<compile_context>
chip_gen: v7x
topology: tpu7x:2x2x1
jax: 0.10.0
libtpu: 0.0.40
codegen_flags: <defaults>
</compile_context>

<pallas_src>
import functools
import math

import jax
import jax.numpy as jnp
from jax import lax
from jax.experimental import pallas as pl
from jax.experimental.pallas import tpu as pltpu


# ----------------------------------------------------------------------------
# In-kernel helpers
# ----------------------------------------------------------------------------
def _layernorm(x, gamma, beta, eps=1e-5):
    x32 = x.astype(jnp.float32)
    mean = jnp.mean(x32, axis=-1, keepdims=True)
    var = jnp.mean(jnp.square(x32 - mean), axis=-1, keepdims=True)
    return (x32 - mean) * lax.rsqrt(var + eps) * gamma.astype(jnp.float32) \
        + beta.astype(jnp.float32)


def _matmul_t(x, w_bf16):
    # x: (M, K) float; w: (N, K) bf16 (PyTorch nn.Linear (out, in) layout).
    # bf16 MXU inputs, f32 accumulation; equivalent to x @ w.T (no transpose).
    return lax.dot_general(x.astype(jnp.bfloat16), w_bf16,
                           (((1,), (1,)), ((), ())),
                           preferred_element_type=jnp.float32)


# ----------------------------------------------------------------------------
# Fused decoder-layer kernel (attention sublayer + feedforward sublayer)
# ----------------------------------------------------------------------------
def _decoder_layer_kernel(num_heads,
                          x_ref,
                          ln1g_ref, ln1b_ref,
                          wq_ref, bq_ref, wk_ref, bk_ref, wv_ref, bv_ref,
                          wo_ref, bo_ref,
                          ln2g_ref, ln2b_ref,
                          w1_ref, bf1_ref, w2_ref, bf2_ref,
                          o_ref,
                          k_scr, v_scr):
    qi = pl.program_id(1)
    S, D = x_ref.shape
    tq = o_ref.shape[0]
    dh = D // num_heads
    scale = jnp.float32(1.0 / math.sqrt(dh))

    # ---- K/V for the whole sequence: computed once per batch entry (qi == 0)
    #      and cached in bf16 VMEM scratch, reused across the query-tile axis.
    @pl.when(qi == 0)
    def _():
        xn_all = _layernorm(x_ref[...], ln1g_ref[...], ln1b_ref[...])   # (S, D) f32
        k = _matmul_t(xn_all, wk_ref[...]) + bk_ref[...]
        v = _matmul_t(xn_all, wv_ref[...]) + bv_ref[...]
        k_scr[...] = k.astype(jnp.bfloat16)
        v_scr[...] = v.astype(jnp.bfloat16)

    # ---- query rows for this tile (sliced from the resident full-S block) ----
    row0 = pl.multiple_of(qi * tq, tq)
    xq = x_ref[pl.ds(row0, tq), :].astype(jnp.float32)                  # (tq, D)
    xqn = _layernorm(xq, ln1g_ref[...], ln1b_ref[...])
    q = _matmul_t(xqn, wq_ref[...]) + bq_ref[...]
    q = (q * scale).astype(jnp.bfloat16)            # scale once, before QK^T

    # Subsequent (causal) mask regenerated in-kernel: keep iff row >= col.
    row = row0 + lax.broadcasted_iota(jnp.int32, (tq, S), 0)
    col = lax.broadcasted_iota(jnp.int32, (tq, S), 1)
    keep = row >= col

    k_all = k_scr[...]                              # (S, D) bf16
    v_all = v_scr[...]
    wo_b = wo_ref[...]                              # (D, D) bf16

    attn = jnp.zeros((tq, D), jnp.float32)
    for h in range(num_heads):                      # static unroll over heads
        lo = h * dh
        qh = q[:, lo:lo + dh]
        kh = k_all[:, lo:lo + dh]
        vh = v_all[:, lo:lo + dh]
        s = lax.dot_general(qh, kh, (((1,), (1,)), ((), ())),
                            preferred_element_type=jnp.float32)         # (tq, S)
        s = jnp.where(keep, s, jnp.float32(-1e30))
        s = s - jnp.max(s, axis=-1, keepdims=True)
        p = jnp.exp(s)
        denom = jnp.sum(p, axis=-1, keepdims=True)                      # (tq, 1)
        pv = lax.dot_general(p.astype(jnp.bfloat16), vh,
                             (((1,), (0,)), ((), ())),
                             preferred_element_type=jnp.float32)        # (tq, dh)
        pv = pv * pl.reciprocal(denom, approx=True)
        # Fold the output projection per head: no concatenate / lane relayout.
        attn = attn + lax.dot_general(pv.astype(jnp.bfloat16),
                                      wo_b[:, lo:lo + dh],
                                      (((1,), (1,)), ((), ())),
                                      preferred_element_type=jnp.float32)

    y = xq + attn + bo_ref[...]                     # attention-sublayer residual

    # ---- fused position-wise FFN sublayer on the same resident rows ----
    yn = _layernorm(y, ln2g_ref[...], ln2b_ref[...])
    h1 = _matmul_t(yn, w1_ref[...]) + bf1_ref[...]                      # (tq, d_ff)
    h1 = jnp.maximum(h1, 0.0)
    out = _matmul_t(h1, w2_ref[...]) + bf2_ref[...]                     # (tq, D)
    o_ref[...] = (y + out).astype(o_ref.dtype)


# ----------------------------------------------------------------------------
# Wrapper
# ----------------------------------------------------------------------------
def decoder_layer_forward(x, mask, params, *, num_heads, q_tile=None):
    """x: (B, S, D) f32.  `mask` is the subsequent (causal) mask of the
    original module; the kernel regenerates it in-kernel via iota (row >= col)
    to avoid the S^2 HBM read + resident VMEM cost, so it is not consumed."""
    # TODO(synk): for arbitrary (non-causal) masks, pass a per-q-tile additive
    # f32 bias input instead of the in-kernel iota mask.
    del mask
    B, S, D = x.shape
    d_ff = params["w1"].shape[0]
    if q_tile is None:
        q_tile = min(256, S)
    assert S % q_tile == 0 and D % num_heads == 0

    # Weights live in bf16 (MXU inputs); biases / LN params stay f32.
    bf = lambda w: w.astype(jnp.bfloat16)
    wq, wk, wv, wo = bf(params["wq"]), bf(params["wk"]), bf(params["wv"]), bf(params["wo"])
    w1, w2 = bf(params["w1"]), bf(params["w2"])

    # Derive a VMEM budget from actual tile sizes (x2 for pipeline buffering)
    # plus K/V scratch, per-head score / FFN-hidden transients, and headroom.
    weight_bytes = 2 * (4 * D * D + 2 * D * d_ff)                 # bf16 weights
    act_bytes = 4 * (S * D + 2 * q_tile * D)                      # f32 x + out tiles
    scratch_bytes = 2 * (2 * S * D)                               # bf16 K/V scratch
    transient_bytes = 4 * (q_tile * S + q_tile * d_ff + S * D)
    vmem_limit = int(min(96 * 1024 * 1024,
                         2 * (weight_bytes + act_bytes)
                         + scratch_bytes + transient_bytes + (32 << 20)))

    const = lambda shape: pl.BlockSpec(shape, lambda b, qi: (0, 0))

    grid_spec = pltpu.PrefetchScalarGridSpec(
        num_scalar_prefetch=0,
        grid=(B, S // q_tile),
        in_specs=[
            # Full-S activation block, resident per batch entry (re-DMA'd only
            # when the batch index changes); query rows are sliced in-kernel.
            pl.BlockSpec((None, S, D), lambda b, qi: (b, 0, 0)),
            const((1, D)), const((1, D)),            # ln1 gamma / beta
            const((D, D)), const((1, D)),            # Wq (out,in), bq
            const((D, D)), const((1, D)),            # Wk, bk
            const((D, D)), const((1, D)),            # Wv, bv
            const((D, D)), const((1, D)),            # Wo, bo
            const((1, D)), const((1, D)),            # ln2 gamma / beta
            const((d_ff, D)), const((1, d_ff)),      # W1 (out,in), b1
            const((D, d_ff)), const((1, D)),         # W2 (out,in), b2
        ],
        out_specs=pl.BlockSpec((None, q_tile, D), lambda b, qi: (b, qi, 0)),
        scratch_shapes=[pltpu.VMEM((S, D), jnp.bfloat16),   # K cache
                        pltpu.VMEM((S, D), jnp.bfloat16)],  # V cache
    )

    return pl.pallas_call(
        functools.partial(_decoder_layer_kernel, num_heads),
        out_shape=jax.ShapeDtypeStruct((B, S, D), x.dtype),
        grid_spec=grid_spec,
        compiler_params=pltpu.CompilerParams(
            dimension_semantics=("parallel", "arbitrary"),
            vmem_limit_bytes=vmem_limit),
    )(x,
      params["ln1_g"], params["ln1_b"],
      wq, params["bq"], wk, params["bk"], wv, params["bv"],
      wo, params["bo"],
      params["ln2_g"], params["ln2_b"],
      w1, params["b1"], w2, params["b2"])


# ----------------------------------------------------------------------------
# Pure-JAX f32 reference (same math, for correctness check)
# ----------------------------------------------------------------------------
def reference_forward(x, mask, params, *, num_heads):
    B, S, D = x.shape
    dh = D // num_heads

    def ln(v, g, b, eps=1e-5):
        m = v.mean(-1, keepdims=True)
        var = ((v - m) ** 2).mean(-1, keepdims=True)
        return (v - m) * lax.rsqrt(var + eps) * g + b

    keep = (mask != 0)[None, None]                  # (1,1,S,S)

    xn = ln(x, params["ln1_g"], params["ln1_b"])
    q = xn @ params["wq"].T + params["bq"]
    k = xn @ params["wk"].T + params["bk"]
    v = xn @ params["wv"].T + params["bv"]
    q = q.reshape(B, S, num_heads, dh).transpose(0, 2, 1, 3)
    k = k.reshape(B, S, num_heads, dh).transpose(0, 2, 1, 3)
    v = v.reshape(B, S, num_heads, dh).transpose(0, 2, 1, 3)
    s = jnp.einsum("bhqd,bhkd->bhqk", q, k) / jnp.sqrt(jnp.float32(dh))
    s = jnp.where(keep, s, -1e30)
    p = jax.nn.softmax(s, axis=-1)
    a = jnp.einsum("bhqk,bhkd->bhqd", p, v)
    a = a.transpose(0, 2, 1, 3).reshape(B, S, D)
    x = x + (a @ params["wo"].T + params["bo"])

    xn2 = ln(x, params["ln2_g"], params["ln2_b"])
    h = jax.nn.relu(xn2 @ params["w1"].T + params["b1"])
    x = x + (h @ params["w2"].T + params["b2"])
    return x


# ----------------------------------------------------------------------------
if __name__ == "__main__":
    # Small, lane-dense shapes consistent with the decoder; S/q_tile = 2 so the
    # query-tile grid axis and the K/V-scratch reuse path are both exercised.
    B, S, D = 2, 256, 128
    H, d_ff = 4, 512

    key = jax.random.PRNGKey(0)
    keys = jax.random.split(key, 17)

    def w(k, shape, scale=0.02):
        return scale * jax.random.normal(k, shape, dtype=jnp.float32)

    params = dict(
        ln1_g=1.0 + w(keys[0], (1, D), 0.1), ln1_b=w(keys[1], (1, D), 0.1),
        wq=w(keys[2], (D, D)), bq=w(keys[3], (1, D)),
        wk=w(keys[4], (D, D)), bk=w(keys[5], (1, D)),
        wv=w(keys[6], (D, D)), bv=w(keys[7], (1, D)),
        wo=w(keys[8], (D, D)), bo=w(keys[9], (1, D)),
        ln2_g=1.0 + w(keys[10], (1, D), 0.1), ln2_b=w(keys[11], (1, D), 0.1),
        w1=w(keys[12], (d_ff, D)), b1=w(keys[13], (1, d_ff)),
        w2=w(keys[14], (D, d_ff)), b2=w(keys[15], (1, D)),
    )

    x = jax.random.normal(keys[16], (B, S, D), dtype=jnp.float32)
    mask = jnp.tril(jnp.ones((S, S), jnp.int32))    # subsequent (causal) mask

    y = decoder_layer_forward(x, mask, params, num_heads=H, q_tile=128)
    y = jax.block_until_ready(y)

    with jax.default_matmul_precision("float32"):
        y_ref = reference_forward(x, mask, params, num_heads=H)
        y_ref = jax.block_until_ready(y_ref)

    assert y.shape == (B, S, D)
    max_err = float(jnp.max(jnp.abs(y - y_ref)))
    # Tolerance loosened vs. the f32 reference to cover bf16 MXU inputs.
    assert jnp.allclose(y, y_ref, atol=2e-2, rtol=2e-2), f"max_err={max_err}"

    print("KERNEL_OK")
</pallas_src>

<mosaic_0001>
module attributes {stable_mosaic.version = 11 : i64} {
  func.func @_decoder_layer_kernel(%arg0: i32, %arg1: i32, %arg2: memref<1x256x128xf32, #tpu.memory_space<vmem>>, %arg3: memref<1x128xf32, #tpu.memory_space<vmem>>, %arg4: memref<1x128xf32, #tpu.memory_space<vmem>>, %arg5: memref<128x128xbf16, #tpu.memory_space<vmem>>, %arg6: memref<1x128xf32, #tpu.memory_space<vmem>>, %arg7: memref<128x128xbf16, #tpu.memory_space<vmem>>, %arg8: memref<1x128xf32, #tpu.memory_space<vmem>>, %arg9: memref<128x128xbf16, #tpu.memory_space<vmem>>, %arg10: memref<1x128xf32, #tpu.memory_space<vmem>>, %arg11: memref<128x128xbf16, #tpu.memory_space<vmem>>, %arg12: memref<1x128xf32, #tpu.memory_space<vmem>>, %arg13: memref<1x128xf32, #tpu.memory_space<vmem>>, %arg14: memref<1x128xf32, #tpu.memory_space<vmem>>, %arg15: memref<512x128xbf16, #tpu.memory_space<vmem>>, %arg16: memref<1x512xf32, #tpu.memory_space<vmem>>, %arg17: memref<128x512xbf16, #tpu.memory_space<vmem>>, %arg18: memref<1x128xf32, #tpu.memory_space<vmem>>, %arg19: memref<1x128x128xf32, #tpu.memory_space<vmem>>, %arg20: memref<256x128xbf16, #tpu.memory_space<vmem>>, %arg21: memref<256x128xbf16, #tpu.memory_space<vmem>>) attributes {dimension_semantics = [#tpu.dimension_semantics<parallel>, #tpu.dimension_semantics<arbitrary>], iteration_bounds = array<i64: 2, 2>, scalar_prefetch = 0 : i64, scratch_operands = 2 : i64, tpu.core_type = #tpu.core_type<tc>, window_params = [{transform_indices = @transform_0, window_bounds = array<i64: 1, 256, 128>}, {pipeline_mode = #tpu.pipeline_mode<synchronous>, transform_indices = @transform_1, window_bounds = array<i64: 1, 128>}, {pipeline_mode = #tpu.pipeline_mode<synchronous>, transform_indices = @transform_2, window_bounds = array<i64: 1, 128>}, {pipeline_mode = #tpu.pipeline_mode<synchronous>, transform_indices = @transform_3, window_bounds = array<i64: 128, 128>}, {pipeline_mode = #tpu.pipeline_mode<synchronous>, transform_indices = @transform_4, window_bounds = array<i64: 1, 128>}, {pipeline_mode = #tpu.pipeline_mode<synchronous>, transform_indices = @transform_5, window_bounds = array<i64: 128, 128>}, {pipeline_mode = #tpu.pipeline_mode<synchronous>, transform_indices = @transform_6, window_bounds = array<i64: 1, 128>}, {pipeline_mode = #tpu.pipeline_mode<synchronous>, transform_indices = @transform_7, window_bounds = array<i64: 128, 128>}, {pipeline_mode = #tpu.pipeline_mode<synchronous>, transform_indices = @transform_8, window_bounds = array<i64: 1, 128>}, {pipeline_mode = #tpu.pipeline_mode<synchronous>, transform_indices = @transform_9, window_bounds = array<i64: 128, 128>}, {pipeline_mode = #tpu.pipeline_mode<synchronous>, transform_indices = @transform_10, window_bounds = array<i64: 1, 128>}, {pipeline_mode = #tpu.pipeline_mode<synchronous>, transform_indices = @transform_11, window_bounds = array<i64: 1, 128>}, {pipeline_mode = #tpu.pipeline_mode<synchronous>, transform_indices = @transform_12, window_bounds = array<i64: 1, 128>}, {pipeline_mode = #tpu.pipeline_mode<synchronous>, transform_indices = @transform_13, window_bounds = array<i64: 512, 128>}, {pipeline_mode = #tpu.pipeline_mode<synchronous>, transform_indices = @transform_14, window_bounds = array<i64: 1, 512>}, {pipeline_mode = #tpu.pipeline_mode<synchronous>, transform_indices = @transform_15, window_bounds = array<i64: 128, 512>}, {pipeline_mode = #tpu.pipeline_mode<synchronous>, transform_indices = @transform_16, window_bounds = array<i64: 1, 128>}, {transform_indices = @transform_17, window_bounds = array<i64: 1, 128, 128>}]} {
    %c0_i32 = arith.constant 0 : i32
    %0 = arith.cmpi eq, %arg1, %c0_i32 : i32
    %1 = arith.extui %0 : i1 to i32
    %c0_i32_0 = arith.constant 0 : i32
    %2 = arith.cmpi ne, %1, %c0_i32_0 : i32
    scf.if %2 {
      %c0_72 = arith.constant 0 : index
      %c0_73 = arith.constant 0 : index
      %c0_74 = arith.constant 0 : index
      %184 = vector.load %arg2[%c0_72, %c0_73, %c0_74] : memref<1x256x128xf32, #tpu.memory_space<vmem>>, vector<1x256x128xf32>
      %185 = vector.shape_cast %184 : vector<1x256x128xf32> to vector<256x128xf32>
      %c0_75 = arith.constant 0 : index
      %c0_76 = arith.constant 0 : index
      %186 = vector.load %arg3[%c0_75, %c0_76] : memref<1x128xf32, #tpu.memory_space<vmem>>, vector<1x128xf32>
      %c0_77 = arith.constant 0 : index
      %c0_78 = arith.constant 0 : index
      %187 = vector.load %arg4[%c0_77, %c0_78] : memref<1x128xf32, #tpu.memory_space<vmem>>, vector<1x128xf32>
      %cst_79 = arith.constant dense<0.000000e+00> : vector<256xf32>
      %188 = vector.multi_reduction <add>, %185, %cst_79 [1] : vector<256x128xf32> to vector<256xf32>
      %189 = vector.shape_cast %188 : vector<256xf32> to vector<256x1xf32>
      %cst_80 = arith.constant 1.280000e+02 : f32
      %190 = vector.broadcast %cst_80 : f32 to vector<256x1xf32>
      %191 = arith.divf %189, %190 : vector<256x1xf32>
      %192 = vector.broadcast %191 : vector<256x1xf32> to vector<256x128xf32>
      %193 = arith.subf %185, %192 : vector<256x128xf32>
      %194 = arith.mulf %193, %193 : vector<256x128xf32>
      %cst_81 = arith.constant dense<0.000000e+00> : vector<256xf32>
      %195 = vector.multi_reduction <add>, %194, %cst_81 [1] : vector<256x128xf32> to vector<256xf32>
      %196 = vector.shape_cast %195 : vector<256xf32> to vector<256x1xf32>
      %cst_82 = arith.constant 1.280000e+02 : f32
      %197 = vector.broadcast %cst_82 : f32 to vector<256x1xf32>
      %198 = arith.divf %196, %197 : vector<256x1xf32>
      %199 = vector.broadcast %191 : vector<256x1xf32> to vector<256x128xf32>
      %200 = arith.subf %185, %199 : vector<256x128xf32>
      %cst_83 = arith.constant 9.99999974E-6 : f32
      %201 = vector.broadcast %cst_83 : f32 to vector<256x1xf32>
      %202 = arith.addf %198, %201 : vector<256x1xf32>
      %203 = math.rsqrt %202 : vector<256x1xf32>
      %204 = vector.broadcast %203 : vector<256x1xf32> to vector<256x128xf32>
      %205 = arith.mulf %200, %204 : vector<256x128xf32>
      %206 = vector.broadcast %186 : vector<1x128xf32> to vector<256x128xf32>
      %207 = arith.mulf %205, %206 : vector<256x128xf32>
      %208 = vector.broadcast %187 : vector<1x128xf32> to vector<256x128xf32>
      %209 = arith.addf %207, %208 : vector<256x128xf32>
      %c0_84 = arith.constant 0 : index
      %c0_85 = arith.constant 0 : index
      %210 = vector.load %arg7[%c0_84, %c0_85] : memref<128x128xbf16, #tpu.memory_space<vmem>>, vector<128x128xbf16>
      %211 = arith.truncf %209 : vector<256x128xf32> to vector<256x128xbf16>
      %cst_86 = arith.constant dense<0.000000e+00> : vector<256x128xf32>
      %212 = tpu.matmul %211, %210, %cst_86 {dimension_numbers = #tpu.dot_dimension_numbers<[1], [1], [0], [0], [0, 0, 1, 0], [], []>} : vector<256x128xbf16>, vector<128x128xbf16>, vector<256x128xf32> -> vector<256x128xf32>
      %c0_87 = arith.constant 0 : index
      %c0_88 = arith.constant 0 : index
      %213 = vector.load %arg8[%c0_87, %c0_88] : memref<1x128xf32, #tpu.memory_space<vmem>>, vector<1x128xf32>
      %214 = vector.broadcast %213 : vector<1x128xf32> to vector<256x128xf32>
      %215 = arith.addf %212, %214 : vector<256x128xf32>
      %c0_89 = arith.constant 0 : index
      %c0_90 = arith.constant 0 : index
      %216 = vector.load %arg9[%c0_89, %c0_90] : memref<128x128xbf16, #tpu.memory_space<vmem>>, vector<128x128xbf16>
      %217 = arith.truncf %209 : vector<256x128xf32> to vector<256x128xbf16>
      %cst_91 = arith.constant dense<0.000000e+00> : vector<256x128xf32>
      %218 = tpu.matmul %217, %216, %cst_91 {dimension_numbers = #tpu.dot_dimension_numbers<[1], [1], [0], [0], [0, 0, 1, 0], [], []>} : vector<256x128xbf16>, vector<128x128xbf16>, vector<256x128xf32> -> vector<256x128xf32>
      %c0_92 = arith.constant 0 : index
      %c0_93 = arith.constant 0 : index
      %219 = vector.load %arg10[%c0_92, %c0_93] : memref<1x128xf32, #tpu.memory_space<vmem>>, vector<1x128xf32>
      %220 = vector.broadcast %219 : vector<1x128xf32> to vector<256x128xf32>
      %221 = arith.addf %218, %220 : vector<256x128xf32>
      %222 = arith.truncf %215 : vector<256x128xf32> to vector<256x128xbf16>
      %c0_94 = arith.constant 0 : index
      %c0_95 = arith.constant 0 : index
      %223 = vector.load %arg20[%c0_94, %c0_95] : memref<256x128xbf16, #tpu.memory_space<vmem>>, vector<256x128xbf16>
      tpu.vector_store %arg20[%c0_94, %c0_95], %222 {strides = array<i32>} : memref<256x128xbf16, #tpu.memory_space<vmem>>, vector<256x128xbf16>,
      %224 = arith.truncf %221 : vector<256x128xf32> to vector<256x128xbf16>
      %c0_96 = arith.constant 0 : index
      %c0_97 = arith.constant 0 : index
      %225 = vector.load %arg21[%c0_96, %c0_97] : memref<256x128xbf16, #tpu.memory_space<vmem>>, vector<256x128xbf16>
      tpu.vector_store %arg21[%c0_96, %c0_97], %224 {strides = array<i32>} : memref<256x128xbf16, #tpu.memory_space<vmem>>, vector<256x128xbf16>,
    } else {
    }
    %c128_i32 = arith.constant 128 : i32
    %3 = arith.muli %arg1, %c128_i32 : i32
    %4 = tpu.assume_multiple %3, 128 : i32
    %c0 = arith.constant 0 : index
    %5 = arith.index_cast %4 : i32 to index
    %c0_1 = arith.constant 0 : index
    %6 = vector.load %arg2[%c0, %5, %c0_1] : memref<1x256x128xf32, #tpu.memory_space<vmem>>, vector<1x128x128xf32>
    %7 = vector.shape_cast %6 : vector<1x128x128xf32> to vector<128x128xf32>
    %c0_2 = arith.constant 0 : index
    %c0_3 = arith.constant 0 : index
    %8 = vector.load %arg3[%c0_2, %c0_3] : memref<1x128xf32, #tpu.memory_space<vmem>>, vector<1x128xf32>
    %c0_4 = arith.constant 0 : index
    %c0_5 = arith.constant 0 : index
    %9 = vector.load %arg4[%c0_4, %c0_5] : memref<1x128xf32, #tpu.memory_space<vmem>>, vector<1x128xf32>
    %cst = arith.constant dense<0.000000e+00> : vector<128xf32>
    %10 = vector.multi_reduction <add>, %7, %cst [1] : vector<128x128xf32> to vector<128xf32>
    %11 = vector.shape_cast %10 : vector<128xf32> to vector<128x1xf32>
    %cst_6 = arith.constant 1.280000e+02 : f32
    %12 = vector.broadcast %cst_6 : f32 to vector<128x1xf32>
    %13 = arith.divf %11, %12 : vector<128x1xf32>
    %14 = vector.broadcast %13 : vector<128x1xf32> to vector<128x128xf32>
    %15 = arith.subf %7, %14 : vector<128x128xf32>
    %16 = arith.mulf %15, %15 : vector<128x128xf32>
    %cst_7 = arith.constant dense<0.000000e+00> : vector<128xf32>
    %17 = vector.multi_reduction <add>, %16, %cst_7 [1] : vector<128x128xf32> to vector<128xf32>
    %18 = vector.shape_cast %17 : vector<128xf32> to vector<128x1xf32>
    %cst_8 = arith.constant 1.280000e+02 : f32
    %19 = vector.broadcast %cst_8 : f32 to vector<128x1xf32>
    %20 = arith.divf %18, %19 : vector<128x1xf32>
    %21 = vector.broadcast %13 : vector<128x1xf32> to vector<128x128xf32>
    %22 = arith.subf %7, %21 : vector<128x128xf32>
    %cst_9 = arith.constant 9.99999974E-6 : f32
    %23 = vector.broadcast %cst_9 : f32 to vector<128x1xf32>
    %24 = arith.addf %20, %23 : vector<128x1xf32>
    %25 = math.rsqrt %24 : vector<128x1xf32>
    %26 = vector.broadcast %25 : vector<128x1xf32> to vector<128x128xf32>
    %27 = arith.mulf %22, %26 : vector<128x128xf32>
    %28 = vector.broadcast %8 : vector<1x128xf32> to vector<128x128xf32>
    %29 = arith.mulf %27, %28 : vector<128x128xf32>
    %30 = vector.broadcast %9 : vector<1x128xf32> to vector<128x128xf32>
    %31 = arith.addf %29, %30 : vector<128x128xf32>
    %c0_10 = arith.constant 0 : index
    %c0_11 = arith.constant 0 : index
    %32 = vector.load %arg5[%c0_10, %c0_11] : memref<128x128xbf16, #tpu.memory_space<vmem>>, vector<128x128xbf16>
    %33 = arith.truncf %31 : vector<128x128xf32> to vector<128x128xbf16>
    %cst_12 = arith.constant dense<0.000000e+00> : vector<128x128xf32>
    %34 = tpu.matmul %33, %32, %cst_12 {dimension_numbers = #tpu.dot_dimension_numbers<[1], [1], [0], [0], [0, 0, 1, 0], [], []>} : vector<128x128xbf16>, vector<128x128xbf16>, vector<128x128xf32> -> vector<128x128xf32>
    %c0_13 = arith.constant 0 : index
    %c0_14 = arith.constant 0 : index
    %35 = vector.load %arg6[%c0_13, %c0_14] : memref<1x128xf32, #tpu.memory_space<vmem>>, vector<1x128xf32>
    %36 = vector.broadcast %35 : vector<1x128xf32> to vector<128x128xf32>
    %37 = arith.addf %34, %36 : vector<128x128xf32>
    %cst_15 = arith.constant 0.176776692 : f32
    %38 = vector.broadcast %cst_15 : f32 to vector<128x128xf32>
    %39 = arith.mulf %37, %38 : vector<128x128xf32>
    %40 = arith.truncf %39 : vector<128x128xf32> to vector<128x128xbf16>
    %41 = tpu.iota {dimensions = array<i32: 0>} : vector<128x256xi32>
    %42 = vector.broadcast %4 : i32 to vector<128x256xi32>
    %43 = arith.addi %42, %41 : vector<128x256xi32>
    %44 = tpu.iota {dimensions = array<i32: 1>} : vector<128x256xi32>
    %45 = arith.cmpi sge, %43, %44 : vector<128x256xi32>
    %c0_16 = arith.constant 0 : index
    %c0_17 = arith.constant 0 : index
    %46 = vector.load %arg20[%c0_16, %c0_17] : memref<256x128xbf16, #tpu.memory_space<vmem>>, vector<256x128xbf16>
    %c0_18 = arith.constant 0 : index
    %c0_19 = arith.constant 0 : index
    %47 = vector.load %arg21[%c0_18, %c0_19] : memref<256x128xbf16, #tpu.memory_space<vmem>>, vector<256x128xbf16>
    %c0_20 = arith.constant 0 : index
    %c0_21 = arith.constant 0 : index
    %48 = vector.load %arg11[%c0_20, %c0_21] : memref<128x128xbf16, #tpu.memory_space<vmem>>, vector<128x128xbf16>
    %cst_22 = arith.constant 0.000000e+00 : f32
    %49 = vector.broadcast %cst_22 : f32 to vector<128x128xf32>
    %50 = vector.extract_strided_slice %40 {offsets = [0, 0], sizes = [128, 32], strides = [1, 1]} : vector<128x128xbf16> to vector<128x32xbf16>
    %51 = vector.extract_strided_slice %46 {offsets = [0, 0], sizes = [256, 32], strides = [1, 1]} : vector<256x128xbf16> to vector<256x32xbf16>
    %52 = vector.extract_strided_slice %47 {offsets = [0, 0], sizes = [256, 32], strides = [1, 1]} : vector<256x128xbf16> to vector<256x32xbf16>
    %cst_23 = arith.constant dense<0.000000e+00> : vector<128x256xf32>
    %53 = tpu.matmul %50, %51, %cst_23 {dimension_numbers = #tpu.dot_dimension_numbers<[1], [1], [0], [0], [0, 0, 1, 0], [], []>} : vector<128x32xbf16>, vector<256x32xbf16>, vector<128x256xf32> -> vector<128x256xf32>
    %cst_24 = arith.constant -1.000000e+30 : f32
    %54 = vector.broadcast %cst_24 : f32 to vector<128x256xf32>
    %55 = arith.select %45, %53, %54 : vector<128x256xi1>, vector<128x256xf32>
    %cst_25 = arith.constant dense<0xFF800000> : vector<128xf32>
    %56 = vector.multi_reduction <maximumf>, %55, %cst_25 [1] : vector<128x256xf32> to vector<128xf32>
    %57 = vector.shape_cast %56 : vector<128xf32> to vector<128x1xf32>
    %58 = vector.broadcast %57 : vector<128x1xf32> to vector<128x256xf32>
    %59 = arith.subf %55, %58 : vector<128x256xf32>
    %60 = math.exp %59 : vector<128x256xf32>
    %cst_26 = arith.constant dense<0.000000e+00> : vector<128xf32>
    %61 = vector.multi_reduction <add>, %60, %cst_26 [1] : vector<128x256xf32> to vector<128xf32>
    %62 = vector.shape_cast %61 : vector<128xf32> to vector<128x1xf32>
    %63 = arith.truncf %60 : vector<128x256xf32> to vector<128x256xbf16>
    %cst_27 = arith.constant dense<0.000000e+00> : vector<128x32xf32>
    %64 = tpu.matmul %63, %52, %cst_27 {dimension_numbers = #tpu.dot_dimension_numbers<[1], [0], [0], [1], [0, 0, 1, 1], [], []>} : vector<128x256xbf16>, vector<256x32xbf16>, vector<128x32xf32> -> vector<128x32xf32>
    %65 = tpu.reciprocal %62 {approx = true} : vector<128x1xf32> -> vector<128x1xf32>
    %66 = vector.broadcast %65 : vector<128x1xf32> to vector<128x32xf32>
    %67 = arith.mulf %64, %66 : vector<128x32xf32>
    %68 = arith.truncf %67 : vector<128x32xf32> to vector<128x32xbf16>
    %69 = vector.extract_strided_slice %48 {offsets = [0, 0], sizes = [128, 32], strides = [1, 1]} : vector<128x128xbf16> to vector<128x32xbf16>
    %cst_28 = arith.constant dense<0.000000e+00> : vector<128x128xf32>
    %70 = tpu.matmul %68, %69, %cst_28 {dimension_numbers = #tpu.dot_dimension_numbers<[1], [1], [0], [0], [0, 0, 1, 0], [], []>} : vector<128x32xbf16>, vector<128x32xbf16>, vector<128x128xf32> -> vector<128x128xf32>
    %71 = arith.addf %49, %70 : vector<128x128xf32>
    %72 = vector.extract_strided_slice %40 {offsets = [0, 32], sizes = [128, 32], strides = [1, 1]} : vector<128x128xbf16> to vector<128x32xbf16>
    %73 = vector.extract_strided_slice %46 {offsets = [0, 32], sizes = [256, 32], strides = [1, 1]} : vector<256x128xbf16> to vector<256x32xbf16>
    %74 = vector.extract_strided_slice %47 {offsets = [0, 32], sizes = [256, 32], strides = [1, 1]} : vector<256x128xbf16> to vector<256x32xbf16>
    %cst_29 = arith.constant dense<0.000000e+00> : vector<128x256xf32>
    %75 = tpu.matmul %72, %73, %cst_29 {dimension_numbers = #tpu.dot_dimension_numbers<[1], [1], [0], [0], [0, 0, 1, 0], [], []>} : vector<128x32xbf16>, vector<256x32xbf16>, vector<128x256xf32> -> vector<128x256xf32>
    %cst_30 = arith.constant -1.000000e+30 : f32
    %76 = vector.broadcast %cst_30 : f32 to vector<128x256xf32>
    %77 = arith.select %45, %75, %76 : vector<128x256xi1>, vector<128x256xf32>
    %cst_31 = arith.constant dense<0xFF800000> : vector<128xf32>
    %78 = vector.multi_reduction <maximumf>, %77, %cst_31 [1] : vector<128x256xf32> to vector<128xf32>
    %79 = vector.shape_cast %78 : vector<128xf32> to vector<128x1xf32>
    %80 = vector.broadcast %79 : vector<128x1xf32> to vector<128x256xf32>
    %81 = arith.subf %77, %80 : vector<128x256xf32>
    %82 = math.exp %81 : vector<128x256xf32>
    %cst_32 = arith.constant dense<0.000000e+00> : vector<128xf32>
    %83 = vector.multi_reduction <add>, %82, %cst_32 [1] : vector<128x256xf32> to vector<128xf32>
    %84 = vector.shape_cast %83 : vector<128xf32> to vector<128x1xf32>
    %85 = arith.truncf %82 : vector<128x256xf32> to vector<128x256xbf16>
    %cst_33 = arith.constant dense<0.000000e+00> : vector<128x32xf32>
    %86 = tpu.matmul %85, %74, %cst_33 {dimension_numbers = #tpu.dot_dimension_numbers<[1], [0], [0], [1], [0, 0, 1, 1], [], []>} : vector<128x256xbf16>, vector<256x32xbf16>, vector<128x32xf32> -> vector<128x32xf32>
    %87 = tpu.reciprocal %84 {approx = true} : vector<128x1xf32> -> vector<128x1xf32>
    %88 = vector.broadcast %87 : vector<128x1xf32> to vector<128x32xf32>
    %89 = arith.mulf %86, %88 : vector<128x32xf32>
    %90 = arith.truncf %89 : vector<128x32xf32> to vector<128x32xbf16>
    %91 = vector.extract_strided_slice %48 {offsets = [0, 32], sizes = [128, 32], strides = [1, 1]} : vector<128x128xbf16> to vector<128x32xbf16>
    %cst_34 = arith.constant dense<0.000000e+00> : vector<128x128xf32>
    %92 = tpu.matmul %90, %91, %cst_34 {dimension_numbers = #tpu.dot_dimension_numbers<[1], [1], [0], [0], [0, 0, 1, 0], [], []>} : vector<128x32xbf16>, vector<128x32xbf16>, vector<128x128xf32> -> vector<128x128xf32>
    %93 = arith.addf %71, %92 : vector<128x128xf32>
    %94 = vector.extract_strided_slice %40 {offsets = [0, 64], sizes = [128, 32], strides = [1, 1]} : vector<128x128xbf16> to vector<128x32xbf16>
    %95 = vector.extract_strided_slice %46 {offsets = [0, 64], sizes = [256, 32], strides = [1, 1]} : vector<256x128xbf16> to vector<256x32xbf16>
    %96 = vector.extract_strided_slice %47 {offsets = [0, 64], sizes = [256, 32], strides = [1, 1]} : vector<256x128xbf16> to vector<256x32xbf16>
    %cst_35 = arith.constant dense<0.000000e+00> : vector<128x256xf32>
    %97 = tpu.matmul %94, %95, %cst_35 {dimension_numbers = #tpu.dot_dimension_numbers<[1], [1], [0], [0], [0, 0, 1, 0], [], []>} : vector<128x32xbf16>, vector<256x32xbf16>, vector<128x256xf32> -> vector<128x256xf32>
    %cst_36 = arith.constant -1.000000e+30 : f32
    %98 = vector.broadcast %cst_36 : f32 to vector<128x256xf32>
    %99 = arith.select %45, %97, %98 : vector<128x256xi1>, vector<128x256xf32>
    %cst_37 = arith.constant dense<0xFF800000> : vector<128xf32>
    %100 = vector.multi_reduction <maximumf>, %99, %cst_37 [1] : vector<128x256xf32> to vector<128xf32>
    %101 = vector.shape_cast %100 : vector<128xf32> to vector<128x1xf32>
    %102 = vector.broadcast %101 : vector<128x1xf32> to vector<128x256xf32>
    %103 = arith.subf %99, %102 : vector<128x256xf32>
    %104 = math.exp %103 : vector<128x256xf32>
    %cst_38 = arith.constant dense<0.000000e+00> : vector<128xf32>
    %105 = vector.multi_reduction <add>, %104, %cst_38 [1] : vector<128x256xf32> to vector<128xf32>
    %106 = vector.shape_cast %105 : vector<128xf32> to vector<128x1xf32>
    %107 = arith.truncf %104 : vector<128x256xf32> to vector<128x256xbf16>
    %cst_39 = arith.constant dense<0.000000e+00> : vector<128x32xf32>
    %108 = tpu.matmul %107, %96, %cst_39 {dimension_numbers = #tpu.dot_dimension_numbers<[1], [0], [0], [1], [0, 0, 1, 1], [], []>} : vector<128x256xbf16>, vector<256x32xbf16>, vector<128x32xf32> -> vector<128x32xf32>
    %109 = tpu.reciprocal %106 {approx = true} : vector<128x1xf32> -> vector<128x1xf32>
    %110 = vector.broadcast %109 : vector<128x1xf32> to vector<128x32xf32>
    %111 = arith.mulf %108, %110 : vector<128x32xf32>
    %112 = arith.truncf %111 : vector<128x32xf32> to vector<128x32xbf16>
    %113 = vector.extract_strided_slice %48 {offsets = [0, 64], sizes = [128, 32], strides = [1, 1]} : vector<128x128xbf16> to vector<128x32xbf16>
    %cst_40 = arith.constant dense<0.000000e+00> : vector<128x128xf32>
    %114 = tpu.matmul %112, %113, %cst_40 {dimension_numbers = #tpu.dot_dimension_numbers<[1], [1], [0], [0], [0, 0, 1, 0], [], []>} : vector<128x32xbf16>, vector<128x32xbf16>, vector<128x128xf32> -> vector<128x128xf32>
    %115 = arith.addf %93, %114 : vector<128x128xf32>
    %116 = vector.extract_strided_slice %40 {offsets = [0, 96], sizes = [128, 32], strides = [1, 1]} : vector<128x128xbf16> to vector<128x32xbf16>
    %117 = vector.extract_strided_slice %46 {offsets = [0, 96], sizes = [256, 32], strides = [1, 1]} : vector<256x128xbf16> to vector<256x32xbf16>
    %118 = vector.extract_strided_slice %47 {offsets = [0, 96], sizes = [256, 32], strides = [1, 1]} : vector<256x128xbf16> to vector<256x32xbf16>
    %cst_41 = arith.constant dense<0.000000e+00> : vector<128x256xf32>
    %119 = tpu.matmul %116, %117, %cst_41 {dimension_numbers = #tpu.dot_dimension_numbers<[1], [1], [0], [0], [0, 0, 1, 0], [], []>} : vector<128x32xbf16>, vector<256x32xbf16>, vector<128x256xf32> -> vector<128x256xf32>
    %cst_42 = arith.constant -1.000000e+30 : f32
    %120 = vector.broadcast %cst_42 : f32 to vector<128x256xf32>
    %121 = arith.select %45, %119, %120 : vector<128x256xi1>, vector<128x256xf32>
    %cst_43 = arith.constant dense<0xFF800000> : vector<128xf32>
    %122 = vector.multi_reduction <maximumf>, %121, %cst_43 [1] : vector<128x256xf32> to vector<128xf32>
    %123 = vector.shape_cast %122 : vector<128xf32> to vector<128x1xf32>
    %124 = vector.broadcast %123 : vector<128x1xf32> to vector<128x256xf32>
    %125 = arith.subf %121, %124 : vector<128x256xf32>
    %126 = math.exp %125 : vector<128x256xf32>
    %cst_44 = arith.constant dense<0.000000e+00> : vector<128xf32>
    %127 = vector.multi_reduction <add>, %126, %cst_44 [1] : vector<128x256xf32> to vector<128xf32>
    %128 = vector.shape_cast %127 : vector<128xf32> to vector<128x1xf32>
    %129 = arith.truncf %126 : vector<128x256xf32> to vector<128x256xbf16>
    %cst_45 = arith.constant dense<0.000000e+00> : vector<128x32xf32>
    %130 = tpu.matmul %129, %118, %cst_45 {dimension_numbers = #tpu.dot_dimension_numbers<[1], [0], [0], [1], [0, 0, 1, 1], [], []>} : vector<128x256xbf16>, vector<256x32xbf16>, vector<128x32xf32> -> vector<128x32xf32>
    %131 = tpu.reciprocal %128 {approx = true} : vector<128x1xf32> -> vector<128x1xf32>
    %132 = vector.broadcast %131 : vector<128x1xf32> to vector<128x32xf32>
    %133 = arith.mulf %130, %132 : vector<128x32xf32>
    %134 = arith.truncf %133 : vector<128x32xf32> to vector<128x32xbf16>
    %135 = vector.extract_strided_slice %48 {offsets = [0, 96], sizes = [128, 32], strides = [1, 1]} : vector<128x128xbf16> to vector<128x32xbf16>
    %cst_46 = arith.constant dense<0.000000e+00> : vector<128x128xf32>
    %136 = tpu.matmul %134, %135, %cst_46 {dimension_numbers = #tpu.dot_dimension_numbers<[1], [1], [0], [0], [0, 0, 1, 0], [], []>} : vector<128x32xbf16>, vector<128x32xbf16>, vector<128x128xf32> -> vector<128x128xf32>
    %137 = arith.addf %115, %136 : vector<128x128xf32>
    %138 = arith.addf %7, %137 : vector<128x128xf32>
    %c0_47 = arith.constant 0 : index
    %c0_48 = arith.constant 0 : index
    %139 = vector.load %arg12[%c0_47, %c0_48] : memref<1x128xf32, #tpu.memory_space<vmem>>, vector<1x128xf32>
    %140 = vector.broadcast %139 : vector<1x128xf32> to vector<128x128xf32>
    %141 = arith.addf %138, %140 : vector<128x128xf32>
    %c0_49 = arith.constant 0 : index
    %c0_50 = arith.constant 0 : index
    %142 = vector.load %arg13[%c0_49, %c0_50] : memref<1x128xf32, #tpu.memory_space<vmem>>, vector<1x128xf32>
    %c0_51 = arith.constant 0 : index
    %c0_52 = arith.constant 0 : index
    %143 = vector.load %arg14[%c0_51, %c0_52] : memref<1x128xf32, #tpu.memory_space<vmem>>, vector<1x128xf32>
    %cst_53 = arith.constant dense<0.000000e+00> : vector<128xf32>
    %144 = vector.multi_reduction <add>, %141, %cst_53 [1] : vector<128x128xf32> to vector<128xf32>
    %145 = vector.shape_cast %144 : vector<128xf32> to vector<128x1xf32>
    %cst_54 = arith.constant 1.280000e+02 : f32
    %146 = vector.broadcast %cst_54 : f32 to vector<128x1xf32>
    %147 = arith.divf %145, %146 : vector<128x1xf32>
    %148 = vector.broadcast %147 : vector<128x1xf32> to vector<128x128xf32>
    %149 = arith.subf %141, %148 : vector<128x128xf32>
    %150 = arith.mulf %149, %149 : vector<128x128xf32>
    %cst_55 = arith.constant dense<0.000000e+00> : vector<128xf32>
    %151 = vector.multi_reduction <add>, %150, %cst_55 [1] : vector<128x128xf32> to vector<128xf32>
    %152 = vector.shape_cast %151 : vector<128xf32> to vector<128x1xf32>
    %cst_56 = arith.constant 1.280000e+02 : f32
    %153 = vector.broadcast %cst_56 : f32 to vector<128x1xf32>
    %154 = arith.divf %152, %153 : vector<128x1xf32>
    %155 = vector.broadcast %147 : vector<128x1xf32> to vector<128x128xf32>
    %156 = arith.subf %141, %155 : vector<128x128xf32>
    %cst_57 = arith.constant 9.99999974E-6 : f32
    %157 = vector.broadcast %cst_57 : f32 to vector<128x1xf32>
    %158 = arith.addf %154, %157 : vector<128x1xf32>
    %159 = math.rsqrt %158 : vector<128x1xf32>
    %160 = vector.broadcast %159 : vector<128x1xf32> to vector<128x128xf32>
    %161 = arith.mulf %156, %160 : vector<128x128xf32>
    %162 = vector.broadcast %142 : vector<1x128xf32> to vector<128x128xf32>
    %163 = arith.mulf %161, %162 : vector<128x128xf32>
    %164 = vector.broadcast %143 : vector<1x128xf32> to vector<128x128xf32>
    %165 = arith.addf %163, %164 : vector<128x128xf32>
    %c0_58 = arith.constant 0 : index
    %c0_59 = arith.constant 0 : index
    %166 = vector.load %arg15[%c0_58, %c0_59] : memref<512x128xbf16, #tpu.memory_space<vmem>>, vector<512x128xbf16>
    %167 = arith.truncf %165 : vector<128x128xf32> to vector<128x128xbf16>
    %cst_60 = arith.constant dense<0.000000e+00> : vector<128x512xf32>
    %168 = tpu.matmul %167, %166, %cst_60 {dimension_numbers = #tpu.dot_dimension_numbers<[1], [1], [0], [0], [0, 0, 1, 0], [], []>} : vector<128x128xbf16>, vector<512x128xbf16>, vector<128x512xf32> -> vector<128x512xf32>
    %c0_61 = arith.constant 0 : index
    %c0_62 = arith.constant 0 : index
    %169 = vector.load %arg16[%c0_61, %c0_62] : memref<1x512xf32, #tpu.memory_space<vmem>>, vector<1x512xf32>
    %170 = vector.broadcast %169 : vector<1x512xf32> to vector<128x512xf32>
    %171 = arith.addf %168, %170 : vector<128x512xf32>
    %cst_63 = arith.constant 0.000000e+00 : f32
    %172 = vector.broadcast %cst_63 : f32 to vector<128x512xf32>
    %173 = arith.maximumf %171, %172 : vector<128x512xf32>
    %c0_64 = arith.constant 0 : index
    %c0_65 = arith.constant 0 : index
    %174 = vector.load %arg17[%c0_64, %c0_65] : memref<128x512xbf16, #tpu.memory_space<vmem>>, vector<128x512xbf16>
    %175 = arith.truncf %173 : vector<128x512xf32> to vector<128x512xbf16>
    %cst_66 = arith.constant dense<0.000000e+00> : vector<128x128xf32>
    %176 = tpu.matmul %175, %174, %cst_66 {dimension_numbers = #tpu.dot_dimension_numbers<[1], [1], [0], [0], [0, 0, 1, 0], [], []>} : vector<128x512xbf16>, vector<128x512xbf16>, vector<128x128xf32> -> vector<128x128xf32>
    %c0_67 = arith.constant 0 : index
    %c0_68 = arith.constant 0 : index
    %177 = vector.load %arg18[%c0_67, %c0_68] : memref<1x128xf32, #tpu.memory_space<vmem>>, vector<1x128xf32>
    %178 = vector.broadcast %177 : vector<1x128xf32> to vector<128x128xf32>
    %179 = arith.addf %176, %178 : vector<128x128xf32>
    %180 = arith.addf %141, %179 : vector<128x128xf32>
    %c0_69 = arith.constant 0 : index
    %c0_70 = arith.constant 0 : index
    %c0_71 = arith.constant 0 : index
    %181 = vector.load %arg19[%c0_69, %c0_70, %c0_71] : memref<1x128x128xf32, #tpu.memory_space<vmem>>, vector<1x128x128xf32>
    %182 = vector.shape_cast %181 : vector<1x128x128xf32> to vector<128x128xf32>
    %183 = vector.shape_cast %180 : vector<128x128xf32> to vector<1x128x128xf32>
    tpu.vector_store %arg19[%c0_69, %c0_70, %c0_71], %183 {strides = array<i32>} : memref<1x128x128xf32, #tpu.memory_space<vmem>>, vector<1x128x128xf32>,
    return
  }
  func.func @transform_0(%arg0: i32, %arg1: i32) -> (i32, i32, i32) {
    %c0_i32 = arith.constant 0 : i32
    %c0_i32_0 = arith.constant 0 : i32
    %c0_i32_1 = arith.constant 0 : i32
    return %arg0, %c0_i32, %c0_i32_0 : i32, i32, i32
  }
  func.func @transform_1(%arg0: i32, %arg1: i32) -> (i32, i32) {
    %c0_i32 = arith.constant 0 : i32
    %c0_i32_0 = arith.constant 0 : i32
    %c0_i32_1 = arith.constant 0 : i32
    return %c0_i32, %c0_i32_0 : i32, i32
  }
  func.func @transform_2(%arg0: i32, %arg1: i32) -> (i32, i32) {
    %c0_i32 = arith.constant 0 : i32
    %c0_i32_0 = arith.constant 0 : i32
    %c0_i32_1 = arith.constant 0 : i32
    return %c0_i32, %c0_i32_0 : i32, i32
  }
  func.func @transform_3(%arg0: i32, %arg1: i32) -> (i32, i32) {
    %c0_i32 = arith.constant 0 : i32
    %c0_i32_0 = arith.constant 0 : i32
    %c0_i32_1 = arith.constant 0 : i32
    return %c0_i32, %c0_i32_0 : i32, i32
  }
  func.func @transform_4(%arg0: i32, %arg1: i32) -> (i32, i32) {
    %c0_i32 = arith.constant 0 : i32
    %c0_i32_0 = arith.constant 0 : i32
    %c0_i32_1 = arith.constant 0 : i32
    return %c0_i32, %c0_i32_0 : i32, i32
  }
  func.func @transform_5(%arg0: i32, %arg1: i32) -> (i32, i32) {
    %c0_i32 = arith.constant 0 : i32
    %c0_i32_0 = arith.constant 0 : i32
    %c0_i32_1 = arith.constant 0 : i32
    return %c0_i32, %c0_i32_0 : i32, i32
  }
  func.func @transform_6(%arg0: i32, %arg1: i32) -> (i32, i32) {
    %c0_i32 = arith.constant 0 : i32
    %c0_i32_0 = arith.constant 0 : i32
    %c0_i32_1 = arith.constant 0 : i32
    return %c0_i32, %c0_i32_0 : i32, i32
  }
  func.func @transform_7(%arg0: i32, %arg1: i32) -> (i32, i32) {
    %c0_i32 = arith.constant 0 : i32
    %c0_i32_0 = arith.constant 0 : i32
    %c0_i32_1 = arith.constant 0 : i32
    return %c0_i32, %c0_i32_0 : i32, i32
  }
  func.func @transform_8(%arg0: i32, %arg1: i32) -> (i32, i32) {
    %c0_i32 = arith.constant 0 : i32
    %c0_i32_0 = arith.constant 0 : i32
    %c0_i32_1 = arith.constant 0 : i32
    return %c0_i32, %c0_i32_0 : i32, i32
  }
  func.func @transform_9(%arg0: i32, %arg1: i32) -> (i32, i32) {
    %c0_i32 = arith.constant 0 : i32
    %c0_i32_0 = arith.constant 0 : i32
    %c0_i32_1 = arith.constant 0 : i32
    return %c0_i32, %c0_i32_0 : i32, i32
  }
  func.func @transform_10(%arg0: i32, %arg1: i32) -> (i32, i32) {
    %c0_i32 = arith.constant 0 : i32
    %c0_i32_0 = arith.constant 0 : i32
    %c0_i32_1 = arith.constant 0 : i32
    return %c0_i32, %c0_i32_0 : i32, i32
  }
  func.func @transform_11(%arg0: i32, %arg1: i32) -> (i32, i32) {
    %c0_i32 = arith.constant 0 : i32
    %c0_i32_0 = arith.constant 0 : i32
    %c0_i32_1 = arith.constant 0 : i32
    return %c0_i32, %c0_i32_0 : i32, i32
  }
  func.func @transform_12(%arg0: i32, %arg1: i32) -> (i32, i32) {
    %c0_i32 = arith.constant 0 : i32
    %c0_i32_0 = arith.constant 0 : i32
    %c0_i32_1 = arith.constant 0 : i32
    return %c0_i32, %c0_i32_0 : i32, i32
  }
  func.func @transform_13(%arg0: i32, %arg1: i32) -> (i32, i32) {
    %c0_i32 = arith.constant 0 : i32
    %c0_i32_0 = arith.constant 0 : i32
    %c0_i32_1 = arith.constant 0 : i32
    return %c0_i32, %c0_i32_0 : i32, i32
  }
  func.func @transform_14(%arg0: i32, %arg1: i32) -> (i32, i32) {
    %c0_i32 = arith.constant 0 : i32
    %c0_i32_0 = arith.constant 0 : i32
    %c0_i32_1 = arith.constant 0 : i32
    return %c0_i32, %c0_i32_0 : i32, i32
  }
  func.func @transform_15(%arg0: i32, %arg1: i32) -> (i32, i32) {
    %c0_i32 = arith.constant 0 : i32
    %c0_i32_0 = arith.constant 0 : i32
    %c0_i32_1 = arith.constant 0 : i32
    return %c0_i32, %c0_i32_0 : i32, i32
  }
  func.func @transform_16(%arg0: i32, %arg1: i32) -> (i32, i32) {
    %c0_i32 = arith.constant 0 : i32
    %c0_i32_0 = arith.constant 0 : i32
    %c0_i32_1 = arith.constant 0 : i32
    return %c0_i32, %c0_i32_0 : i32, i32
  }
  func.func @transform_17(%arg0: i32, %arg1: i32) -> (i32, i32, i32) {
    %c0_i32 = arith.constant 0 : i32
    %c0_i32_0 = arith.constant 0 : i32
    return %arg0, %arg1, %c0_i32 : i32, i32, i32
  }
}

</mosaic_0001>

<bundles_post_ra>
// kernel: tpu_custom_call.1
= control target key start
LH: loop header
LB: loop body
LE: loop exit
PB: predicated region body
PF: predicated region fallthrough
CT: control target
= control target key end

     0   :  { %s13290_s0 = inlined_call_operand.hbm [shape: f32[2,256,128], index: 0, kind: input, shape index: {}]   ;;  %s13291_s1 = inlined_call_operand.vmem [shape: f32[1,128], index: 1, kind: input, shape index: {}]   ;;  %s13292_s2 = inlined_call_operand.vmem [shape: f32[1,128], index: 2, kind: input, shape index: {}]   ;;  %s13293_s3 = inlined_call_operand.hbm [shape: bf16[128,128], index: 3, kind: input, shape index: {}]   ;;  %s13294_s4 = inlined_call_operand.vmem [shape: f32[1,128], index: 4, kind: input, shape index: {}]   ;;  %s13295_s5 = inlined_call_operand.hbm [shape: bf16[128,128], index: 5, kind: input, shape index: {}]   ;;  %s13296_s6 = inlined_call_operand.vmem [shape: f32[1,128], index: 6, kind: input, shape index: {}]   ;;  %s13297_s7 = inlined_call_operand.hbm [shape: bf16[128,128], index: 7, kind: input, shape index: {}]   ;;  %s13298_s8 = inlined_call_operand.vmem [shape: f32[1,128], index: 8, kind: input, shape index: {}]   ;;  %s13299_s9 = inlined_call_operand.hbm [shape: bf16[128,128], index: 9, kind: input, shape index: {}]   ;;  %s13300_s10 = inlined_call_operand.vmem [shape: f32[1,128], index: 10, kind: input, shape index: {}]   ;;  %s13301_s11 = inlined_call_operand.vmem [shape: f32[1,128], index: 11, kind: input, shape index: {}]   ;;  %s13302_s12 = inlined_call_operand.vmem [shape: f32[1,128], index: 12, kind: input, shape index: {}]   ;;  %s13303_s13 = inlined_call_operand.hbm [shape: bf16[512,128], index: 13, kind: input, shape index: {}]   ;;  %s13304_s14 = inlined_call_operand.vmem [shape: f32[1,512], index: 14, kind: input, shape index: {}]   ;;  %s13305_s15 = inlined_call_operand.hbm [shape: bf16[128,512], index: 15, kind: input, shape index: {}]   ;;  %s13306_s16 = inlined_call_operand.vmem [shape: f32[1,128], index: 16, kind: input, shape index: {}]   ;;  %s13307_s17 = inlined_call_operand.hbm [shape: f32[2,256,128], index: 17, kind: output, shape index: {}]  }
   0x1   :  { %13396 = sst [smem:[#allocation95_spill]] %s13290_s0 }
   0x2   :  { %13397 = sst [smem:[#allocation96_spill]] %s13291_s1 }
   0x3   :  { %13398 = sst [smem:[#allocation97_spill]] %s13292_s2 }
   0x4   :  { %13399 = sst [smem:[#allocation98_spill]] %s13293_s3 }
   0x5   :  { %13400 = sst [smem:[#allocation99_spill]] %s13294_s4 }
   0x6   :  { %13401 = sst [smem:[#allocation100_spill]] %s13295_s5 }
   0x7   :  { %13402 = sst [smem:[#allocation101_spill]] %s13296_s6 }
   0x8   :  { %13403 = sst [smem:[#allocation102_spill]] %s13297_s7 }
   0x9   :  { %13404 = sst [smem:[#allocation103_spill]] %s13298_s8 }
   0xa   :  { %13405 = sst [smem:[#allocation104_spill]] %s13300_s10 }
   0xb   :  { %13406 = sst [smem:[#allocation105_spill]] %s13301_s11 }
   0xc   :  { %13407 = sst [smem:[#allocation106_spill]] %s13302_s12 }
   0xd   :  { %13408 = sst [smem:[#allocation107_spill]] %s13304_s14 }
   0xe   :  { %13409 = sst [smem:[#allocation108_spill]] %s13306_s16 }
   0xf   :  { %13410 = sst [smem:[#allocation109_spill]] %s13307_s17 }
  0x10   :  { %22 = vsyncpa [#allocation5], 0 }
  0x11   :  { %24 = vsyncpa [#allocation5 + $0x1], 0 }
  0x12   :  { %25 = vsyncpa [#allocation8], 0 }
  0x13   :  { %26 = vsyncpa [#allocation11], 0 }
  0x14   :  { %27 = vsyncpa [#allocation14], 0 }
  0x15   :  { %28 = vsyncpa [#allocation6], 0 }
  0x16   :  { %30 = vsyncpa [#allocation6 + $0x1], 0  ;;  %s9440_s24 = smov 0   ;;  %s9442_s25 = smov 0  }
  0x17   :  { %s9444_s26 = smov 0   ;;  %s9446_s27 = smov 0  }
  0x18   :  { %s9448_s28 = smov 0   ;;  %s9450_s29 = smov 0  }
  0x19   :  { %s9452_s0 = smov 0   ;;  %s9454_s30 = smov 0  }
  0x1a   :  { %s9456_s18 = smov 0   ;;  %s9458_s19 = smov 0  }
  0x1b   :  { %s9460_s1 = smov 0  }
  0x1c LB: > { %13411 = sst [smem:[#allocation22_spill]] %s9289_s24  ;;  %s6972_s20 = sadd.s32 4294967295, %s9329_s1   ;;  %s9329_s1 = sphi %s9460_s1, %s36_s1   ;;  %s9325_s19 = sphi %s9458_s19, %s13804_s19   ;;  %s9321_s18 = sphi %s9456_s18, %s13803_s18   ;;  %s9317_s30 = sphi %s9454_s30, %s13802_s30   ;;  %s9313_s0 = sphi %s9452_s0, %s13801_s0   ;;  %s9309_s29 = sphi %s9450_s29, %s13800_s29   ;;  %s9305_s28 = sphi %s9448_s28, %s13799_s28   ;;  %s9301_s27 = sphi %s9446_s27, %s13798_s27   ;;  %s9297_s26 = sphi %s9444_s26, %s13797_s26   ;;  %s9293_s25 = sphi %s9442_s25, %s13796_s25   ;;  %s9289_s24 = sphi %s9440_s24, %s13795_s24  }
  0x1d   : > { %13412 = sst [smem:[#allocation23_spill]] %s9313_s0  ;;  %p6974_p0 = scmp.ge.s32.totalorder %s9329_s1, 1 }
  0x1e   : > { %13413 = sst [smem:[#allocation24_spill]] %s9317_s30  ;;  %p9497_p1 = scmp.eq.s32.totalorder %s6972_s20, 0 }
  0x1f   : > { %p9501_p2 = scmp.eq.s32.totalorder %s6972_s20, 3  ;;  %p443_p3 = scmp.lt.s32.totalorder %s9329_s1, 5 }
  0x20   : > { %s13414_s21 = scalar_select %p9497_p1, 1, 0 }
  0x21   : > { %s13415_s22 = scalar_select %p9501_p2, 1, 0 }
  0x22   : > { %p9506_p4 = pnand %p6974_p0, %p443_p3  ;;  %s9331_s17 = smov [#allocation7]  }
  0x23   : > { %13416 = sst [smem:[#allocation25_spill]] %s13415_s22  ;;  %s461_s30 = sshll.u32 %s9331_s17, 4  ;;  %s9510_s30 = int_to_ptr.vmem [resolvable:$true] %s461_s30 }
  0x24   : > { %s13417_s23 = scalar_select %p9506_p4, 1, 0 }
  0x25   : > { %p8146_p5 = pneg %p9506_p4  ;;  %s9332_s20 = smov [#allocation10]  }
  0x26   : > { %13418 = sst [smem:[#allocation26_spill]] %s13417_s23  ;;  %s493_s14 = sshll.u32 %s9332_s20, 4  ;;  %s9520_s14 = int_to_ptr.vmem [resolvable:$true] %s493_s14 }
  0x27   : > { %p9516_p6 = pnand %p8146_p5, %p9497_p1  ;;  %s9333_s12 = smov [#allocation13]  }
  0x28   : > { %s531_s11 = sshll.u32 %s9333_s12, 4  ;;  %s13420_s3 = sld [smem:[#allocation98_spill]]  ;;  %s9522_s11 = int_to_ptr.vmem [resolvable:$true] %s531_s11 }
  0x29   : > { %p9532_p8 = pneg %p9516_p6 }
  0x2e   : > { %s8997_s4 = scalar_lea.hbm %s13420_s3, 1024 }
  0x2f   : > { %p8998_p7 = scmp.ne.s32.totalorder %s13420_s3, %s8997_s4  ;;  %p9004_p11 = scmp.lt.u32.totalorder %s8997_s4, %s13420_s3 }
  0x31   : > { %p9000_p9 = pnand %p9532_p8, %p8998_p7 }
  0x33   : > { %p9001_p10 = pneg %p9000_p9 }
  0x35   : > { %p9006_p12 = pnand %p9004_p11, %p9001_p10 }
  0x37   : > { %9009 = shalt.err (!%p9006_p12)
}
  0x38   : > { %s9010_s6 = scalar_lea.vmem %s9510_s30, 1024  ;;  %p9018_p5 = scmp.lt.s32.totalorder %s9510_s30, %s9510_s30 }
  0x39   : > { %p9011_p13 = scmp.ne.s32.totalorder %s9510_s30, %s9010_s6  ;;  %p9019_p4 = scmp.lt.s32.totalorder %s9010_s6, %s9010_s6 }
  0x3b   : > { %p9013_p0 = pnand %p9011_p13, %p9532_p8  ;;  %p9020_p7 = por %p9019_p4, %p9018_p5 }
  0x3d   : > { %p9014_p3 = pneg %p9013_p0 }
  0x3f   : > { %p9021_p9 = pnand %p9020_p7, %p9014_p3 }
  0x41   : > { %9024 = shalt.err (!%p9021_p9)
}
  0x42   : > { %s9334_s8 = smov 64   ;;  %s9335_s4 = smov 4  }
  0x43   : > { %8149 = dma.hbm_to_vmem [thread:$0]  (!%p9516_p6), %s13420_s3, 1024, %s9510_s30, [#allocation8], %s9334_s8, %s9334_s8, %s9335_s4  }
  0x44   : > { %s13422_s7 = sld [smem:[#allocation102_spill]] }
  0x4a   : > { %s9025_s6 = scalar_lea.hbm %s13422_s7, 1024 }
  0x4b   : > { %p9026_p4 = scmp.ne.s32.totalorder %s13422_s7, %s9025_s6  ;;  %p9032_p12 = scmp.lt.u32.totalorder %s9025_s6, %s13422_s7 }
  0x4d   : > { %p9028_p10 = pnand %p9026_p4, %p9532_p8 }
  0x4f   : > { %p9029_p11 = pneg %p9028_p10 }
  0x51   : > { %p9034_p13 = pnand %p9032_p12, %p9029_p11 }
  0x53   : > { %9037 = shalt.err (!%p9034_p13)
}
  0x54   : > { %s9038_s30 = scalar_lea.vmem %s9520_s14, 1024  ;;  %p9046_p7 = scmp.lt.s32.totalorder %s9520_s14, %s9520_s14 }
  0x55   : > { %p9039_p0 = scmp.ne.s32.totalorder %s9520_s14, %s9038_s30  ;;  %p9047_p9 = scmp.lt.s32.totalorder %s9038_s30, %s9038_s30 }
  0x57   : > { %p9041_p3 = pnand %p9039_p0, %p9532_p8  ;;  %p9048_p4 = por %p9047_p9, %p9046_p7 }
  0x59   : > { %p9042_p5 = pneg %p9041_p3 }
  0x5b   : > { %p9049_p10 = pnand %p9048_p4, %p9042_p5 }
  0x5d   : > { %9052 = shalt.err (!%p9049_p10)
}
  0x5e   : > { %8155 = dma.hbm_to_vmem [thread:$0]  (!%p9516_p6), %s13422_s7, 1024, %s9520_s14, [#allocation11], %s9334_s8, %s9334_s8, %s9335_s4  }
  0x5f   : > { %s9053_s10 = scalar_lea.hbm %s13303_s13, 4096 }
  0x60   : > { %p9054_p11 = scmp.ne.s32.totalorder %s13303_s13, %s9053_s10  ;;  %p9060_p0 = scmp.lt.u32.totalorder %s9053_s10, %s13303_s13 }
  0x62   : > { %p9056_p12 = pnand %p9054_p11, %p9532_p8 }
  0x64   : > { %p9057_p13 = pneg %p9056_p12 }
  0x66   : > { %p9062_p3 = pnand %p9060_p0, %p9057_p13 }
  0x68   : > { %9065 = shalt.err (!%p9062_p3)
}
  0x69   : > { %s9066_s14 = scalar_lea.vmem %s9522_s11, 4096  ;;  %p9074_p4 = scmp.lt.s32.totalorder %s9522_s11, %s9522_s11 }
  0x6a   : > { %p9067_p5 = scmp.ne.s32.totalorder %s9522_s11, %s9066_s14  ;;  %p9075_p10 = scmp.lt.s32.totalorder %s9066_s14, %s9066_s14 }
  0x6c   : > { %p9069_p7 = pnand %p9067_p5, %p9532_p8  ;;  %p9076_p11 = por %p9075_p10, %p9074_p4 }
  0x6e   : > { %p9070_p9 = pneg %p9069_p7 }
  0x70   : > { %p9077_p12 = pnand %p9076_p11, %p9070_p9 }
  0x72   : > { %9080 = shalt.err (!%p9077_p12)
}
  0x73   : > { %8161 = dma.hbm_to_vmem [thread:$0]  (!%p9516_p6), %s13303_s13, 4096, %s9522_s11, [#allocation14], %s9334_s8, %s9334_s8, %s9335_s4  }
  0x74   : > { %s9336_s0 = smov [#allocation9]   ;;  %s9337_s23 = smov [#allocation12]  }
  0x75   : > { %s477_s22 = sshll.u32 %s9336_s0, 4  ;;  %s509_s10 = sshll.u32 %s9337_s23, 4  ;;  %s478_s22 = int_to_ptr.vmem [resolvable:$true] %s477_s22  ;;  %s9608_s10 = int_to_ptr.vmem [resolvable:$true] %s509_s10 }
  0x76   : > { %s13423_s5 = sld [smem:[#allocation100_spill]] }
  0x7c   : > { %s9081_s20 = scalar_lea.hbm %s13423_s5, 1024 }
  0x7d   : > { %p9082_p13 = scmp.ne.s32.totalorder %s13423_s5, %s9081_s20  ;;  %p9088_p5 = scmp.lt.u32.totalorder %s9081_s20, %s13423_s5 }
  0x7f   : > { %p9084_p0 = pnand %p9082_p13, %p9532_p8 }
  0x81   : > { %p9085_p3 = pneg %p9084_p0 }
  0x83   : > { %p9090_p7 = pnand %p9088_p5, %p9085_p3 }
  0x85   : > { %9093 = shalt.err (!%p9090_p7)
}
  0x86   : > { %s9094_s24 = scalar_lea.vmem %s478_s22, 1024  ;;  %p9102_p11 = scmp.lt.s32.totalorder %s478_s22, %s478_s22 }
  0x87   : > { %p9095_p9 = scmp.ne.s32.totalorder %s478_s22, %s9094_s24  ;;  %p9103_p12 = scmp.lt.s32.totalorder %s9094_s24, %s9094_s24 }
  0x89   : > { %p9097_p4 = pnand %p9095_p9, %p9532_p8  ;;  %p9104_p2 = por %p9103_p12, %p9102_p11 }
  0x8b   : > { %p9098_p10 = pneg %p9097_p4 }
  0x8d   : > { %p9105_p1 = pnand %p9104_p2, %p9098_p10 }
  0x8f   : > { %9108 = shalt.err (!%p9105_p1)
}
  0x90   : > { %8152 = dma.hbm_to_vmem [thread:$0]  (!%p9516_p6), %s13423_s5, 1024, %s478_s22, [#allocation8], %s9334_s8, %s9334_s8, %s9335_s4  }
  0x91   : > { %s9109_s20 = scalar_lea.hbm %s13299_s9, 1024 }
  0x92   : > { %p9110_p13 = scmp.ne.s32.totalorder %s13299_s9, %s9109_s20  ;;  %p9116_p0 = scmp.lt.u32.totalorder %s9109_s20, %s13299_s9 }
  0x94   : > { %p9112_p1 = pnand %p9110_p13, %p9532_p8 }
  0x96   : > { %p9113_p2 = pneg %p9112_p1 }
  0x98   : > { %p9118_p3 = pnand %p9116_p0, %p9113_p2 }
  0x9a   : > { %9121 = shalt.err (!%p9118_p3)
}
  0x9b   : > { %s9122_s22 = scalar_lea.vmem %s9608_s10, 1024  ;;  %p9130_p4 = scmp.lt.s32.totalorder %s9608_s10, %s9608_s10 }
  0x9c   : > { %p9123_p5 = scmp.ne.s32.totalorder %s9608_s10, %s9122_s22  ;;  %p9131_p10 = scmp.lt.s32.totalorder %s9122_s22, %s9122_s22 }
  0x9e   : > { %p9125_p7 = pnand %p9123_p5, %p9532_p8  ;;  %p9132_p11 = por %p9131_p10, %p9130_p4 }
  0xa0   : > { %p9126_p9 = pneg %p9125_p7 }
  0xa2   : > { %p9133_p12 = pnand %p9132_p11, %p9126_p9 }
  0xa4   : > { %9136 = shalt.err (!%p9133_p12)
}
  0xa5   : > { %8158 = dma.hbm_to_vmem [thread:$0]  (!%p9516_p6), %s13299_s9, 1024, %s9608_s10, [#allocation11], %s9334_s8, %s9334_s8, %s9335_s4  }
  0xa6   : > { %s9338_s23 = smov [#allocation15]   ;;  %s9137_s6 = scalar_lea.hbm %s13305_s15, 4096 }
  0xa7   : > { %s547_s17 = sshll.u32 %s9338_s23, 4  ;;  %p9138_p13 = scmp.ne.s32.totalorder %s13305_s15, %s9137_s6  ;;  %s548_s17 = int_to_ptr.vmem [resolvable:$true] %s547_s17 }
  0xa8   : > { %p9144_p0 = scmp.lt.u32.totalorder %s9137_s6, %s13305_s15 }
  0xa9   : > { %p9140_p1 = pnand %p9138_p13, %p9532_p8 }
  0xab   : > { %p9141_p2 = pneg %p9140_p1 }
  0xad   : > { %p9146_p3 = pnand %p9144_p0, %p9141_p2 }
  0xaf   : > { %9149 = shalt.err (!%p9146_p3)
}
  0xb0   : > { %s9150_s8 = scalar_lea.vmem %s548_s17, 4096  ;;  %p9158_p4 = scmp.lt.s32.totalorder %s548_s17, %s548_s17 }
  0xb1   : > { %p9151_p5 = scmp.ne.s32.totalorder %s548_s17, %s9150_s8  ;;  %p9159_p10 = scmp.lt.s32.totalorder %s9150_s8, %s9150_s8 }
  0xb3   : > { %p9153_p7 = pnand %p9151_p5, %p9532_p8  ;;  %p9160_p11 = por %p9159_p10, %p9158_p4 }
  0xb5   : > { %p9154_p9 = pneg %p9153_p7 }
  0xb7   : > { %p9161_p12 = pnand %p9160_p11, %p9154_p9 }
  0xb9   : > { %9164 = shalt.err (!%p9161_p12)
}
  0xba   : > { %s9339_s4 = smov 256   ;;  %s9340_s2 = smov 16  }
  0xbb   : > { %8164 = dma.hbm_to_vmem [thread:$0]  (!%p9516_p6), %s13305_s15, 4096, %s548_s17, [#allocation14], %s9339_s4, %s9339_s4, %s9340_s2  }
  0xbc   : > { %s6973_s0 = sadd.s32 4294967294, %s9329_s1   ;;  %s45_s23 = sadd.s32 1, %s9321_s18 }
  0xbd   : > { %s13424_s12 = sld [smem:[#allocation22_spill]]  ;;  %s48_s20 = sadd.s32 1, %s9325_s19 }
  0xbe   : > { %p46_p8 = scmp.ge.s32.totalorder %s45_s23, 2  ;;  %s55_s6 = sadd.s32 1, %s9309_s29 }
  0xbf   : > { %p62_p13 = scmp.ne.s32.totalorder %s9309_s29, %s9305_s28  ;;  %p63_p1 = scmp.eq.s32.totalorder %s9329_s1, 0 }
  0xc0   : > { %s13806_s23 = smov (%p46_p8, %s45_s23), 0  ;;  %s13425_s16 = sld [smem:[#allocation25_spill]] }
  0xc1   : > { %s13808_s20 = smov (!%p46_p8, %s48_s20), %s9325_s19  ;;  %p9685_p2 = por %p63_p1, %p62_p13 }
  0xc2   : > { %p68_p6 = scmp.ne.s32.totalorder %s9305_s28, %s9301_s27  ;;  %p50_p0 = scmp.ge.s32.totalorder %s13808_s20, 2 }
  0xc3   : > { %s415_s14 = ssub.s32 %s9321_s18, %s13806_s23  ;;  %p13427_p3 = scmp.ne.s32.totalorder %s13414_s21, 0 }
  0xc4   : > { %s419_s11 = sadd.s32 1, %s9297_s26  ;;  %s13810_s20 = smov (%p50_p0, %s13808_s20), 0 }
  0xc5   : > { %p9695_p5 = por %p13427_p3, %p68_p6  ;;  %p429_p7 = scmp.ne.s32.totalorder %s9297_s26, %s9293_s25 }
  0xc6   : > { %p435_p9 = scmp.ne.s32.totalorder %s9293_s25, %s13424_s12  ;;  %s52_s22 = ssub.s32 %s9325_s19, %s13810_s20 }
  0xc7   : > { %p436_p4 = scmp.eq.s32.totalorder %s6973_s0, 3  ;;  %p53_p10 = scmp.eq.s32.totalorder %s52_s22, 0 }
  0xc8   : > { %s416_s27 = sor.u32 %s415_s14, %s52_s22  ;;  %p13429_p12 = scmp.ne.s32.totalorder %s13425_s16, 0 }
  0xc9   : > { %p417_p11 = scmp.eq.s32.totalorder %s416_s27, 0  ;;  %p9720_p13 = por %p436_p4, %p435_p9 }
  0xca   : > { %p9710_p8 = por %p13429_p12, %p429_p7  ;;  %p8179_p1 = scmp.lt.s32.totalorder %s9329_s1, 4 }
  0xcb   : > { %s9715_s4 = scalar_select %p53_p10, %s9309_s29, %s55_s6  }
  0xcc   : > { %s13430_s8 = scalar_select %p9710_p8, 1, 0 }
  0xcd   : > { %s9718_s2 = scalar_select %p417_p11, %s9297_s26, %s419_s11  }
  0xce   : > { %s13431_s10 = scalar_select %p9720_p13, 1, 0 }
  0xcf   : > { %s564_s24 = sand.u32 1, %s9309_s29   ;;  %s7173_s12 = sshll.u32 %s9325_s19, 12 }
  0xd0   : > { %s6982_s0 = sshll.u32 %s564_s24, 8  ;;  %s13432_s22 = sld [smem:[#allocation95_spill]] }
  0xd1   : > { %s568_s6 = scalar_lea.vmem [#allocation4], %s6982_s0  ;;  %p9734_p6 = pnand %p8179_p1, %p9685_p2 }
  0xd2   : > { %s575_s11 = sshll.u32 %s568_s6, 4  ;;  %s9740_s5 = scalar_lea.sflag [#allocation5], %s564_s24  ;;  %s9738_s11 = int_to_ptr.vmem [resolvable:$true] %s575_s11 }
  0xd3   : > { %p9167_p3 = pneg %p9734_p6 }
  0xd6   : > { %s9730_s16 = scalar_lea.hbm %s13432_s22, %s7173_s12  ;;  %s9170_s0 = scalar_lea.hbm %s13432_s22, 8192 }
  0xd7   : > { %s9165_s3 = scalar_lea.hbm %s9730_s16, 4096  ;;  %p9171_p2 = scmp.lt.u32.totalorder %s9730_s16, %s13432_s22 }
  0xd8   : > { %p9166_p0 = scmp.ne.s32.totalorder %s9730_s16, %s9165_s3  ;;  %p9172_p4 = scmp.lt.u32.totalorder %s9170_s0, %s9165_s3 }
  0xd9   : > { %p9174_p11 = scmp.lt.u32.totalorder %s9165_s3, %s9730_s16 }
  0xda   : > { %p9168_p7 = pnand %p9167_p3, %p9166_p0  ;;  %p9173_p10 = por %p9172_p4, %p9171_p2 }
  0xdc   : > { %p9169_p9 = pneg %p9168_p7  ;;  %p9175_p12 = por %p9174_p11, %p9173_p10 }
  0xde   : > { %p9176_p1 = pnand %p9175_p12, %p9169_p9 }
  0xe0   : > { %9179 = shalt.err (!%p9176_p1)
}
  0xe1   : > { %s9180_s24 = scalar_lea.vmem %s9738_s11, 4096  ;;  %s9341_s12 = smov [#allocation4]  }
  0xe2   : > { %p9181_p0 = scmp.ne.s32.totalorder %s9738_s11, %s9180_s24  ;;  %s9185_s17 = sshll.u32 %s9341_s12, 4  ;;  %s9186_s17 = int_to_ptr.vmem [resolvable:$false] %s9185_s17 }
  0xe3   : > { %s9187_s14 = scalar_lea.vmem %s9186_s17, 8192  ;;  %p9188_p8 = scmp.lt.s32.totalorder %s9738_s11, %s9186_s17 }
  0xe4   : > { %p9183_p7 = pnand %p9181_p0, %p9167_p3  ;;  %p9189_p2 = scmp.lt.s32.totalorder %s9187_s14, %s9180_s24 }
  0xe6   : > { %p9184_p13 = pneg %p9183_p7  ;;  %p9190_p4 = por %p9189_p2, %p9188_p8 }
  0xe8   : > { %p9191_p10 = pnand %p9190_p4, %p9184_p13 }
  0xea   : > { %9194 = shalt.err (!%p9191_p10)
}
  0xeb   : > { %s9342_s3 = smov 128   ;;  %s9343_s0 = smov 8  }
  0xec   : > { %8168 = dma.hbm_to_vmem [thread:$0]  (!%p9734_p6), %s9730_s16, 4096, %s9738_s11, %s9740_s5, %s9342_s3, %s9342_s3, %s9343_s0  }
  0xed   : > { %s13434_s6 = sld [smem:[#allocation26_spill]] }
  0xf3   : > { %p13435_p3 = scmp.ne.s32.totalorder %s13434_s6, 0 }
  0xf5   : > { %587 = sbr.rel (%p13435_p3) target bundleno = 4179 (0x1053), region = 88 }
  0xfc   : > { %s589_s12 = sand.u32 1, %s9305_s28  }
  0xfd   : > { %s6986_s7 = sshll.u32 %s589_s12, 8  ;;  %s590_s17 = scalar_lea.sflag [#allocation5], %s589_s12 }
  0xfe   : > { %s9771_s24 = scalar_lea.vmem [#allocation4], %s6986_s7 }
  0xff   : > { %9268 = dma.done.wait (%p9695_p5), %s590_s17, 4096  }
 0x100   : > { %9270 = vsyncadd (%p9695_p5), %s590_s17, 4294963200  ;;  %p13436_p8 = scmp.ne.s32.totalorder %s13414_s21, 0 }
 0x102   : > { %9272 = dma.done.wait (%p13436_p8), [#allocation8], 2048  }
 0x103   : > { %9274 = vsyncadd (%p13436_p8), [#allocation8], 4294965248 }
 0x104   : > { %9276 = dma.done.wait (%p13436_p8), [#allocation11], 2048  }
 0x105   : > { %9278 = vsyncadd (%p13436_p8), [#allocation11], 4294965248 }
 0x106   : > { %9280 = dma.done.wait (%p13436_p8), [#allocation14], 8192  }
 0x107   : > { %9282 = vsyncadd (%p13436_p8), [#allocation14], 4294959104  ;;  %s665_s5 = sand.u32 1, %s9293_s25   ;;  %s13437_s16 = sld [smem:[#allocation23_spill]] }
 0x108   : > { %s6993_s7 = sshll.u32 %s665_s5, 7 }
 0x109   : > { %s9792_s30 = scalar_lea.vmem [#allocation16], %s6993_s7 }
 0x10d   : > { %p6994_p5 = scmp.ne.s32.totalorder %s13437_s16, 0 }
 0x10e   : > { %v9796_v0 = vld [vmem:[%s9771_s24] sm:$0xff] (!%p6994_p5)  ;;  %v9799_v1 = vld [vmem:[%s9771_s24 + $0x10] sm:$0xff] (!%p6994_p5)  ;;  %v9804_v2 = vld [vmem:[%s9771_s24 + $0x8] sm:$0xff] (!%p6994_p5)  ;;  %s13438_s27 = sld [smem:[#allocation96_spill]] (!%p6994_p5)  ;;  %s13439_s0 = sld [smem:[#allocation97_spill]] (!%p6994_p5) }
 0x10f   : > { %673 = sbr.rel (%p6994_p5) target bundleno = 868 (0x364), region = 120  ;;  %708 = vadd.xlane.f32.xlu0 (!%p6994_p5), %v9796_v0  ;;  %712 = vadd.xlane.f32.xlu1 (!%p6994_p5), %v9799_v1  ;;  %v9807_v3 = vld [vmem:[%s9771_s24 + $0x18] sm:$0xff] (!%p6994_p5)  ;;  %v9812_v4 = vld [vmem:[%s9771_s24 + $0x20] sm:$0xff] (!%p6994_p5)  ;;  %v9815_v5 = vld [vmem:[%s9771_s24 + $0x28] sm:$0xff] (!%p6994_p5)  ;;  %s13440_s17 = sld [smem:[#allocation101_spill]] (!%p6994_p5) }
 0x110   : > { %v9820_v6 = vld [vmem:[%s9771_s24 + $0x30] sm:$0xff] (!%p6994_p5)  ;;  %v9823_v7 = vld [vmem:[%s9771_s24 + $0x38] sm:$0xff] (!%p6994_p5)  ;;  %v9826_v8 = vld [vmem:[%s9771_s24 + $0x40] sm:$0xff] (!%p6994_p5)  ;;  %s13441_s21 = sld [smem:[#allocation103_spill]] (!%p6994_p5) }
 0x111   : > { %v9829_v9 = vld [vmem:[%s9771_s24 + $0x48] sm:$0xff] (!%p6994_p5)  ;;  %v9834_v10 = vld [vmem:[%s9771_s24 + $0x50] sm:$0xff] (!%p6994_p5)  ;;  %v9837_v11 = vld [vmem:[%s9771_s24 + $0x58] sm:$0xff] (!%p6994_p5) }
 0x112   : > { %v9844_v12 = vld [vmem:[%s9771_s24 + $0x60] sm:$0xff] (!%p6994_p5)  ;;  %v9847_v13 = vld [vmem:[%s9771_s24 + $0x68] sm:$0xff] (!%p6994_p5)  ;;  %v9852_v14 = vld [vmem:[%s9771_s24 + $0x70] sm:$0xff] (!%p6994_p5) }
 0x113   : > { %710 = vadd.xlane.f32.xlu0 (!%p6994_p5), %v9804_v2  ;;  %714 = vadd.xlane.f32.xlu1 (!%p6994_p5), %v9807_v3  ;;  %v9855_v15 = vld [vmem:[%s9771_s24 + $0x78] sm:$0xff] (!%p6994_p5)  ;;  %v9860_v16 = vld [vmem:[%s9771_s24 + $0x80] sm:$0xff] (!%p6994_p5)  ;;  %v9863_v17 = vld [vmem:[%s9771_s24 + $0x88] sm:$0xff] (!%p6994_p5) }
 0x114   : > { %v9868_v18 = vld [vmem:[%s9771_s24 + $0x90] sm:$0xff] (!%p6994_p5)  ;;  %v9871_v19 = vld [vmem:[%s9771_s24 + $0x98] sm:$0xff] (!%p6994_p5)  ;;  %v9876_v20 = vld [vmem:[%s9771_s24 + $0xa0] sm:$0xff] (!%p6994_p5) }
 0x115   : > { %v9879_v21 = vld [vmem:[%s9771_s24 + $0xa8] sm:$0xff] (!%p6994_p5)  ;;  %v9884_v22 = vld [vmem:[%s9771_s24 + $0xb0] sm:$0xff] (!%p6994_p5)  ;;  %v9887_v23 = vld [vmem:[%s9771_s24 + $0xb8] sm:$0xff] (!%p6994_p5) }
 0x116   : > { %v9892_v24 = vld [vmem:[%s9771_s24 + $0xc0] sm:$0xff]  ;;  %v9895_v25 = vld [vmem:[%s9771_s24 + $0xc8] sm:$0xff]  ;;  %v9900_v26 = vld [vmem:[%s9771_s24 + $0xd0] sm:$0xff] }
 0x117   : > { %716 = vadd.xlane.f32.xlu0 %v9812_v4  ;;  %718 = vadd.xlane.f32.xlu1 %v9815_v5  ;;  %v9903_v27 = vld [vmem:[%s9771_s24 + $0xd8] sm:$0xff]  ;;  %v9908_v28 = vld [vmem:[%s9771_s24 + $0xe0] sm:$0xff]  ;;  %v9911_v29 = vld [vmem:[%s9771_s24 + $0xe8] sm:$0xff] }
 0x118   : > { %v9916_v30 = vld [vmem:[%s9771_s24 + $0xf0] sm:$0xff]  ;;  %v9919_v31 = vld [vmem:[%s9771_s24 + $0xf8] sm:$0xff]  ;;  %v8292_v32 = vld [vmem:[#allocation9] sm:$0xff]  }
 0x119   : > { %v8293_v33 = vld [vmem:[#allocation10] sm:$0xff]   ;;  %v8294_v34 = vld [vmem:[#allocation9 + $0x8] sm:$0xff]   ;;  %7750 = vmatprep.subr.bf16.mxu0 %v8292_v32  ;;  %v8296_v36 = vld [vmem:[#allocation9 + $0x10] sm:$0xff]  }
 0x11a   : > { %v8295_v35 = vld [vmem:[#allocation10 + $0x8] sm:$0xff]   ;;  %7798 = vmatprep.subr.bf16.mxu1 %v8293_v33  ;;  %7751 = vmatpush3.bf16.xpose.msra.mxu0 %v8292_v32  ;;  %v8297_v37 = vld [vmem:[#allocation10 + $0x10] sm:$0xff]   ;;  %v8298_v38 = vld [vmem:[#allocation9 + $0x18] sm:$0xff]  }
 0x11b   : > { %720 = vadd.xlane.f32.xlu0 %v9820_v6  ;;  %722 = vadd.xlane.f32.xlu1 %v9823_v7  ;;  %v8299_v39 = vld [vmem:[#allocation10 + $0x18] sm:$0xff]   ;;  %v8300_v40 = vld [vmem:[#allocation9 + $0x20] sm:$0xff]  }
 0x11c   : > { %7799 = vmatpush3.bf16.xpose.msra.mxu1 %v8293_v33  ;;  %7752 = vmatprep.subr.bf16.mxu0 %v8294_v34  ;;  %v8301_v41 = vld [vmem:[#allocation10 + $0x20] sm:$0xff]  }
 0x11d   : > { %7800 = vmatprep.subr.bf16.mxu1 %v8295_v35 }
 0x11f   : > { %724 = vadd.xlane.f32.xlu0 %v9826_v8  ;;  %726 = vadd.xlane.f32.xlu1 %v9829_v9 }
 0x122   : > { %7753 = vmatpush3.bf16.xpose.msra.mxu0 %v8294_v34 }
 0x123   : > { %728 = vadd.xlane.f32.xlu0 %v9834_v10  ;;  %730 = vadd.xlane.f32.xlu1 %v9837_v11 }
 0x124   : > { %7801 = vmatpush3.bf16.xpose.msra.mxu1 %v8295_v35  ;;  %7754 = vmatprep.subr.bf16.mxu0 %v8296_v36 }
 0x125   : > { %7802 = vmatprep.subr.bf16.mxu1 %v8297_v37 }
 0x127   : > { %732 = vadd.xlane.f32.xlu0 %v9844_v12  ;;  %734 = vadd.xlane.f32.xlu1 %v9847_v13 }
 0x12a   : > { %7755 = vmatpush3.bf16.xpose.msra.mxu0 %v8296_v36 }
 0x12b   : > { %736 = vadd.xlane.f32.xlu0 %v9852_v14  ;;  %738 = vadd.xlane.f32.xlu1 %v9855_v15 }
 0x12c   : > { %7803 = vmatpush3.bf16.xpose.msra.mxu1 %v8297_v37  ;;  %7756 = vmatprep.subr.bf16.mxu0 %v8298_v38 }
 0x12d   : > { %7804 = vmatprep.subr.bf16.mxu1 %v8299_v39 }
 0x12f   : > { %740 = vadd.xlane.f32.xlu0 %v9860_v16  ;;  %742 = vadd.xlane.f32.xlu1 %v9863_v17 }
 0x132   : > { %7757 = vmatpush3.bf16.xpose.msra.mxu0 %v8298_v38 }
 0x133   : > { %744 = vadd.xlane.f32.xlu0 %v9868_v18  ;;  %746 = vadd.xlane.f32.xlu1 %v9871_v19 }
 0x134   : > { %7805 = vmatpush3.bf16.xpose.msra.mxu1 %v8299_v39  ;;  %7758 = vmatprep.subr.bf16.mxu0 %v8300_v40 }
 0x135   : > { %7806 = vmatprep.subr.bf16.mxu1 %v8301_v41 }
 0x137   : > { %748 = vadd.xlane.f32.xlu0 %v9876_v20  ;;  %750 = vadd.xlane.f32.xlu1 %v9879_v21 }
 0x13a   : > { %7759 = vmatpush3.bf16.xpose.msra.mxu0 %v8300_v40 }
 0x13b   : > { %752 = vadd.xlane.f32.xlu0 %v9884_v22  ;;  %754 = vadd.xlane.f32.xlu1 %v9887_v23 }
 0x13c   : > { %7807 = vmatpush3.bf16.xpose.msra.mxu1 %v8301_v41 }
 0x13f   : > { %756 = vadd.xlane.f32.xlu0 %v9892_v24  ;;  %758 = vadd.xlane.f32.xlu1 %v9895_v25 }
 0x143   : > { %760 = vadd.xlane.f32.xlu0 %v9900_v26  ;;  %762 = vadd.xlane.f32.xlu1 %v9903_v27 }
 0x147   : > { %764 = vadd.xlane.f32.xlu0 %v9908_v28  ;;  %766 = vadd.xlane.f32.xlu1 %v9911_v29 }
 0x14b   : > { %768 = vadd.xlane.f32.xlu0 %v9916_v30  ;;  %770 = vadd.xlane.f32.xlu1 %v9919_v31 }
 0x19c   : > { %v709_v42 = vpop.xlane.xlu0 %708  ;;  %v713_v43 = vpop.xlane.xlu1 %712 }
 0x19d   : > { %v773_v44 = vmul.f32 0.0078125, %v709_v42  ;;  %v775_v45 = vmul.f32 0.0078125, %v713_v43 }
 0x19f   : > { %v9924_v46 = vsub.f32 %v9796_v0, %v773_v44  ;;  %v9927_v47 = vsub.f32 %v9799_v1, %v775_v45 }
 0x1a0   : > { %v711_v48 = vpop.xlane.xlu0 %710  ;;  %v715_v49 = vpop.xlane.xlu1 %714 }
 0x1a1   : > { %v774_v50 = vmul.f32 0.0078125, %v711_v48  ;;  %v837_v51 = vmul.f32 %v9924_v46, %v9924_v46  ;;  %v776_v52 = vmul.f32 0.0078125, %v715_v49  ;;  %v839_v55 = vmul.f32 %v9927_v47, %v9927_v47 }
 0x1a3   : > { %v9932_v53 = vsub.f32 %v9804_v2, %v774_v50  ;;  %869 = vadd.xlane.f32.xlu0 %v837_v51  ;;  %v9935_v54 = vsub.f32 %v9807_v3, %v776_v52 }
 0x1a4   : > { %v717_v56 = vpop.xlane.xlu0 %716  ;;  %v719_v57 = vpop.xlane.xlu1 %718 }
 0x1a5   : > { %v777_v58 = vmul.f32 0.0078125, %v717_v56  ;;  %v838_v59 = vmul.f32 %v9932_v53, %v9932_v53  ;;  %v778_v60 = vmul.f32 0.0078125, %v719_v57  ;;  %v840_v63 = vmul.f32 %v9935_v54, %v9935_v54  ;;  %v8302_v56 = vld [vmem:[#allocation9 + $0x28] sm:$0xff]  }
 0x1a6   : > { %v8303_v57 = vld [vmem:[#allocation10 + $0x28] sm:$0xff]   ;;  %7760 = vmatprep.subr.bf16.mxu0 %v8302_v56 }
 0x1a7   : > { %v9942_v61 = vsub.f32 %v9812_v4, %v777_v58  ;;  %873 = vadd.xlane.f32.xlu0 %v839_v55  ;;  %871 = vadd.xlane.f32.xlu1 %v838_v59  ;;  %v9945_v62 = vsub.f32 %v9815_v5, %v778_v60 }
 0x1a8   : > { %v721_v0 = vpop.xlane.xlu0 %720  ;;  %v723_v1 = vpop.xlane.xlu1 %722  ;;  %7808 = vmatprep.subr.bf16.mxu1 %v8303_v57  ;;  %7761 = vmatpush3.bf16.xpose.msra.mxu0 %v8302_v56 }
 0x1a9   : > { %v779_v2 = vmul.f32 0.0078125, %v721_v0  ;;  %v841_v3 = vmul.f32 %v9942_v61, %v9942_v61  ;;  %v780_v32 = vmul.f32 0.0078125, %v723_v1  ;;  %v842_v5 = vmul.f32 %v9945_v62, %v9945_v62  ;;  %7809 = vmatpush3.bf16.xpose.msra.mxu1 %v8303_v57 }
 0x1ab   : > { %v9952_v33 = vsub.f32 %v9820_v6, %v779_v2  ;;  %875 = vadd.xlane.f32.xlu1 %v840_v63  ;;  %877 = vadd.xlane.f32.xlu0 %v841_v3  ;;  %v9955_v4 = vsub.f32 %v9823_v7, %v780_v32 }
 0x1ac   : > { %v725_v34 = vpop.xlane.xlu0 %724  ;;  %v727_v35 = vpop.xlane.xlu1 %726 }
 0x1ad   : > { %v781_v36 = vmul.f32 0.0078125, %v725_v34  ;;  %v843_v37 = vmul.f32 %v9952_v33, %v9952_v33  ;;  %v782_v38 = vmul.f32 0.0078125, %v727_v35  ;;  %v844_v7 = vmul.f32 %v9955_v4, %v9955_v4 }
 0x1af   : > { %v9962_v39 = vsub.f32 %v9826_v8, %v781_v36  ;;  %879 = vadd.xlane.f32.xlu1 %v842_v5  ;;  %881 = vadd.xlane.f32.xlu0 %v843_v37  ;;  %v9965_v6 = vsub.f32 %v9829_v9, %v782_v38  ;;  %v8304_v36 = vld [vmem:[#allocation9 + $0x30] sm:$0xff]  }
 0x1b0   : > { %v729_v40 = vpop.xlane.xlu0 %728  ;;  %v731_v41 = vpop.xlane.xlu1 %730  ;;  %v8305_v37 = vld [vmem:[#allocation10 + $0x30] sm:$0xff]   ;;  %7762 = vmatprep.subr.bf16.mxu0 %v8304_v36 }
 0x1b1   : > { %v783_v42 = vmul.f32 0.0078125, %v729_v40  ;;  %v845_v43 = vmul.f32 %v9962_v39, %v9962_v39  ;;  %v784_v44 = vmul.f32 0.0078125, %v731_v41  ;;  %v846_v9 = vmul.f32 %v9965_v6, %v9965_v6  ;;  %7810 = vmatprep.subr.bf16.mxu1 %v8305_v37  ;;  %7763 = vmatpush3.bf16.xpose.msra.mxu0 %v8304_v36 }
 0x1b2   : > { %7811 = vmatpush3.bf16.xpose.msra.mxu1 %v8305_v37 }
 0x1b3   : > { %v9972_v45 = vsub.f32 %v9834_v10, %v783_v42  ;;  %883 = vadd.xlane.f32.xlu1 %v844_v7  ;;  %885 = vadd.xlane.f32.xlu0 %v845_v43  ;;  %v9975_v8 = vsub.f32 %v9837_v11, %v784_v44 }
 0x1b4   : > { %v733_v48 = vpop.xlane.xlu0 %732  ;;  %v735_v49 = vpop.xlane.xlu1 %734 }
 0x1b5   : > { %v785_v50 = vmul.f32 0.0078125, %v733_v48  ;;  %v847_v51 = vmul.f32 %v9972_v45, %v9972_v45  ;;  %v786_v52 = vmul.f32 0.0078125, %v735_v49  ;;  %v848_v11 = vmul.f32 %v9975_v8, %v9975_v8 }
 0x1b7   : > { %v9982_v55 = vsub.f32 %v9844_v12, %v785_v50  ;;  %887 = vadd.xlane.f32.xlu1 %v846_v9  ;;  %889 = vadd.xlane.f32.xlu0 %v847_v51  ;;  %v9985_v10 = vsub.f32 %v9847_v13, %v786_v52  ;;  %v8306_v52 = vld [vmem:[#allocation9 + $0x38] sm:$0xff]  }
 0x1b8   : > { %v737_v58 = vpop.xlane.xlu0 %736  ;;  %v739_v59 = vpop.xlane.xlu1 %738  ;;  %7764 = vmatprep.subr.bf16.mxu0 %v8306_v52 }
 0x1b9   : > { %v787_v60 = vmul.f32 0.0078125, %v737_v58  ;;  %v849_v63 = vmul.f32 %v9982_v55, %v9982_v55  ;;  %v788_v0 = vmul.f32 0.0078125, %v739_v59  ;;  %v850_v1 = vmul.f32 %v9985_v10, %v9985_v10  ;;  %7765 = vmatpush3.bf16.xpose.msra.mxu0 %v8306_v52 }
 0x1bb   : > { %v9992_v12 = vsub.f32 %v9852_v14, %v787_v60  ;;  %891 = vadd.xlane.f32.xlu1 %v848_v11  ;;  %893 = vadd.xlane.f32.xlu0 %v849_v63  ;;  %v9995_v13 = vsub.f32 %v9855_v15, %v788_v0  ;;  %v8307_v11 = vld [vmem:[#allocation10 + $0x38] sm:$0xff]  }
 0x1bc   : > { %v741_v2 = vpop.xlane.xlu0 %740  ;;  %v743_v3 = vpop.xlane.xlu1 %742  ;;  %7812 = vmatprep.subr.bf16.mxu1 %v8307_v11 }
 0x1bd   : > { %v789_v32 = vmul.f32 0.0078125, %v741_v2  ;;  %v851_v5 = vmul.f32 %v9992_v12, %v9992_v12  ;;  %v790_v34 = vmul.f32 0.0078125, %v743_v3  ;;  %v852_v15 = vmul.f32 %v9995_v13, %v9995_v13  ;;  %7813 = vmatpush3.bf16.xpose.msra.mxu1 %v8307_v11 }
 0x1bf   : > { %v10002_v35 = vsub.f32 %v9860_v16, %v789_v32  ;;  %895 = vadd.xlane.f32.xlu1 %v850_v1  ;;  %897 = vadd.xlane.f32.xlu0 %v851_v5  ;;  %v10005_v14 = vsub.f32 %v9863_v17, %v790_v34 }
 0x1c0   : > { %v745_v38 = vpop.xlane.xlu0 %744  ;;  %v747_v7 = vpop.xlane.xlu1 %746 }
 0x1c1   : > { %v791_v40 = vmul.f32 0.0078125, %v745_v38  ;;  %v853_v41 = vmul.f32 %v10002_v35, %v10002_v35  ;;  %v792_v42 = vmul.f32 0.0078125, %v747_v7  ;;  %v854_v43 = vmul.f32 %v10005_v14, %v10005_v14 }
 0x1c3   : > { %v10012_v16 = vsub.f32 %v9868_v18, %v791_v40  ;;  %899 = vadd.xlane.f32.xlu1 %v852_v15  ;;  %901 = vadd.xlane.f32.xlu0 %v853_v41  ;;  %v10015_v17 = vsub.f32 %v9871_v19, %v792_v42 }
 0x1c4   : > { %v749_v44 = vpop.xlane.xlu0 %748  ;;  %v751_v9 = vpop.xlane.xlu1 %750 }
 0x1c5   : > { %v793_v48 = vmul.f32 0.0078125, %v749_v44  ;;  %v855_v49 = vmul.f32 %v10012_v16, %v10012_v16  ;;  %v794_v50 = vmul.f32 0.0078125, %v751_v9  ;;  %v856_v19 = vmul.f32 %v10015_v17, %v10015_v17 }
 0x1c7   : > { %v10022_v51 = vsub.f32 %v9876_v20, %v793_v48  ;;  %903 = vadd.xlane.f32.xlu1 %v854_v43  ;;  %905 = vadd.xlane.f32.xlu0 %v855_v49  ;;  %v10025_v18 = vsub.f32 %v9879_v21, %v794_v50 }
 0x1c8   : > { %v753_v56 = vpop.xlane.xlu0 %752  ;;  %v755_v57 = vpop.xlane.xlu1 %754 }
 0x1c9   : > { %v795_v58 = vmul.f32 0.0078125, %v753_v56  ;;  %v857_v59 = vmul.f32 %v10022_v51, %v10022_v51  ;;  %v796_v60 = vmul.f32 0.0078125, %v755_v57  ;;  %v858_v63 = vmul.f32 %v10025_v18, %v10025_v18 }
 0x1cb   : > { %v10032_v20 = vsub.f32 %v9884_v22, %v795_v58  ;;  %907 = vadd.xlane.f32.xlu1 %v856_v19  ;;  %909 = vadd.xlane.f32.xlu0 %v857_v59  ;;  %v10035_v21 = vsub.f32 %v9887_v23, %v796_v60 }
 0x1cc   : > { %v757_v0 = vpop.xlane.xlu0 %756  ;;  %v759_v1 = vpop.xlane.xlu1 %758 }
 0x1cd   : > { %v797_v2 = vmul.f32 0.0078125, %v757_v0  ;;  %v859_v3 = vmul.f32 %v10032_v20, %v10032_v20  ;;  %v798_v32 = vmul.f32 0.0078125, %v759_v1  ;;  %v860_v23 = vmul.f32 %v10035_v21, %v10035_v21 }
 0x1cf   : > { %v10042_v5 = vsub.f32 %v9892_v24, %v797_v2  ;;  %911 = vadd.xlane.f32.xlu1 %v858_v63  ;;  %913 = vadd.xlane.f32.xlu0 %v859_v3  ;;  %v10045_v22 = vsub.f32 %v9895_v25, %v798_v32 }
 0x1d0   : > { %v761_v34 = vpop.xlane.xlu0 %760  ;;  %v763_v15 = vpop.xlane.xlu1 %762 }
 0x1d1   : > { %v799_v36 = vmul.f32 0.0078125, %v761_v34  ;;  %v861_v37 = vmul.f32 %v10042_v5, %v10042_v5  ;;  %v800_v38 = vmul.f32 0.0078125, %v763_v15  ;;  %v862_v25 = vmul.f32 %v10045_v22, %v10045_v22 }
 0x1d3   : > { %v10052_v7 = vsub.f32 %v9900_v26, %v799_v36  ;;  %915 = vadd.xlane.f32.xlu1 %v860_v23  ;;  %917 = vadd.xlane.f32.xlu0 %v861_v37  ;;  %v10055_v24 = vsub.f32 %v9903_v27, %v800_v38 }
 0x1d4   : > { %v765_v40 = vpop.xlane.xlu0 %764  ;;  %v767_v41 = vpop.xlane.xlu1 %766 }
 0x1d5   : > { %v801_v42 = vmul.f32 0.0078125, %v765_v40  ;;  %v863_v43 = vmul.f32 %v10052_v7, %v10052_v7  ;;  %v802_v44 = vmul.f32 0.0078125, %v767_v41  ;;  %v864_v27 = vmul.f32 %v10055_v24, %v10055_v24 }
 0x1d7   : > { %v10062_v9 = vsub.f32 %v9908_v28, %v801_v42  ;;  %919 = vadd.xlane.f32.xlu1 %v862_v25  ;;  %921 = vadd.xlane.f32.xlu0 %v863_v43  ;;  %v10065_v26 = vsub.f32 %v9911_v29, %v802_v44 }
 0x1d8   : > { %v769_v48 = vpop.xlane.xlu0 %768  ;;  %v771_v49 = vpop.xlane.xlu1 %770 }
 0x1d9   : > { %v803_v50 = vmul.f32 0.0078125, %v769_v48  ;;  %v865_v19 = vmul.f32 %v10062_v9, %v10062_v9  ;;  %v804_v52 = vmul.f32 0.0078125, %v771_v49  ;;  %v866_v29 = vmul.f32 %v10065_v26, %v10065_v26 }
 0x1db   : > { %v10072_v11 = vsub.f32 %v9916_v30, %v803_v50  ;;  %923 = vadd.xlane.f32.xlu1 %v864_v27  ;;  %925 = vadd.xlane.f32.xlu0 %v865_v19  ;;  %v10075_v28 = vsub.f32 %v9919_v31, %v804_v52  ;;  %v10087_v19 = vld [vmem:[%s13438_s27] ss:$0 sm:$0xff] }
 0x1dd   : > { %v867_v56 = vmul.f32 %v10072_v11, %v10072_v11  ;;  %v868_v57 = vmul.f32 %v10075_v28, %v10075_v28 }
 0x1df   : > { %927 = vadd.xlane.f32.xlu1 %v866_v29  ;;  %929 = vadd.xlane.f32.xlu0 %v867_v56 }
 0x1e3   : > { %931 = vadd.xlane.f32.xlu1 %v868_v57 }
 0x230   : > { %v870_v58 = vpop.xlane.xlu0 %869 }
 0x231   : > { %v933_v30 = vmul.f32 0.0078125, %v870_v58 }
 0x233   : > { %v965_v59 = vadd.f32 1e-05, %v933_v30 }
 0x234   : > { %v872_v60 = vpop.xlane.xlu1 %871  ;;  %v874_v63 = vpop.xlane.xlu0 %873 }
 0x235   : > { %8308 = vrsqrt.f32 %v965_v59  ;;  %v934_v31 = vmul.f32 0.0078125, %v872_v60  ;;  %v935_v0 = vmul.f32 0.0078125, %v874_v63 }
 0x237   : > { %v966_v1 = vadd.f32 1e-05, %v934_v31  ;;  %v967_v2 = vadd.f32 1e-05, %v935_v0  ;;  %v10094_v31 = vld [vmem:[%s13439_s0] ss:$0 sm:$0xff] }
 0x238   : > { %v876_v3 = vpop.xlane.xlu1 %875  ;;  %v878_v32 = vpop.xlane.xlu0 %877 }
 0x239   : > { %8310 = vrsqrt.f32 %v966_v1  ;;  %v936_v23 = vmul.f32 0.0078125, %v876_v3  ;;  %v937_v34 = vmul.f32 0.0078125, %v878_v32 }
 0x23a   : > { %8312 = vrsqrt.f32 %v967_v2 }
 0x23b   : > { %v968_v15 = vadd.f32 1e-05, %v936_v23  ;;  %v969_v36 = vadd.f32 1e-05, %v937_v34 }
 0x23c   : > { %v880_v37 = vpop.xlane.xlu1 %879  ;;  %v882_v38 = vpop.xlane.xlu0 %881 }
 0x23d   : > { %8314 = vrsqrt.f32 %v968_v15  ;;  %v938_v25 = vmul.f32 0.0078125, %v880_v37  ;;  %v939_v40 = vmul.f32 0.0078125, %v882_v38 }
 0x23e   : > { %8316 = vrsqrt.f32 %v969_v36 }
 0x23f   : > { %v8309_v41 = vpop.eup %8308  ;;  %v970_v42 = vadd.f32 1e-05, %v938_v25  ;;  %v971_v43 = vadd.f32 1e-05, %v939_v40 }
 0x240   : > { %v884_v44 = vpop.xlane.xlu1 %883  ;;  %v886_v27 = vpop.xlane.xlu0 %885  ;;  %v1029_v48 = vmul.f32 %v8309_v41, %v9924_v46 }
 0x241   : > { %8318 = vrsqrt.f32 %v970_v42  ;;  %v940_v49 = vmul.f32 0.0078125, %v884_v44  ;;  %v941_v50 = vmul.f32 0.0078125, %v886_v27 }
 0x242   : > { %8320 = vrsqrt.f32 %v971_v43  ;;  %v1067_v60 = vmul.f32 %v10087_v19, %v1029_v48 }
 0x243   : > { %v8311_v52 = vpop.eup %8310  ;;  %v972_v29 = vadd.f32 1e-05, %v940_v49  ;;  %v973_v56 = vadd.f32 1e-05, %v941_v50 }
 0x244   : > { %v8313_v57 = vpop.eup %8312  ;;  %v888_v58 = vpop.xlane.xlu1 %887  ;;  %v1030_v59 = vmul.f32 %v8311_v52, %v9932_v53  ;;  %v1105_v36 = vadd.f32 %v10094_v31, %v1067_v60 }
 0x245   : > { %v890_v30 = vpop.xlane.xlu0 %889  ;;  %8322 = vrsqrt.f32 %v972_v29  ;;  %v942_v46 = vmul.f32 0.0078125, %v888_v58  ;;  %v1031_v0 = vmul.f32 %v8313_v57, %v9927_v47 }
 0x246   : > { %v943_v63 = vmul.f32 0.0078125, %v890_v30  ;;  %8324 = vrsqrt.f32 %v973_v56  ;;  %v1068_v1 = vmul.f32 %v10087_v19, %v1030_v59 }
 0x247   : > { %v8315_v2 = vpop.eup %8314  ;;  %v974_v3 = vadd.f32 1e-05, %v942_v46  ;;  %v1069_v53 = vmul.f32 %v10087_v19, %v1031_v0 }
 0x248   : > { %v975_v32 = vadd.f32 1e-05, %v943_v63  ;;  %v8317_v23 = vpop.eup %8316  ;;  %v892_v34 = vpop.xlane.xlu1 %891  ;;  %v1106_v37 = vadd.f32 %v10094_v31, %v1068_v1  ;;  %v1032_v38 = vmul.f32 %v8315_v2, %v9935_v54 }
 0x249   : > { %v894_v15 = vpop.xlane.xlu0 %893  ;;  %8326 = vrsqrt.f32 %v974_v3  ;;  %v944_v25 = vmul.f32 0.0078125, %v892_v34  ;;  %v1033_v42 = vmul.f32 %v8317_v23, %v9942_v61  ;;  %v1107_v48 = vadd.f32 %v10094_v31, %v1069_v53 }
 0x24a   : > { %v945_v47 = vmul.f32 0.0078125, %v894_v15  ;;  %8328 = vrsqrt.f32 %v975_v32  ;;  %v1153_v40 = vpack.c.bf16 %v1106_v37, %v1105_v36  ;;  %v1070_v41 = vmul.f32 %v10087_v19, %v1032_v38 }
 0x24b   : > { %v8319_v43 = vpop.eup %8318  ;;  %v976_v44 = vadd.f32 1e-05, %v944_v25  ;;  %v1071_v56 = vmul.f32 %v10087_v19, %v1033_v42 }
 0x24c   : > { %v977_v27 = vadd.f32 1e-05, %v945_v47  ;;  %v8321_v49 = vpop.eup %8320  ;;  %v896_v50 = vpop.xlane.xlu1 %895  ;;  %7766 = vmatprep.mubr.bf16.mxu0 %v1153_v40  ;;  %7814 = vmatprep.mubr.bf16.mxu1 %v1153_v40  ;;  %v1108_v54 = vadd.f32 %v10094_v31, %v1070_v41  ;;  %v1034_v29 = vmul.f32 %v8319_v43, %v9945_v62 }
 0x24d   : > { %v898_v52 = vpop.xlane.xlu0 %897  ;;  %8330 = vrsqrt.f32 %v976_v44  ;;  %v946_v57 = vmul.f32 0.0078125, %v896_v50  ;;  %v1035_v61 = vmul.f32 %v8321_v49, %v9952_v33  ;;  %v1109_v3 = vadd.f32 %v10094_v31, %v1071_v56 }
 0x24e   : > { %v947_v58 = vmul.f32 0.0078125, %v898_v52  ;;  %8332 = vrsqrt.f32 %v977_v27  ;;  %v1154_v30 = vpack.c.bf16 %v1108_v54, %v1107_v48  ;;  %v1072_v59 = vmul.f32 %v10087_v19, %v1034_v29 }
 0x24f   : > { %v8323_v60 = vpop.eup %8322  ;;  %v978_v46 = vadd.f32 1e-05, %v946_v57  ;;  %v1073_v0 = vmul.f32 %v10087_v19, %v1035_v61 }
 0x250   : > { %v979_v63 = vadd.f32 1e-05, %v947_v58  ;;  %v8325_v1 = vpop.eup %8324  ;;  %v900_v2 = vpop.xlane.xlu1 %899  ;;  %7767 = vmatmul.mubr.bf16.vlgmr.msra.gmra.mrb[0].mxu0 %v1154_v30  ;;  %7815 = vmatmul.mubr.bf16.vlgmr.msra.gmra.mrb[0].mxu1 %v1154_v30  ;;  %v1110_v32 = vadd.f32 %v10094_v31, %v1072_v59  ;;  %v1036_v33 = vmul.f32 %v8323_v60, %v9955_v4 }
 0x251   : > { %v902_v62 = vpop.xlane.xlu0 %901  ;;  %8334 = vrsqrt.f32 %v978_v46  ;;  %v948_v53 = vmul.f32 0.0078125, %v900_v2  ;;  %v1037_v36 = vmul.f32 %v8325_v1, %v9962_v39  ;;  %v1111_v47 = vadd.f32 %v10094_v31, %v1073_v0 }
 0x252   : > { %v949_v23 = vmul.f32 0.0078125, %v902_v62  ;;  %8336 = vrsqrt.f32 %v979_v63  ;;  %v1155_v34 = vpack.c.bf16 %v1110_v32, %v1109_v3  ;;  %v1074_v15 = vmul.f32 %v10087_v19, %v1036_v33 }
 0x253   : > { %v8327_v37 = vpop.eup %8326  ;;  %v980_v38 = vadd.f32 1e-05, %v948_v53  ;;  %v1075_v44 = vmul.f32 %v10087_v19, %v1037_v36 }
 0x254   : > { %v981_v25 = vadd.f32 1e-05, %v949_v23  ;;  %v8329_v40 = vpop.eup %8328  ;;  %v904_v41 = vpop.xlane.xlu1 %903  ;;  %7770 = vmatprep.mubr.bf16.mxu0 %v1155_v34  ;;  %7818 = vmatprep.mubr.bf16.mxu1 %v1155_v34  ;;  %v1112_v4 = vadd.f32 %v10094_v31, %v1074_v15  ;;  %v1038_v43 = vmul.f32 %v8327_v37, %v9965_v6 }
 0x255   : > { %v906_v42 = vpop.xlane.xlu0 %905  ;;  %8338 = vrsqrt.f32 %v980_v38  ;;  %v950_v27 = vmul.f32 0.0078125, %v904_v41  ;;  %v1039_v39 = vmul.f32 %v8329_v40, %v9972_v45  ;;  %v1113_v61 = vadd.f32 %v10094_v31, %v1075_v44 }
 0x256   : > { %v951_v48 = vmul.f32 0.0078125, %v906_v42  ;;  %8340 = vrsqrt.f32 %v981_v25  ;;  %v1156_v49 = vpack.c.bf16 %v1112_v4, %v1111_v47  ;;  %v1076_v50 = vmul.f32 %v10087_v19, %v1038_v43 }
 0x257   : > { %v8331_v52 = vpop.eup %8330  ;;  %v982_v54 = vadd.f32 1e-05, %v950_v27  ;;  %v1077_v56 = vmul.f32 %v10087_v19, %v1039_v39 }
 0x258   : > { %v983_v29 = vadd.f32 1e-05, %v951_v48  ;;  %v8333_v57 = vpop.eup %8332  ;;  %v908_v58 = vpop.xlane.xlu1 %907  ;;  %7771 = vmatmul.mubr.bf16.gmra.mrb[4].mxu0 %v1156_v49  ;;  %7819 = vmatmul.mubr.bf16.gmra.mrb[4].mxu1 %v1156_v49  ;;  %v1114_v30 = vadd.f32 %v10094_v31, %v1076_v50  ;;  %v1040_v45 = vmul.f32 %v8331_v52, %v9975_v8 }
 0x259   : > { %v910_v6 = vpop.xlane.xlu0 %909  ;;  %8342 = vrsqrt.f32 %v982_v54  ;;  %v952_v59 = vmul.f32 0.0078125, %v908_v58  ;;  %v1041_v0 = vmul.f32 %v8333_v57, %v9982_v55  ;;  %v1115_v3 = vadd.f32 %v10094_v31, %v1077_v56 }
 0x25a   : > { %v953_v60 = vmul.f32 0.0078125, %v910_v6  ;;  %8344 = vrsqrt.f32 %v983_v29  ;;  %v1157_v46 = vpack.c.bf16 %v1114_v30, %v1113_v61  ;;  %v1078_v63 = vmul.f32 %v10087_v19, %v1040_v45 }
 0x25b   : > { %v8335_v1 = vpop.eup %8334  ;;  %v984_v2 = vadd.f32 1e-05, %v952_v59  ;;  %v1079_v34 = vmul.f32 %v10087_v19, %v1041_v0 }
 0x25c   : > { %v985_v62 = vadd.f32 1e-05, %v953_v60  ;;  %v8337_v32 = vpop.eup %8336  ;;  %v912_v33 = vpop.xlane.xlu1 %911  ;;  %7774 = vmatprep.mubr.bf16.mxu0 %v1157_v46  ;;  %7822 = vmatprep.mubr.bf16.mxu1 %v1157_v46  ;;  %v1116_v8 = vadd.f32 %v10094_v31, %v1078_v63  ;;  %v1042_v23 = vmul.f32 %v8335_v1, %v9985_v10 }
 0x25d   : > { %v914_v53 = vpop.xlane.xlu0 %913  ;;  %8346 = vrsqrt.f32 %v984_v2  ;;  %v954_v15 = vmul.f32 0.0078125, %v912_v33  ;;  %v1043_v55 = vmul.f32 %v8337_v32, %v9992_v12  ;;  %v1117_v43 = vadd.f32 %v10094_v31, %v1079_v34 }
 0x25e   : > { %v955_v36 = vmul.f32 0.0078125, %v914_v53  ;;  %8348 = vrsqrt.f32 %v985_v62  ;;  %v1158_v37 = vpack.c.bf16 %v1116_v8, %v1115_v3  ;;  %v1080_v38 = vmul.f32 %v10087_v19, %v1042_v23 }
 0x25f   : > { %v8339_v25 = vpop.eup %8338  ;;  %v986_v47 = vadd.f32 1e-05, %v954_v15  ;;  %v1081_v41 = vmul.f32 %v10087_v19, %v1043_v55 }
 0x260   : > { %v987_v40 = vadd.f32 1e-05, %v955_v36  ;;  %v8341_v42 = vpop.eup %8340  ;;  %v916_v4 = vpop.xlane.xlu1 %915  ;;  %7775 = vmatmul.mubr.bf16.gmra.mrb[8].mxu0 %v1158_v37  ;;  %7823 = vmatmul.mubr.bf16.gmra.mrb[8].mxu1 %v1158_v37  ;;  %v1118_v44 = vadd.f32 %v10094_v31, %v1080_v38  ;;  %v1044_v12 = vmul.f32 %v8339_v25, %v9995_v13 }
 0x261   : > { %v918_v10 = vpop.xlane.xlu0 %917  ;;  %8350 = vrsqrt.f32 %v986_v47  ;;  %v956_v27 = vmul.f32 0.0078125, %v916_v4  ;;  %v1045_v50 = vmul.f32 %v8341_v42, %v10002_v35  ;;  %v1119_v56 = vadd.f32 %v10094_v31, %v1081_v41 }
 0x262   : > { %v957_v48 = vmul.f32 0.0078125, %v918_v10  ;;  %8352 = vrsqrt.f32 %v987_v40  ;;  %v1159_v39 = vpack.c.bf16 %v1118_v44, %v1117_v43  ;;  %v1082_v49 = vmul.f32 %v10087_v19, %v1044_v12 }
 0x263   : > { %v8343_v52 = vpop.eup %8342  ;;  %v988_v54 = vadd.f32 1e-05, %v956_v27  ;;  %v1083_v30 = vmul.f32 %v10087_v19, %v1045_v50 }
 0x264   : > { %v989_v29 = vadd.f32 1e-05, %v957_v48  ;;  %v8345_v57 = vpop.eup %8344  ;;  %v920_v58 = vpop.xlane.xlu1 %919  ;;  %7778 = vmatprep.mubr.bf16.mxu0 %v1159_v39  ;;  %7826 = vmatprep.mubr.bf16.mxu1 %v1159_v39  ;;  %v1120_v13 = vadd.f32 %v10094_v31, %v1082_v49  ;;  %v1046_v61 = vmul.f32 %v8343_v52, %v10005_v14 }
 0x265   : > { %v922_v6 = vpop.xlane.xlu0 %921  ;;  %8354 = vrsqrt.f32 %v988_v54  ;;  %v958_v45 = vmul.f32 0.0078125, %v920_v58  ;;  %v1047_v35 = vmul.f32 %v8345_v57, %v10012_v16  ;;  %v1121_v32 = vadd.f32 %v10094_v31, %v1083_v30 }
 0x266   : > { %v959_v59 = vmul.f32 0.0078125, %v922_v6  ;;  %8356 = vrsqrt.f32 %v989_v29  ;;  %v1160_v60 = vpack.c.bf16 %v1120_v13, %v1119_v56  ;;  %v1084_v46 = vmul.f32 %v10087_v19, %v1046_v61 }
 0x267   : > { %v8347_v63 = vpop.eup %8346  ;;  %v990_v0 = vadd.f32 1e-05, %v958_v45  ;;  %v1085_v2 = vmul.f32 %v10087_v19, %v1047_v35 }
 0x268   : > { %v991_v1 = vadd.f32 1e-05, %v959_v59  ;;  %v8349_v62 = vpop.eup %8348  ;;  %v924_v3 = vpop.xlane.xlu1 %923  ;;  %7779 = vmatmul.mubr.bf16.gmra.mrb[12].mxu0 %v1160_v60  ;;  %7827 = vmatmul.mubr.bf16.gmra.mrb[12].mxu1 %v1160_v60  ;;  %v1122_v33 = vadd.f32 %v10094_v31, %v1084_v46  ;;  %v1048_v16 = vmul.f32 %v8347_v63, %v10015_v17 }
 0x269   : > { %v926_v14 = vpop.xlane.xlu0 %925  ;;  %8358 = vrsqrt.f32 %v990_v0  ;;  %v960_v53 = vmul.f32 0.0078125, %v924_v3  ;;  %v1049_v15 = vmul.f32 %v8349_v62, %v10022_v51  ;;  %v1123_v38 = vadd.f32 %v10094_v31, %v1085_v2 }
 0x26a   : > { %v961_v8 = vmul.f32 0.0078125, %v926_v14  ;;  %8360 = vrsqrt.f32 %v991_v1  ;;  %v1161_v23 = vpack.c.bf16 %v1122_v33, %v1121_v32  ;;  %v1086_v34 = vmul.f32 %v10087_v19, %v1048_v16 }
 0x26b   : > { %v8351_v36 = vpop.eup %8350  ;;  %v992_v55 = vadd.f32 1e-05, %v960_v53  ;;  %v1087_v42 = vmul.f32 %v10087_v19, %v1049_v15 }
 0x26c   : > { %v993_v37 = vadd.f32 1e-05, %v961_v8  ;;  %v8353_v25 = vpop.eup %8352  ;;  %v928_v47 = vpop.xlane.xlu1 %927  ;;  %7782 = vmatprep.mubr.bf16.mxu0 %v1161_v23  ;;  %7830 = vmatprep.mubr.bf16.mxu1 %v1161_v23  ;;  %v1124_v17 = vadd.f32 %v10094_v31, %v1086_v34  ;;  %v1050_v41 = vmul.f32 %v8351_v36, %v10025_v18 }
 0x26d   : > { %v930_v40 = vpop.xlane.xlu0 %929  ;;  %8362 = vrsqrt.f32 %v992_v55  ;;  %v962_v4 = vmul.f32 0.0078125, %v928_v47  ;;  %v1051_v51 = vmul.f32 %v8353_v25, %v10032_v20  ;;  %v1125_v39 = vadd.f32 %v10094_v31, %v1087_v42 }
 0x26e   : > { %v963_v10 = vmul.f32 0.0078125, %v930_v40  ;;  %8364 = vrsqrt.f32 %v993_v37  ;;  %v1162_v43 = vpack.c.bf16 %v1124_v17, %v1123_v38  ;;  %v1088_v44 = vmul.f32 %v10087_v19, %v1050_v41  ;;  %v10192_v40 = vld [vmem:[%s13440_s17] ss:$0 sm:$0xff] }
 0x26f   : > { %v8355_v12 = vpop.eup %8354  ;;  %v994_v27 = vadd.f32 1e-05, %v962_v4  ;;  %v1089_v54 = vmul.f32 %v10087_v19, %v1051_v51 }
 0x270   : > { %v995_v48 = vadd.f32 1e-05, %v963_v10  ;;  %v8357_v49 = vpop.eup %8356  ;;  %v932_v50 = vpop.xlane.xlu1 %931  ;;  %7783 = vmatmul.mubr.bf16.gmra.mrb[16].mxu0 %v1162_v43  ;;  %7831 = vmatmul.mubr.bf16.gmra.mrb[16].mxu1 %v1162_v43  ;;  %v1126_v18 = vadd.f32 %v10094_v31, %v1088_v44  ;;  %v1052_v52 = vmul.f32 %v8355_v12, %v10035_v21 }
 0x271   : > { %8366 = vrsqrt.f32 %v994_v27  ;;  %v964_v20 = vmul.f32 0.0078125, %v932_v50  ;;  %v1053_v29 = vmul.f32 %v8357_v49, %v10042_v5  ;;  %v1127_v30 = vadd.f32 %v10094_v31, %v1089_v54 }
 0x272   : > { %8368 = vrsqrt.f32 %v995_v48  ;;  %v1163_v56 = vpack.c.bf16 %v1126_v18, %v1125_v39  ;;  %v1090_v57 = vmul.f32 %v10087_v19, %v1052_v52 }
 0x273   : > { %v8359_v58 = vpop.eup %8358  ;;  %v996_v6 = vadd.f32 1e-05, %v964_v20  ;;  %v1091_v13 = vmul.f32 %v10087_v19, %v1053_v29 }
 0x274   : > { %v8361_v61 = vpop.eup %8360  ;;  %7786 = vmatprep.mubr.bf16.mxu0 %v1163_v56  ;;  %7834 = vmatprep.mubr.bf16.mxu1 %v1163_v56  ;;  %v1128_v21 = vadd.f32 %v10094_v31, %v1090_v57  ;;  %v1054_v45 = vmul.f32 %v8359_v58, %v10045_v22 }
 0x275   : > { %8370 = vrsqrt.f32 %v996_v6  ;;  %v1055_v5 = vmul.f32 %v8361_v61, %v10052_v7  ;;  %v1129_v46 = vadd.f32 %v10094_v31, %v1091_v13 }
 0x276   : > { %v1164_v59 = vpack.c.bf16 %v1128_v21, %v1127_v30  ;;  %v1092_v35 = vmul.f32 %v10087_v19, %v1054_v45 }
 0x277   : > { %v8363_v60 = vpop.eup %8362  ;;  %v1093_v2 = vmul.f32 %v10087_v19, %v1055_v5 }
 0x278   : > { %v8365_v63 = vpop.eup %8364  ;;  %7787 = vmatmul.mubr.bf16.gmra.mrb[20].mxu0 %v1164_v59  ;;  %7835 = vmatmul.mubr.bf16.gmra.mrb[20].mxu1 %v1164_v59  ;;  %v1130_v0 = vadd.f32 %v10094_v31, %v1092_v35  ;;  %v1056_v1 = vmul.f32 %v8363_v60, %v10055_v24 }
 0x279   : > { %v1057_v22 = vmul.f32 %v8365_v63, %v10062_v9  ;;  %v1131_v33 = vadd.f32 %v10094_v31, %v1093_v2 }
 0x27a   : > { %v1165_v62 = vpack.c.bf16 %v1130_v0, %v1129_v46  ;;  %v1094_v7 = vmul.f32 %v10087_v19, %v1056_v1 }
 0x27b   : > { %v8367_v3 = vpop.eup %8366  ;;  %v1095_v14 = vmul.f32 %v10087_v19, %v1057_v22 }
 0x27c   : > { %v8369_v32 = vpop.eup %8368  ;;  %7790 = vmatprep.mubr.bf16.mxu0 %v1165_v62  ;;  %7838 = vmatprep.mubr.bf16.mxu1 %v1165_v62  ;;  %v1132_v16 = vadd.f32 %v10094_v31, %v1094_v7  ;;  %v1058_v53 = vmul.f32 %v8367_v3, %v10065_v26 }
 0x27d   : > { %v1059_v24 = vmul.f32 %v8369_v32, %v10072_v11  ;;  %v1133_v34 = vadd.f32 %v10094_v31, %v1095_v14 }
 0x27e   : > { %v1166_v8 = vpack.c.bf16 %v1132_v16, %v1131_v33  ;;  %v1096_v9 = vmul.f32 %v10087_v19, %v1058_v53 }
 0x27f   : > { %v8371_v23 = vpop.eup %8370  ;;  %v1097_v55 = vmul.f32 %v10087_v19, %v1059_v24 }
 0x280   : > { %7791 = vmatmul.mubr.bf16.gmra.mrb[24].mxu0 %v1166_v8  ;;  %7839 = vmatmul.mubr.bf16.gmra.mrb[24].mxu1 %v1166_v8  ;;  %v1134_v15 = vadd.f32 %v10094_v31, %v1096_v9  ;;  %v1060_v36 = vmul.f32 %v8371_v23, %v10075_v28 }
 0x281   : > { %v1135_v26 = vadd.f32 %v10094_v31, %v1097_v55 }
 0x282   : > { %v1167_v37 = vpack.c.bf16 %v1134_v15, %v1133_v34  ;;  %v1098_v38 = vmul.f32 %v10087_v19, %v1060_v36  ;;  %v10197_v19 = vld [vmem:[%s13441_s21] ss:$0 sm:$0xff] }
 0x284   : > { %7794 = vmatprep.mubr.bf16.mxu0 %v1167_v37  ;;  %7842 = vmatprep.mubr.bf16.mxu1 %v1167_v37  ;;  %v1136_v11 = vadd.f32 %v10094_v31, %v1098_v38 }
 0x286   : > { %v1168_v25 = vpack.c.bf16 %v1136_v11, %v1135_v26 }
 0x288   : > { %7795 = vmatmul.mubr.bf16.gmra.mrb[28].mxu0 %v1168_v25  ;;  %7843 = vmatmul.mubr.bf16.gmra.mrb[28].mxu1 %v1168_v25 }
 0x323   : > { %v7768_v47 = vpop.f32.mrb[0].mxu0  ;;  %v7816_v28 = vpop.f32.mrb[0].mxu1 }
 0x324   : > { %v1258_v17 = vpop.f32.mrb[1].mxu0  ;;  %v1490_v41 = vpop.f32.mrb[1].mxu1  ;;  %v1267_v31 = vadd.f32 %v7768_v47, %v10192_v40  ;;  %v1499_v10 = vadd.f32 %v7816_v28, %v10197_v19 }
 0x325   : > { %v7769_v42 = vpop.f32.mrb[2].mxu0  ;;  %v7817_v4 = vpop.f32.mrb[2].mxu1  ;;  %v1259_v27 = vadd.f32 %v10192_v40, %v1258_v17  ;;  %v1491_v48 = vadd.f32 %v10197_v19, %v1490_v41 }
 0x326   : > { %v1270_v51 = vadd.f32 %v7769_v42, %v10192_v40  ;;  %v1502_v43 = vadd.f32 %v7817_v4, %v10197_v19  ;;  %v1261_v44 = vpop.f32.mrb[3].mxu0  ;;  %v1493_v12 = vpop.f32.mrb[3].mxu1 }
 0x327   : > { %v1262_v39 = vadd.f32 %v10192_v40, %v1261_v44  ;;  %v1494_v49 = vadd.f32 %v10197_v19, %v1493_v12 }
 0x328   : > { %v1618_v50 = vpack.c.bf16 %v1270_v51, %v1267_v31  ;;  %v1650_v18 = vpack.c.bf16 %v1502_v43, %v1499_v10 }
 0x329   : > { %v1617_v52 = vpack.c.bf16 %v1262_v39, %v1259_v27  ;;  %v1649_v54 = vpack.c.bf16 %v1494_v49, %v1491_v48 }
 0x32a   : > { %1634 = vst [vmem:[#allocation2 + $0x8] sm:$0xff] %v1618_v50  ;;  %1666 = vst [vmem:[#allocation3 + $0x8] sm:$0xff] %v1650_v18 }
 0x32b   : > { %1633 = vst [vmem:[#allocation2] sm:$0xff] %v1617_v52  ;;  %1665 = vst [vmem:[#allocation3] sm:$0xff] %v1649_v54  ;;  %v7772_v20 = vpop.f32.mrb[4].mxu0  ;;  %v7820_v29 = vpop.f32.mrb[4].mxu1 }
 0x32c   : > { %v1274_v56 = vpop.f32.mrb[5].mxu0  ;;  %v1506_v57 = vpop.f32.mrb[5].mxu1  ;;  %v1283_v13 = vadd.f32 %v7772_v20, %v10192_v40  ;;  %v1515_v61 = vadd.f32 %v7820_v29, %v10197_v19 }
 0x32d   : > { %v7773_v58 = vpop.f32.mrb[6].mxu0  ;;  %v7821_v6 = vpop.f32.mrb[6].mxu1  ;;  %v1275_v59 = vadd.f32 %v10192_v40, %v1274_v56  ;;  %v1507_v35 = vadd.f32 %v10197_v19, %v1506_v57 }
 0x32e   : > { %v1286_v30 = vadd.f32 %v7773_v58, %v10192_v40  ;;  %v1518_v21 = vadd.f32 %v7821_v6, %v10197_v19  ;;  %v1277_v45 = vpop.f32.mrb[7].mxu0  ;;  %v1509_v5 = vpop.f32.mrb[7].mxu1 }
 0x32f   : > { %v1278_v60 = vadd.f32 %v10192_v40, %v1277_v45  ;;  %v1510_v46 = vadd.f32 %v10197_v19, %v1509_v5 }
 0x330   : > { %v1620_v63 = vpack.c.bf16 %v1286_v30, %v1283_v13  ;;  %v1652_v0 = vpack.c.bf16 %v1518_v21, %v1515_v61 }
 0x331   : > { %v1619_v1 = vpack.c.bf16 %v1278_v60, %v1275_v59  ;;  %v1651_v2 = vpack.c.bf16 %v1510_v46, %v1507_v35 }
 0x332   : > { %1636 = vst [vmem:[#allocation2 + $0x18] sm:$0xff] %v1620_v63  ;;  %1668 = vst [vmem:[#allocation3 + $0x18] sm:$0xff] %v1652_v0 }
 0x333   : > { %1635 = vst [vmem:[#allocation2 + $0x10] sm:$0xff] %v1619_v1  ;;  %1667 = vst [vmem:[#allocation3 + $0x10] sm:$0xff] %v1651_v2  ;;  %v7776_v22 = vpop.f32.mrb[8].mxu0  ;;  %v7824_v62 = vpop.f32.mrb[8].mxu1 }
 0x334   : > { %v1290_v7 = vpop.f32.mrb[9].mxu0  ;;  %v1522_v3 = vpop.f32.mrb[9].mxu1  ;;  %v1299_v33 = vadd.f32 %v7776_v22, %v10192_v40  ;;  %v1531_v16 = vadd.f32 %v7824_v62, %v10197_v19 }
 0x335   : > { %v7777_v14 = vpop.f32.mrb[10].mxu0  ;;  %v7825_v32 = vpop.f32.mrb[10].mxu1  ;;  %v1291_v23 = vadd.f32 %v10192_v40, %v1290_v7  ;;  %v1523_v34 = vadd.f32 %v10197_v19, %v1522_v3 }
 0x336   : > { %v1302_v53 = vadd.f32 %v7777_v14, %v10192_v40  ;;  %v1534_v24 = vadd.f32 %v7825_v32, %v10197_v19  ;;  %v1293_v8 = vpop.f32.mrb[11].mxu0  ;;  %v1525_v9 = vpop.f32.mrb[11].mxu1 }
 0x337   : > { %v1294_v15 = vadd.f32 %v10192_v40, %v1293_v8  ;;  %v1526_v36 = vadd.f32 %v10197_v19, %v1525_v9 }
 0x338   : > { %v1622_v55 = vpack.c.bf16 %v1302_v53, %v1299_v33  ;;  %v1654_v37 = vpack.c.bf16 %v1534_v24, %v1531_v16 }
 0x339   : > { %v1621_v38 = vpack.c.bf16 %v1294_v15, %v1291_v23  ;;  %v1653_v26 = vpack.c.bf16 %v1526_v36, %v1523_v34 }
 0x33a   : > { %1638 = vst [vmem:[#allocation2 + $0x28] sm:$0xff] %v1622_v55  ;;  %1670 = vst [vmem:[#allocation3 + $0x28] sm:$0xff] %v1654_v37 }
 0x33b   : > { %1637 = vst [vmem:[#allocation2 + $0x20] sm:$0xff] %v1621_v38  ;;  %1669 = vst [vmem:[#allocation3 + $0x20] sm:$0xff] %v1653_v26  ;;  %v7780_v11 = vpop.f32.mrb[12].mxu0  ;;  %v7828_v25 = vpop.f32.mrb[12].mxu1 }
 0x33c   : > { %v1306_v47 = vpop.f32.mrb[13].mxu0  ;;  %v1538_v28 = vpop.f32.mrb[13].mxu1  ;;  %v1315_v42 = vadd.f32 %v7780_v11, %v10192_v40  ;;  %v1547_v4 = vadd.f32 %v7828_v25, %v10197_v19 }
 0x33d   : > { %v7781_v17 = vpop.f32.mrb[14].mxu0  ;;  %v7829_v41 = vpop.f32.mrb[14].mxu1  ;;  %v1307_v44 = vadd.f32 %v10192_v40, %v1306_v47  ;;  %v1539_v12 = vadd.f32 %v10197_v19, %v1538_v28 }
 0x33e   : > { %v1318_v31 = vadd.f32 %v7781_v17, %v10192_v40  ;;  %v1550_v10 = vadd.f32 %v7829_v41, %v10197_v19  ;;  %v1309_v51 = vpop.f32.mrb[15].mxu0  ;;  %v1541_v43 = vpop.f32.mrb[15].mxu1 }
 0x33f   : > { %v1310_v27 = vadd.f32 %v10192_v40, %v1309_v51  ;;  %v1542_v48 = vadd.f32 %v10197_v19, %v1541_v43 }
 0x340   : > { %v1624_v39 = vpack.c.bf16 %v1318_v31, %v1315_v42  ;;  %v1656_v49 = vpack.c.bf16 %v1550_v10, %v1547_v4 }
 0x341   : > { %v1623_v50 = vpack.c.bf16 %v1310_v27, %v1307_v44  ;;  %v1655_v18 = vpack.c.bf16 %v1542_v48, %v1539_v12 }
 0x342   : > { %1640 = vst [vmem:[#allocation2 + $0x38] sm:$0xff] %v1624_v39  ;;  %1672 = vst [vmem:[#allocation3 + $0x38] sm:$0xff] %v1656_v49 }
 0x343   : > { %1639 = vst [vmem:[#allocation2 + $0x30] sm:$0xff] %v1623_v50  ;;  %1671 = vst [vmem:[#allocation3 + $0x30] sm:$0xff] %v1655_v18  ;;  %v7784_v52 = vpop.f32.mrb[16].mxu0  ;;  %v7832_v54 = vpop.f32.mrb[16].mxu1 }
 0x344   : > { %v1322_v20 = vpop.f32.mrb[17].mxu0  ;;  %v1554_v29 = vpop.f32.mrb[17].mxu1  ;;  %v1331_v58 = vadd.f32 %v7784_v52, %v10192_v40  ;;  %v1563_v6 = vadd.f32 %v7832_v54, %v10197_v19 }
 0x345   : > { %v7785_v56 = vpop.f32.mrb[18].mxu0  ;;  %v7833_v57 = vpop.f32.mrb[18].mxu1  ;;  %v1323_v45 = vadd.f32 %v10192_v40, %v1322_v20  ;;  %v1555_v5 = vadd.f32 %v10197_v19, %v1554_v29 }
 0x346   : > { %v1334_v13 = vadd.f32 %v7785_v56, %v10192_v40  ;;  %v1566_v61 = vadd.f32 %v7833_v57, %v10197_v19  ;;  %v1325_v30 = vpop.f32.mrb[19].mxu0  ;;  %v1557_v21 = vpop.f32.mrb[19].mxu1 }
 0x347   : > { %v1326_v59 = vadd.f32 %v10192_v40, %v1325_v30  ;;  %v1558_v35 = vadd.f32 %v10197_v19, %v1557_v21 }
 0x348   : > { %v1626_v60 = vpack.c.bf16 %v1334_v13, %v1331_v58  ;;  %v1658_v46 = vpack.c.bf16 %v1566_v61, %v1563_v6 }
 0x349   : > { %v1625_v63 = vpack.c.bf16 %v1326_v59, %v1323_v45  ;;  %v1657_v0 = vpack.c.bf16 %v1558_v35, %v1555_v5 }
 0x34a   : > { %1642 = vst [vmem:[#allocation2 + $0x48] sm:$0xff] %v1626_v60  ;;  %1674 = vst [vmem:[#allocation3 + $0x48] sm:$0xff] %v1658_v46 }
 0x34b   : > { %1641 = vst [vmem:[#allocation2 + $0x40] sm:$0xff] %v1625_v63  ;;  %1673 = vst [vmem:[#allocation3 + $0x40] sm:$0xff] %v1657_v0  ;;  %v7788_v1 = vpop.f32.mrb[20].mxu0  ;;  %v7836_v2 = vpop.f32.mrb[20].mxu1 }
 0x34c   : > { %v1338_v22 = vpop.f32.mrb[21].mxu0  ;;  %v1570_v62 = vpop.f32.mrb[21].mxu1  ;;  %v1347_v14 = vadd.f32 %v7788_v1, %v10192_v40  ;;  %v1579_v32 = vadd.f32 %v7836_v2, %v10197_v19 }
 0x34d   : > { %v7789_v7 = vpop.f32.mrb[22].mxu0  ;;  %v7837_v3 = vpop.f32.mrb[22].mxu1  ;;  %v1339_v8 = vadd.f32 %v10192_v40, %v1338_v22  ;;  %v1571_v9 = vadd.f32 %v10197_v19, %v1570_v62 }
 0x34e   : > { %v1350_v33 = vadd.f32 %v7789_v7, %v10192_v40  ;;  %v1582_v16 = vadd.f32 %v7837_v3, %v10197_v19  ;;  %v1341_v53 = vpop.f32.mrb[23].mxu0  ;;  %v1573_v24 = vpop.f32.mrb[23].mxu1 }
 0x34f   : > { %v1342_v23 = vadd.f32 %v10192_v40, %v1341_v53  ;;  %v1574_v34 = vadd.f32 %v10197_v19, %v1573_v24 }
 0x350   : > { %v1628_v15 = vpack.c.bf16 %v1350_v33, %v1347_v14  ;;  %v1660_v36 = vpack.c.bf16 %v1582_v16, %v1579_v32 }
 0x351   : > { %v1627_v55 = vpack.c.bf16 %v1342_v23, %v1339_v8  ;;  %v1659_v37 = vpack.c.bf16 %v1574_v34, %v1571_v9 }
 0x352   : > { %1644 = vst [vmem:[#allocation2 + $0x58] sm:$0xff] %v1628_v15  ;;  %1676 = vst [vmem:[#allocation3 + $0x58] sm:$0xff] %v1660_v36 }
 0x353   : > { %1643 = vst [vmem:[#allocation2 + $0x50] sm:$0xff] %v1627_v55  ;;  %1675 = vst [vmem:[#allocation3 + $0x50] sm:$0xff] %v1659_v37  ;;  %v7792_v38 = vpop.f32.mrb[24].mxu0  ;;  %v7840_v26 = vpop.f32.mrb[24].mxu1 }
 0x354   : > { %v1354_v11 = vpop.f32.mrb[25].mxu0  ;;  %v1586_v25 = vpop.f32.mrb[25].mxu1  ;;  %v1363_v17 = vadd.f32 %v7792_v38, %v10192_v40  ;;  %v1595_v41 = vadd.f32 %v7840_v26, %v10197_v19 }
 0x355   : > { %v7793_v47 = vpop.f32.mrb[26].mxu0  ;;  %v7841_v28 = vpop.f32.mrb[26].mxu1  ;;  %v1355_v51 = vadd.f32 %v10192_v40, %v1354_v11  ;;  %v1587_v43 = vadd.f32 %v10197_v19, %v1586_v25 }
 0x356   : > { %v1366_v42 = vadd.f32 %v7793_v47, %v10192_v40  ;;  %v1598_v4 = vadd.f32 %v7841_v28, %v10197_v19  ;;  %v1357_v31 = vpop.f32.mrb[27].mxu0  ;;  %v1589_v10 = vpop.f32.mrb[27].mxu1 }
 0x357   : > { %v1358_v44 = vadd.f32 %v10192_v40, %v1357_v31  ;;  %v1590_v12 = vadd.f32 %v10197_v19, %v1589_v10 }
 0x358   : > { %v1630_v27 = vpack.c.bf16 %v1366_v42, %v1363_v17  ;;  %v1662_v48 = vpack.c.bf16 %v1598_v4, %v1595_v41 }
 0x359   : > { %v1629_v39 = vpack.c.bf16 %v1358_v44, %v1355_v51  ;;  %v1661_v49 = vpack.c.bf16 %v1590_v12, %v1587_v43 }
 0x35a   : > { %1646 = vst [vmem:[#allocation2 + $0x68] sm:$0xff] %v1630_v27  ;;  %1678 = vst [vmem:[#allocation3 + $0x68] sm:$0xff] %v1662_v48 }
 0x35b   : > { %1645 = vst [vmem:[#allocation2 + $0x60] sm:$0xff] %v1629_v39  ;;  %1677 = vst [vmem:[#allocation3 + $0x60] sm:$0xff] %v1661_v49  ;;  %v7796_v50 = vpop.f32.mrb[28].mxu0  ;;  %v7844_v18 = vpop.f32.mrb[28].mxu1 }
 0x35c   : > { %v1370_v52 = vpop.f32.mrb[29].mxu0  ;;  %v1602_v54 = vpop.f32.mrb[29].mxu1  ;;  %v1379_v56 = vadd.f32 %v7796_v50, %v10192_v40  ;;  %v1611_v57 = vadd.f32 %v7844_v18, %v10197_v19 }
 0x35d   : > { %v7797_v20 = vpop.f32.mrb[30].mxu0  ;;  %v7845_v29 = vpop.f32.mrb[30].mxu1  ;;  %v1371_v30 = vadd.f32 %v10192_v40, %v1370_v52  ;;  %v1603_v21 = vadd.f32 %v10197_v19, %v1602_v54 }
 0x35e   : > { %v1382_v58 = vadd.f32 %v7797_v20, %v10192_v40  ;;  %v1614_v6 = vadd.f32 %v7845_v29, %v10197_v19  ;;  %v1373_v13 = vpop.f32.mrb[31].mxu0  ;;  %v1605_v61 = vpop.f32.mrb[31].mxu1 }
 0x35f   : > { %v1374_v45 = vadd.f32 %v10192_v40, %v1373_v13  ;;  %v1606_v5 = vadd.f32 %v10197_v19, %v1605_v61 }
 0x360   : > { %v1632_v59 = vpack.c.bf16 %v1382_v58, %v1379_v56  ;;  %v1664_v35 = vpack.c.bf16 %v1614_v6, %v1611_v57 }
 0x361   : > { %v1631_v60 = vpack.c.bf16 %v1374_v45, %v1371_v30  ;;  %v1663_v46 = vpack.c.bf16 %v1606_v5, %v1603_v21 }
 0x362   : > { %1648 = vst [vmem:[#allocation2 + $0x78] sm:$0xff] %v1632_v59  ;;  %1680 = vst [vmem:[#allocation3 + $0x78] sm:$0xff] %v1664_v35 }
 0x363   : > { %1647 = vst [vmem:[#allocation2 + $0x70] sm:$0xff] %v1631_v60  ;;  %1679 = vst [vmem:[#allocation3 + $0x70] sm:$0xff] %v1663_v46 }
 0x364 PF: > { %s13442_s11 = sld [smem:[#allocation23_spill]]  ;;  %v8372_v8 = vld [vmem:[#allocation7] sm:$0xff]   ;;  %v8373_v9 = vld [vmem:[#allocation7 + $0x8] sm:$0xff]   ;;  %v8374_v23 = vld [vmem:[#allocation7 + $0x10] sm:$0xff]   ;;  %vm13340_vm0 = vcmask 261120   ;;  %s13443_s6 = sld [smem:[#allocation96_spill]] }
 0x365   : > { %7846 = vmatprep.subr.bf16.mxu0 %v8372_v8  ;;  %v8375_v34 = vld [vmem:[#allocation7 + $0x18] sm:$0xff]   ;;  %v8376_v15 = vld [vmem:[#allocation7 + $0x20] sm:$0xff]   ;;  %s13444_s7 = sld [smem:[#allocation97_spill]]  ;;  %s13445_s3 = sld [smem:[#allocation99_spill]] }
 0x366   : > { %7847 = vmatpush3.bf16.xpose.msra.mxu0 %v8372_v8  ;;  %s9345_s0 = smov 64   ;;  %s13783_s12 = sld [smem:[#allocation104_spill]] }
 0x367   : > { %7848 = vmatprep.subr.bf16.mxu0 %v8373_v9  ;;  %s13789_s17 = sld [smem:[#allocation24_spill]]  ;;  %p13792_p6 = scmp.ne.s32.totalorder %s13430_s8, 0 }
 0x36a   : > { %s7015_s27 = sshll.u32 %s13442_s11, 7 }
 0x36b   : > { %s10267_s14 = scalar_lea.vmem %s9771_s24, %s7015_s27 [#allocation4]  ;;  %s9344_s24 = smov 96  }
 0x36c   : > { %v1683_v40 = vld [vmem:[%s10267_s14] sm:$0xff]  ;;  %v1685_v19 = vld [vmem:[%s10267_s14 + $0x10] sm:$0xff]  ;;  %v1684_v63 = vld [vmem:[%s10267_s14 + $0x8] sm:$0xff] }
 0x36d   : > { %1701 = vadd.xlane.f32.xlu0 %v1683_v40  ;;  %1705 = vadd.xlane.f32.xlu1 %v1685_v19  ;;  %v1686_v0 = vld [vmem:[%s10267_s14 + $0x18] sm:$0xff]  ;;  %v10274_v1 = vld [vmem:[%s10267_s14 + $0x20] sm:$0xff]  ;;  %v1688_v2 = vld [vmem:[%s10267_s14 + $0x28] sm:$0xff]  ;;  %s7169_s16 = sshll.u32 %s13789_s17, 5 }
 0x36e   : > { %v10278_v22 = vld [vmem:[%s10267_s14 + $0x30] sm:$0xff]  ;;  %v10281_v62 = vld [vmem:[%s10267_s14 + $0x38] sm:$0xff]  ;;  %v10285_v7 = vld [vmem:[%s10267_s14 + $0x40] sm:$0xff]  ;;  %7849 = vmatpush3.bf16.xpose.msra.mxu0 %v8373_v9 }
 0x36f   : > { %v10288_v3 = vld [vmem:[%s10267_s14 + $0x48] sm:$0xff]  ;;  %v10293_v14 = vld [vmem:[%s10267_s14 + $0x50] sm:$0xff]  ;;  %v10296_v32 = vld [vmem:[%s10267_s14 + $0x58] sm:$0xff]  ;;  %7850 = vmatprep.subr.bf16.mxu0 %v8374_v23 }
 0x370   : > { %v10301_v33 = vld [vmem:[%s10267_s14 + $0x60] sm:$0xff]  ;;  %v10304_v16 = vld [vmem:[%s10267_s14 + $0x68] sm:$0xff]  ;;  %v10309_v53 = vld [vmem:[%s10267_s14 + $0x70] sm:$0xff] }
 0x371   : > { %1703 = vadd.xlane.f32.xlu0 %v1684_v63  ;;  %1707 = vadd.xlane.f32.xlu1 %v1686_v0  ;;  %v10312_v24 = vld [vmem:[%s10267_s14 + $0x78] sm:$0xff] }
 0x375   : > { %1709 = vadd.xlane.f32.xlu0 %v10274_v1  ;;  %1711 = vadd.xlane.f32.xlu1 %v1688_v2 }
 0x376   : > { %7851 = vmatpush3.bf16.xpose.msra.mxu0 %v8374_v23 }
 0x377   : > { %7852 = vmatprep.subr.bf16.mxu0 %v8375_v34 }
 0x379   : > { %1713 = vadd.xlane.f32.xlu0 %v10278_v22  ;;  %1715 = vadd.xlane.f32.xlu1 %v10281_v62 }
 0x37d   : > { %1717 = vadd.xlane.f32.xlu0 %v10285_v7  ;;  %1719 = vadd.xlane.f32.xlu1 %v10288_v3 }
 0x37e   : > { %7853 = vmatpush3.bf16.xpose.msra.mxu0 %v8375_v34 }
 0x37f   : > { %7854 = vmatprep.subr.bf16.mxu0 %v8376_v15 }
 0x381   : > { %1721 = vadd.xlane.f32.xlu0 %v10293_v14  ;;  %1723 = vadd.xlane.f32.xlu1 %v10296_v32 }
 0x385   : > { %1725 = vadd.xlane.f32.xlu0 %v10301_v33  ;;  %1727 = vadd.xlane.f32.xlu1 %v10304_v16 }
 0x386   : > { %7855 = vmatpush3.bf16.xpose.msra.mxu0 %v8376_v15 }
 0x389   : > { %1729 = vadd.xlane.f32.xlu0 %v10309_v53  ;;  %1731 = vadd.xlane.f32.xlu1 %v10312_v24 }
 0x3fa   : > { %v1702_v36 = vpop.xlane.xlu0 %1701  ;;  %v1706_v55 = vpop.xlane.xlu1 %1705 }
 0x3fb   : > { %v1734_v37 = vmul.f32 0.0078125, %v1702_v36  ;;  %v1736_v38 = vmul.f32 0.0078125, %v1706_v55 }
 0x3fd   : > { %v10318_v26 = vsub.f32 %v1683_v40, %v1734_v37  ;;  %v10320_v11 = vsub.f32 %v1685_v19, %v1736_v38  ;;  %v8378_v38 = vld [vmem:[#allocation7 + $0x30] sm:$0xff]  }
 0x3fe   : > { %v1704_v25 = vpop.xlane.xlu0 %1703  ;;  %v1708_v47 = vpop.xlane.xlu1 %1707 }
 0x3ff   : > { %v1735_v28 = vmul.f32 0.0078125, %v1704_v25  ;;  %v1766_v17 = vmul.f32 %v10318_v26, %v10318_v26  ;;  %v1737_v41 = vmul.f32 0.0078125, %v1708_v47  ;;  %v1768_v42 = vmul.f32 %v10320_v11, %v10320_v11  ;;  %v8379_v25 = vld [vmem:[#allocation7 + $0x38] sm:$0xff]   ;;  %v10395_v47 = vld [vmem:[#allocation2] sm:$0xff] }
 0x401   : > { %1782 = vadd.xlane.f32.xlu0 %v1766_v17  ;;  %v10326_v4 = vsub.f32 %v1684_v63, %v1735_v28  ;;  %v10328_v31 = vsub.f32 %v1686_v0, %v1737_v41  ;;  %v10403_v28 = vld [vmem:[#allocation2 + $0x8] sm:$0xff]  ;;  %v10407_v17 = vld [vmem:[#allocation2 + $0x10] sm:$0xff] }
 0x402   : > { %v1710_v10 = vpop.xlane.xlu0 %1709  ;;  %v1712_v51 = vpop.xlane.xlu1 %1711  ;;  %v10409_v41 = vld [vmem:[#allocation2 + $0x48] sm:$0xff] }
 0x403   : > { %v1738_v43 = vmul.f32 0.0078125, %v1710_v10  ;;  %v1767_v44 = vmul.f32 %v10326_v4, %v10326_v4  ;;  %v1739_v12 = vmul.f32 0.0078125, %v1712_v51  ;;  %v1769_v27 = vmul.f32 %v10328_v31, %v10328_v31  ;;  %v10423_v51 = vld [vmem:[#allocation2 + $0x50] sm:$0xff] }
 0x404   : > { %v2268_v10 = vsel %vm13340_vm0, %v10403_v28, 0 }
 0x405   : > { %1786 = vadd.xlane.f32.xlu0 %v1768_v42  ;;  %1784 = vadd.xlane.f32.xlu1 %v1767_v44  ;;  %v10335_v48 = vsub.f32 %v10274_v1, %v1738_v43  ;;  %v10337_v39 = vsub.f32 %v1688_v2, %v1739_v12  ;;  %v10417_v42 = vld [vmem:[#allocation2 + $0x18] sm:$0xff]  ;;  %v10427_v43 = vld [vmem:[#allocation2 + $0x20] sm:$0xff]  ;;  %v10437_v12 = vld [vmem:[#allocation2 + $0x28] sm:$0xff] }
 0x406   : > { %v1714_v49 = vpop.xlane.xlu0 %1713  ;;  %v1716_v50 = vpop.xlane.xlu1 %1715  ;;  %v10435_v44 = vld [vmem:[#allocation2 + $0x58] sm:$0xff] }
 0x407   : > { %v1740_v18 = vmul.f32 0.0078125, %v1714_v49  ;;  %v1770_v52 = vmul.f32 %v10335_v48, %v10335_v48  ;;  %v1741_v54 = vmul.f32 0.0078125, %v1716_v50  ;;  %v1771_v20 = vmul.f32 %v10337_v39, %v10337_v39  ;;  %v10445_v49 = vld [vmem:[#allocation2 + $0x60] sm:$0xff]  ;;  %v10447_v50 = vld [vmem:[#allocation2 + $0x30] sm:$0xff] }
 0x409   : > { %1788 = vadd.xlane.f32.xlu1 %v1769_v27  ;;  %1790 = vadd.xlane.f32.xlu0 %v1770_v52  ;;  %v10344_v29 = vsub.f32 %v10278_v22, %v1740_v18  ;;  %v10347_v56 = vsub.f32 %v10281_v62, %v1741_v54  ;;  %v2271_v27 = vsel %vm13340_vm0, %v10407_v17, 0  ;;  %v10455_v18 = vld [vmem:[#allocation2 + $0x68] sm:$0xff]  ;;  %v2274_v52 = vsel %vm13340_vm0, %v10417_v42, 0  ;;  %v10461_v54 = vld [vmem:[#allocation2 + $0x70] sm:$0xff] }
 0x40a   : > { %v1718_v57 = vpop.xlane.xlu0 %1717  ;;  %v1720_v58 = vpop.xlane.xlu1 %1719 }
 0x40b   : > { %v1742_v6 = vmul.f32 0.0078125, %v1718_v57  ;;  %v1772_v13 = vmul.f32 %v10344_v29, %v10344_v29  ;;  %v1743_v61 = vmul.f32 0.0078125, %v1720_v58  ;;  %v1773_v30 = vmul.f32 %v10347_v56, %v10347_v56 }
 0x40c   : > { %v2280_v57 = vsel %vm13340_vm0, %v10437_v12, 0  ;;  %v2283_v58 = vsel %vm13340_vm0, %v10447_v50, 0 }
 0x40d   : > { %1792 = vadd.xlane.f32.xlu1 %v1771_v20  ;;  %1794 = vadd.xlane.f32.xlu0 %v1772_v13  ;;  %v10354_v21 = vsub.f32 %v10285_v7, %v1742_v6  ;;  %v10357_v45 = vsub.f32 %v10288_v3, %v1743_v61  ;;  %v2277_v20 = vsel %vm13340_vm0, %v10427_v43, 0 }
 0x40e   : > { %v1722_v5 = vpop.xlane.xlu0 %1721  ;;  %v1724_v59 = vpop.xlane.xlu1 %1723 }
 0x40f   : > { %v1744_v35 = vmul.f32 0.0078125, %v1722_v5  ;;  %v1774_v60 = vmul.f32 %v10354_v21, %v10354_v21  ;;  %v1745_v46 = vmul.f32 0.0078125, %v1724_v59  ;;  %v1775_v40 = vmul.f32 %v10357_v45, %v10357_v45 }
 0x411   : > { %1796 = vadd.xlane.f32.xlu1 %v1773_v30  ;;  %1798 = vadd.xlane.f32.xlu0 %v1774_v60  ;;  %v10364_v19 = vsub.f32 %v10293_v14, %v1744_v35  ;;  %v10367_v63 = vsub.f32 %v10296_v32, %v1745_v46  ;;  %v8377_v32 = vld [vmem:[#allocation7 + $0x28] sm:$0xff]  }
 0x412   : > { %v1726_v0 = vpop.xlane.xlu0 %1725  ;;  %v1728_v1 = vpop.xlane.xlu1 %1727  ;;  %7856 = vmatprep.subr.bf16.mxu0 %v8377_v32 }
 0x413   : > { %v1746_v2 = vmul.f32 0.0078125, %v1726_v0  ;;  %v1776_v22 = vmul.f32 %v10364_v19, %v10364_v19  ;;  %v1747_v62 = vmul.f32 0.0078125, %v1728_v1  ;;  %v1777_v7 = vmul.f32 %v10367_v63, %v10367_v63  ;;  %7857 = vmatpush3.bf16.xpose.msra.mxu0 %v8377_v32 }
 0x414   : > { %7858 = vmatprep.subr.bf16.mxu0 %v8378_v38 }
 0x415   : > { %1800 = vadd.xlane.f32.xlu1 %v1775_v40  ;;  %1802 = vadd.xlane.f32.xlu0 %v1776_v22  ;;  %v10374_v3 = vsub.f32 %v10301_v33, %v1746_v2  ;;  %v10377_v14 = vsub.f32 %v10304_v16, %v1747_v62 }
 0x416   : > { %v1730_v8 = vpop.xlane.xlu0 %1729  ;;  %v1732_v9 = vpop.xlane.xlu1 %1731 }
 0x417   : > { %v1748_v23 = vmul.f32 0.0078125, %v1730_v8  ;;  %v1778_v34 = vmul.f32 %v10374_v3, %v10374_v3  ;;  %v1749_v15 = vmul.f32 0.0078125, %v1732_v9  ;;  %v1779_v36 = vmul.f32 %v10377_v14, %v10377_v14 }
 0x419   : > { %1804 = vadd.xlane.f32.xlu1 %v1777_v7  ;;  %1806 = vadd.xlane.f32.xlu0 %v1778_v34  ;;  %v10384_v33 = vsub.f32 %v10309_v53, %v1748_v23  ;;  %v10387_v16 = vsub.f32 %v10312_v24, %v1749_v15  ;;  %v10393_v53 = vld [vmem:[#allocation2 + $0x40] sm:$0xff]  ;;  %v2265_v24 = vsel %vm13340_vm0, %v10395_v47, 0 }
 0x41a   : > { %8054 = vmatprep.subr.msk.bf16.mxu1 %vm13340_vm0, %v10393_v53 }
 0x41b   : > { %v1780_v55 = vmul.f32 %v10384_v33, %v10384_v33  ;;  %v1781_v37 = vmul.f32 %v10387_v16, %v10387_v16  ;;  %7859 = vmatpush3.bf16.xpose.msra.mxu0 %v8378_v38  ;;  %7239 = vmatpush3.bf16.xpose.msra.mxu1 %v2265_v24  ;;  %v10481_v24 = vld [vmem:[%s13443_s6] ss:$0 sm:$0xff] }
 0x41c   : > { %7860 = vmatprep.subr.bf16.mxu0 %v8379_v25  ;;  %8055 = vmatprep.subr.msk.bf16.mxu1 %vm13340_vm0, %v10409_v41 }
 0x41d   : > { %1808 = vadd.xlane.f32.xlu1 %v1779_v36  ;;  %1810 = vadd.xlane.f32.xlu0 %v1780_v55 }
 0x421   : > { %1812 = vadd.xlane.f32.xlu1 %v1781_v37 }
 0x423   : > { %7861 = vmatpush3.bf16.xpose.msra.mxu0 %v8379_v25  ;;  %7241 = vmatpush3.bf16.xpose.msra.mxu1 %v2268_v10 }
 0x424   : > { %8056 = vmatprep.subr.msk.bf16.mxu1 %vm13340_vm0, %v10423_v51 }
 0x42b   : > { %7243 = vmatpush3.bf16.xpose.msra.mxu1 %v2271_v27 }
 0x42c   : > { %8057 = vmatprep.subr.msk.bf16.mxu1 %vm13340_vm0, %v10435_v44 }
 0x432   : > { %2858 = vrot.lane.b32.xlu1 %v10393_v53, %s9344_s24 }
 0x433   : > { %2842 = vrot.lane.b32.xlu0 %v10395_v47, %s9344_s24  ;;  %7245 = vmatpush3.bf16.xpose.msra.mxu1 %v2274_v52 }
 0x434   : > { %8058 = vmatprep.subr.msk.bf16.mxu1 %vm13340_vm0, %v10445_v49 }
 0x436   : > { %2844 = vrot.lane.b32.xlu1 %v10403_v28, %s9344_s24 }
 0x437   : > { %2846 = vrot.lane.b32.xlu0 %v10407_v17, %s9344_s24 }
 0x43a   : > { %2860 = vrot.lane.b32.xlu1 %v10409_v41, %s9344_s24 }
 0x43b   : > { %2848 = vrot.lane.b32.xlu0 %v10417_v42, %s9344_s24  ;;  %7247 = vmatpush3.bf16.xpose.msra.mxu1 %v2277_v20 }
 0x43c   : > { %8059 = vmatprep.subr.msk.bf16.mxu1 %vm13340_vm0, %v10455_v18 }
 0x43e   : > { %2862 = vrot.lane.b32.xlu1 %v10423_v51, %s9344_s24 }
 0x43f   : > { %2850 = vrot.lane.b32.xlu0 %v10427_v43, %s9344_s24 }
 0x442   : > { %2864 = vrot.lane.b32.xlu1 %v10435_v44, %s9344_s24 }
 0x443   : > { %2852 = vrot.lane.b32.xlu0 %v10437_v12, %s9344_s24  ;;  %7249 = vmatpush3.bf16.xpose.msra.mxu1 %v2280_v57 }
 0x444   : > { %8060 = vmatprep.subr.msk.bf16.mxu1 %vm13340_vm0, %v10461_v54 }
 0x446   : > { %2866 = vrot.lane.b32.xlu1 %v10445_v49, %s9344_s24 }
 0x447   : > { %2854 = vrot.lane.b32.xlu0 %v10447_v50, %s9344_s24 }
 0x44a   : > { %2868 = vrot.lane.b32.xlu1 %v10455_v18, %s9344_s24 }
 0x44b   : > { %7251 = vmatpush3.bf16.xpose.msra.mxu1 %v2283_v58 }
 0x44e   : > { %2870 = vrot.lane.b32.xlu1 %v10461_v54, %s9344_s24 }
 0x48e   : > { %v1783_v6 = vpop.xlane.xlu0 %1782 }
 0x48f   : > { %v1814_v13 = vmul.f32 0.0078125, %v1783_v6 }
 0x491   : > { %v1830_v61 = vadd.f32 1e-05, %v1814_v13 }
 0x492   : > { %v1785_v30 = vpop.xlane.xlu1 %1784  ;;  %v1787_v5 = vpop.xlane.xlu0 %1786 }
 0x493   : > { %8468 = vrsqrt.f32 %v1830_v61  ;;  %v1815_v59 = vmul.f32 0.0078125, %v1785_v30  ;;  %v1816_v35 = vmul.f32 0.0078125, %v1787_v5  ;;  %v10488_v30 = vld [vmem:[%s13444_s7] ss:$0 sm:$0xff]  ;;  %s13784_s7 = sld [smem:[#allocation105_spill]] }
 0x495   : > { %v1831_v60 = vadd.f32 1e-05, %v1815_v59  ;;  %v1832_v46 = vadd.f32 1e-05, %v1816_v35 }
 0x496   : > { %v1789_v40 = vpop.xlane.xlu1 %1788  ;;  %v1791_v0 = vpop.xlane.xlu0 %1790 }
 0x497   : > { %8470 = vrsqrt.f32 %v1831_v60  ;;  %v1817_v1 = vmul.f32 0.0078125, %v1789_v40  ;;  %v1818_v2 = vmul.f32 0.0078125, %v1791_v0 }
 0x498   : > { %8472 = vrsqrt.f32 %v1832_v46 }
 0x499   : > { %v1833_v22 = vadd.f32 1e-05, %v1817_v1  ;;  %v1834_v62 = vadd.f32 1e-05, %v1818_v2 }
 0x49a   : > { %v1793_v7 = vpop.xlane.xlu1 %1792  ;;  %v1795_v32 = vpop.xlane.xlu0 %1794 }
 0x49b   : > { %8474 = vrsqrt.f32 %v1833_v22  ;;  %v1819_v8 = vmul.f32 0.0078125, %v1793_v7  ;;  %v1820_v9 = vmul.f32 0.0078125, %v1795_v32 }
 0x49c   : > { %8476 = vrsqrt.f32 %v1834_v62 }
 0x49d   : > { %v8469_v23 = vpop.eup %8468  ;;  %v1835_v34 = vadd.f32 1e-05, %v1819_v8  ;;  %v1836_v15 = vadd.f32 1e-05, %v1820_v9 }
 0x49e   : > { %v1797_v36 = vpop.xlane.xlu1 %1796  ;;  %v1799_v55 = vpop.xlane.xlu0 %1798  ;;  %v1862_v37 = vmul.f32 %v8469_v23, %v10318_v26 }
 0x49f   : > { %8478 = vrsqrt.f32 %v1835_v34  ;;  %v1821_v38 = vmul.f32 0.0078125, %v1797_v36  ;;  %v1822_v25 = vmul.f32 0.0078125, %v1799_v55 }
 0x4a0   : > { %8480 = vrsqrt.f32 %v1836_v15  ;;  %v1884_v13 = vmul.f32 %v10481_v24, %v1862_v37 }
 0x4a1   : > { %v8471_v10 = vpop.eup %8470  ;;  %v1837_v27 = vadd.f32 1e-05, %v1821_v38  ;;  %v1838_v52 = vadd.f32 1e-05, %v1822_v25 }
 0x4a2   : > { %v8473_v20 = vpop.eup %8472  ;;  %v1801_v57 = vpop.xlane.xlu1 %1800  ;;  %v1863_v6 = vmul.f32 %v8471_v10, %v10326_v4  ;;  %v1906_v1 = vadd.f32 %v10488_v30, %v1884_v13 }
 0x4a3   : > { %v1803_v58 = vpop.xlane.xlu0 %1802  ;;  %8482 = vrsqrt.f32 %v1837_v27  ;;  %v1823_v26 = vmul.f32 0.0078125, %v1801_v57  ;;  %v1864_v5 = vmul.f32 %v8473_v20, %v10320_v11 }
 0x4a4   : > { %v1824_v61 = vmul.f32 0.0078125, %v1803_v58  ;;  %8484 = vrsqrt.f32 %v1838_v52  ;;  %v1885_v59 = vmul.f32 %v10481_v24, %v1863_v6 }
 0x4a5   : > { %v8475_v35 = vpop.eup %8474  ;;  %v1839_v60 = vadd.f32 1e-05, %v1823_v26  ;;  %v1886_v62 = vmul.f32 %v10481_v24, %v1864_v5 }
 0x4a6   : > { %v1840_v46 = vadd.f32 1e-05, %v1824_v61  ;;  %v8477_v40 = vpop.eup %8476  ;;  %v1805_v4 = vpop.xlane.xlu1 %1804  ;;  %v1907_v2 = vadd.f32 %v10488_v30, %v1885_v59  ;;  %v1865_v22 = vmul.f32 %v8475_v35, %v10328_v31 }
 0x4a7   : > { %v1807_v0 = vpop.xlane.xlu0 %1806  ;;  %8486 = vrsqrt.f32 %v1839_v60  ;;  %v1825_v7 = vmul.f32 0.0078125, %v1805_v4  ;;  %v1866_v9 = vmul.f32 %v8477_v40, %v10335_v48  ;;  %v1908_v31 = vadd.f32 %v10488_v30, %v1886_v62 }
 0x4a8   : > { %v1826_v11 = vmul.f32 0.0078125, %v1807_v0  ;;  %8488 = vrsqrt.f32 %v1840_v46  ;;  %v1938_v32 = vpack.c.bf16 %v1907_v2, %v1906_v1  ;;  %v1887_v8 = vmul.f32 %v10481_v24, %v1865_v22 }
 0x4a9   : > { %v8479_v23 = vpop.eup %8478  ;;  %v1841_v34 = vadd.f32 1e-05, %v1825_v7  ;;  %v1888_v10 = vmul.f32 %v10481_v24, %v1866_v9 }
 0x4aa   : > { %v1842_v15 = vadd.f32 1e-05, %v1826_v11  ;;  %v8481_v36 = vpop.eup %8480  ;;  %v1809_v55 = vpop.xlane.xlu1 %1808  ;;  %7862 = vmatprep.mubr.bf16.mxu0 %v1938_v32  ;;  %v1909_v38 = vadd.f32 %v10488_v30, %v1887_v8  ;;  %v1867_v25 = vmul.f32 %v8479_v23, %v10337_v39 }
 0x4ab   : > { %v1811_v37 = vpop.xlane.xlu0 %1810  ;;  %8490 = vrsqrt.f32 %v1841_v34  ;;  %v1827_v27 = vmul.f32 0.0078125, %v1809_v55  ;;  %v1868_v48 = vmul.f32 %v8481_v36, %v10344_v29  ;;  %v1910_v5 = vadd.f32 %v10488_v30, %v1888_v10 }
 0x4ac   : > { %v1828_v52 = vmul.f32 0.0078125, %v1811_v37  ;;  %8492 = vrsqrt.f32 %v1842_v15  ;;  %v1939_v20 = vpack.c.bf16 %v1909_v38, %v1908_v31  ;;  %v1889_v57 = vmul.f32 %v10481_v24, %v1867_v25 }
 0x4ad   : > { %v8483_v58 = vpop.eup %8482  ;;  %v1843_v6 = vadd.f32 1e-05, %v1827_v27  ;;  %v1890_v35 = vmul.f32 %v10481_v24, %v1868_v48 }
 0x4ae   : > { %v1844_v13 = vadd.f32 1e-05, %v1828_v52  ;;  %v8485_v26 = vpop.eup %8484  ;;  %v1813_v61 = vpop.xlane.xlu1 %1812  ;;  %7863 = vmatmul.mubr.bf16.vlgmr.msra.gmra.mrb[0].mxu0 %v1939_v20  ;;  %v1911_v39 = vadd.f32 %v10488_v30, %v1889_v57  ;;  %v1869_v59 = vmul.f32 %v8483_v58, %v10347_v56 }
 0x4af   : > { %8494 = vrsqrt.f32 %v1843_v6  ;;  %v1829_v29 = vmul.f32 0.0078125, %v1813_v61  ;;  %v1870_v60 = vmul.f32 %v8485_v26, %v10354_v21  ;;  %v1912_v2 = vadd.f32 %v10488_v30, %v1890_v35  ;;  %v10535_v61 = vld [vmem:[#allocation2 + $0x78] sm:$0xff]  ;;  %v10559_v35 = vld [vmem:[#allocation3 + $0x50] sm:$0xff] }
 0x4b0   : > { %8496 = vrsqrt.f32 %v1844_v13  ;;  %v1940_v46 = vpack.c.bf16 %v1911_v39, %v1910_v5  ;;  %v1891_v40 = vmul.f32 %v10481_v24, %v1869_v59  ;;  %v10537_v5 = vld [vmem:[#allocation2 + $0x38] sm:$0xff]  ;;  %2872 = vrot.lane.b32.xlu1 %v10535_v61, %s9344_s24  ;;  %8061 = vmatprep.subr.msk.bf16.mxu1 %vm13340_vm0, %v10535_v61  ;;  %v10552_v39 = vld [vmem:[#allocation3 + $0x48] sm:$0xff] }
 0x4b1   : > { %v8487_v4 = vpop.eup %8486  ;;  %v1845_v0 = vadd.f32 1e-05, %v1829_v29  ;;  %v1892_v62 = vmul.f32 %v10481_v24, %v1870_v60  ;;  %2856 = vrot.lane.b32.xlu0 %v10537_v5, %s9344_s24  ;;  %v10556_v59 = vld [vmem:[#allocation3 + $0x8] sm:$0xff]  ;;  %v10562_v29 = vld [vmem:[#allocation3 + $0x10] sm:$0xff]  ;;  %v10564_v60 = vld [vmem:[#allocation3 + $0x58] sm:$0xff] }
 0x4b2   : > { %v8489_v1 = vpop.eup %8488  ;;  %7866 = vmatprep.mubr.bf16.mxu0 %v1940_v46  ;;  %v1913_v22 = vadd.f32 %v10488_v30, %v1891_v40  ;;  %v1871_v56 = vmul.f32 %v8487_v4, %v10357_v45  ;;  %v10568_v46 = vld [vmem:[#allocation3 + $0x18] sm:$0xff]  ;;  %v10571_v40 = vld [vmem:[#allocation3 + $0x60] sm:$0xff]  ;;  %v2859_v4 = vpop.permute.xlu1 %2858 }
 0x4b3   : > { %8498 = vrsqrt.f32 %v1845_v0  ;;  %v1872_v7 = vmul.f32 %v8489_v1, %v10364_v19  ;;  %v1914_v9 = vadd.f32 %v10488_v30, %v1892_v62  ;;  %v10574_v0 = vld [vmem:[#allocation3 + $0x20] sm:$0xff]  ;;  %v10576_v1 = vld [vmem:[#allocation3 + $0x68] sm:$0xff]  ;;  %v10589_v62 = vld [vmem:[#allocation3 + $0x78] sm:$0xff] }
 0x4b4   : > { %v1941_v21 = vpack.c.bf16 %v1913_v22, %v1912_v2  ;;  %v1893_v11 = vmul.f32 %v10481_v24, %v1871_v56  ;;  %v10581_v2 = vld [vmem:[#allocation3 + $0x28] sm:$0xff]  ;;  %v10584_v22 = vld [vmem:[#allocation3 + $0x70] sm:$0xff] }
 0x4b5   : > { %v8491_v32 = vpop.eup %8490  ;;  %v1894_v15 = vmul.f32 %v10481_v24, %v1872_v7  ;;  %v10587_v56 = vld [vmem:[#allocation3 + $0x30] sm:$0xff]  ;;  %v10593_v7 = vld [vmem:[#allocation3 + $0x38] sm:$0xff] }
 0x4b6   : > { %v8493_v8 = vpop.eup %8492  ;;  %7867 = vmatmul.mubr.bf16.gmra.mrb[4].mxu0 %v1941_v21  ;;  %v1915_v23 = vadd.f32 %v10488_v30, %v1893_v11  ;;  %v1873_v34 = vmul.f32 %v8491_v32, %v10367_v63  ;;  %v10599_v21 = vld [vmem:[%s13445_s3] ss:$0 sm:$0xff]  ;;  %s13785_s3 = sld [smem:[#allocation106_spill]] }
 0x4b7   : > { %v1874_v45 = vmul.f32 %v8493_v8, %v10374_v3  ;;  %v1916_v31 = vadd.f32 %v10488_v30, %v1894_v15 }
 0x4b8   : > { %v1942_v36 = vpack.c.bf16 %v1915_v23, %v1914_v9  ;;  %v1895_v55 = vmul.f32 %v10481_v24, %v1873_v34 }
 0x4b9   : > { %v8495_v19 = vpop.eup %8494  ;;  %v1896_v10 = vmul.f32 %v10481_v24, %v1874_v45 }
 0x4ba   : > { %v8497_v37 = vpop.eup %8496  ;;  %7870 = vmatprep.mubr.bf16.mxu0 %v1942_v36  ;;  %v1917_v38 = vadd.f32 %v10488_v30, %v1895_v55  ;;  %v1875_v25 = vmul.f32 %v8495_v19, %v10377_v14  ;;  %v2845_v36 = vpop.permute.xlu1 %2844 }
 0x4bb   : > { %v1876_v63 = vmul.f32 %v8497_v37, %v10384_v33  ;;  %v1918_v48 = vadd.f32 %v10488_v30, %v1896_v10 }
 0x4bc   : > { %v1943_v27 = vpack.c.bf16 %v1917_v38, %v1916_v31  ;;  %v1897_v52 = vmul.f32 %v10481_v24, %v1875_v25  ;;  %v2843_v38 = vpop.permute.xlu0 %2842 }
 0x4bd   : > { %v8499_v3 = vpop.eup %8498  ;;  %v1898_v58 = vmul.f32 %v10481_v24, %v1876_v63 }
 0x4be   : > { %7871 = vmatmul.mubr.bf16.gmra.mrb[8].mxu0 %v1943_v27  ;;  %v1919_v20 = vadd.f32 %v10488_v30, %v1897_v52  ;;  %v1877_v57 = vmul.f32 %v8499_v3, %v10387_v16  ;;  %v2286_v16 = vsel %vm13340_vm0, %v10537_v5, 0  ;;  %v2899_v3 = vsel %vm13340_vm0, %v2843_v38, 0 }
 0x4bf   : > { %v1920_v13 = vadd.f32 %v10488_v30, %v1898_v58  ;;  %7253 = vmatpush3.bf16.xpose.msra.mxu1 %v2286_v16 }
 0x4c0   : > { %v1944_v6 = vpack.c.bf16 %v1919_v20, %v1918_v48  ;;  %v1899_v14 = vmul.f32 %v10481_v24, %v1877_v57  ;;  %v10547_v24 = vld [vmem:[#allocation3 + $0x40] sm:$0xff]  ;;  %8062 = vmatprep.subr.msk.bf16.mxu1 %vm13340_vm0, %v2859_v4  ;;  %v2861_v57 = vpop.permute.xlu1 %2860 }
 0x4c1   : > { %7270 = vmatprep.subr.bf16.mxu0 %v10547_v24 }
 0x4c2   : > { %7874 = vmatprep.mubr.bf16.mxu0 %v1944_v6  ;;  %v1921_v33 = vadd.f32 %v10488_v30, %v1899_v14  ;;  %v10549_v30 = vld [vmem:[#allocation3] sm:$0xff] }
 0x4c3   : > { %7271 = vmatpush3.bf16.msra.mxu0 %v10549_v30 }
 0x4c4   : > { %v1945_v26 = vpack.c.bf16 %v1921_v33, %v1920_v13  ;;  %7272 = vmatprep.subr.bf16.mxu0 %v10552_v39 }
 0x4c6   : > { %7875 = vmatmul.mubr.bf16.gmra.mrb[12].mxu0 %v1945_v26 }
 0x4c7   : > { %7273 = vmatpush3.bf16.msra.mxu0 %v10556_v59 }
 0x4c8   : > { %7274 = vmatprep.subr.bf16.mxu0 %v10559_v35 }
 0x4cb   : > { %7275 = vmatpush3.bf16.msra.mxu0 %v10562_v29 }
 0x4cc   : > { %7276 = vmatprep.subr.bf16.mxu0 %v10564_v60 }
 0x4cf   : > { %7277 = vmatpush3.bf16.msra.mxu0 %v10568_v46 }
 0x4d0   : > { %7278 = vmatprep.subr.bf16.mxu0 %v10571_v40 }
 0x4d3   : > { %7279 = vmatpush3.bf16.msra.mxu0 %v10574_v0 }
 0x4d4   : > { %7280 = vmatprep.subr.bf16.mxu0 %v10576_v1 }
 0x4d7   : > { %7281 = vmatpush3.bf16.msra.mxu0 %v10581_v2 }
 0x4d8   : > { %7282 = vmatprep.subr.bf16.mxu0 %v10584_v22 }
 0x4db   : > { %7283 = vmatpush3.bf16.msra.mxu0 %v10587_v56 }
 0x4dc   : > { %7284 = vmatprep.subr.bf16.mxu0 %v10589_v62 }
 0x4df   : > { %7285 = vmatpush3.bf16.msra.mxu0 %v10593_v7 }
 0x581   : > { %v7864_v11 = vpop.f32.mrb[0].mxu0 }
 0x582   : > { %v2044_v32 = vadd.f32 %v7864_v11, %v10599_v21  ;;  %v2035_v8 = vpop.f32.mrb[1].mxu0 }
 0x583   : > { %v2036_v9 = vadd.f32 %v10599_v21, %v2035_v8  ;;  %v7865_v23 = vpop.f32.mrb[2].mxu0 }
 0x584   : > { %v2047_v34 = vadd.f32 %v7865_v23, %v10599_v21  ;;  %v2038_v15 = vpop.f32.mrb[3].mxu0  ;;  %v2100_v55 = vmul.f32 0.17677669, %v2044_v32  ;;  %v2902_v23 = vsel %vm13340_vm0, %v2845_v36, 0 }
 0x585   : > { %v2039_v45 = vadd.f32 %v10599_v21, %v2038_v15  ;;  %v2098_v37 = vmul.f32 0.17677669, %v2036_v9 }
 0x586   : > { %v2101_v19 = vmul.f32 0.17677669, %v2047_v34 }
 0x587   : > { %v2099_v31 = vmul.f32 0.17677669, %v2039_v45  ;;  %v2863_v45 = vpop.permute.xlu1 %2862 }
 0x588   : > { %v10605_v25 = vpack.c.bf16 %v2101_v19, %v2100_v55 }
 0x589   : > { %v10607_v10 = vpack.c.bf16 %v2099_v31, %v2098_v37  ;;  %v7868_v63 = vpop.f32.mrb[4].mxu0 }
 0x58a   : > { %13446 = vst [vmem:[#allocation27_spill] sm:$0xff] %v10605_v25  ;;  %v2060_v27 = vadd.f32 %v7868_v63, %v10599_v21  ;;  %2812 = vrot.lane.b32.xlu1 %v10605_v25, %s9344_s24  ;;  %v2051_v52 = vpop.f32.mrb[5].mxu0 }
 0x58b   : > { %13447 = vst [vmem:[#allocation28_spill] sm:$0xff] %v10607_v10  ;;  %v2052_v48 = vadd.f32 %v10599_v21, %v2051_v52  ;;  %2810 = vrot.lane.b32.xlu0 %v10607_v10, %s9344_s24  ;;  %v7869_v20 = vpop.f32.mrb[6].mxu0  ;;  %7254 = vmatprep.mubr.msk.bf16.mxu1 %vm13340_vm0, %v10607_v10 }
 0x58c   : > { %v2063_v58 = vadd.f32 %v7869_v20, %v10599_v21  ;;  %v2054_v6 = vpop.f32.mrb[7].mxu0  ;;  %7255 = vmatmul.mubr.msk.bf16.vlgmr.msra.gmra.mrb[0].mxu1 %vm13340_vm0, %v10607_v10  ;;  %v2104_v13 = vmul.f32 0.17677669, %v2060_v27  ;;  %v2847_v27 = vpop.permute.xlu0 %2846 }
 0x58d   : > { %v2055_v14 = vadd.f32 %v10599_v21, %v2054_v6  ;;  %7256 = vmatprep.mubr.msk.bf16.mxu1 %vm13340_vm0, %v10605_v25  ;;  %7335 = vmatpush3.bf16.xpose.msra.mxu1 %v2899_v3  ;;  %v2102_v26 = vmul.f32 0.17677669, %v2052_v48 }
 0x58e   : > { %v2105_v33 = vmul.f32 0.17677669, %v2063_v58  ;;  %8063 = vmatprep.subr.msk.bf16.mxu1 %vm13340_vm0, %v2861_v57  ;;  %v2905_v58 = vsel %vm13340_vm0, %v2847_v27, 0 }
 0x58f   : > { %v2103_v16 = vmul.f32 0.17677669, %v2055_v14 }
 0x590   : > { %v10625_v4 = vpack.c.bf16 %v2105_v33, %v2104_v13  ;;  %v2865_v13 = vpop.permute.xlu1 %2864 }
 0x591   : > { %v10627_v11 = vpack.c.bf16 %v2103_v16, %v2102_v26  ;;  %v7872_v32 = vpop.f32.mrb[8].mxu0 }
 0x592   : > { %13448 = vst [vmem:[#allocation29_spill] sm:$0xff] %v10625_v4  ;;  %v2076_v8 = vadd.f32 %v7872_v32, %v10599_v21  ;;  %2816 = vrot.lane.b32.xlu1 %v10625_v4, %s9344_s24  ;;  %v2067_v9 = vpop.f32.mrb[9].mxu0 }
 0x593   : > { %13449 = vst [vmem:[#allocation30_spill] sm:$0xff] %v10627_v11  ;;  %v2068_v34 = vadd.f32 %v10599_v21, %v2067_v9  ;;  %2814 = vrot.lane.b32.xlu0 %v10627_v11, %s9344_s24  ;;  %v7873_v15 = vpop.f32.mrb[10].mxu0 }
 0x594   : > { %v2079_v55 = vadd.f32 %v7873_v15, %v10599_v21  ;;  %v2070_v19 = vpop.f32.mrb[11].mxu0  ;;  %7257 = vmatmul.mubr.msk.bf16.gmra.mrb[4].mxu1 %vm13340_vm0, %v10605_v25  ;;  %v2108_v36 = vmul.f32 0.17677669, %v2076_v8 }
 0x595   : > { %v2071_v37 = vadd.f32 %v10599_v21, %v2070_v19  ;;  %7258 = vmatprep.mubr.msk.bf16.mxu1 %vm13340_vm0, %v10627_v11  ;;  %7337 = vmatpush3.bf16.xpose.msra.mxu1 %v2902_v23  ;;  %v2106_v38 = vmul.f32 0.17677669, %v2068_v34  ;;  %v2849_v34 = vpop.permute.xlu0 %2848 }
 0x596   : > { %v2109_v31 = vmul.f32 0.17677669, %v2079_v55  ;;  %8064 = vmatprep.subr.msk.bf16.mxu1 %vm13340_vm0, %v2863_v45  ;;  %v2867_v55 = vpop.permute.xlu1 %2866 }
 0x597   : > { %v2107_v63 = vmul.f32 0.17677669, %v2071_v37 }
 0x598   : > { %v10643_v52 = vpack.c.bf16 %v2109_v31, %v2108_v36 }
 0x599   : > { %v10645_v3 = vpack.c.bf16 %v2107_v63, %v2106_v38  ;;  %v7876_v48 = vpop.f32.mrb[12].mxu0  ;;  %v2851_v19 = vpop.permute.xlu0 %2850 }
 0x59a   : > { %13450 = vst [vmem:[#allocation31_spill] sm:$0xff] %v10643_v52  ;;  %v2092_v20 = vadd.f32 %v7876_v48, %v10599_v21  ;;  %2820 = vrot.lane.b32.xlu1 %v10643_v52, %s9344_s24  ;;  %v2083_v57 = vpop.f32.mrb[13].mxu0  ;;  %v2911_v37 = vsel %vm13340_vm0, %v2851_v19, 0  ;;  %v2869_v36 = vpop.permute.xlu1 %2868 }
 0x59b   : > { %13451 = vst [vmem:[#allocation32_spill] sm:$0xff] %v10645_v3  ;;  %v2084_v6 = vadd.f32 %v10599_v21, %v2083_v57  ;;  %2818 = vrot.lane.b32.xlu0 %v10645_v3, %s9344_s24  ;;  %v7877_v14 = vpop.f32.mrb[14].mxu0 }
 0x59c   : > { %v2095_v33 = vadd.f32 %v7877_v14, %v10599_v21  ;;  %v2086_v26 = vpop.f32.mrb[15].mxu0  ;;  %7259 = vmatmul.mubr.msk.bf16.gmra.mrb[8].mxu1 %vm13340_vm0, %v10627_v11  ;;  %v2112_v32 = vmul.f32 0.17677669, %v2092_v20 }
 0x59d   : > { %v2087_v16 = vadd.f32 %v10599_v21, %v2086_v26  ;;  %7260 = vmatprep.mubr.msk.bf16.mxu1 %vm13340_vm0, %v10625_v4  ;;  %7339 = vmatpush3.bf16.xpose.msra.mxu1 %v2905_v58  ;;  %v2110_v9 = vmul.f32 0.17677669, %v2084_v6  ;;  %v2908_v21 = vsel %vm13340_vm0, %v2849_v34, 0 }
 0x59e   : > { %v2113_v8 = vmul.f32 0.17677669, %v2095_v33  ;;  %8065 = vmatprep.subr.msk.bf16.mxu1 %vm13340_vm0, %v2865_v13 }
 0x59f   : > { %v2111_v23 = vmul.f32 0.17677669, %v2087_v16 }
 0x5a0   : > { %v10661_v15 = vpack.c.bf16 %v2113_v8, %v2112_v32 }
 0x5a1   : > { %v10663_v45 = vpack.c.bf16 %v2111_v23, %v2110_v9 }
 0x5a2   : > { %13452 = vst [vmem:[#allocation33_spill] sm:$0xff] %v10661_v15  ;;  %2824 = vrot.lane.b32.xlu1 %v10661_v15, %s9344_s24 }
 0x5a3   : > { %13453 = vst [vmem:[#allocation34_spill] sm:$0xff] %v10663_v45  ;;  %2822 = vrot.lane.b32.xlu0 %v10663_v45, %s9344_s24 }
 0x5a4   : > { %7261 = vmatmul.mubr.msk.bf16.gmra.mrb[12].mxu1 %vm13340_vm0, %v10625_v4 }
 0x5a5   : > { %7262 = vmatprep.mubr.msk.bf16.mxu1 %vm13340_vm0, %v10645_v3  ;;  %7341 = vmatpush3.bf16.xpose.msra.mxu1 %v2908_v21 }
 0x5a6   : > { %3315 = vrot.lane.b32.xlu1 %v10549_v30, %s9344_s24  ;;  %8066 = vmatprep.subr.msk.bf16.mxu1 %vm13340_vm0, %v2867_v55 }
 0x5a7   : > { %3331 = vrot.lane.b32.xlu0 %v10547_v24, %s9344_s24  ;;  %v2853_v24 = vpop.permute.xlu0 %2852 }
 0x5a8   : > { %v2914_v30 = vsel %vm13340_vm0, %v2853_v24, 0 }
 0x5aa   : > { %3333 = vrot.lane.b32.xlu1 %v10552_v39, %s9344_s24  ;;  %v2871_v39 = vpop.permute.xlu1 %2870 }
 0x5ab   : > { %3317 = vrot.lane.b32.xlu0 %v10556_v59, %s9344_s24  ;;  %v2855_v59 = vpop.permute.xlu0 %2854 }
 0x5ac   : > { %7263 = vmatmul.mubr.msk.bf16.gmra.mrb[16].mxu1 %vm13340_vm0, %v10645_v3 }
 0x5ad   : > { %7264 = vmatprep.mubr.msk.bf16.mxu1 %vm13340_vm0, %v10643_v52  ;;  %7343 = vmatpush3.bf16.xpose.msra.mxu1 %v2911_v37 }
 0x5ae   : > { %3335 = vrot.lane.b32.xlu1 %v10559_v35, %s9344_s24  ;;  %8067 = vmatprep.subr.msk.bf16.mxu1 %vm13340_vm0, %v2869_v36  ;;  %v2917_v35 = vsel %vm13340_vm0, %v2855_v59, 0 }
 0x5af   : > { %3337 = vrot.lane.b32.xlu0 %v10564_v60, %s9344_s24  ;;  %v2857_v60 = vpop.permute.xlu0 %2856 }
 0x5b2   : > { %3319 = vrot.lane.b32.xlu1 %v10562_v29, %s9344_s24  ;;  %v2873_v29 = vpop.permute.xlu1 %2872 }
 0x5b3   : > { %3321 = vrot.lane.b32.xlu0 %v10568_v46, %s9344_s24  ;;  %v2920_v46 = vsel %vm13340_vm0, %v2857_v60, 0 }
 0x5b4   : > { %7265 = vmatmul.mubr.msk.bf16.gmra.mrb[20].mxu1 %vm13340_vm0, %v10643_v52 }
 0x5b5   : > { %7266 = vmatprep.mubr.msk.bf16.mxu1 %vm13340_vm0, %v10663_v45  ;;  %7345 = vmatpush3.bf16.xpose.msra.mxu1 %v2914_v30 }
 0x5b6   : > { %3339 = vrot.lane.b32.xlu1 %v10571_v40, %s9344_s24  ;;  %8068 = vmatprep.subr.msk.bf16.mxu1 %vm13340_vm0, %v2871_v39 }
 0x5b7   : > { %3341 = vrot.lane.b32.xlu0 %v10576_v1, %s9344_s24 }
 0x5ba   : > { %3323 = vrot.lane.b32.xlu1 %v10574_v0, %s9344_s24 }
 0x5bb   : > { %3325 = vrot.lane.b32.xlu0 %v10581_v2, %s9344_s24 }
 0x5bc   : > { %7267 = vmatmul.mubr.msk.bf16.gmra.mrb[24].mxu1 %vm13340_vm0, %v10663_v45 }
 0x5bd   : > { %7268 = vmatprep.mubr.msk.bf16.mxu1 %vm13340_vm0, %v10661_v15  ;;  %7347 = vmatpush3.bf16.xpose.msra.mxu1 %v2917_v35 }
 0x5be   : > { %3343 = vrot.lane.b32.xlu1 %v10584_v22, %s9344_s24  ;;  %8069 = vmatprep.subr.msk.bf16.mxu1 %vm13340_vm0, %v2873_v29 }
 0x5bf   : > { %3345 = vrot.lane.b32.xlu0 %v10589_v62, %s9344_s24 }
 0x5c2   : > { %3327 = vrot.lane.b32.xlu1 %v10587_v56, %s9344_s24 }
 0x5c3   : > { %3329 = vrot.lane.b32.xlu0 %v10593_v7, %s9344_s24 }
 0x5c4   : > { %7269 = vmatmul.mubr.msk.bf16.gmra.mrb[28].mxu1 %vm13340_vm0, %v10661_v15 }
 0x5c5   : > { %7349 = vmatpush3.bf16.xpose.msra.mxu1 %v2920_v46 }
 0x5c6   : > { %3862 = vrot.lane.b32.xlu1 %v10395_v47, %s9345_s0  ;;  %v8383_v47 = vld [vmem:[#allocation12 + $0x8] sm:$0xff]  }
 0x5c7   : > { %3878 = vrot.lane.b32.xlu0 %v10393_v53, %s9345_s0  ;;  %v8380_v53 = vld [vmem:[#allocation12] sm:$0xff]  }
 0x5ca   : > { %3880 = vrot.lane.b32.xlu1 %v10409_v41, %s9345_s0  ;;  %v2122_v41 = vlaneseq }
 0x5cb   : > { %3864 = vrot.lane.b32.xlu0 %v10403_v28, %s9345_s0  ;;  %v8381_v28 = vld [vmem:[#allocation12 + $0x10] sm:$0xff]  }
 0x5ce   : > { %3882 = vrot.lane.b32.xlu1 %v10423_v51, %s9345_s0  ;;  %v10778_v51 = vshrl.u32 %v2122_v41, 7 }
 0x5cf   : > { %3866 = vrot.lane.b32.xlu0 %v10407_v17, %s9345_s0  ;;  %v8384_v17 = vld [vmem:[#allocation12 + $0x18] sm:$0xff]  }
 0x5d0   : > { %13454 = vst [vmem:[#allocation35_spill] sm:$0xff] %v10778_v51  ;;  %v2133_v40 = vadd.s32 80, %v10778_v51  ;;  %v2134_v2 = vadd.s32 88, %v10778_v51  ;;  %v2135_v62 = vadd.s32 96, %v10778_v51  ;;  %v2136_v31 = vadd.s32 104, %v10778_v51 }
 0x5d1   : > { %v2137_v20 = vadd.s32 112, %v10778_v51  ;;  %v2138_v6 = vadd.s32 120, %v10778_v51 }
 0x5d2   : > { %3884 = vrot.lane.b32.xlu1 %v10435_v44, %s9345_s0  ;;  %v2131_v44 = vadd.s32 64, %v10778_v51 }
 0x5d3   : > { %3868 = vrot.lane.b32.xlu0 %v10417_v42, %s9345_s0  ;;  %v8382_v42 = vld [vmem:[#allocation12 + $0x20] sm:$0xff]  }
 0x5d6   : > { %3886 = vrot.lane.b32.xlu1 %v10445_v49, %s9345_s0 }
 0x5d7   : > { %3870 = vrot.lane.b32.xlu0 %v10427_v43, %s9345_s0  ;;  %v10780_v43 = vand.u32 127, %v2122_v41 }
 0x5da   : > { %3888 = vrot.lane.b32.xlu1 %v10455_v18, %s9345_s0 }
 0x5db   : > { %3872 = vrot.lane.b32.xlu0 %v10437_v12, %s9345_s0  ;;  %v10786_v12 = vstv %s7015_s27  ;;  %s9346_s27 = smov 32  }
 0x5dc   : > { %v10793_v18 = vadd.s32 %v10786_v12, %v2131_v44  ;;  %v10813_v0 = vadd.s32 %v10786_v12, %v2133_v40  ;;  %v10823_v22 = vadd.s32 %v10786_v12, %v2134_v2  ;;  %v10831_v7 = vadd.s32 %v10786_v12, %v2135_v62 }
 0x5dd   : > { %v10841_v27 = vadd.s32 %v10786_v12, %v2136_v31  ;;  %v10849_v58 = vadd.s32 %v10786_v12, %v2137_v20  ;;  %v10861_v33 = vadd.s32 %v10786_v12, %v2138_v6  ;;  %v2124_v40 = vadd.s32 8, %v10778_v51 }
 0x5de   : > { %3890 = vrot.lane.b32.xlu1 %v10461_v54, %s9345_s0  ;;  %13455 = vst [vmem:[#allocation36_spill] sm:$0xff] %v10793_v18  ;;  %vm2175_vm1 = vcmp.ge.s32.totalorder %v10793_v18, %v10780_v43  ;;  %13457 = vst [vmem:[#allocation38_spill] sm:$0xff] %v10813_v0  ;;  %vm2179_vm5 = vcmp.ge.s32.totalorder %v10813_v0, %v10780_v43  ;;  %vm13395_vm7 = vcmp.ge.s32.totalorder %v10823_v22, %v10780_v43 }
 0x5df   : > { %3874 = vrot.lane.b32.xlu0 %v10447_v50, %s9345_s0  ;;  %v10790_v50 = vadd.s32 128, %v10780_v43  ;;  %13458 = vst [vmem:[#allocation39_spill] sm:$0xff] %v10823_v22  ;;  %vm13351_vm11 = vcmp.ge.s32.totalorder %v10841_v27, %v10780_v43  ;;  %13459 = vst [vmem:[#allocation40_spill] sm:$0xff] %v10849_v58  ;;  %vm13349_vm15 = vcmp.ge.s32.totalorder %v10861_v33, %v10780_v43 }
 0x5e0   : > { %v10944_v62 = vadd.s32 %v10786_v12, %v2124_v40 }
 0x5e1   : > { %vm2176_vm2 = vcmp.ge.s32.totalorder %v10793_v18, %v10790_v50  ;;  %vm13394_vm8 = vcmp.ge.s32.totalorder %v10823_v22, %v10790_v50  ;;  %vm13350_vm12 = vcmp.ge.s32.totalorder %v10841_v27, %v10790_v50  ;;  %vm13348_vm10 = vcmp.ge.s32.totalorder %v10861_v33, %v10790_v50 }
 0x5e2   : > { %3892 = vrot.lane.b32.xlu1 %v10535_v61, %s9345_s0  ;;  %v2132_v61 = vadd.s32 72, %v10778_v51  ;;  %13484 = vst [vmem:[#allocation65_spill] sm:$0xff] %v10944_v62  ;;  %vm13325_vm9 = vcmp.ge.s32.totalorder %v10944_v62, %v10780_v43  ;;  %vm13326_vm6 = vcmp.ge.s32.totalorder %v10944_v62, %v10790_v50 }
 0x5e3   : > { %3876 = vrot.lane.b32.xlu0 %v10537_v5, %s9345_s0 }
 0x5e4   : > { %v10805_v5 = vadd.s32 %v10786_v12, %v2132_v61 }
 0x5e6   : > { %3848 = vrot.lane.b32.xlu1 %v10605_v25, %s9345_s0  ;;  %13456 = vst [vmem:[#allocation37_spill] sm:$0xff] %v10805_v5  ;;  %vm2177_vm3 = vcmp.ge.s32.totalorder %v10805_v5, %v10780_v43  ;;  %vm2178_vm4 = vcmp.ge.s32.totalorder %v10805_v5, %v10790_v50 }
 0x5e7   : > { %3846 = vrot.lane.b32.xlu0 %v10607_v10, %s9345_s0 }
 0x5ea   : > { %3852 = vrot.lane.b32.xlu1 %v10625_v4, %s9345_s0 }
 0x5eb   : > { %3850 = vrot.lane.b32.xlu0 %v10627_v11, %s9345_s0 }
 0x5ee   : > { %3856 = vrot.lane.b32.xlu1 %v10643_v52, %s9345_s0 }
 0x5ef   : > { %3854 = vrot.lane.b32.xlu0 %v10645_v3, %s9345_s0 }
 0x5f2   : > { %3860 = vrot.lane.b32.xlu1 %v10661_v15, %s9345_s0 }
 0x5f3   : > { %3540 = vrot.lane.b32.xlu0 %v8380_v53, %s9344_s24 }
 0x5f6   : > { %3542 = vrot.lane.b32.xlu1 %v8383_v47, %s9344_s24 }
 0x5f7   : > { %3544 = vrot.lane.b32.xlu0 %v8381_v28, %s9344_s24 }
 0x5fa   : > { %3546 = vrot.lane.b32.xlu1 %v8384_v17, %s9344_s24 }
 0x5fb   : > { %3548 = vrot.lane.b32.xlu0 %v8382_v42, %s9344_s24 }
 0x5fc   : > { %v2813_v54 = vpop.permute.xlu1 %2812 }
 0x5fd   : > { %v2811_v49 = vpop.permute.xlu0 %2810 }
 0x5fe   : > { %7350 = vmatprep.mubr.msk.bf16.mxu1 %vm13340_vm0, %v2811_v49 }
 0x5ff   : > { %3858 = vrot.lane.b32.xlu0 %v10663_v45, %s9345_s0  ;;  %7351 = vmatmul.mubr.msk.bf16.vlgmr.msra.gmra.mrb[32].mxu1 %vm13340_vm0, %v2811_v49 }
 0x600   : > { %7352 = vmatprep.mubr.msk.bf16.mxu1 %vm13340_vm0, %v2813_v54 }
 0x604   : > { %v2817_v56 = vpop.permute.xlu1 %2816 }
 0x605   : > { %v2815_v1 = vpop.permute.xlu0 %2814 }
 0x607   : > { %7353 = vmatmul.mubr.msk.bf16.gmra.mrb[36].mxu1 %vm13340_vm0, %v2813_v54 }
 0x608   : > { %7354 = vmatprep.mubr.msk.bf16.mxu1 %vm13340_vm0, %v2815_v1 }
 0x60c   : > { %v2821_v38 = vpop.permute.xlu1 %2820 }
 0x60d   : > { %v2819_v63 = vpop.permute.xlu0 %2818 }
 0x60f   : > { %7355 = vmatmul.mubr.msk.bf16.gmra.mrb[40].mxu1 %vm13340_vm0, %v2815_v1 }
 0x610   : > { %7356 = vmatprep.mubr.msk.bf16.mxu1 %vm13340_vm0, %v2817_v56 }
 0x614   : > { %v2825_v48 = vpop.permute.xlu1 %2824 }
 0x615   : > { %v2823_v57 = vpop.permute.xlu0 %2822 }
 0x617   : > { %7357 = vmatmul.mubr.msk.bf16.gmra.mrb[44].mxu1 %vm13340_vm0, %v2817_v56  ;;  %v10941_v56 = vadd.s32 %v10786_v12, %v10778_v51 }
 0x618   : > { %v10853_v14 = vpop.permute.xlu1 %3315  ;;  %7358 = vmatprep.mubr.msk.bf16.mxu1 %vm13340_vm0, %v2819_v63 }
 0x619   : > { %v3332_v13 = vpop.permute.xlu0 %3331  ;;  %13483 = vst [vmem:[#allocation64_spill] sm:$0xff] %v10941_v56  ;;  %vm13329_vm14 = vcmp.ge.s32.totalorder %v10941_v56, %v10780_v43  ;;  %vm13328_vm13 = vcmp.ge.s32.totalorder %v10941_v56, %v10790_v50 }
 0x61a   : > { %7366 = vmatprep.subr.bf16.mxu0 %v3332_v13  ;;  %v2126_v13 = vadd.s32 24, %v10778_v51 }
 0x61c   : > { %v10867_v26 = vpop.permute.xlu1 %3333 }
 0x61d   : > { %v10869_v16 = vpop.permute.xlu0 %3317 }
 0x61f   : > { %7359 = vmatmul.mubr.msk.bf16.gmra.mrb[48].mxu1 %vm13340_vm0, %v2819_v63  ;;  %v2125_v63 = vadd.s32 16, %v10778_v51 }
 0x620   : > { %v10872_v32 = vpop.permute.xlu1 %3335  ;;  %7360 = vmatprep.mubr.msk.bf16.mxu1 %vm13340_vm0, %v2821_v38 }
 0x621   : > { %v10875_v8 = vpop.permute.xlu0 %3337  ;;  %v10975_v52 = vadd.s32 %v10786_v12, %v2125_v63  ;;  %v10994_v63 = vadd.s32 %v10786_v12, %v2126_v13 }
 0x623   : > { %13489 = vst [vmem:[#allocation70_spill] sm:$0xff] %v10975_v52  ;;  %13491 = vst [vmem:[#allocation72_spill] sm:$0xff] %v10994_v63 }
 0x624   : > { %v10877_v9 = vpop.permute.xlu1 %3319 }
 0x625   : > { %v10879_v23 = vpop.permute.xlu0 %3321 }
 0x627   : > { %7361 = vmatmul.mubr.msk.bf16.gmra.mrb[52].mxu1 %vm13340_vm0, %v2821_v38 }
 0x628   : > { %v10882_v34 = vpop.permute.xlu1 %3339  ;;  %7362 = vmatprep.mubr.msk.bf16.mxu1 %vm13340_vm0, %v2823_v57 }
 0x629   : > { %v10885_v21 = vpop.permute.xlu0 %3341 }
 0x62c   : > { %v10887_v55 = vpop.permute.xlu1 %3323 }
 0x62d   : > { %v10889_v19 = vpop.permute.xlu0 %3325 }
 0x62e   : > { %13460 = vst [vmem:[#allocation41_spill] sm:$0xff] %v10889_v19 }
 0x62f   : > { %7363 = vmatmul.mubr.msk.bf16.gmra.mrb[56].mxu1 %vm13340_vm0, %v2823_v57 }
 0x630   : > { %v10892_v37 = vpop.permute.xlu1 %3343  ;;  %7364 = vmatprep.mubr.msk.bf16.mxu1 %vm13340_vm0, %v2825_v48 }
 0x631   : > { %13461 = vst [vmem:[#allocation42_spill] sm:$0xff] %v10892_v37  ;;  %v10895_v36 = vpop.permute.xlu0 %3345 }
 0x632   : > { %13462 = vst [vmem:[#allocation43_spill] sm:$0xff] %v10895_v36 }
 0x634   : > { %v10897_v24 = vpop.permute.xlu1 %3327 }
 0x635   : > { %13463 = vst [vmem:[#allocation44_spill] sm:$0xff] %v10897_v24  ;;  %v10899_v30 = vpop.permute.xlu0 %3329 }
 0x636   : > { %13464 = vst [vmem:[#allocation45_spill] sm:$0xff] %v10899_v30 }
 0x637   : > { %7365 = vmatmul.mubr.msk.bf16.gmra.mrb[60].mxu1 %vm13340_vm0, %v2825_v48 }
 0x638   : > { %v10902_v39 = vpop.permute.xlu1 %3862 }
 0x639   : > { %13465 = vst [vmem:[#allocation46_spill] sm:$0xff] %v10902_v39  ;;  %v10904_v59 = vpop.permute.xlu0 %3878  ;;  %v2128_v39 = vadd.s32 40, %v10778_v51 }
 0x63a   : > { %13466 = vst [vmem:[#allocation47_spill] sm:$0xff] %v10904_v59 }
 0x63c   : > { %v10906_v35 = vpop.permute.xlu1 %3880 }
 0x63d   : > { %13467 = vst [vmem:[#allocation48_spill] sm:$0xff] %v10906_v35  ;;  %v10908_v29 = vpop.permute.xlu0 %3864 }
 0x63e   : > { %13468 = vst [vmem:[#allocation49_spill] sm:$0xff] %v10908_v29 }
 0x640   : > { %v10910_v60 = vpop.permute.xlu1 %3882 }
 0x641   : > { %13469 = vst [vmem:[#allocation50_spill] sm:$0xff] %v10910_v60  ;;  %v10912_v46 = vpop.permute.xlu0 %3866 }
 0x642   : > { %13470 = vst [vmem:[#allocation51_spill] sm:$0xff] %v10912_v46 }
 0x644   : > { %v10914_v53 = vpop.permute.xlu1 %3884 }
 0x645   : > { %13471 = vst [vmem:[#allocation52_spill] sm:$0xff] %v10914_v53  ;;  %v10916_v47 = vpop.permute.xlu0 %3868 }
 0x646   : > { %13472 = vst [vmem:[#allocation53_spill] sm:$0xff] %v10916_v47 }
 0x648   : > { %v10918_v28 = vpop.permute.xlu1 %3886 }
 0x649   : > { %13473 = vst [vmem:[#allocation54_spill] sm:$0xff] %v10918_v28  ;;  %v10920_v17 = vpop.permute.xlu0 %3870 }
 0x64a   : > { %13474 = vst [vmem:[#allocation55_spill] sm:$0xff] %v10920_v17 }
 0x64c   : > { %v10922_v41 = vpop.permute.xlu1 %3888 }
 0x64d   : > { %13475 = vst [vmem:[#allocation56_spill] sm:$0xff] %v10922_v41  ;;  %v10924_v42 = vpop.permute.xlu0 %3872 }
 0x64e   : > { %13476 = vst [vmem:[#allocation57_spill] sm:$0xff] %v10924_v42 }
 0x650   : > { %v10926_v44 = vpop.permute.xlu1 %3890 }
 0x651   : > { %13477 = vst [vmem:[#allocation58_spill] sm:$0xff] %v10926_v44  ;;  %v10928_v49 = vpop.permute.xlu0 %3874  ;;  %v8385_v44 = vld [vmem:[#allocation12 + $0x28] sm:$0xff]  }
 0x652   : > { %13478 = vst [vmem:[#allocation59_spill] sm:$0xff] %v10928_v49 }
 0x654   : > { %v10930_v54 = vpop.permute.xlu1 %3892 }
 0x655   : > { %13479 = vst [vmem:[#allocation60_spill] sm:$0xff] %v10930_v54  ;;  %v10932_v61 = vpop.permute.xlu0 %3876 }
 0x656   : > { %13480 = vst [vmem:[#allocation61_spill] sm:$0xff] %v10932_v61 }
 0x658   : > { %v10935_v1 = vpop.permute.xlu1 %3848 }
 0x659   : > { %13481 = vst [vmem:[#allocation62_spill] sm:$0xff] %v10935_v1  ;;  %v10937_v2 = vpop.permute.xlu0 %3846 }
 0x65a   : > { %13482 = vst [vmem:[#allocation63_spill] sm:$0xff] %v10937_v2 }
 0x65c   : > { %v10946_v31 = vpop.permute.xlu1 %3852 }
 0x65d   : > { %13485 = vst [vmem:[#allocation66_spill] sm:$0xff] %v10946_v31  ;;  %v10948_v38 = vpop.permute.xlu0 %3850 }
 0x65e   : > { %13486 = vst [vmem:[#allocation67_spill] sm:$0xff] %v10948_v38  ;;  %v2129_v38 = vadd.s32 48, %v10778_v51 }
 0x65f   : > { %v2346_v48 = vpop.f32.mrb[0].mxu1 }
 0x660   : > { %v10960_v20 = vsel %vm13329_vm14, %v2346_v48, -1e+30  ;;  %v2348_v57 = vpop.f32.mrb[1].mxu1  ;;  %v10962_v6 = vpop.permute.xlu1 %3856  ;;  %vm13343_vm14 = vcmp.ge.s32.totalorder %v10994_v63, %v10790_v50  ;;  %v11053_v54 = vadd.s32 %v10786_v12, %v2129_v38 }
 0x661   : > { %13487 = vst [vmem:[#allocation68_spill] sm:$0xff] %v10962_v6  ;;  %v10970_v40 = vsel %vm13328_vm13, %v2348_v57, -1e+30  ;;  %v2350_v45 = vpop.f32.mrb[2].mxu1  ;;  %v10972_v15 = vpop.permute.xlu0 %3854  ;;  %vm13336_vm13 = vcmp.ge.s32.totalorder %v10994_v63, %v10780_v43 }
 0x662   : > { %13488 = vst [vmem:[#allocation69_spill] sm:$0xff] %v10972_v15  ;;  %v2457_v48 = vmax.f32 %v10960_v20, %v10970_v40  ;;  %v10982_v3 = vsel %vm13325_vm9, %v2350_v45, -1e+30  ;;  %v2352_v11 = vpop.f32.mrb[3].mxu1  ;;  %vm2163_vm9 = vcmp.ge.s32.totalorder %v10975_v52, %v10780_v43  ;;  %v2127_v45 = vadd.s32 32, %v10778_v51  ;;  %13493 = vst [vmem:[#allocation74_spill] sm:$0xff] %v11053_v54 }
 0x663   : > { %v10987_v57 = vsel %vm13326_vm6, %v2352_v11, -1e+30  ;;  %vm13333_vm6 = vcmp.ge.s32.totalorder %v10975_v52, %v10790_v50 }
 0x664   : > { %v2460_v25 = vmax.f32 %v10982_v3, %v10987_v57  ;;  %v10991_v10 = vpop.permute.xlu1 %3860  ;;  %2458 = vmax.xlane.f32.xlu0 %v2457_v48 }
 0x665   : > { %13490 = vst [vmem:[#allocation71_spill] sm:$0xff] %v10991_v10  ;;  %v3541_v4 = vpop.permute.xlu0 %3540 }
 0x666   : > { %2461 = vmax.xlane.f32.xlu1 %v2460_v25  ;;  %8070 = vmatprep.subr.msk.bf16.mxu1 %vm13340_vm0, %v3541_v4  ;;  %v3581_v11 = vsel %vm13340_vm0, %v3541_v4, 0 }
 0x667   : > { %v2356_v6 = vpop.f32.mrb[4].mxu1  ;;  %7879 = vmatpush3.bf16.xpose.msra.mxu1 %v3581_v11  ;;  %v11018_v11 = vadd.s32 %v10786_v12, %v2127_v45 }
 0x668   : > { %v11006_v13 = vsel %vm2163_vm9, %v2356_v6, -1e+30  ;;  %v2358_v48 = vpop.f32.mrb[5].mxu1  ;;  %v3543_v25 = vpop.permute.xlu1 %3542 }
 0x669   : > { %v11015_v10 = vsel %vm13333_vm6, %v2358_v48, -1e+30  ;;  %v2360_v4 = vpop.f32.mrb[6].mxu1  ;;  %13492 = vst [vmem:[#allocation73_spill] sm:$0xff] %v11018_v11  ;;  %8071 = vmatprep.subr.msk.bf16.mxu1 %vm13340_vm0, %v3543_v25  ;;  %v3584_v45 = vsel %vm13340_vm0, %v3543_v25, 0  ;;  %vm13338_vm6 = vcmp.ge.s32.totalorder %v11018_v11, %v10780_v43 }
 0x66a   : > { %v2463_v6 = vmax.f32 %v11006_v13, %v11015_v10  ;;  %v2362_v15 = vpop.f32.mrb[7].mxu1  ;;  %v11026_v31 = vsel %vm13336_vm13, %v2360_v4, -1e+30  ;;  %vm13339_vm13 = vcmp.ge.s32.totalorder %v11018_v11, %v10790_v50  ;;  %v3545_v4 = vpop.permute.xlu0 %3544 }
 0x66b   : > { %v11031_v48 = vsel %vm13343_vm14, %v2362_v15, -1e+30 }
 0x66c   : > { %2464 = vmax.xlane.f32.xlu0 %v2463_v6  ;;  %v2466_v1 = vmax.f32 %v11026_v31, %v11031_v48 }
 0x66f   : > { %v2366_v2 = vpop.f32.mrb[8].mxu1  ;;  %7881 = vmatpush3.bf16.xpose.msra.mxu1 %v3584_v45 }
 0x670   : > { %v11044_v15 = vsel %vm13338_vm6, %v2366_v2, -1e+30  ;;  %v2368_v25 = vpop.f32.mrb[9].mxu1  ;;  %2467 = vmax.xlane.f32.xlu0 %v2466_v1  ;;  %8072 = vmatprep.subr.msk.bf16.mxu1 %vm13340_vm0, %v3545_v4  ;;  %v3587_v2 = vsel %vm13340_vm0, %v3545_v4, 0  ;;  %vm13342_vm6 = vcmp.ge.s32.totalorder %v11053_v54, %v10780_v43  ;;  %v3547_v1 = vpop.permute.xlu1 %3546 }
 0x671   : > { %v11050_v6 = vsel %vm13339_vm13, %v2368_v25, -1e+30  ;;  %v2370_v61 = vpop.f32.mrb[10].mxu1  ;;  %vm13341_vm13 = vcmp.ge.s32.totalorder %v11053_v54, %v10790_v50 }
 0x672   : > { %v2469_v45 = vmax.f32 %v11044_v15, %v11050_v6  ;;  %v2372_v49 = vpop.f32.mrb[11].mxu1 }
 0x674   : > { %2470 = vmax.xlane.f32.xlu0 %v2469_v45 }
 0x677   : > { %v2376_v25 = vpop.f32.mrb[12].mxu1  ;;  %3550 = vrot.lane.b32.xlu1 %v8385_v44, %s9344_s24  ;;  %7883 = vmatpush3.bf16.xpose.msra.mxu1 %v3587_v2  ;;  %v3590_v44 = vsel %vm13340_vm0, %v3547_v1, 0  ;;  %v3549_v2 = vpop.permute.xlu0 %3548 }
 0x678   : > { %v11066_v38 = vsel %vm13342_vm6, %v2376_v25, -1e+30  ;;  %v2378_v42 = vpop.f32.mrb[13].mxu1  ;;  %8073 = vmatprep.subr.msk.bf16.mxu1 %vm13340_vm0, %v3547_v1  ;;  %v3593_v46 = vsel %vm13340_vm0, %v3549_v2, 0  ;;  %v11081_v1 = vadd.s32 %v10786_v12, %v2128_v39 }
 0x679   : > { %v11072_v4 = vsel %vm13341_vm13, %v2378_v42, -1e+30  ;;  %v2380_v45 = vpop.f32.mrb[14].mxu1 }
 0x67a   : > { %v2475_v41 = vmax.f32 %v11066_v38, %v11072_v4  ;;  %v2382_v17 = vpop.f32.mrb[15].mxu1  ;;  %13494 = vst [vmem:[#allocation75_spill] sm:$0xff] %v11081_v1  ;;  %vm2170_vm13 = vcmp.ge.s32.totalorder %v11081_v1, %v10790_v50 }
 0x67c   : > { %2476 = vmax.xlane.f32.xlu0 %v2475_v41  ;;  %v8386_v41 = vld [vmem:[#allocation12 + $0x30] sm:$0xff]  }
 0x67f   : > { %v2386_v28 = vpop.f32.mrb[16].mxu1  ;;  %7885 = vmatpush3.bf16.xpose.msra.mxu1 %v3590_v44  ;;  %v2130_v44 = vadd.s32 56, %v10778_v51 }
 0x680   : > { %v2388_v25 = vpop.f32.mrb[17].mxu1  ;;  %8074 = vmatprep.subr.msk.bf16.mxu1 %vm13340_vm0, %v3549_v2  ;;  %vm2169_vm0 = vcmp.ge.s32.totalorder %v11081_v1, %v10780_v43  ;;  %v11100_v2 = vsel %vm2170_vm13, %v2372_v49, -1e+30 }
 0x681   : > { %v2390_v47 = vpop.f32.mrb[18].mxu1  ;;  %v11095_v39 = vsel %vm2169_vm0, %v2370_v61, -1e+30  ;;  %13496 = vst [vmem:[#allocation77_spill] sm:$0xff] %v11100_v2 }
 0x682   : > { %v2392_v53 = vpop.f32.mrb[19].mxu1 }
 0x687   : > { %v2396_v42 = vpop.f32.mrb[20].mxu1  ;;  %7887 = vmatpush3.bf16.xpose.msra.mxu1 %v3593_v46  ;;  %v11090_v46 = vadd.s32 %v10786_v12, %v2130_v44  ;;  %v2472_v12 = vmax.f32 %v11095_v39, %v11100_v2  ;;  %v11123_v2 = vsel %vm2177_vm3, %v2390_v47, -1e+30 }
 0x688   : > { %v2398_v60 = vpop.f32.mrb[21].mxu1 }
 0x689   : > { %v2400_v29 = vpop.f32.mrb[22].mxu1  ;;  %13495 = vst [vmem:[#allocation76_spill] sm:$0xff] %v11090_v46  ;;  %vm2173_vm6 = vcmp.ge.s32.totalorder %v11090_v46, %v10780_v43  ;;  %vm2174_vm14 = vcmp.ge.s32.totalorder %v11090_v46, %v10790_v50 }
 0x68a   : > { %v2402_v35 = vpop.f32.mrb[23].mxu1  ;;  %v11111_v61 = vsel %vm2173_vm6, %v2380_v45, -1e+30  ;;  %v11116_v49 = vsel %vm2174_vm14, %v2382_v17, -1e+30 }
 0x68b   : > { %13497 = vst [vmem:[#allocation78_spill] sm:$0xff] %v11116_v49  ;;  %v2478_v19 = vmax.f32 %v11111_v61, %v11116_v49  ;;  %v11128_v45 = vsel %vm2178_vm4, %v2392_v53, -1e+30  ;;  %v11140_v49 = vsel %vm13394_vm8, %v2402_v35, -1e+30 }
 0x68c   : > { %v2484_v17 = vmax.f32 %v11123_v2, %v11128_v45 }
 0x68f   : > { %v2406_v59 = vpop.f32.mrb[24].mxu1 }
 0x690   : > { %v2408_v30 = vpop.f32.mrb[25].mxu1 }
 0x691   : > { %v2410_v36 = vpop.f32.mrb[26].mxu1 }
 0x692   : > { %3552 = vrot.lane.b32.xlu0 %v8386_v41, %s9344_s24  ;;  %v2412_v24 = vpop.f32.mrb[27].mxu1 }
 0x693   : > { %v11152_v53 = vsel %vm13350_vm12, %v2412_v24, -1e+30  ;;  %v11174_v24 = vsel %vm2176_vm2, %v2388_v25, -1e+30  ;;  %vm13501_vm12 = vcmp.ge.s32.totalorder %v10831_v7, %v10790_v50 }
 0x697   : > { %v2416_v41 = vpop.f32.mrb[28].mxu1 }
 0x698   : > { %v2418_v51 = vpop.f32.mrb[29].mxu1 }
 0x699   : > { %v2420_v44 = vpop.f32.mrb[30].mxu1 }
 0x69a   : > { %v2422_v37 = vpop.f32.mrb[31].mxu1  ;;  %v11159_v35 = vsel %vm13349_vm15, %v2420_v44, -1e+30  ;;  %vm13499_vm15 = vcmp.ge.s32.totalorder %v10831_v7, %v10780_v43 }
 0x69b   : > { %2473 = vmax.xlane.f32.xlu1 %v2472_v12  ;;  %v11135_v12 = vsel %vm13395_vm7, %v2400_v29, -1e+30 }
 0x69c   : > { %v2490_v47 = vmax.f32 %v11135_v12, %v11140_v49 }
 0x69f   : > { %2479 = vmax.xlane.f32.xlu1 %v2478_v19  ;;  %v11147_v19 = vsel %vm13351_vm11, %v2410_v36, -1e+30  ;;  %v11169_v36 = vsel %vm2175_vm1, %v2386_v28, -1e+30  ;;  %vm13504_vm11 = vcmp.ge.s32.totalorder %v10849_v58, %v10790_v50 }
 0x6a0   : > { %v2496_v29 = vmax.f32 %v11147_v19, %v11152_v53 }
 0x6a3   : > { %2485 = vmax.xlane.f32.xlu1 %v2484_v17  ;;  %v11164_v17 = vsel %vm13348_vm10, %v2422_v37, -1e+30  ;;  %v11183_v37 = vsel %vm2179_vm5, %v2396_v42, -1e+30  ;;  %vm13498_vm10 = vcmp.ge.s32.totalorder %v10813_v0, %v10790_v50 }
 0x6a4   : > { %v2502_v44 = vmax.f32 %v11159_v35, %v11164_v17  ;;  %v11188_v28 = vsel %vm13498_vm10, %v2398_v60, -1e+30  ;;  %vm13503_vm10 = vcmp.ge.s32.totalorder %v10849_v58, %v10780_v43 }
 0x6a5   : > { %v2487_v25 = vmax.f32 %v11183_v37, %v11188_v28  ;;  %v11207_v60 = vsel %vm13503_vm10, %v2416_v41, -1e+30  ;;  %vm13510_vm10 = vcmp.ge.s32.totalorder %v10944_v62, %v10790_v50 }
 0x6a7   : > { %2491 = vmax.xlane.f32.xlu1 %v2490_v47  ;;  %v2481_v47 = vmax.f32 %v11169_v36, %v11174_v24 }
 0x6ab   : > { %2497 = vmax.xlane.f32.xlu1 %v2496_v29  ;;  %v11195_v29 = vsel %vm13499_vm15, %v2406_v59, -1e+30  ;;  %vm13507_vm15 = vcmp.ge.s32.totalorder %v10941_v56, %v10790_v50 }
 0x6ac   : > { %13500 = vst [vmem:[#allocation79_spill] sm:$0xff] %v11195_v29 }
 0x6af   : > { %2503 = vmax.xlane.f32.xlu1 %v2502_v44  ;;  %v11200_v44 = vsel %vm13501_vm12, %v2408_v30, -1e+30  ;;  %vm13505_vm12 = vcmp.ge.s32.totalorder %v10941_v56, %v10780_v43 }
 0x6b0   : > { %13502 = vst [vmem:[#allocation80_spill] sm:$0xff] %v11200_v44  ;;  %v2493_v42 = vmax.f32 %v11195_v29, %v11200_v44 }
 0x6b1   : > { %2482 = vmax.xlane.f32.xlu0 %v2481_v47  ;;  %v11212_v47 = vsel %vm13504_vm11, %v2418_v51, -1e+30  ;;  %vm13509_vm11 = vcmp.ge.s32.totalorder %v10944_v62, %v10780_v43 }
 0x6b2   : > { %v2499_v59 = vmax.f32 %v11207_v60, %v11212_v47 }
 0x6b5   : > { %2488 = vmax.xlane.f32.xlu0 %v2487_v25 }
 0x6b9   : > { %2494 = vmax.xlane.f32.xlu0 %v2493_v42 }
 0x6bd   : > { %2500 = vmax.xlane.f32.xlu0 %v2499_v59 }
 0x6d2   : > { %v2980_v30 = vpop.f32.mrb[32].mxu1 }
 0x6d3   : > { %v11219_v25 = vsel %vm13505_vm12, %v2980_v30, -1e+30  ;;  %v2982_v44 = vpop.f32.mrb[33].mxu1  ;;  %vm13512_vm12 = vcmp.ge.s32.totalorder %v10975_v52, %v10790_v50 }
 0x6d4   : > { %13506 = vst [vmem:[#allocation81_spill] sm:$0xff] %v11219_v25  ;;  %v11224_v41 = vsel %vm13507_vm15, %v2982_v44, -1e+30  ;;  %v2984_v29 = vpop.f32.mrb[34].mxu1  ;;  %vm13514_vm15 = vcmp.ge.s32.totalorder %v10994_v63, %v10780_v43 }
 0x6d5   : > { %13508 = vst [vmem:[#allocation82_spill] sm:$0xff] %v11224_v41  ;;  %v3091_v51 = vmax.f32 %v11219_v25, %v11224_v41  ;;  %v11231_v42 = vsel %vm13509_vm11, %v2984_v29, -1e+30  ;;  %v2986_v59 = vpop.f32.mrb[35].mxu1  ;;  %vm13516_vm11 = vcmp.ge.s32.totalorder %v10994_v63, %v10790_v50 }
 0x6d6   : > { %v11236_v30 = vsel %vm13510_vm10, %v2986_v59, -1e+30  ;;  %vm13518_vm10 = vcmp.ge.s32.totalorder %v11018_v11, %v10780_v43 }
 0x6d7   : > { %v3094_v56 = vmax.f32 %v11231_v42, %v11236_v30  ;;  %3092 = vmax.xlane.f32.xlu1 %v3091_v51 }
 0x6d9   : > { %3095 = vmax.xlane.f32.xlu0 %v3094_v56 }
 0x6da   : > { %v2990_v44 = vpop.f32.mrb[36].mxu1 }
 0x6db   : > { %v11243_v41 = vsel %vm2163_vm9, %v2990_v44, -1e+30  ;;  %v2992_v25 = vpop.f32.mrb[37].mxu1 }
 0x6dc   : > { %13511 = vst [vmem:[#allocation83_spill] sm:$0xff] %v11243_v41  ;;  %v11248_v29 = vsel %vm13512_vm12, %v2992_v25, -1e+30  ;;  %v2994_v62 = vpop.f32.mrb[38].mxu1  ;;  %vm13520_vm12 = vcmp.ge.s32.totalorder %v11018_v11, %v10790_v50 }
 0x6dd   : > { %13513 = vst [vmem:[#allocation84_spill] sm:$0xff] %v11248_v29  ;;  %v3097_v59 = vmax.f32 %v11243_v41, %v11248_v29  ;;  %v11255_v56 = vsel %vm13514_vm15, %v2994_v62, -1e+30  ;;  %v2996_v51 = vpop.f32.mrb[39].mxu1  ;;  %vm13524_vm15 = vcmp.ge.s32.totalorder %v11053_v54, %v10780_v43 }
 0x6de   : > { %13515 = vst [vmem:[#allocation85_spill] sm:$0xff] %v11255_v56  ;;  %v11260_v44 = vsel %vm13516_vm11, %v2996_v51, -1e+30  ;;  %vm13526_vm11 = vcmp.ge.s32.totalorder %v11053_v54, %v10790_v50 }
 0x6df   : > { %13517 = vst [vmem:[#allocation86_spill] sm:$0xff] %v11260_v44  ;;  %v3100_v52 = vmax.f32 %v11255_v56, %v11260_v44  ;;  %3098 = vmax.xlane.f32.xlu1 %v3097_v59 }
 0x6e1   : > { %3101 = vmax.xlane.f32.xlu0 %v3100_v52 }
 0x6e2   : > { %v3000_v25 = vpop.f32.mrb[40].mxu1 }
 0x6e3   : > { %v11267_v29 = vsel %vm13518_vm10, %v3000_v25, -1e+30  ;;  %v3002_v41 = vpop.f32.mrb[41].mxu1  ;;  %vm13530_vm10 = vcmask 261120  }
 0x6e4   : > { %13519 = vst [vmem:[#allocation87_spill] sm:$0xff] %v11267_v29  ;;  %v11272_v62 = vsel %vm13520_vm12, %v3002_v41, -1e+30  ;;  %v3004_v63 = vpop.f32.mrb[42].mxu1  ;;  %vm13531_vm12 = vmmov %vm13530_vm10 }
 0x6e5   : > { %13521 = vst [vmem:[#allocation88_spill] sm:$0xff] %v11272_v62  ;;  %v3103_v51 = vmax.f32 %v11267_v29, %v11272_v62  ;;  %v11279_v52 = vsel %vm2169_vm0, %v3004_v63, -1e+30  ;;  %v3006_v59 = vpop.f32.mrb[43].mxu1 }
 0x6e6   : > { %13522 = vst [vmem:[#allocation89_spill] sm:$0xff] %v11279_v52  ;;  %v11284_v25 = vsel %vm2170_vm13, %v3006_v59, -1e+30  ;;  %v11298_v59 = vpop.permute.xlu0 %3858 }
 0x6e7   : > { %13523 = vst [vmem:[#allocation90_spill] sm:$0xff] %v11284_v25  ;;  %v3106_v11 = vmax.f32 %v11279_v52, %v11284_v25  ;;  %3104 = vmax.xlane.f32.xlu1 %v3103_v51  ;;  %13528 = vst [vmem:[#allocation93_spill] sm:$0xff] %v11298_v59 }
 0x6e9   : > { %3107 = vmax.xlane.f32.xlu0 %v3106_v11 }
 0x6ea   : > { %v3010_v41 = vpop.f32.mrb[44].mxu1 }
 0x6eb   : > { %v11291_v62 = vsel %vm13524_vm15, %v3010_v41, -1e+30  ;;  %v3012_v29 = vpop.f32.mrb[45].mxu1  ;;  %vm13532_vm15 = vcmp.ge.s32.totalorder %v10813_v0, %v10790_v50 }
 0x6ec   : > { %13525 = vst [vmem:[#allocation91_spill] sm:$0xff] %v11291_v62  ;;  %v11296_v63 = vsel %vm13526_vm11, %v3012_v29, -1e+30  ;;  %v3014_v1 = vpop.f32.mrb[46].mxu1  ;;  %vm13533_vm11 = vcmp.ge.s32.totalorder %v10831_v7, %v10780_v43 }
 0x6ed   : > { %13527 = vst [vmem:[#allocation92_spill] sm:$0xff] %v11296_v63  ;;  %v3109_v25 = vmax.f32 %v11291_v62, %v11296_v63  ;;  %v11305_v11 = vsel %vm2173_vm6, %v3014_v1, -1e+30  ;;  %v3016_v51 = vpop.f32.mrb[47].mxu1 }
 0x6ee   : > { %v11310_v41 = vsel %vm2174_vm14, %v3016_v51, -1e+30 }
 0x6ef   : > { %13529 = vst [vmem:[#allocation94_spill] sm:$0xff] %v11310_v41  ;;  %v3112_v29 = vmax.f32 %v11305_v11, %v11310_v41  ;;  %3110 = vmax.xlane.f32.xlu1 %v3109_v25 }
 0x6f1   : > { %3113 = vmax.xlane.f32.xlu0 %v3112_v29  ;;  %v2459_v54 = vpop.xlane.xlu0 %2458 }
 0x6f2   : > { %v2505_v59 = vsub.f32 %v10960_v20, %v2459_v54  ;;  %v2506_v63 = vsub.f32 %v10970_v40, %v2459_v54  ;;  %v3020_v62 = vpop.f32.mrb[48].mxu1 }
 0x6f3   : > { %v11319_v1 = vsel %vm2175_vm1, %v3020_v62, -1e+30  ;;  %v2462_v52 = vpop.xlane.xlu1 %2461  ;;  %v3022_v46 = vpop.f32.mrb[49].mxu1 }
 0x6f4   : > { %v2537_v51 = vmul.f32 1.442695, %v2505_v59  ;;  %v2539_v44 = vmul.f32 1.442695, %v2506_v63  ;;  %v2507_v56 = vsub.f32 %v10982_v3, %v2462_v52  ;;  %v2508_v25 = vsub.f32 %v10987_v57, %v2462_v52  ;;  %v3024_v29 = vpop.f32.mrb[50].mxu1 }
 0x6f5   : > { %v11326_v20 = vsel %vm2176_vm2, %v3022_v46, -1e+30  ;;  %v3026_v54 = vpop.f32.mrb[51].mxu1  ;;  %v11333_v3 = vsel %vm2177_vm3, %v3024_v29, -1e+30 }
 0x6f6   : > { %8500 = vpow2.f32 %v2537_v51  ;;  %v2541_v40 = vmul.f32 1.442695, %v2507_v56  ;;  %v2543_v41 = vmul.f32 1.442695, %v2508_v25  ;;  %v3115_v62 = vmax.f32 %v11319_v1, %v11326_v20 }
 0x6f7   : > { %8502 = vpow2.f32 %v2539_v44  ;;  %v11338_v57 = vsel %vm2178_vm4, %v3026_v54, -1e+30  ;;  %v3551_v46 = vpop.permute.xlu1 %3550 }
 0x6f8   : > { %8504 = vpow2.f32 %v2541_v40  ;;  %3116 = vmax.xlane.f32.xlu1 %v3115_v62  ;;  %8075 = vmatprep.subr.msk.bf16.mxu1 %vm13530_vm10, %v3551_v46  ;;  %v3596_v56 = vsel %vm13531_vm12, %v3551_v46, 0  ;;  %v3118_v44 = vmax.f32 %v11333_v3, %v11338_v57  ;;  %vm13534_vm10 = vcmp.ge.s32.totalorder %v10831_v7, %v10790_v50 }
 0x6f9   : > { %8506 = vpow2.f32 %v2543_v41  ;;  %v2465_v52 = vpop.xlane.xlu0 %2464  ;;  %7889 = vmatpush3.bf16.xpose.msra.mxu1 %v3596_v56  ;;  %vm13535_vm12 = vcmp.ge.s32.totalorder %v10841_v27, %v10780_v43 }
 0x6fa   : > { %v2509_v63 = vsub.f32 %v11006_v13, %v2465_v52  ;;  %v2510_v59 = vsub.f32 %v11015_v10, %v2465_v52  ;;  %v3030_v51 = vpop.f32.mrb[52].mxu1 }
 0x6fb   : > { %v11349_v25 = vsel %vm2179_vm5, %v3030_v51, -1e+30  ;;  %v3032_v29 = vpop.f32.mrb[53].mxu1 }
 0x6fc   : > { %v2545_v54 = vmul.f32 1.442695, %v2509_v63  ;;  %v2547_v40 = vmul.f32 1.442695, %v2510_v59  ;;  %3119 = vmax.xlane.f32.xlu1 %v3118_v44  ;;  %v11354_v41 = vsel %vm13532_vm15, %v3032_v29, -1e+30  ;;  %vm13536_vm15 = vcmp.ge.s32.totalorder %v10841_v27, %v10790_v50 }
 0x6fd   : > { %v3121_v13 = vmax.f32 %v11349_v25, %v11354_v41  ;;  %v3034_v62 = vpop.f32.mrb[54].mxu1  ;;  %v2468_v10 = vpop.xlane.xlu0 %2467 }
 0x6fe   : > { %8508 = vpow2.f32 %v2545_v54  ;;  %v11361_v46 = vsel %vm13395_vm7, %v3034_v62, -1e+30  ;;  %v3036_v56 = vpop.f32.mrb[55].mxu1  ;;  %v2511_v52 = vsub.f32 %v11026_v31, %v2468_v10  ;;  %v2512_v44 = vsub.f32 %v11031_v48, %v2468_v10 }
 0x6ff   : > { %8510 = vpow2.f32 %v2547_v40  ;;  %v11368_v63 = vsel %vm13394_vm8, %v3036_v56, -1e+30  ;;  %3122 = vmax.xlane.f32.xlu0 %v3121_v13 }
 0x700   : > { %v8501_v59 = vpop.eup %8500  ;;  %v3124_v51 = vmax.f32 %v11361_v46, %v11368_v63  ;;  %v2549_v29 = vmul.f32 1.442695, %v2511_v52  ;;  %v2551_v54 = vmul.f32 1.442695, %v2512_v44 }
 0x701   : > { %v8503_v62 = vpop.eup %8502  ;;  %v2471_v0 = vpop.xlane.xlu0 %2470 }
 0x702   : > { %v8505_v5 = vpop.eup %8504  ;;  %8512 = vpow2.f32 %v2549_v29  ;;  %3125 = vmax.xlane.f32.xlu1 %v3124_v51  ;;  %v2513_v31 = vsub.f32 %v11044_v15, %v2471_v0  ;;  %v2514_v48 = vsub.f32 %v11050_v6, %v2471_v0  ;;  %v3040_v40 = vpop.f32.mrb[56].mxu1  ;;  %v11374_v10 = vadd.f32 %v8503_v62, %v8501_v59 }
 0x703   : > { %v8507_v56 = vpop.eup %8506  ;;  %8514 = vpow2.f32 %v2551_v54  ;;  %v11379_v13 = vsel %vm13533_vm11, %v3040_v40, -1e+30  ;;  %v3042_v52 = vpop.f32.mrb[57].mxu1  ;;  %v2649_v44 = vpack.c.bf16 %v8505_v5, %v8501_v59  ;;  %vm13537_vm11 = vcmp.ge.s32.totalorder %v10849_v58, %v10780_v43 }
 0x704   : > { %v2553_v22 = vmul.f32 1.442695, %v2513_v31  ;;  %v2555_v18 = vmul.f32 1.442695, %v2514_v48  ;;  %v11384_v15 = vsel %vm13534_vm10, %v3042_v52, -1e+30  ;;  %v2650_v0 = vpack.c.bf16 %v8507_v56, %v8503_v62 }
 0x705   : > { %v3127_v6 = vmax.f32 %v11379_v13, %v11384_v15  ;;  %v3044_v51 = vpop.f32.mrb[58].mxu1  ;;  %v11388_v29 = vadd.f32 %v8507_v56, %v8505_v5  ;;  %vm13538_vm10 = vcmp.ge.s32.totalorder %v10849_v58, %v10790_v50 }
 0x706   : > { %8516 = vpow2.f32 %v2553_v22  ;;  %v11393_v54 = vsel %vm13535_vm12, %v3044_v51, -1e+30  ;;  %2697 = vmatprep.mubr.bf16.mxu0 %v2650_v0  ;;  %v3046_v59 = vpop.f32.mrb[59].mxu1  ;;  %vm13539_vm12 = vcmask 261120  }
 0x707   : > { %8518 = vpow2.f32 %v2555_v18  ;;  %v11398_v31 = vsel %vm13536_vm15, %v3046_v59, -1e+30  ;;  %2698 = vmatmul.mubr.bf16.vlgmr.msra.gmra.mrb[16].mxu0 %v2649_v44  ;;  %3128 = vmax.xlane.f32.xlu0 %v3127_v6  ;;  %vm13540_vm15 = vmmov %vm13539_vm12 }
 0x708   : > { %v8509_v62 = vpop.eup %8508  ;;  %v3130_v5 = vmax.f32 %v11393_v54, %v11398_v31  ;;  %7367 = vmatpush3.bf16.msra.mxu0 %v10853_v14 }
 0x709   : > { %v8511_v22 = vpop.eup %8510  ;;  %7368 = vmatprep.subr.bf16.mxu0 %v10867_v26  ;;  %v2477_v48 = vpop.xlane.xlu0 %2476 }
 0x70a   : > { %3131 = vmax.xlane.f32.xlu1 %v3130_v5  ;;  %v2517_v18 = vsub.f32 %v11066_v38, %v2477_v48  ;;  %v2518_v40 = vsub.f32 %v11072_v4, %v2477_v48  ;;  %v3050_v56 = vpop.f32.mrb[60].mxu1  ;;  %v11406_v52 = vadd.f32 %v8511_v22, %v8509_v62 }
 0x70b   : > { %v11411_v44 = vsel %vm13537_vm11, %v3050_v56, -1e+30  ;;  %v3052_v0 = vpop.f32.mrb[61].mxu1  ;;  %vm13547_vm11 = vmmov %vm13539_vm12 }
 0x70c   : > { %v8513_v6 = vpop.eup %8512  ;;  %v2561_v14 = vmul.f32 1.442695, %v2517_v18  ;;  %v2563_v51 = vmul.f32 1.442695, %v2518_v40  ;;  %7369 = vmatpush3.bf16.msra.mxu0 %v10869_v16  ;;  %v11417_v26 = vsel %vm13538_vm10, %v3052_v0, -1e+30  ;;  %vm13550_vm10 = vcmp.ge.s32.totalorder %v10861_v33, %v10780_v43 }
 0x70d   : > { %v8515_v38 = vpop.eup %8514  ;;  %v3133_v4 = vmax.f32 %v11411_v44, %v11417_v26  ;;  %7370 = vmatprep.subr.bf16.mxu0 %v10872_v32  ;;  %v11422_v59 = vpop.f32.mrb[62].mxu1  ;;  %v2651_v5 = vpack.c.bf16 %v8513_v6, %v8509_v62 }
 0x70e   : > { %v3553_v48 = vpop.permute.xlu0 %3552  ;;  %8520 = vpow2.f32 %v2561_v14  ;;  %v11424_v18 = vpop.f32.mrb[63].mxu1  ;;  %v2652_v40 = vpack.c.bf16 %v8515_v38, %v8511_v22  ;;  %v11428_v56 = vadd.f32 %v8515_v38, %v8513_v6  ;;  %v8387_v22 = vld [vmem:[#allocation12 + $0x38] sm:$0xff]   ;;  %v13541_v14 = vld [vmem:[#allocation41_spill] sm:$0xff] }
 0x70f   : > { %8076 = vmatprep.subr.msk.bf16.mxu1 %vm13539_vm12, %v3553_v48  ;;  %v3599_v16 = vsel %vm13540_vm15, %v3553_v48, 0  ;;  %8522 = vpow2.f32 %v2563_v51  ;;  %3134 = vmax.xlane.f32.xlu0 %v3133_v4  ;;  %v13544_v51 = vld [vmem:[#allocation43_spill] sm:$0xff]  ;;  %v13545_v38 = vld [vmem:[#allocation45_spill] sm:$0xff]  ;;  %vm13551_vm12 = vcmp.ge.s32.totalorder %v10861_v33, %v10790_v50  ;;  %vm13565_vm15 = vmmov %vm13547_vm11 }
 0x710   : > { %7891 = vmatpush3.bf16.xpose.msra.mxu1 %v3599_v16  ;;  %v11430_v0 = vpop.eup %8516  ;;  %7371 = vmatpush3.bf16.msra.mxu0 %v10877_v9  ;;  %v13548_v48 = vld [vmem:[#allocation77_spill] sm:$0xff] }
 0x711   : > { %2705 = vmatprep.mubr.bf16.mxu0 %v2652_v40  ;;  %v11433_v32 = vpop.eup %8518  ;;  %7372 = vmatprep.subr.bf16.mxu0 %v10875_v8  ;;  %v8917_v16 = vld [vmem:[#allocation2 + $0x10] sm:$0xff] }
 0x712   : > { %2706 = vmatmul.mubr.bf16.gmra.mrb[20].mxu0 %v2651_v5  ;;  %v11438_v62 = vadd.f32 %v11433_v32, %v11430_v0 }
 0x714   : > { %7373 = vmatpush3.bf16.msra.mxu0 %v10879_v23  ;;  %v13542_v23 = vld [vmem:[#allocation42_spill] sm:$0xff] }
 0x715   : > { %7374 = vmatprep.subr.bf16.mxu0 %v10882_v34  ;;  %v13543_v34 = vld [vmem:[#allocation44_spill] sm:$0xff] }
 0x718   : > { %v11442_v6 = vpop.eup %8520  ;;  %7375 = vmatpush3.bf16.msra.mxu0 %v10887_v55  ;;  %v13546_v55 = vld [vmem:[#allocation47_spill] sm:$0xff] }
 0x719   : > { %v11445_v9 = vpop.eup %8522  ;;  %7376 = vmatprep.subr.bf16.mxu0 %v10885_v21  ;;  %v8916_v21 = vld [vmem:[#allocation2 + $0x8] sm:$0xff] }
 0x71a   : > { %v11450_v8 = vadd.f32 %v11445_v9, %v11442_v6 }
 0x71b   : > { %3554 = vrot.lane.b32.xlu1 %v8387_v22, %s9344_s24  ;;  %s13787_s24 = sld [smem:[#allocation107_spill]] }
 0x71c   : > { %7377 = vmatpush3.bf16.msra.mxu0 %v13541_v14 }
 0x71d   : > { %7378 = vmatprep.subr.bf16.mxu0 %v13542_v23 }
 0x720   : > { %7379 = vmatpush3.bf16.msra.mxu0 %v13543_v34 }
 0x721   : > { %7380 = vmatprep.subr.bf16.mxu0 %v13544_v51  ;;  %v13549_v51 = vld [vmem:[#allocation78_spill] sm:$0xff] }
 0x724   : > { %7381 = vmatpush3.bf16.msra.mxu0 %v13545_v38 }
 0x725   : > { %8086 = vmatprep.subr.msk.bf16.mxu0 %vm13547_vm11, %v13546_v55  ;;  %4699 = vrot.lane.b32.xlu0 %v8916_v21, %s9346_s27  ;;  %v8918_v55 = vld [vmem:[#allocation2 + $0x18] sm:$0xff] }
 0x728   : > { %v2474_v4 = vpop.xlane.xlu1 %2473 }
 0x729   : > { %v2515_v5 = vsub.f32 %v11095_v39, %v2474_v4  ;;  %v2516_v40 = vsub.f32 %v13548_v48, %v2474_v4  ;;  %4701 = vrot.lane.b32.xlu0 %v8917_v16, %s9346_s27 }
 0x72b   : > { %v2557_v22 = vmul.f32 1.442695, %v2515_v5  ;;  %v2559_v14 = vmul.f32 1.442695, %v2516_v40 }
 0x72c   : > { %v2480_v23 = vpop.xlane.xlu1 %2479 }
 0x72d   : > { %8524 = vpow2.f32 %v2557_v22  ;;  %v2519_v34 = vsub.f32 %v11111_v61, %v2480_v23  ;;  %v2520_v38 = vsub.f32 %v13549_v51, %v2480_v23  ;;  %4703 = vrot.lane.b32.xlu0 %v8918_v55, %s9346_s27 }
 0x72e   : > { %8526 = vpow2.f32 %v2559_v14 }
 0x72f   : > { %v2565_v21 = vmul.f32 1.442695, %v2519_v34  ;;  %v2567_v58 = vmul.f32 1.442695, %v2520_v38 }
 0x730   : > { %v2486_v39 = vpop.xlane.xlu1 %2485 }
 0x731   : > { %8528 = vpow2.f32 %v2565_v21  ;;  %v2523_v4 = vsub.f32 %v11123_v2, %v2486_v39  ;;  %v2524_v48 = vsub.f32 %v11128_v45, %v2486_v39  ;;  %v11475_v2 = vsel %vm13550_vm10, %v11422_v59, -1e+30  ;;  %vm13571_vm10 = vmmov %vm13547_vm11 }
 0x732   : > { %8530 = vpow2.f32 %v2567_v58  ;;  %v11481_v58 = vsel %vm13551_vm12, %v11424_v18, -1e+30  ;;  %vm13573_vm12 = vmmov %vm13571_vm10 }
 0x733   : > { %v2573_v5 = vmul.f32 1.442695, %v2523_v4  ;;  %v2575_v40 = vmul.f32 1.442695, %v2524_v48  ;;  %v3136_v18 = vmax.f32 %v11475_v2, %v11481_v58  ;;  %vm13609_vm8 = vmmov %vm13571_vm10 }
 0x734   : > { %v2492_v16 = vpop.xlane.xlu1 %2491  ;;  %vm13642_vm7 = vmmov %vm13609_vm8 }
 0x735   : > { %8532 = vpow2.f32 %v2573_v5  ;;  %v2527_v61 = vsub.f32 %v11135_v12, %v2492_v16  ;;  %v2528_v22 = vsub.f32 %v11140_v49, %v2492_v16 }
 0x736   : > { %8534 = vpow2.f32 %v2575_v40 }
 0x737   : > { %v8525_v23 = vpop.eup %8524  ;;  %v2581_v14 = vmul.f32 1.442695, %v2527_v61  ;;  %v2583_v34 = vmul.f32 1.442695, %v2528_v22 }
 0x738   : > { %v8527_v51 = vpop.eup %8526  ;;  %v2498_v45 = vpop.xlane.xlu1 %2497  ;;  %v2653_v49 = vpack.c.bf16 %v8525_v23, %v11430_v0 }
 0x739   : > { %8536 = vpow2.f32 %v2581_v14  ;;  %v2531_v12 = vsub.f32 %v11147_v19, %v2498_v45  ;;  %v2532_v38 = vsub.f32 %v11152_v53, %v2498_v45  ;;  %v2654_v55 = vpack.c.bf16 %v8527_v51, %v11433_v32 }
 0x73a   : > { %8538 = vpow2.f32 %v2583_v34  ;;  %v11487_v21 = vadd.f32 %v8527_v51, %v8525_v23 }
 0x73b   : > { %v8529_v59 = vpop.eup %8528  ;;  %v2589_v39 = vmul.f32 1.442695, %v2531_v12  ;;  %v2591_v4 = vmul.f32 1.442695, %v2532_v38  ;;  %2713 = vmatprep.mubr.bf16.mxu0 %v2654_v55 }
 0x73c   : > { %v8531_v48 = vpop.eup %8530  ;;  %2714 = vmatmul.mubr.bf16.gmra.mrb[24].mxu0 %v2653_v49  ;;  %v2504_v0 = vpop.xlane.xlu1 %2503  ;;  %v2655_v45 = vpack.c.bf16 %v8529_v59, %v11442_v6 }
 0x73d   : > { %8540 = vpow2.f32 %v2589_v39  ;;  %v2535_v19 = vsub.f32 %v11159_v35, %v2504_v0  ;;  %v2536_v53 = vsub.f32 %v11164_v17, %v2504_v0  ;;  %v2656_v32 = vpack.c.bf16 %v8531_v48, %v11445_v9 }
 0x73e   : > { %8542 = vpow2.f32 %v2591_v4  ;;  %v2483_v5 = vpop.xlane.xlu0 %2482  ;;  %v11494_v40 = vadd.f32 %v8531_v48, %v8529_v59 }
 0x73f   : > { %v8533_v16 = vpop.eup %8532  ;;  %v2597_v61 = vmul.f32 1.442695, %v2535_v19  ;;  %v2599_v22 = vmul.f32 1.442695, %v2536_v53  ;;  %3137 = vmax.xlane.f32.xlu1 %v3136_v18  ;;  %2721 = vmatprep.mubr.bf16.mxu0 %v2656_v32  ;;  %v2521_v23 = vsub.f32 %v11169_v36, %v2483_v5  ;;  %v2522_v14 = vsub.f32 %v11174_v24, %v2483_v5  ;;  %v13552_v18 = vld [vmem:[#allocation79_spill] sm:$0xff]  ;;  %v13553_v19 = vld [vmem:[#allocation80_spill] sm:$0xff] }
 0x740   : > { %v8535_v34 = vpop.eup %8534 }
 0x741   : > { %8544 = vpow2.f32 %v2597_v61  ;;  %v2569_v35 = vmul.f32 1.442695, %v2521_v23  ;;  %v2571_v51 = vmul.f32 1.442695, %v2522_v14  ;;  %v11498_v17 = vadd.f32 %v8535_v34, %v8533_v16 }
 0x742   : > { %8546 = vpow2.f32 %v2599_v22  ;;  %v2489_v9 = vpop.xlane.xlu0 %2488 }
 0x743   : > { %v8537_v49 = vpop.eup %8536  ;;  %8548 = vpow2.f32 %v2569_v35  ;;  %v2525_v12 = vsub.f32 %v11183_v37, %v2489_v9  ;;  %v2526_v38 = vsub.f32 %v11188_v28, %v2489_v9 }
 0x744   : > { %v8539_v55 = vpop.eup %8538  ;;  %8550 = vpow2.f32 %v2571_v51  ;;  %2722 = vmatmul.mubr.bf16.gmra.mrb[28].mxu0 %v2655_v45 }
 0x745   : > { %v2577_v36 = vmul.f32 1.442695, %v2525_v12  ;;  %v2579_v24 = vmul.f32 1.442695, %v2526_v38  ;;  %v11503_v39 = vadd.f32 %v8539_v55, %v8537_v49 }
 0x746   : > { %v2495_v4 = vpop.xlane.xlu0 %2494 }
 0x747   : > { %v8541_v48 = vpop.eup %8540  ;;  %8552 = vpow2.f32 %v2577_v36  ;;  %v2529_v0 = vsub.f32 %v13552_v18, %v2495_v4  ;;  %v2530_v6 = vsub.f32 %v13553_v19, %v2495_v4  ;;  %v8920_v18 = vld [vmem:[#allocation2 + $0x40] sm:$0xff]  ;;  %v8921_v19 = vld [vmem:[#allocation2 + $0x48] sm:$0xff] }
 0x748   : > { %v8543_v59 = vpop.eup %8542  ;;  %8554 = vpow2.f32 %v2579_v24 }
 0x749   : > { %v2585_v53 = vmul.f32 1.442695, %v2529_v0  ;;  %v2587_v37 = vmul.f32 1.442695, %v2530_v6  ;;  %v11507_v32 = vadd.f32 %v8543_v59, %v8541_v48 }
 0x74a   : > { %v2501_v28 = vpop.xlane.xlu0 %2500 }
 0x74b   : > { %v11509_v5 = vpop.eup %8544  ;;  %8556 = vpow2.f32 %v2585_v53  ;;  %v2533_v61 = vsub.f32 %v11207_v60, %v2501_v28  ;;  %v2534_v22 = vsub.f32 %v11212_v47, %v2501_v28  ;;  %v8919_v60 = vld [vmem:[#allocation2] sm:$0xff]  ;;  %v8922_v28 = vld [vmem:[#allocation2 + $0x50] sm:$0xff] }
 0x74c   : > { %v8547_v23 = vpop.eup %8546  ;;  %8558 = vpow2.f32 %v2587_v37  ;;  %2605 = vadd.xlane.f32.xlu0 %v11388_v29 }
 0x74d   : > { %v8549_v14 = vpop.eup %8548  ;;  %v2593_v35 = vmul.f32 1.442695, %v2533_v61  ;;  %v2595_v51 = vmul.f32 1.442695, %v2534_v22  ;;  %v11515_v9 = vadd.f32 %v8547_v23, %v11509_v5  ;;  %v8923_v61 = vld [vmem:[#allocation2 + $0x58] sm:$0xff] }
 0x74e   : > { %v8551_v45 = vpop.eup %8550  ;;  %v2657_v12 = vpack.c.bf16 %v8533_v16, %v8549_v14 }
 0x74f   : > { %8560 = vpow2.f32 %v2593_v35  ;;  %v2658_v38 = vpack.c.bf16 %v8535_v34, %v8551_v45  ;;  %v11517_v36 = vadd.f32 %v8551_v45, %v8549_v14  ;;  %v13555_v45 = vld [vmem:[#allocation82_spill] sm:$0xff] }
 0x750   : > { %8562 = vpow2.f32 %v2595_v51  ;;  %4697 = vrot.lane.b32.xlu1 %v8919_v60, %s9346_s27  ;;  %2608 = vadd.xlane.f32.xlu0 %v11406_v52  ;;  %v13554_v51 = vld [vmem:[#allocation81_spill] sm:$0xff] }
 0x751   : > { %v8553_v47 = vpop.eup %8552  ;;  %2729 = vmatprep.mubr.bf16.mxu0 %v2658_v38 }
 0x752   : > { %v8555_v29 = vpop.eup %8554  ;;  %2730 = vmatmul.mubr.bf16.gmra.mrb[32].mxu0 %v2657_v12  ;;  %v2659_v6 = vpack.c.bf16 %v8537_v49, %v8553_v47  ;;  %v8924_v12 = vld [vmem:[#allocation2 + $0x20] sm:$0xff] }
 0x753   : > { %v2660_v24 = vpack.c.bf16 %v8539_v55, %v8555_v29  ;;  %v11521_v4 = vadd.f32 %v8555_v29, %v8553_v47 }
 0x754   : > { %4713 = vrot.lane.b32.xlu1 %v8920_v18, %s9346_s27 }
 0x755   : > { %v8557_v16 = vpop.eup %8556  ;;  %2737 = vmatprep.mubr.bf16.mxu0 %v2660_v24 }
 0x756   : > { %v8559_v34 = vpop.eup %8558  ;;  %v2661_v22 = vpack.c.bf16 %v8541_v48, %v8557_v16 }
 0x757   : > { %v11524_v0 = vadd.f32 %v8559_v34, %v8557_v16  ;;  %v2662_v53 = vpack.c.bf16 %v8543_v59, %v8559_v34  ;;  %v8925_v16 = vld [vmem:[#allocation2 + $0x28] sm:$0xff] }
 0x758   : > { %4715 = vrot.lane.b32.xlu1 %v8921_v19, %s9346_s27  ;;  %v13556_v19 = vld [vmem:[#allocation83_spill] sm:$0xff] }
 0x759   : > { %v8561_v52 = vpop.eup %8560 }
 0x75a   : > { %v8563_v37 = vpop.eup %8562  ;;  %2738 = vmatmul.mubr.bf16.gmra.mrb[36].mxu0 %v2659_v6  ;;  %v2663_v48 = vpack.c.bf16 %v11509_v5, %v8561_v52 }
 0x75b   : > { %2745 = vmatprep.mubr.bf16.mxu0 %v2662_v53  ;;  %v11527_v55 = vadd.f32 %v8563_v37, %v8561_v52  ;;  %v2664_v14 = vpack.c.bf16 %v8547_v23, %v8563_v37  ;;  %v13557_v53 = vld [vmem:[#allocation84_spill] sm:$0xff]  ;;  %v13558_v52 = vld [vmem:[#allocation85_spill] sm:$0xff] }
 0x75c   : > { %4717 = vrot.lane.b32.xlu1 %v8922_v28, %s9346_s27 }
 0x760   : > { %4719 = vrot.lane.b32.xlu1 %v8923_v61, %s9346_s27  ;;  %v13559_v61 = vld [vmem:[#allocation86_spill] sm:$0xff] }
 0x762   : > { %2746 = vmatmul.mubr.bf16.gmra.mrb[40].mxu0 %v2661_v22 }
 0x763   : > { %2753 = vmatprep.mubr.bf16.mxu0 %v2664_v14 }
 0x764   : > { %v3093_v35 = vpop.xlane.xlu1 %3092 }
 0x765   : > { %v3139_v49 = vsub.f32 %v13554_v51, %v3093_v35  ;;  %v3140_v59 = vsub.f32 %v13555_v45, %v3093_v35 }
 0x766   : > { %4705 = vrot.lane.b32.xlu0 %v8924_v12, %s9346_s27  ;;  %v3096_v38 = vpop.xlane.xlu0 %3095 }
 0x767   : > { %v3171_v60 = vmul.f32 1.442695, %v3139_v49  ;;  %v3173_v47 = vmul.f32 1.442695, %v3140_v59  ;;  %v3141_v29 = vsub.f32 %v11231_v42, %v3096_v38  ;;  %v3142_v24 = vsub.f32 %v11236_v30, %v3096_v38  ;;  %v8926_v42 = vld [vmem:[#allocation2 + $0x30] sm:$0xff]  ;;  %v13560_v38 = vld [vmem:[#allocation87_spill] sm:$0xff] }
 0x769   : > { %8564 = vpow2.f32 %v3171_v60  ;;  %v3175_v23 = vmul.f32 1.442695, %v3141_v29  ;;  %v3177_v18 = vmul.f32 1.442695, %v3142_v24 }
 0x76a   : > { %8566 = vpow2.f32 %v3173_v47  ;;  %2754 = vmatmul.mubr.bf16.gmra.mrb[44].mxu0 %v2663_v48  ;;  %4707 = vrot.lane.b32.xlu0 %v8925_v16, %s9346_s27  ;;  %v13561_v47 = vld [vmem:[#allocation88_spill] sm:$0xff] }
 0x76b   : > { %8568 = vpow2.f32 %v3175_v23 }
 0x76c   : > { %8570 = vpow2.f32 %v3177_v18  ;;  %v3099_v34 = vpop.xlane.xlu1 %3098 }
 0x76d   : > { %v3143_v6 = vsub.f32 %v13556_v19, %v3099_v34  ;;  %v3144_v37 = vsub.f32 %v13557_v53, %v3099_v34  ;;  %v13562_v19 = vld [vmem:[#allocation89_spill] sm:$0xff]  ;;  %v13563_v53 = vld [vmem:[#allocation90_spill] sm:$0xff] }
 0x76e   : > { %4709 = vrot.lane.b32.xlu0 %v8926_v42, %s9346_s27  ;;  %v3102_v30 = vpop.xlane.xlu0 %3101 }
 0x76f   : > { %v3179_v5 = vmul.f32 1.442695, %v3143_v6  ;;  %v3145_v28 = vsub.f32 %v13558_v52, %v3102_v30  ;;  %v3146_v22 = vsub.f32 %v13559_v61, %v3102_v30  ;;  %v3181_v14 = vmul.f32 1.442695, %v3144_v37  ;;  %v13564_v52 = vld [vmem:[#allocation46_spill] sm:$0xff] }
 0x771   : > { %v3183_v35 = vmul.f32 1.442695, %v3145_v28  ;;  %v3185_v51 = vmul.f32 1.442695, %v3146_v22  ;;  %8572 = vpow2.f32 %v3179_v5  ;;  %v3919_v28 = vsel %vm13565_vm15, %v13564_v52, 0  ;;  %vm13575_vm15 = vmmov %vm13571_vm10 }
 0x773   : > { %v8565_v49 = vpop.eup %8564  ;;  %8574 = vpow2.f32 %v3183_v35  ;;  %v13566_v35 = vld [vmem:[#allocation48_spill] sm:$0xff] }
 0x774   : > { %v8567_v45 = vpop.eup %8566  ;;  %8576 = vpow2.f32 %v3185_v51  ;;  %v3105_v59 = vpop.xlane.xlu1 %3104  ;;  %v13567_v51 = vld [vmem:[#allocation91_spill] sm:$0xff] }
 0x775   : > { %v11543_v12 = vpop.eup %8568  ;;  %8578 = vpow2.f32 %v3181_v14  ;;  %v3147_v60 = vsub.f32 %v13560_v38, %v3105_v59  ;;  %v3148_v29 = vsub.f32 %v13561_v47, %v3105_v59  ;;  %v11547_v24 = vadd.f32 %v8567_v45, %v8565_v49 }
 0x776   : > { %v11549_v48 = vpop.eup %8570  ;;  %v3108_v23 = vpop.xlane.xlu0 %3107  ;;  %v3283_v18 = vpack.c.bf16 %v11543_v12, %v8565_v49 }
 0x777   : > { %v3187_v16 = vmul.f32 1.442695, %v3147_v60  ;;  %v3189_v34 = vmul.f32 1.442695, %v3148_v29  ;;  %v3149_v6 = vsub.f32 %v13562_v19, %v3108_v23  ;;  %v3150_v37 = vsub.f32 %v13563_v53, %v3108_v23 }
 0x778   : > { %v3284_v42 = vpack.c.bf16 %v11549_v48, %v8567_v45  ;;  %v13568_v45 = vld [vmem:[#allocation92_spill] sm:$0xff] }
 0x779   : > { %8580 = vpow2.f32 %v3187_v16  ;;  %v3191_v30 = vmul.f32 1.442695, %v3149_v6  ;;  %v3193_v5 = vmul.f32 1.442695, %v3150_v37 }
 0x77a   : > { %8582 = vpow2.f32 %v3189_v34  ;;  %3395 = vmatprep.mubr.bf16.mxu0 %v3284_v42  ;;  %v13569_v34 = vld [vmem:[#allocation94_spill] sm:$0xff] }
 0x77b   : > { %8584 = vpow2.f32 %v3191_v30  ;;  %3396 = vmatmul.mubr.bf16.vlgmr.msra.gmra.mrb[48].mxu0 %v3283_v18  ;;  %v11557_v61 = vpop.eup %8572  ;;  %v13570_v30 = vld [vmem:[#allocation49_spill] sm:$0xff] }
 0x77c   : > { %8586 = vpow2.f32 %v3193_v5  ;;  %7463 = vmatpush3.bf16.xpose.msra.mxu0 %v3919_v28  ;;  %v3111_v22 = vpop.xlane.xlu1 %3110  ;;  %v3922_v5 = vsel %vm13571_vm10, %v13570_v30, 0  ;;  %v13572_v28 = vld [vmem:[#allocation50_spill] sm:$0xff]  ;;  %v13576_v30 = vld [vmem:[#allocation52_spill] sm:$0xff] }
 0x77d   : > { %v11559_v14 = vpop.eup %8574  ;;  %8087 = vmatprep.subr.msk.bf16.mxu0 %vm13547_vm11, %v13566_v35  ;;  %v3151_v49 = vsub.f32 %v13567_v51, %v3111_v22  ;;  %v3152_v59 = vsub.f32 %v13568_v45, %v3111_v22  ;;  %vm13577_vm11 = vmmov %vm13571_vm10 }
 0x77e   : > { %v11565_v38 = vpop.eup %8576  ;;  %v3114_v60 = vpop.xlane.xlu0 %3113  ;;  %v3285_v47 = vpack.c.bf16 %v11559_v14, %v11557_v61 }
 0x77f   : > { %v11569_v29 = vpop.eup %8578  ;;  %v3195_v23 = vmul.f32 1.442695, %v3151_v49  ;;  %v3197_v18 = vmul.f32 1.442695, %v3152_v59  ;;  %v3153_v16 = vsub.f32 %v11305_v11, %v3114_v60  ;;  %v3154_v19 = vsub.f32 %v13569_v34, %v3114_v60 }
 0x780   : > { %v3286_v6 = vpack.c.bf16 %v11565_v38, %v11569_v29 }
 0x781   : > { %8588 = vpow2.f32 %v3195_v23  ;;  %v3199_v53 = vmul.f32 1.442695, %v3153_v16  ;;  %v3201_v37 = vmul.f32 1.442695, %v3154_v19 }
 0x782   : > { %8590 = vpow2.f32 %v3197_v18  ;;  %3403 = vmatprep.mubr.bf16.mxu0 %v3286_v6 }
 0x783   : > { %v11575_v42 = vpop.eup %8580  ;;  %8592 = vpow2.f32 %v3199_v53  ;;  %3404 = vmatmul.mubr.bf16.gmra.mrb[52].mxu0 %v3285_v47 }
 0x784   : > { %v11579_v52 = vpop.eup %8582  ;;  %8594 = vpow2.f32 %v3201_v37  ;;  %7465 = vmatpush3.bf16.xpose.msra.mxu0 %v3922_v5  ;;  %2602 = vadd.xlane.f32.xlu1 %v11374_v10 }
 0x785   : > { %v8585_v11 = vpop.eup %8584  ;;  %8088 = vmatprep.subr.msk.bf16.mxu0 %vm13573_vm12, %v13572_v28  ;;  %v3117_v22 = vpop.xlane.xlu1 %3116  ;;  %vm13580_vm12 = vmmov %vm13571_vm10 }
 0x786   : > { %v8587_v35 = vpop.eup %8586  ;;  %v3155_v51 = vsub.f32 %v11319_v1, %v3117_v22  ;;  %v3156_v49 = vsub.f32 %v11326_v20, %v3117_v22  ;;  %v3287_v59 = vpack.c.bf16 %v8585_v11, %v11575_v42  ;;  %v13574_v20 = vld [vmem:[#allocation51_spill] sm:$0xff] }
 0x787   : > { %v3288_v45 = vpack.c.bf16 %v8587_v35, %v11579_v52  ;;  %v11588_v60 = vadd.f32 %v8587_v35, %v8585_v11  ;;  %v3925_v34 = vsel %vm13575_vm15, %v13574_v20, 0  ;;  %vm13582_vm15 = vmmov %vm13571_vm10 }
 0x788   : > { %v3203_v47 = vmul.f32 1.442695, %v3155_v51  ;;  %v3205_v23 = vmul.f32 1.442695, %v3156_v49  ;;  %2611 = vadd.xlane.f32.xlu1 %v11428_v56 }
 0x789   : > { %v3120_v10 = vpop.xlane.xlu1 %3119  ;;  %3411 = vmatprep.mubr.bf16.mxu0 %v3288_v45  ;;  %v13578_v45 = vld [vmem:[#allocation53_spill] sm:$0xff] }
 0x78a   : > { %8596 = vpow2.f32 %v3203_v47  ;;  %v3157_v18 = vsub.f32 %v11333_v3, %v3120_v10  ;;  %v3158_v16 = vsub.f32 %v11338_v57, %v3120_v10 }
 0x78b   : > { %v11593_v1 = vpop.eup %8588  ;;  %8598 = vpow2.f32 %v3205_v23  ;;  %3412 = vmatmul.mubr.bf16.gmra.mrb[56].mxu0 %v3287_v59  ;;  %v3928_v59 = vsel %vm13571_vm10, %v13578_v45, 0  ;;  %v11644_v45 = vld [vmem:[#allocation12] sm:$0xff]  }
 0x78c   : > { %v11597_v19 = vpop.eup %8590  ;;  %v3207_v6 = vmul.f32 1.442695, %v3157_v18  ;;  %v3209_v53 = vmul.f32 1.442695, %v3158_v16  ;;  %7467 = vmatpush3.bf16.xpose.msra.mxu0 %v3925_v34  ;;  %v3123_v56 = vpop.xlane.xlu0 %3122 }
 0x78d   : > { %v11599_v37 = vpop.eup %8592  ;;  %8089 = vmatprep.subr.msk.bf16.mxu0 %vm13577_vm11, %v13576_v30  ;;  %v3160_v3 = vsub.f32 %v11354_v41, %v3123_v56  ;;  %2617 = vadd.xlane.f32.xlu0 %v11487_v21  ;;  %v3159_v35 = vsub.f32 %v11349_v25, %v3123_v56  ;;  %vm13583_vm11 = vmmov %vm13571_vm10 }
 0x78e   : > { %v11605_v57 = vpop.eup %8594  ;;  %8600 = vpow2.f32 %v3207_v6  ;;  %v3289_v22 = vpack.c.bf16 %v11599_v37, %v11593_v1 }
 0x78f   : > { %8602 = vpow2.f32 %v3209_v53  ;;  %v3213_v5 = vmul.f32 1.442695, %v3160_v3  ;;  %v3126_v11 = vpop.xlane.xlu1 %3125  ;;  %v3290_v28 = vpack.c.bf16 %v11605_v57, %v11597_v19  ;;  %v3211_v23 = vmul.f32 1.442695, %v3159_v35  ;;  %v13584_v35 = vld [vmem:[#allocation56_spill] sm:$0xff] }
 0x790   : > { %v3161_v51 = vsub.f32 %v11361_v46, %v3126_v11  ;;  %v3162_v41 = vsub.f32 %v11368_v63, %v3126_v11  ;;  %v13579_v46 = vld [vmem:[#allocation54_spill] sm:$0xff]  ;;  %v13581_v11 = vld [vmem:[#allocation55_spill] sm:$0xff] }
 0x791   : > { %3419 = vmatprep.mubr.bf16.mxu0 %v3290_v28  ;;  %2620 = vadd.xlane.f32.xlu0 %v11450_v8  ;;  %8604 = vpow2.f32 %v3213_v5 }
 0x792   : > { %v3215_v21 = vmul.f32 1.442695, %v3161_v51  ;;  %v3217_v49 = vmul.f32 1.442695, %v3162_v41  ;;  %v8928_v51 = vld [vmem:[#allocation2 + $0x68] sm:$0xff] }
 0x793   : > { %3420 = vmatmul.mubr.bf16.gmra.mrb[60].mxu0 %v3289_v22 }
 0x794   : > { %v8597_v47 = vpop.eup %8596  ;;  %8606 = vpow2.f32 %v3215_v21  ;;  %7469 = vmatpush3.bf16.xpose.msra.mxu0 %v3928_v59  ;;  %v3129_v10 = vpop.xlane.xlu0 %3128 }
 0x795   : > { %v8599_v25 = vpop.eup %8598  ;;  %8608 = vpow2.f32 %v3217_v49  ;;  %8090 = vmatprep.subr.msk.bf16.mxu0 %vm13580_vm12, %v13579_v46  ;;  %v3163_v63 = vsub.f32 %v11379_v13, %v3129_v10  ;;  %v3164_v8 = vsub.f32 %v11384_v15, %v3129_v10  ;;  %2629 = vadd.xlane.f32.xlu0 %v11498_v17  ;;  %v8927_v13 = vld [vmem:[#allocation2 + $0x60] sm:$0xff]  ;;  %vm13585_vm12 = vmmov %vm13571_vm10  ;;  %v13587_v10 = vld [vmem:[#allocation57_spill] sm:$0xff] }
 0x796   : > { %v11622_v18 = vadd.f32 %v8599_v25, %v8597_v47  ;;  %8610 = vpow2.f32 %v3211_v23 }
 0x797   : > { %v3219_v16 = vmul.f32 1.442695, %v3163_v63  ;;  %v3221_v20 = vmul.f32 1.442695, %v3164_v8  ;;  %v3132_v34 = vpop.xlane.xlu1 %3131  ;;  %v13589_v63 = vld [vmem:[#allocation58_spill] sm:$0xff]  ;;  %v3238_v8 = vadd.f32 %v11549_v48, %v11543_v12  ;;  %v3244_v12 = vadd.f32 %v11565_v38, %v11559_v14 }
 0x798   : > { %v11624_v6 = vpop.eup %8600  ;;  %v3165_v53 = vsub.f32 %v11393_v54, %v3132_v34  ;;  %v3166_v56 = vsub.f32 %v11398_v31, %v3132_v34  ;;  %v3931_v54 = vsel %vm13582_vm15, %v13581_v11, 0  ;;  %vm13586_vm15 = vmmov %vm13571_vm10  ;;  %v3256_v38 = vadd.f32 %v11605_v57, %v11599_v37 }
 0x799   : > { %v11628_v30 = vpop.eup %8602  ;;  %8612 = vpow2.f32 %v3219_v16  ;;  %4721 = vrot.lane.b32.xlu1 %v8927_v13, %s9346_s27  ;;  %2632 = vadd.xlane.f32.xlu0 %v11521_v4  ;;  %v3291_v15 = vpack.c.bf16 %v11624_v6, %v8597_v47  ;;  %v8930_v47 = vld [vmem:[#allocation2 + $0x70] sm:$0xff] }
 0x79a   : > { %8614 = vpow2.f32 %v3221_v20  ;;  %v3223_v17 = vmul.f32 1.442695, %v3165_v53  ;;  %v3225_v3 = vmul.f32 1.442695, %v3166_v56  ;;  %v3292_v5 = vpack.c.bf16 %v11628_v30, %v8599_v25 }
 0x79b   : > { %v3555_v28 = vpop.permute.xlu1 %3554  ;;  %v8605_v22 = vpop.eup %8604  ;;  %v3241_v56 = vadd.f32 %v11569_v29, %v11557_v61  ;;  %v13594_v61 = vld [vmem:[#allocation61_spill] sm:$0xff] }
 0x79c   : > { %7471 = vmatpush3.bf16.xpose.msra.mxu0 %v3931_v54  ;;  %3427 = vmatprep.mubr.bf16.mxu0 %v3292_v5  ;;  %v3602_v31 = vsel %vm13583_vm11, %v3555_v28, 0  ;;  %8616 = vpow2.f32 %v3225_v3  ;;  %vm13588_vm11 = vmmov %vm13571_vm10  ;;  %v3135_v48 = vpop.xlane.xlu0 %3134  ;;  %v3247_v3 = vadd.f32 %v11579_v52, %v11575_v42  ;;  %v3253_v54 = vadd.f32 %v11597_v19, %v11593_v1 }
 0x79d   : > { %8091 = vmatprep.subr.msk.bf16.mxu0 %vm13571_vm10, %v13584_v35  ;;  %3428 = vmatmul.mubr.bf16.gmra.mrb[64].mxu0 %v3291_v15  ;;  %8618 = vpow2.f32 %v3223_v17  ;;  %v3934_v25 = vsel %vm13588_vm11, %v13587_v10, 0  ;;  %v13592_v17 = vld [vmem:[#allocation60_spill] sm:$0xff]  ;;  %vm13595_vm11 = vmmov %vm13571_vm10  ;;  %v3167_v5 = vsub.f32 %v11411_v44, %v3135_v48  ;;  %v3168_v11 = vsub.f32 %v11417_v26, %v3135_v48  ;;  %v13608_v48 = vld [vmem:[#allocation66_spill] sm:$0xff] }
 0x79e   : > { %v8607_v4 = vpop.eup %8606  ;;  %8077 = vmatprep.subr.msk.bf16.mxu1 %vm13585_vm12, %v3555_v28  ;;  %4723 = vrot.lane.b32.xlu1 %v8928_v51, %s9346_s27  ;;  %vm13591_vm12 = vmmov %vm13571_vm10  ;;  %v3940_v29 = vsel %vm13595_vm11, %v13594_v61, 0  ;;  %v3262_v42 = vadd.f32 %v11628_v30, %v11624_v6  ;;  %v8938_v61 = vld [vmem:[#allocation3 + $0x70] sm:$0xff] }
 0x79f   : > { %v8609_v41 = vpop.eup %8608  ;;  %7893 = vmatpush3.bf16.xpose.msra.mxu1 %v3602_v31  ;;  %2641 = vadd.xlane.f32.xlu0 %v11507_v32  ;;  %v3227_v28 = vmul.f32 1.442695, %v3167_v5  ;;  %v3229_v14 = vmul.f32 1.442695, %v3168_v11  ;;  %vm13599_vm11 = vmmov %vm13571_vm10  ;;  %v13612_v11 = vld [vmem:[#allocation69_spill] sm:$0xff] }
 0x7a0   : > { %v3294_v21 = vpack.c.bf16 %v8609_v41, %v8605_v22  ;;  %v11642_v49 = vadd.f32 %v8609_v41, %v8607_v4  ;;  %8078 = vmatprep.subr.msk.bf16.mxu1 %vm13586_vm15, %v11644_v45  ;;  %v8611_v59 = vpop.eup %8610  ;;  %vm13593_vm15 = vmmov %vm13571_vm10 }
 0x7a1   : > { %v3293_v32 = vpack.c.bf16 %v8607_v4, %v8611_v59  ;;  %8620 = vpow2.f32 %v3227_v28  ;;  %v3265_v44 = vadd.f32 %v8611_v59, %v8605_v22  ;;  %v8940_v28 = vld [vmem:[#allocation3] sm:$0xff] }
 0x7a2   : > { %4725 = vrot.lane.b32.xlu1 %v8930_v47, %s9346_s27  ;;  %3435 = vmatprep.mubr.bf16.mxu0 %v3294_v21  ;;  %8622 = vpow2.f32 %v3229_v14  ;;  %v8932_v47 = vld [vmem:[#allocation3 + $0x48] sm:$0xff] }
 0x7a3   : > { %v8613_v23 = vpop.eup %8612  ;;  %2644 = vadd.xlane.f32.xlu0 %v11527_v55  ;;  %v13590_v55 = vld [vmem:[#allocation59_spill] sm:$0xff] }
 0x7a4   : > { %v8615_v46 = vpop.eup %8614  ;;  %7473 = vmatpush3.bf16.xpose.msra.mxu0 %v3934_v25  ;;  %v3937_v13 = vsel %vm13591_vm12, %v13590_v55, 0  ;;  %vm13597_vm12 = vmmov %vm13571_vm10  ;;  %v13604_v55 = vld [vmem:[#allocation67_spill] sm:$0xff] }
 0x7a5   : > { %8092 = vmatprep.subr.msk.bf16.mxu0 %vm13571_vm10, %v13589_v63  ;;  %3436 = vmatmul.mubr.bf16.gmra.mrb[68].mxu0 %v3293_v32  ;;  %v11656_v16 = vadd.f32 %v8615_v46, %v8613_v23 }
 0x7a6   : > { %v8617_v20 = vpop.eup %8616 }
 0x7a7   : > { %3239 = vadd.xlane.f32.xlu0 %v3238_v8  ;;  %v8619_v34 = vpop.eup %8618  ;;  %v3296_v53 = vpack.c.bf16 %v8617_v20, %v8615_v46  ;;  %v8933_v8 = vld [vmem:[#allocation3 + $0x50] sm:$0xff] }
 0x7a8   : > { %v3295_v15 = vpack.c.bf16 %v8619_v34, %v8613_v23  ;;  %v3274_v52 = vadd.f32 %v8619_v34, %v8617_v20  ;;  %v8934_v20 = vld [vmem:[#allocation3 + $0x10] sm:$0xff] }
 0x7a9   : > { %3443 = vmatprep.mubr.bf16.mxu0 %v3296_v53 }
 0x7ab   : > { %3242 = vadd.xlane.f32.xlu0 %v3241_v56  ;;  %v8621_v26 = vpop.eup %8620 }
 0x7ac   : > { %7475 = vmatpush3.bf16.xpose.msra.mxu0 %v3937_v13  ;;  %v8623_v31 = vpop.eup %8622 }
 0x7ad   : > { %8093 = vmatprep.subr.msk.bf16.mxu0 %vm13593_vm15, %v13592_v17  ;;  %3444 = vmatmul.mubr.bf16.gmra.mrb[72].mxu0 %v3295_v15  ;;  %v3277_v1 = vadd.f32 %v8623_v31, %v8621_v26  ;;  %vm13598_vm15 = vmmov %vm13571_vm10  ;;  %v8936_v15 = vld [vmem:[#allocation3 + $0x60] sm:$0xff] }
 0x7af   : > { %3245 = vadd.xlane.f32.xlu0 %v3244_v12 }
 0x7b3   : > { %3248 = vadd.xlane.f32.xlu0 %v3247_v3  ;;  %v8937_v3 = vld [vmem:[#allocation3 + $0x68] sm:$0xff] }
 0x7b4   : > { %7477 = vmatpush3.bf16.xpose.msra.mxu0 %v3940_v29 }
 0x7b7   : > { %3254 = vadd.xlane.f32.xlu0 %v3253_v54  ;;  %v8939_v54 = vld [vmem:[#allocation3 + $0x30] sm:$0xff] }
 0x7bb   : > { %3257 = vadd.xlane.f32.xlu0 %v3256_v38  ;;  %v8941_v38 = vld [vmem:[#allocation3 + $0x38] sm:$0xff] }
 0x7bf   : > { %3263 = vadd.xlane.f32.xlu0 %v3262_v42  ;;  %v8942_v42 = vld [vmem:[#allocation2 + $0x38] sm:$0xff] }
 0x7c3   : > { %3266 = vadd.xlane.f32.xlu0 %v3265_v44 }
 0x7c6   : > { %2614 = vadd.xlane.f32.xlu1 %v11438_v62 }
 0x7c7   : > { %3275 = vadd.xlane.f32.xlu0 %v3274_v52  ;;  %v13616_v52 = vld [vmem:[#allocation29_spill] sm:$0xff] }
 0x7ca   : > { %2623 = vadd.xlane.f32.xlu1 %v11494_v40 }
 0x7cb   : > { %3278 = vadd.xlane.f32.xlu0 %v3277_v1 }
 0x7cc   : > { %v3138_v19 = vpop.xlane.xlu1 %3137 }
 0x7cd   : > { %v3169_v37 = vsub.f32 %v11475_v2, %v3138_v19  ;;  %v3170_v57 = vsub.f32 %v11481_v58, %v3138_v19  ;;  %v8944_v19 = vld [vmem:[#allocation3 + $0x8] sm:$0xff] }
 0x7ce   : > { %2626 = vadd.xlane.f32.xlu1 %v11517_v36 }
 0x7cf   : > { %v3231_v6 = vmul.f32 1.442695, %v3169_v37  ;;  %v3233_v30 = vmul.f32 1.442695, %v3170_v57 }
 0x7d0   : > { %v4698_v22 = vpop.permute.xlu1 %4697 }
 0x7d1   : > { %8624 = vpow2.f32 %v3231_v6  ;;  %v4754_v32 = vsel %vm13598_vm15, %v4698_v22, 0  ;;  %vm13602_vm15 = vmmov %vm13571_vm10 }
 0x7d2   : > { %8626 = vpow2.f32 %v3233_v30  ;;  %2635 = vadd.xlane.f32.xlu1 %v11503_v39  ;;  %v13596_v39 = vld [vmem:[#allocation63_spill] sm:$0xff]  ;;  %v13618_v30 = vld [vmem:[#allocation93_spill] sm:$0xff] }
 0x7d4   : > { %v4714_v62 = vpop.permute.xlu1 %4713 }
 0x7d5   : > { %8102 = vmatprep.subr.msk.bf16.mxu0 %vm13571_vm10, %v4714_v62 }
 0x7d6   : > { %2638 = vadd.xlane.f32.xlu1 %v11524_v0 }
 0x7d8   : > { %v4716_v63 = vpop.permute.xlu1 %4715 }
 0x7da   : > { %2647 = vadd.xlane.f32.xlu1 %v11515_v9  ;;  %v7286_v40 = vpop.f32.mrb[16].mxu0  ;;  %v8931_v9 = vld [vmem:[#allocation3 + $0x40] sm:$0xff] }
 0x7db   : > { %v8625_v2 = vpop.eup %8624  ;;  %v7287_v35 = vpop.f32.mrb[17].mxu0 }
 0x7dc   : > { %v8627_v58 = vpop.eup %8626  ;;  %v11687_v4 = vadd.f32 %v7287_v35, %v7286_v40  ;;  %v7289_v36 = vpop.f32.mrb[18].mxu0  ;;  %v3297_v51 = vpack.c.bf16 %v8625_v2, %v8621_v26  ;;  %v13614_v26 = vld [vmem:[#allocation68_spill] sm:$0xff] }
 0x7dd   : > { %v7290_v41 = vpop.f32.mrb[19].mxu0  ;;  %v3298_v21 = vpack.c.bf16 %v8627_v58, %v8623_v31  ;;  %v3280_v53 = vadd.f32 %v8627_v58, %v8625_v2  ;;  %v4718_v56 = vpop.permute.xlu1 %4717  ;;  %v8943_v31 = vld [vmem:[#allocation2 + $0x78] sm:$0xff]  ;;  %v13620_v35 = vld [vmem:[#allocation28_spill] sm:$0xff] }
 0x7de   : > { %v11689_v59 = vadd.f32 %v7290_v41, %v7289_v36  ;;  %3236 = vadd.xlane.f32.xlu1 %v11547_v24 }
 0x7df   : > { %3451 = vmatprep.mubr.bf16.mxu0 %v3298_v21 }
 0x7e0   : > { %3452 = vmatmul.mubr.bf16.gmra.mrb[76].mxu0 %v3297_v51  ;;  %v8945_v51 = vld [vmem:[#allocation3 + $0x58] sm:$0xff] }
 0x7e1   : > { %7478 = vmatprep.mubr.msk.bf16.mxu0 %vm13597_vm12, %v13596_v39  ;;  %4335 = vrot.lane.b32.xlu0 %v8931_v9, %s9345_s0  ;;  %vm13601_vm12 = vmmov %vm13571_vm10  ;;  %v4720_v12 = vpop.permute.xlu1 %4719 }
 0x7e2   : > { %3251 = vadd.xlane.f32.xlu1 %v11588_v60  ;;  %v13600_v60 = vld [vmem:[#allocation62_spill] sm:$0xff] }
 0x7e5   : > { %v7292_v0 = vpop.f32.mrb[20].mxu0  ;;  %4337 = vrot.lane.b32.xlu0 %v8932_v47, %s9345_s0 }
 0x7e6   : > { %v7293_v23 = vpop.f32.mrb[21].mxu0  ;;  %3260 = vadd.xlane.f32.xlu1 %v11622_v18  ;;  %v4700_v18 = vpop.permute.xlu0 %4699 }
 0x7e7   : > { %v11697_v10 = vadd.f32 %v7293_v23, %v7292_v0  ;;  %v7295_v24 = vpop.f32.mrb[22].mxu0  ;;  %v4757_v34 = vsel %vm13602_vm15, %v4700_v18, 0  ;;  %vm13606_vm15 = vmmov %vm13571_vm10  ;;  %v13622_v0 = vld [vmem:[#allocation71_spill] sm:$0xff] }
 0x7e8   : > { %v7296_v25 = vpop.f32.mrb[23].mxu0  ;;  %7479 = vmatmul.mubr.msk.bf16.vlgmr.msra.gmra.mrb[80].mxu0 %vm13599_vm11, %v13596_v39  ;;  %vm13603_vm11 = vmmov %vm13571_vm10 }
 0x7e9   : > { %v11701_v46 = vadd.f32 %v7296_v25, %v7295_v24  ;;  %7480 = vmatprep.mubr.msk.bf16.mxu0 %vm13571_vm10, %v13600_v60  ;;  %4339 = vrot.lane.b32.xlu0 %v8933_v8, %s9345_s0 }
 0x7ea   : > { %3269 = vadd.xlane.f32.xlu1 %v11642_v49  ;;  %7575 = vmatpush3.bf16.xpose.msra.mxu0 %v4754_v32  ;;  %v8935_v49 = vld [vmem:[#allocation3 + $0x18] sm:$0xff]  ;;  %v4702_v13 = vpop.permute.xlu0 %4701 }
 0x7eb   : > { %8103 = vmatprep.subr.msk.bf16.mxu0 %vm13601_vm12, %v4716_v63  ;;  %vm13605_vm12 = vmmov %vm13571_vm10 }
 0x7ed   : > { %4323 = vrot.lane.b32.xlu0 %v8934_v20, %s9345_s0 }
 0x7ee   : > { %3272 = vadd.xlane.f32.xlu1 %v11656_v16  ;;  %v4760_v16 = vsel %vm13606_vm15, %v4702_v13, 0  ;;  %v4704_v17 = vpop.permute.xlu0 %4703  ;;  %vm13611_vm15 = vmmov %vm13609_vm8 }
 0x7f0   : > { %7481 = vmatmul.mubr.msk.bf16.gmra.mrb[84].mxu0 %vm13603_vm11, %v13600_v60  ;;  %vm13607_vm11 = vmmov %vm13571_vm10  ;;  %v13625_v60 = vld [vmem:[#allocation27_spill] sm:$0xff] }
 0x7f1   : > { %7482 = vmatprep.mubr.msk.bf16.mxu0 %vm13571_vm10, %v13604_v55  ;;  %4325 = vrot.lane.b32.xlu0 %v8935_v49, %s9345_s0 }
 0x7f2   : > { %3281 = vadd.xlane.f32.xlu1 %v3280_v53  ;;  %7577 = vmatpush3.bf16.xpose.msra.mxu0 %v4757_v34  ;;  %v2606_v29 = vpop.xlane.xlu0 %2605 }
 0x7f3   : > { %8104 = vmatprep.subr.msk.bf16.mxu0 %vm13605_vm12, %v4718_v56  ;;  %vm13610_vm12 = vmmov %vm13609_vm8  ;;  %8628 = vrcp.f32 %v2606_v29 }
 0x7f4   : > { %v4763_v5 = vsel %vm13610_vm12, %v4704_v17, 0  ;;  %vm13617_vm12 = vmmov %vm13609_vm8 }
 0x7f5   : > { %4343 = vrot.lane.b32.xlu0 %v8936_v15, %s9345_s0 }
 0x7f6   : > { %v2609_v14 = vpop.xlane.xlu0 %2608 }
 0x7f8   : > { %7483 = vmatmul.mubr.msk.bf16.gmra.mrb[88].mxu0 %vm13607_vm11, %v13604_v55  ;;  %vm13613_vm11 = vmmov %vm13609_vm8  ;;  %v8946_v55 = vld [vmem:[#allocation3 + $0x20] sm:$0xff] }
 0x7f9   : > { %7484 = vmatprep.mubr.msk.bf16.mxu0 %vm13571_vm10, %v13608_v48  ;;  %4345 = vrot.lane.b32.xlu0 %v8937_v3, %s9345_s0  ;;  %vm13615_vm10 = vmmov %vm13609_vm8 }
 0x7fa   : > { %7579 = vmatpush3.bf16.xpose.msra.mxu0 %v4760_v16  ;;  %v4706_v44 = vpop.permute.xlu0 %4705 }
 0x7fb   : > { %8105 = vmatprep.subr.msk.bf16.mxu0 %vm13609_vm8, %v4720_v12 }
 0x7fd   : > { %4347 = vrot.lane.b32.xlu0 %v8938_v61, %s9345_s0  ;;  %v8629_v24 = vpop.eup %8628 }
 0x7fe   : > { %v4708_v1 = vpop.permute.xlu0 %4707  ;;  %v11771_v18 = vmul.f32 %v8629_v24, %v11689_v59 }
 0x800   : > { %7485 = vmatmul.mubr.msk.bf16.gmra.mrb[92].mxu0 %vm13611_vm15, %v13608_v48  ;;  %vm13619_vm15 = vmmov %vm13609_vm8  ;;  %v8947_v48 = vld [vmem:[#allocation3 + $0x28] sm:$0xff] }
 0x801   : > { %7486 = vmatprep.mubr.msk.bf16.mxu0 %vm13613_vm11, %v13612_v11  ;;  %4331 = vrot.lane.b32.xlu0 %v8939_v54, %s9345_s0  ;;  %vm13621_vm11 = vmmov %vm13609_vm8 }
 0x802   : > { %7581 = vmatpush3.bf16.xpose.msra.mxu0 %v4763_v5  ;;  %v4710_v58 = vpop.permute.xlu0 %4709  ;;  %v4766_v21 = vsel %vm13621_vm11, %v4706_v44, 0  ;;  %vm13627_vm11 = vmmov %vm13609_vm8 }
 0x803   : > { %4319 = vrot.lane.b32.xlu1 %v8940_v28, %s9345_s0  ;;  %v4769_v15 = vsel %vm13627_vm11, %v4708_v1, 0  ;;  %vm13633_vm11 = vmmov %vm13609_vm8 }
 0x805   : > { %4333 = vrot.lane.b32.xlu0 %v8941_v38, %s9345_s0 }
 0x807   : > { %4711 = vrot.lane.b32.xlu1 %v8942_v42, %s9346_s27 }
 0x808   : > { %7487 = vmatmul.mubr.msk.bf16.gmra.mrb[96].mxu0 %vm13609_vm8, %v13612_v11 }
 0x809   : > { %7488 = vmatprep.mubr.msk.bf16.mxu0 %vm13615_vm10, %v13614_v26  ;;  %4687 = vrot.lane.b32.xlu0 %v13616_v52, %s9346_s27  ;;  %vm13623_vm10 = vmmov %vm13609_vm8  ;;  %v13631_v52 = vld [vmem:[#allocation32_spill] sm:$0xff] }
 0x80b   : > { %4727 = vrot.lane.b32.xlu1 %v8943_v31, %s9346_s27 }
 0x80f   : > { %4321 = vrot.lane.b32.xlu1 %v8944_v19, %s9345_s0  ;;  %v7298_v37 = vpop.f32.mrb[24].mxu0 }
 0x810   : > { %7489 = vmatmul.mubr.msk.bf16.gmra.mrb[100].mxu0 %vm13617_vm12, %v13614_v26  ;;  %v7299_v57 = vpop.f32.mrb[25].mxu0  ;;  %vm13624_vm12 = vmmov %vm13609_vm8 }
 0x811   : > { %v11747_v6 = vadd.f32 %v7299_v57, %v7298_v37  ;;  %7490 = vmatprep.mubr.msk.bf16.mxu0 %vm13619_vm15, %v13618_v30  ;;  %v2603_v22 = vpop.xlane.xlu1 %2602  ;;  %v7301_v62 = vpop.f32.mrb[26].mxu0  ;;  %vm13626_vm15 = vmmov %vm13609_vm8 }
 0x812   : > { %8630 = vrcp.f32 %v2603_v22  ;;  %v7302_v40 = vpop.f32.mrb[27].mxu0 }
 0x813   : > { %v11751_v2 = vadd.f32 %v7302_v40, %v7301_v62  ;;  %4681 = vrot.lane.b32.xlu1 %v13620_v35, %s9346_s27  ;;  %8632 = vrcp.f32 %v2609_v14  ;;  %v8948_v14 = vld [vmem:[#allocation3 + $0x78] sm:$0xff] }
 0x815   : > { %v2612_v36 = vpop.xlane.xlu1 %2611 }
 0x816   : > { %8634 = vrcp.f32 %v2612_v36 }
 0x817   : > { %4341 = vrot.lane.b32.xlu1 %v8945_v51, %s9345_s0  ;;  %v7304_v41 = vpop.f32.mrb[28].mxu0 }
 0x818   : > { %7491 = vmatmul.mubr.msk.bf16.gmra.mrb[104].mxu0 %vm13609_vm8, %v13618_v30  ;;  %v7305_v39 = vpop.f32.mrb[29].mxu0 }
 0x819   : > { %v11759_v9 = vadd.f32 %v7305_v39, %v7304_v41  ;;  %7492 = vmatprep.mubr.msk.bf16.mxu0 %vm13623_vm10, %v13622_v0  ;;  %v7307_v47 = vpop.f32.mrb[30].mxu0  ;;  %v4722_v23 = vpop.permute.xlu1 %4721  ;;  %vm13628_vm10 = vmmov %vm13609_vm8 }
 0x81a   : > { %v7308_v25 = vpop.f32.mrb[31].mxu0  ;;  %v11763_v32 = vpop.xlane.xlu0 %2617  ;;  %8106 = vmatprep.subr.msk.bf16.mxu0 %vm13624_vm12, %v4722_v23  ;;  %vm13630_vm12 = vmmov %vm13609_vm8 }
 0x81b   : > { %v11766_v63 = vadd.f32 %v7308_v25, %v7307_v47  ;;  %4683 = vrot.lane.b32.xlu1 %v13625_v60, %s9346_s27  ;;  %7583 = vmatpush3.bf16.xpose.msra.mxu0 %v4766_v21  ;;  %v4772_v11 = vsel %vm13630_vm12, %v4710_v58, 0  ;;  %vm13635_vm12 = vmmov %vm13609_vm8 }
 0x81c   : > { %v8631_v8 = vpop.eup %8630 }
 0x81d   : > { %v4724_v20 = vpop.permute.xlu1 %4723  ;;  %v11774_v34 = vmul.f32 %v8631_v8, %v11687_v4  ;;  %v8633_v53 = vpop.eup %8632 }
 0x81e   : > { %v11776_v56 = vpop.xlane.xlu0 %2620  ;;  %8107 = vmatprep.subr.msk.bf16.mxu0 %vm13626_vm15, %v4724_v20  ;;  %v11786_v4 = vmul.f32 %v8633_v53, %v11697_v10  ;;  %vm13632_vm15 = vmmov %vm13609_vm8 }
 0x81f   : > { %4327 = vrot.lane.b32.xlu1 %v8946_v55, %s9345_s0  ;;  %v2794_v49 = vpack.c.bf16 %v11771_v18, %v11774_v34 }
 0x820   : > { %v8635_v13 = vpop.eup %8634  ;;  %7493 = vmatmul.mubr.msk.bf16.gmra.mrb[108].mxu0 %vm13609_vm8, %v13622_v0 }
 0x821   : > { %v11789_v59 = vmul.f32 %v8635_v13, %v11701_v46  ;;  %v4726_v16 = vpop.permute.xlu1 %4725  ;;  %v13629_v46 = vld [vmem:[#allocation30_spill] sm:$0xff] }
 0x822   : > { %v11791_v17 = vpop.xlane.xlu0 %2629 }
 0x823   : > { %v2795_v12 = vpack.c.bf16 %v11789_v59, %v11786_v4  ;;  %4329 = vrot.lane.b32.xlu1 %v8947_v48, %s9345_s0  ;;  %7585 = vmatpush3.bf16.xpose.msra.mxu0 %v4769_v15 }
 0x824   : > { %8108 = vmatprep.subr.msk.bf16.mxu0 %vm13628_vm10, %v4726_v16  ;;  %vm13634_vm10 = vmmov %vm13609_vm8 }
 0x825   : > { %v7310_v3 = vpop.f32.mrb[32].mxu0 }
 0x826   : > { %v7311_v61 = vpop.f32.mrb[33].mxu0  ;;  %v11797_v29 = vpop.xlane.xlu0 %2632 }
 0x827   : > { %v11799_v10 = vadd.f32 %v7311_v61, %v7310_v3  ;;  %4685 = vrot.lane.b32.xlu1 %v13629_v46, %s9346_s27  ;;  %v7313_v5 = vpop.f32.mrb[34].mxu0 }
 0x828   : > { %v7314_v54 = vpop.f32.mrb[35].mxu0 }
 0x829   : > { %v11804_v28 = vadd.f32 %v7314_v54, %v7313_v5 }
 0x82b   : > { %4349 = vrot.lane.b32.xlu1 %v8948_v14, %s9345_s0  ;;  %7587 = vmatpush3.bf16.xpose.msra.mxu0 %v4772_v11 }
 0x82c   : > { %v11807_v38 = vpop.xlane.xlu0 %2641 }
 0x82d   : > { %v7316_v42 = vpop.f32.mrb[36].mxu0 }
 0x82e   : > { %v7317_v44 = vpop.f32.mrb[37].mxu0 }
 0x82f   : > { %v11809_v26 = vadd.f32 %v7317_v44, %v7316_v42  ;;  %4689 = vrot.lane.b32.xlu1 %v13631_v52, %s9346_s27  ;;  %v7319_v31 = vpop.f32.mrb[38].mxu0 }
 0x830   : > { %v11813_v1 = vpop.xlane.xlu0 %2644  ;;  %v7320_v19 = vpop.f32.mrb[39].mxu0 }
 0x831   : > { %v11815_v37 = vadd.f32 %v7320_v19, %v7319_v31 }
 0x834   : > { %v11817_v57 = vpop.xlane.xlu0 %3239 }
 0x835   : > { %v7322_v30 = vpop.f32.mrb[40].mxu0 }
 0x836   : > { %v7323_v22 = vpop.f32.mrb[41].mxu0 }
 0x837   : > { %v11819_v62 = vadd.f32 %v7323_v22, %v7322_v30  ;;  %v7325_v40 = vpop.f32.mrb[42].mxu0 }
 0x838   : > { %v3243_v35 = vpop.xlane.xlu0 %3242  ;;  %v7326_v58 = vpop.f32.mrb[43].mxu0 }
 0x839   : > { %v11821_v36 = vadd.f32 %v7326_v58, %v7325_v40  ;;  %8636 = vrcp.f32 %v3243_v35 }
 0x83c   : > { %v3246_v51 = vpop.xlane.xlu0 %3245 }
 0x83d   : > { %v7328_v41 = vpop.f32.mrb[44].mxu0  ;;  %8638 = vrcp.f32 %v3246_v51 }
 0x83e   : > { %v7329_v21 = vpop.f32.mrb[45].mxu0  ;;  %8640 = vrcp.f32 %v11763_v32 }
 0x83f   : > { %v11823_v39 = vadd.f32 %v7329_v21, %v7328_v41  ;;  %v7331_v0 = vpop.f32.mrb[46].mxu0 }
 0x840   : > { %v7332_v47 = vpop.f32.mrb[47].mxu0  ;;  %v11827_v24 = vpop.xlane.xlu0 %3248 }
 0x841   : > { %v11825_v23 = vadd.f32 %v7332_v47, %v7331_v0 }
 0x843   : > { %v8637_v14 = vpop.eup %8636 }
 0x844   : > { %v3255_v25 = vpop.xlane.xlu0 %3254 }
 0x847   : > { %v8639_v44 = vpop.eup %8638 }
 0x848   : > { %v3258_v60 = vpop.xlane.xlu0 %3257  ;;  %v8641_v31 = vpop.eup %8640 }
 0x849   : > { %v11851_v51 = vmul.f32 %v8641_v31, %v11751_v2 }
 0x84c   : > { %v11834_v48 = vpop.xlane.xlu0 %3263 }
 0x84e   : > { %v7382_v8 = vpop.f32.mrb[48].mxu0 }
 0x84f   : > { %v7383_v20 = vpop.f32.mrb[49].mxu0 }
 0x850   : > { %v11829_v53 = vadd.f32 %v7383_v20, %v7382_v8  ;;  %v7385_v55 = vpop.f32.mrb[50].mxu0  ;;  %v11838_v42 = vpop.xlane.xlu0 %3266 }
 0x851   : > { %v7386_v13 = vpop.f32.mrb[51].mxu0 }
 0x852   : > { %v11832_v15 = vadd.f32 %v7386_v13, %v7385_v55 }
 0x853   : > { %v2615_v16 = vpop.xlane.xlu1 %2614 }
 0x854   : > { %8642 = vrcp.f32 %v2615_v16  ;;  %v11853_v21 = vpop.xlane.xlu0 %3275 }
 0x855   : > { %8644 = vrcp.f32 %v11776_v56 }
 0x856   : > { %v7388_v3 = vpop.f32.mrb[52].mxu0 }
 0x857   : > { %v2624_v61 = vpop.xlane.xlu1 %2623  ;;  %v7389_v46 = vpop.f32.mrb[53].mxu0 }
 0x858   : > { %8646 = vrcp.f32 %v2624_v61  ;;  %v7390_v5 = vadd.f32 %v7389_v46, %v7388_v3  ;;  %v7391_v11 = vpop.f32.mrb[54].mxu0  ;;  %v11870_v3 = vpop.xlane.xlu0 %3278 }
 0x859   : > { %v7392_v54 = vpop.f32.mrb[55].mxu0  ;;  %8648 = vrcp.f32 %v11791_v17 }
 0x85a   : > { %v7393_v32 = vadd.f32 %v7392_v54, %v7391_v11  ;;  %v11840_v19 = vmul.f32 %v8637_v14, %v7390_v5 }
 0x85b   : > { %v2627_v52 = vpop.xlane.xlu1 %2626 }
 0x85c   : > { %v11842_v30 = vmul.f32 %v8639_v44, %v7393_v32  ;;  %8650 = vrcp.f32 %v2627_v52 }
 0x85d   : > { %8652 = vrcp.f32 %v11797_v29 }
 0x85e   : > { %v8643_v56 = vpop.eup %8642  ;;  %v3493_v22 = vpack.c.bf16 %v11842_v30, %v11840_v19  ;;  %v7394_v40 = vpop.f32.mrb[56].mxu0  ;;  %8654 = vrcp.f32 %v3255_v25 }
 0x85f   : > { %v2636_v17 = vpop.xlane.xlu1 %2635  ;;  %v7395_v35 = vpop.f32.mrb[57].mxu0  ;;  %v11848_v58 = vmul.f32 %v8643_v56, %v11747_v6 }
 0x860   : > { %v8645_v41 = vpop.eup %8644  ;;  %8656 = vrcp.f32 %v2636_v17  ;;  %v11855_v0 = vadd.f32 %v7395_v35, %v7394_v40  ;;  %v7397_v29 = vpop.f32.mrb[58].mxu0 }
 0x861   : > { %8658 = vrcp.f32 %v3258_v60  ;;  %v7398_v47 = vpop.f32.mrb[59].mxu0  ;;  %v2796_v25 = vpack.c.bf16 %v11851_v51, %v11848_v58  ;;  %v11863_v2 = vmul.f32 %v8645_v41, %v11759_v9  ;;  %v11888_v40 = vpop.permute.xlu0 %4335  ;;  %v13674_v58 = vld [vmem:[#allocation73_spill] sm:$0xff] }
 0x862   : > { %v8647_v8 = vpop.eup %8646  ;;  %v11859_v20 = vadd.f32 %v7398_v47, %v7397_v29  ;;  %8660 = vrcp.f32 %v11807_v38  ;;  %v13660_v29 = vld [vmem:[#allocation64_spill] sm:$0xff] }
 0x863   : > { %v2639_v6 = vpop.xlane.xlu1 %2638  ;;  %v11866_v55 = vmul.f32 %v8647_v8, %v11766_v63  ;;  %v8649_v13 = vpop.eup %8648 }
 0x864   : > { %8662 = vrcp.f32 %v2639_v6  ;;  %v11873_v46 = vmul.f32 %v8649_v13, %v11804_v28 }
 0x865   : > { %v2797_v60 = vpack.c.bf16 %v11866_v55, %v11863_v2  ;;  %8664 = vrcp.f32 %v11813_v1 }
 0x866   : > { %v8651_v16 = vpop.eup %8650  ;;  %v7400_v61 = vpop.f32.mrb[60].mxu0 }
 0x867   : > { %v2648_v38 = vpop.xlane.xlu1 %2647  ;;  %v7401_v9 = vpop.f32.mrb[61].mxu0  ;;  %v11877_v5 = vmul.f32 %v8651_v16, %v11799_v10 }
 0x868   : > { %v8653_v63 = vpop.eup %8652  ;;  %8666 = vrcp.f32 %v2648_v38  ;;  %v7402_v11 = vadd.f32 %v7401_v9, %v7400_v61  ;;  %v7403_v54 = vpop.f32.mrb[62].mxu0 }
 0x869   : > { %v8655_v14 = vpop.eup %8654  ;;  %v7404_v32 = vpop.f32.mrb[63].mxu0  ;;  %v11882_v56 = vmul.f32 %v8653_v63, %v11809_v26  ;;  %8668 = vrcp.f32 %v11817_v57 }
 0x86a   : > { %v8657_v52 = vpop.eup %8656  ;;  %v7405_v31 = vadd.f32 %v7404_v32, %v7403_v54  ;;  %v11890_v17 = vmul.f32 %v8655_v14, %v7402_v11  ;;  %v11907_v9 = vpop.permute.xlu0 %4337 }
 0x86b   : > { %v8659_v28 = vpop.eup %8658  ;;  %v3237_v1 = vpop.xlane.xlu1 %3236  ;;  %v11886_v10 = vmul.f32 %v8657_v52, %v11815_v37 }
 0x86c   : > { %v11892_v35 = vmul.f32 %v8659_v28, %v7405_v31  ;;  %8670 = vrcp.f32 %v3237_v1  ;;  %v8661_v41 = vpop.eup %8660 }
 0x86d   : > { %v11899_v57 = vmul.f32 %v8661_v41, %v11821_v36  ;;  %8672 = vrcp.f32 %v11827_v24 }
 0x86e   : > { %v8663_v47 = vpop.eup %8662  ;;  %v3495_v26 = vpack.c.bf16 %v11892_v35, %v11890_v17 }
 0x86f   : > { %v3252_v37 = vpop.xlane.xlu1 %3251  ;;  %v11903_v8 = vmul.f32 %v8663_v47, %v11819_v62  ;;  %v8665_v13 = vpop.eup %8664 }
 0x870   : > { %8674 = vrcp.f32 %v3252_v37  ;;  %v7406_v6 = vpop.f32.mrb[64].mxu0  ;;  %v11910_v36 = vmul.f32 %v8665_v13, %v11823_v39  ;;  %v11921_v47 = vpop.permute.xlu0 %4339 }
 0x871   : > { %v7407_v16 = vpop.f32.mrb[65].mxu0  ;;  %8676 = vrcp.f32 %v11834_v48 }
 0x872   : > { %v8667_v38 = vpop.eup %8666  ;;  %v7408_v63 = vadd.f32 %v7407_v16, %v7406_v6  ;;  %v7409_v11 = vpop.f32.mrb[66].mxu0 }
 0x873   : > { %v3261_v24 = vpop.xlane.xlu1 %3260  ;;  %v7410_v62 = vpop.f32.mrb[67].mxu0  ;;  %v11914_v54 = vmul.f32 %v8667_v38, %v11825_v23  ;;  %v3726_v38 = vsel %vm13632_vm15, %v11644_v45, 0  ;;  %vm13636_vm15 = vmmov %vm13609_vm8 }
 0x874   : > { %8678 = vrcp.f32 %v3261_v24  ;;  %v7411_v14 = vadd.f32 %v7410_v62, %v7409_v11  ;;  %v8669_v32 = vpop.eup %8668 }
 0x875   : > { %8680 = vrcp.f32 %v11838_v42  ;;  %v3477_v28 = vmul.f32 %v8669_v32, %v11832_v15 }
 0x876   : > { %v8671_v31 = vpop.eup %8670 }
 0x877   : > { %v3270_v39 = vpop.xlane.xlu1 %3269  ;;  %v3476_v1 = vmul.f32 %v8671_v31, %v11829_v53  ;;  %v8673_v41 = vpop.eup %8672 }
 0x878   : > { %8682 = vrcp.f32 %v3270_v39  ;;  %v7412_v48 = vpop.f32.mrb[68].mxu0  ;;  %v3480_v15 = vmul.f32 %v8673_v41, %v11855_v0  ;;  %v11937_v0 = vpop.permute.xlu0 %4323 }
 0x879   : > { %v7413_v23 = vpop.f32.mrb[69].mxu0  ;;  %v3492_v37 = vpack.c.bf16 %v3477_v28, %v3476_v1  ;;  %8684 = vrcp.f32 %v11853_v21  ;;  %v11933_v21 = vld [vmem:[#allocation12 + $0x8] sm:$0xff]  }
 0x87a   : > { %v8675_v6 = vpop.eup %8674  ;;  %v7414_v13 = vadd.f32 %v7413_v23, %v7412_v48  ;;  %v7415_v16 = vpop.f32.mrb[70].mxu0  ;;  %v3729_v23 = vsel %vm13636_vm15, %v11933_v21, 0  ;;  %vm13640_vm15 = vmmov %vm13609_vm8 }
 0x87b   : > { %v7416_v42 = vpop.f32.mrb[71].mxu0  ;;  %v3273_v11 = vpop.xlane.xlu1 %3272  ;;  %7894 = vmatprep.mubr.msk.bf16.mxu1 %vm13633_vm11, %v3492_v37  ;;  %v3481_v53 = vmul.f32 %v8675_v6, %v11859_v20  ;;  %vm13637_vm11 = vmmov %vm13609_vm8 }
 0x87c   : > { %v7417_v24 = vadd.f32 %v7416_v42, %v7415_v16  ;;  %8686 = vrcp.f32 %v3273_v11  ;;  %7895 = vmatmul.mubr.msk.bf16.vlgmr.msra.gmra.mrb[64].mxu1 %vm13609_vm8, %v3493_v22  ;;  %v8677_v62 = vpop.eup %8676 }
 0x87d   : > { %v3494_v32 = vpack.c.bf16 %v3481_v53, %v3480_v15  ;;  %7911 = vmatpush3.bf16.xpose.msra.mxu1 %v3726_v38  ;;  %v3485_v20 = vmul.f32 %v8677_v62, %v7411_v14  ;;  %v11950_v15 = vpop.permute.xlu0 %4325  ;;  %8688 = vrcp.f32 %v11870_v3 }
 0x87e   : > { %v8679_v45 = vpop.eup %8678  ;;  %8079 = vmatprep.subr.msk.bf16.mxu1 %vm13634_vm10, %v11933_v21  ;;  %vm13638_vm10 = vmmov %vm13609_vm8 }
 0x87f   : > { %v3484_v31 = vmul.f32 %v8679_v45, %v7408_v63  ;;  %v11939_v28 = vpop.xlane.xlu1 %3281  ;;  %7898 = vmatprep.mubr.msk.bf16.mxu1 %vm13635_vm12, %v3494_v32  ;;  %v8681_v30 = vpop.eup %8680  ;;  %vm13639_vm12 = vmmov %vm13609_vm8 }
 0x880   : > { %v7418_v19 = vpop.f32.mrb[72].mxu0  ;;  %v3486_v37 = vmul.f32 %v8681_v30, %v7414_v13  ;;  %v11953_v13 = vld [vmem:[#allocation12 + $0x10] sm:$0xff]   ;;  %8690 = vrcp.f32 %v11939_v28 }
 0x881   : > { %v3496_v22 = vpack.c.bf16 %v3485_v20, %v3484_v31  ;;  %v7419_v39 = vpop.f32.mrb[73].mxu0  ;;  %v11958_v35 = vpop.permute.xlu0 %4343  ;;  %v3732_v45 = vsel %vm13640_vm15, %v11953_v13, 0  ;;  %v11967_v20 = vld [vmem:[#allocation12 + $0x18] sm:$0xff]   ;;  %vm13645_vm15 = vmmov %vm13642_vm7 }
 0x882   : > { %v8683_v1 = vpop.eup %8682  ;;  %v7420_v48 = vadd.f32 %v7419_v39, %v7418_v19  ;;  %v7421_v41 = vpop.f32.mrb[74].mxu0 }
 0x883   : > { %v3487_v6 = vmul.f32 %v8683_v1, %v7417_v24  ;;  %v7422_v16 = vpop.f32.mrb[75].mxu0  ;;  %v11944_v38 = vpop.permute.xlu1 %4319 }
 0x884   : > { %v7423_v63 = vadd.f32 %v7422_v16, %v7421_v41  ;;  %7899 = vmatmul.mubr.msk.bf16.gmra.mrb[68].mxu1 %vm13637_vm11, %v3495_v26  ;;  %v8685_v14 = vpop.eup %8684  ;;  %vm13641_vm11 = vmmov %vm13609_vm8  ;;  %v11993_v16 = vld [vmem:[#allocation12 + $0x28] sm:$0xff]  }
 0x885   : > { %v3497_v42 = vpack.c.bf16 %v3487_v6, %v3486_v37  ;;  %7902 = vmatprep.mubr.msk.bf16.mxu1 %vm13609_vm8, %v3496_v22  ;;  %7913 = vmatpush3.bf16.xpose.msra.mxu1 %v3729_v23  ;;  %v11971_v19 = vpop.permute.xlu0 %4345 }
 0x886   : > { %v8687_v11 = vpop.eup %8686  ;;  %v3489_v53 = vmul.f32 %v8685_v14, %v7423_v63  ;;  %8080 = vmatprep.subr.msk.bf16.mxu1 %vm13638_vm10, %v11953_v13  ;;  %vm13643_vm10 = vmmov %vm13642_vm7 }
 0x887   : > { %v3488_v24 = vmul.f32 %v8687_v11, %v7420_v48  ;;  %v4712_v62 = vpop.permute.xlu1 %4711  ;;  %v11981_v48 = vld [vmem:[#allocation12 + $0x20] sm:$0xff]   ;;  %v8689_v28 = vpop.eup %8688 }
 0x888   : > { %v4775_v17 = vsel %vm13639_vm12, %v4712_v62, 0  ;;  %vm13644_vm12 = vmmov %vm13642_vm7 }
 0x889   : > { %v3498_v32 = vpack.c.bf16 %v3489_v53, %v3488_v24  ;;  %v3735_v22 = vsel %vm13644_vm12, %v11967_v20, 0  ;;  %v11977_v39 = vpop.permute.xlu0 %4347  ;;  %vm13649_vm12 = vmmov %vm13642_vm7  ;;  %v12003_v53 = vld [vmem:[#allocation12 + $0x30] sm:$0xff]  }
 0x88b   : > { %v4728_v26 = vpop.permute.xlu1 %4727 }
 0x88c   : > { %7903 = vmatmul.mubr.msk.bf16.gmra.mrb[72].mxu1 %vm13641_vm11, %v3497_v42  ;;  %8109 = vmatprep.subr.msk.bf16.mxu0 %vm13609_vm8, %v4728_v26  ;;  %vm13646_vm11 = vmmov %vm13642_vm7 }
 0x88d   : > { %7906 = vmatprep.mubr.msk.bf16.mxu1 %vm13642_vm7, %v3498_v32  ;;  %7589 = vmatpush3.bf16.xpose.msra.mxu0 %v4775_v17  ;;  %vm13647_vm8 = vmmov %vm13642_vm7  ;;  %v11988_v37 = vpop.permute.xlu0 %4331  ;;  %v12016_v17 = vld [vmem:[#allocation12 + $0x38] sm:$0xff]  }
 0x88e   : > { %7915 = vmatpush3.bf16.xpose.msra.mxu1 %v3732_v45  ;;  %v3738_v23 = vsel %vm13647_vm8, %v11981_v48, 0  ;;  %vm13652_vm8 = vmmov %vm13642_vm7 }
 0x88f   : > { %v11965_v31 = vpop.permute.xlu1 %4321  ;;  %8081 = vmatprep.subr.msk.bf16.mxu1 %vm13643_vm10, %v11967_v20  ;;  %vm13648_vm10 = vmmov %vm13642_vm7 }
 0x891   : > { %v11997_v63 = vpop.permute.xlu0 %4333 }
 0x893   : > { %v4682_v30 = vpop.permute.xlu1 %4681 }
 0x894   : > { %7590 = vmatprep.mubr.msk.bf16.mxu0 %vm13645_vm15, %v4682_v30  ;;  %vm13650_vm15 = vmmov %vm13642_vm7 }
 0x895   : > { %7591 = vmatmul.mubr.msk.bf16.vlgmr.msra.gmra.mrb[112].mxu0 %vm13646_vm11, %v4682_v30  ;;  %vm13651_vm11 = vmmov %vm13642_vm7  ;;  %v4688_v24 = vpop.permute.xlu0 %4687 }
 0x896   : > { %7917 = vmatpush3.bf16.xpose.msra.mxu1 %v3735_v22  ;;  %v3741_v42 = vsel %vm13651_vm11, %v11993_v16, 0  ;;  %vm13656_vm11 = vmmov %vm13642_vm7 }
 0x897   : > { %v11979_v1 = vpop.permute.xlu1 %4341  ;;  %8082 = vmatprep.subr.msk.bf16.mxu1 %vm13642_vm7, %v11981_v48 }
 0x89b   : > { %v4684_v41 = vpop.permute.xlu1 %4683 }
 0x89c   : > { %7592 = vmatprep.mubr.msk.bf16.mxu0 %vm13648_vm10, %v4684_v41  ;;  %vm13653_vm10 = vmmov %vm13642_vm7 }
 0x89d   : > { %7593 = vmatmul.mubr.msk.bf16.gmra.mrb[116].mxu0 %vm13649_vm12, %v4684_v41  ;;  %vm13654_vm12 = vmmov %vm13642_vm7 }
 0x89e   : > { %7919 = vmatpush3.bf16.xpose.msra.mxu1 %v3738_v23 }
 0x89f   : > { %v11991_v6 = vpop.permute.xlu1 %4327  ;;  %8083 = vmatprep.subr.msk.bf16.mxu1 %vm13650_vm15, %v11993_v16  ;;  %vm13655_vm15 = vmmov %vm13642_vm7 }
 0x8a0   : > { %v3744_v32 = vsel %vm13655_vm15, %v12003_v53, 0  ;;  %vm13661_vm15 = vcmp.ge.s32.totalorder %v13660_v29, %v10780_v43 }
 0x8a3   : > { %v11999_v14 = vpop.permute.xlu1 %4329 }
 0x8a6   : > { %7921 = vmatpush3.bf16.xpose.msra.mxu1 %v3741_v42 }
 0x8a7   : > { %v4686_v11 = vpop.permute.xlu1 %4685  ;;  %8084 = vmatprep.subr.msk.bf16.mxu1 %vm13642_vm7, %v12003_v53 }
 0x8a8   : > { %7594 = vmatprep.mubr.msk.bf16.mxu0 %vm13652_vm8, %v4686_v11  ;;  %vm13657_vm8 = vmmov %vm13642_vm7 }
 0x8a9   : > { %7595 = vmatmul.mubr.msk.bf16.gmra.mrb[120].mxu0 %vm13653_vm10, %v4686_v11  ;;  %vm13658_vm10 = vmmov %vm13642_vm7  ;;  %v8691_v11 = vpop.eup %8690 }
 0x8aa   : > { %7596 = vmatprep.mubr.msk.bf16.mxu0 %vm13654_vm12, %v4688_v24  ;;  %v3747_v30 = vsel %vm13658_vm10, %v12016_v17, 0  ;;  %vm13659_vm12 = vmmov %vm13642_vm7 }
 0x8ab   : > { %v12010_v62 = vpop.permute.xlu1 %4349  ;;  %vm13665_vm10 = vmmov %vm13642_vm7 }
 0x8ae   : > { %7923 = vmatpush3.bf16.xpose.msra.mxu1 %v3744_v32 }
 0x8af   : > { %8085 = vmatprep.subr.msk.bf16.mxu1 %vm13656_vm11, %v12016_v17  ;;  %v4690_v26 = vpop.permute.xlu1 %4689  ;;  %vm13662_vm11 = vcmp.ge.s32.totalorder %v13660_v29, %v10790_v50 }
 0x8b1   : > { %7597 = vmatmul.mubr.msk.bf16.gmra.mrb[124].mxu0 %vm13642_vm7, %v4688_v24 }
 0x8b2   : > { %7598 = vmatprep.mubr.msk.bf16.mxu0 %vm13657_vm8, %v4690_v26 }
 0x8b3   : > { %v7424_v45 = vpop.f32.mrb[76].mxu0 }
 0x8b4   : > { %v7425_v22 = vpop.f32.mrb[77].mxu0 }
 0x8b5   : > { %v7426_v41 = vadd.f32 %v7425_v22, %v7424_v45  ;;  %v7427_v3 = vpop.f32.mrb[78].mxu0 }
 0x8b6   : > { %v7428_v23 = vpop.f32.mrb[79].mxu0  ;;  %7925 = vmatpush3.bf16.xpose.msra.mxu1 %v3747_v30 }
 0x8b7   : > { %v7429_v42 = vadd.f32 %v7428_v23, %v7427_v3  ;;  %7494 = vmatprep.subr.bf16.mxu1 %v11888_v40  ;;  %v3490_v32 = vmul.f32 %v8689_v28, %v7426_v41  ;;  %v13667_v28 = vld [vmem:[#allocation70_spill] sm:$0xff] }
 0x8b9   : > { %v3491_v52 = vmul.f32 %v8691_v11, %v7429_v42  ;;  %7599 = vmatmul.mubr.msk.bf16.gmra.mrb[128].mxu0 %vm13659_vm12, %v4690_v26  ;;  %v13663_v26 = vld [vmem:[#allocation65_spill] sm:$0xff] }
 0x8ba   : > { %vm13664_vm8 = vcmp.ge.s32.totalorder %v13663_v26, %v10780_v43  ;;  %vm13666_vm12 = vcmp.ge.s32.totalorder %v13663_v26, %v10790_v50 }
 0x8bb   : > { %v3499_v24 = vpack.c.bf16 %v3491_v52, %v3490_v32  ;;  %v4000_v61 = vpop.f32.mrb[80].mxu0  ;;  %v13670_v32 = vld [vmem:[#allocation72_spill] sm:$0xff] }
 0x8bc   : > { %v12029_v44 = vsel %vm13661_vm15, %v4000_v61, -1e+30  ;;  %v4002_v45 = vpop.f32.mrb[81].mxu0  ;;  %vm13668_vm15 = vcmp.ge.s32.totalorder %v13667_v28, %v10790_v50 }
 0x8bd   : > { %v12034_v30 = vsel %vm13662_vm11, %v4002_v45, -1e+30  ;;  %7907 = vmatmul.mubr.msk.bf16.gmra.mrb[76].mxu1 %vm13642_vm7, %v3499_v24  ;;  %v4004_v40 = vpop.f32.mrb[82].mxu0  ;;  %vm13669_vm11 = vmmov %vm13642_vm7  ;;  %vm13671_vm7 = vcmp.ge.s32.totalorder %v13670_v32, %v10780_v43 }
 0x8be   : > { %v4111_v22 = vmax.f32 %v12029_v44, %v12034_v30  ;;  %v12042_v52 = vsel %vm13664_vm8, %v4004_v40, -1e+30  ;;  %7926 = vmatprep.mubr.msk.bf16.mxu1 %vm13665_vm10, %v2794_v49  ;;  %v4006_v61 = vpop.f32.mrb[83].mxu0  ;;  %vm13672_vm8 = vmmov %vm13665_vm10  ;;  %vm13673_vm10 = vcmp.ge.s32.totalorder %v13670_v32, %v10790_v50 }
 0x8bf   : > { %v12051_v41 = vsel %vm13666_vm12, %v4006_v61, -1e+30  ;;  %vm13675_vm12 = vcmp.ge.s32.totalorder %v13674_v58, %v10780_v43 }
 0x8c0   : > { %v4114_v3 = vmax.f32 %v12042_v52, %v12051_v41  ;;  %4112 = vmax.xlane.f32.xlu0 %v4111_v22  ;;  %v13679_v22 = vpack.c.bf16 %v11873_v46, %v11877_v5  ;;  %v13681_v46 = vld [vmem:[#allocation74_spill] sm:$0xff] }
 0x8c2   : > { %4115 = vmax.xlane.f32.xlu1 %v4114_v3  ;;  %v13684_v3 = vpack.c.bf16 %v11886_v10, %v11882_v56 }
 0x8c3   : > { %v4010_v23 = vpop.f32.mrb[84].mxu0 }
 0x8c4   : > { %v12058_v42 = vsel %vm2163_vm9, %v4010_v23, -1e+30  ;;  %v4012_v18 = vpop.f32.mrb[85].mxu0 }
 0x8c5   : > { %v12063_v34 = vsel %vm13668_vm15, %v4012_v18, -1e+30  ;;  %7927 = vmatmul.mubr.msk.bf16.vlgmr.msra.gmra.mrb[64].mxu1 %vm13669_vm11, %v2795_v12  ;;  %v4014_v49 = vpop.f32.mrb[86].mxu0  ;;  %vm13676_vm15 = vcmp.ge.s32.totalorder %v13674_v58, %v10790_v50  ;;  %vm13677_vm11 = vmmov %vm13672_vm8 }
 0x8c6   : > { %v4117_v11 = vmax.f32 %v12058_v42, %v12063_v34  ;;  %v12074_v24 = vsel %vm13671_vm7, %v4014_v49, -1e+30  ;;  %7495 = vmatpush3.bf16.msra.mxu1 %v11944_v38  ;;  %7930 = vmatprep.mubr.msk.bf16.mxu1 %vm13672_vm8, %v2796_v25  ;;  %v4016_v45 = vpop.f32.mrb[87].mxu0  ;;  %vm13680_vm7 = vmmov %vm13672_vm8  ;;  %vm13682_vm8 = vcmp.ge.s32.totalorder %v13681_v46, %v10780_v43  ;;  %v13687_v49 = vpack.c.bf16 %v11899_v57, %v11903_v8 }
 0x8c7   : > { %v12084_v4 = vsel %vm13673_vm10, %v4016_v45, -1e+30  ;;  %7496 = vmatprep.subr.bf16.mxu1 %v11907_v9  ;;  %vm13683_vm10 = vcmp.ge.s32.totalorder %v13681_v46, %v10790_v50 }
 0x8c8   : > { %v4120_v59 = vmax.f32 %v12074_v24, %v12084_v4  ;;  %4118 = vmax.xlane.f32.xlu0 %v4117_v11 }
 0x8ca   : > { %7497 = vmatpush3.bf16.msra.mxu1 %v11965_v31  ;;  %4121 = vmax.xlane.f32.xlu1 %v4120_v59  ;;  %v13690_v59 = vpack.c.bf16 %v11914_v54, %v11910_v36 }
 0x8cb   : > { %v4020_v12 = vpop.f32.mrb[88].mxu0  ;;  %7498 = vmatprep.subr.bf16.mxu1 %v11921_v47 }
 0x8cc   : > { %v12094_v51 = vsel %vm13675_vm12, %v4020_v12, -1e+30  ;;  %v4022_v25 = vpop.f32.mrb[89].mxu0  ;;  %vm13685_vm12 = vmmov %vm13680_vm7 }
 0x8cd   : > { %v12099_v9 = vsel %vm13676_vm15, %v4022_v25, -1e+30  ;;  %7931 = vmatmul.mubr.msk.bf16.gmra.mrb[68].mxu1 %vm13677_vm11, %v2797_v60  ;;  %v4024_v38 = vpop.f32.mrb[90].mxu0  ;;  %vm13688_vm15 = vmmov %vm13680_vm7 }
 0x8ce   : > { %v4123_v47 = vmax.f32 %v12094_v51, %v12099_v9  ;;  %v12110_v40 = vsel %vm2169_vm0, %v4024_v38, -1e+30  ;;  %7934 = vmatprep.mubr.msk.bf16.mxu1 %vm13680_vm7, %v13679_v22  ;;  %v4026_v61 = vpop.f32.mrb[91].mxu0  ;;  %7499 = vmatpush3.bf16.msra.mxu1 %v11937_v0  ;;  %vm13691_vm11 = vmmov %vm13680_vm7  ;;  %v13693_v22 = vld [vmem:[#allocation38_spill] sm:$0xff] }
 0x8cf   : > { %v12120_v2 = vsel %vm2170_vm13, %v4026_v61, -1e+30  ;;  %7500 = vmatprep.subr.bf16.mxu1 %v11979_v1  ;;  %vm13694_vm7 = vcmp.ge.s32.totalorder %v13693_v22, %v10790_v50 }
 0x8d0   : > { %v4126_v55 = vmax.f32 %v12110_v40, %v12120_v2  ;;  %4124 = vmax.xlane.f32.xlu1 %v4123_v47 }
 0x8d2   : > { %4127 = vmax.xlane.f32.xlu0 %v4126_v55  ;;  %7501 = vmatpush3.bf16.msra.mxu1 %v11950_v15 }
 0x8d3   : > { %v4030_v60 = vpop.f32.mrb[92].mxu0  ;;  %7502 = vmatprep.subr.bf16.mxu1 %v11958_v35 }
 0x8d4   : > { %v12130_v5 = vsel %vm13682_vm8, %v4030_v60, -1e+30  ;;  %v4032_v0 = vpop.f32.mrb[93].mxu0 }
 0x8d5   : > { %v12135_v1 = vsel %vm13683_vm10, %v4032_v0, -1e+30  ;;  %7935 = vmatmul.mubr.msk.bf16.gmra.mrb[72].mxu1 %vm13685_vm12, %v13684_v3  ;;  %v4034_v15 = vpop.f32.mrb[94].mxu0  ;;  %v13695_v3 = vld [vmem:[#allocation39_spill] sm:$0xff]  ;;  %vm13698_vm12 = vcmp.ge.s32.totalorder %v10831_v7, %v10780_v43 }
 0x8d6   : > { %v4129_v35 = vmax.f32 %v12130_v5, %v12135_v1  ;;  %v12146_v18 = vsel %vm2173_vm6, %v4034_v15, -1e+30  ;;  %7938 = vmatprep.mubr.msk.bf16.mxu1 %vm13688_vm15, %v13687_v49  ;;  %v4036_v11 = vpop.f32.mrb[95].mxu0  ;;  %7503 = vmatpush3.bf16.msra.mxu1 %v11991_v6  ;;  %vm13696_vm8 = vcmp.ge.s32.totalorder %v13695_v3, %v10780_v43  ;;  %vm13697_vm10 = vcmp.ge.s32.totalorder %v13695_v3, %v10790_v50 }
 0x8d7   : > { %v12156_v56 = vsel %vm2174_vm14, %v4036_v11, -1e+30  ;;  %7504 = vmatprep.subr.bf16.mxu1 %v11971_v19  ;;  %vm13699_vm15 = vcmp.ge.s32.totalorder %v10831_v7, %v10790_v50 }
 0x8d8   : > { %v4132_v10 = vmax.f32 %v12146_v18, %v12156_v56  ;;  %4130 = vmax.xlane.f32.xlu0 %v4129_v35 }
 0x8da   : > { %4133 = vmax.xlane.f32.xlu1 %v4132_v10  ;;  %7505 = vmatpush3.bf16.msra.mxu1 %v11999_v14 }
 0x8db   : > { %v4040_v57 = vpop.f32.mrb[96].mxu0  ;;  %7506 = vmatprep.subr.bf16.mxu1 %v11977_v39 }
 0x8dc   : > { %v12166_v6 = vsel %vm2175_vm1, %v4040_v57, -1e+30  ;;  %v4042_v45 = vpop.f32.mrb[97].mxu0 }
 0x8dd   : > { %v12171_v19 = vsel %vm2176_vm2, %v4042_v45, -1e+30  ;;  %7939 = vmatmul.mubr.msk.bf16.gmra.mrb[76].mxu1 %vm13691_vm11, %v13690_v59  ;;  %v4044_v14 = vpop.f32.mrb[98].mxu0  ;;  %vm13700_vm11 = vcmp.ge.s32.totalorder %v10841_v27, %v10780_v43 }
 0x8de   : > { %v4135_v39 = vmax.f32 %v12166_v6, %v12171_v19  ;;  %v12182_v25 = vsel %vm2177_vm3, %v4044_v14, -1e+30  ;;  %v4046_v38 = vpop.f32.mrb[99].mxu0  ;;  %7507 = vmatpush3.bf16.msra.mxu1 %v11988_v37 }
 0x8df   : > { %v12188_v47 = vsel %vm2178_vm4, %v4046_v38, -1e+30  ;;  %7508 = vmatprep.subr.bf16.mxu1 %v12010_v62 }
 0x8e0   : > { %v4138_v36 = vmax.f32 %v12182_v25, %v12188_v47  ;;  %4136 = vmax.xlane.f32.xlu1 %v4135_v39 }
 0x8e2   : > { %4139 = vmax.xlane.f32.xlu0 %v4138_v36  ;;  %7509 = vmatpush3.bf16.msra.mxu1 %v11997_v63 }
 0x8e3   : > { %v4050_v54 = vpop.f32.mrb[100].mxu0 }
 0x8e4   : > { %v12197_v61 = vsel %vm2179_vm5, %v4050_v54, -1e+30  ;;  %v4052_v37 = vpop.f32.mrb[101].mxu0 }
 0x8e5   : > { %v12202_v55 = vsel %vm13694_vm7, %v4052_v37, -1e+30  ;;  %v4054_v62 = vpop.f32.mrb[102].mxu0  ;;  %vm13701_vm7 = vcmp.ge.s32.totalorder %v10841_v27, %v10790_v50  ;;  %v13702_v37 = vld [vmem:[#allocation40_spill] sm:$0xff] }
 0x8e6   : > { %v4141_v60 = vmax.f32 %v12197_v61, %v12202_v55  ;;  %v4056_v0 = vpop.f32.mrb[103].mxu0  ;;  %v12209_v63 = vsel %vm13696_vm8, %v4054_v62, -1e+30  ;;  %vm13703_vm8 = vcmp.ge.s32.totalorder %v13702_v37, %v10780_v43 }
 0x8e7   : > { %v12214_v15 = vsel %vm13697_vm10, %v4056_v0, -1e+30  ;;  %vm13704_vm10 = vcmp.ge.s32.totalorder %v13702_v37, %v10790_v50 }
 0x8e8   : > { %4142 = vmax.xlane.f32.xlu1 %v4141_v60  ;;  %v4144_v35 = vmax.f32 %v12209_v63, %v12214_v15 }
 0x8eb   : > { %v4060_v49 = vpop.f32.mrb[104].mxu0 }
 0x8ec   : > { %v12221_v11 = vsel %vm13698_vm12, %v4060_v49, -1e+30  ;;  %4145 = vmax.xlane.f32.xlu1 %v4144_v35  ;;  %v4062_v10 = vpop.f32.mrb[105].mxu0  ;;  %vm13705_vm12 = vcmp.ge.s32.totalorder %v10861_v33, %v10780_v43 }
 0x8ed   : > { %v12226_v57 = vsel %vm13699_vm15, %v4062_v10, -1e+30  ;;  %v4064_v45 = vpop.f32.mrb[106].mxu0  ;;  %vm13706_vm15 = vcmp.ge.s32.totalorder %v10861_v33, %v10790_v50 }
 0x8ee   : > { %v4147_v59 = vmax.f32 %v12221_v11, %v12226_v57  ;;  %v12233_v14 = vsel %vm13700_vm11, %v4064_v45, -1e+30  ;;  %v4066_v39 = vpop.f32.mrb[107].mxu0  ;;  %vm13710_vm11 = vcmp.ge.s32.totalorder %v13660_v29, %v10780_v43 }
 0x8ef   : > { %v12238_v38 = vsel %vm13701_vm7, %v4066_v39, -1e+30  ;;  %vm13711_vm7 = vcmp.ge.s32.totalorder %v13660_v29, %v10790_v50 }
 0x8f0   : > { %v4150_v36 = vmax.f32 %v12233_v14, %v12238_v38  ;;  %4148 = vmax.xlane.f32.xlu0 %v4147_v59 }
 0x8f2   : > { %4151 = vmax.xlane.f32.xlu1 %v4150_v36  ;;  %v13707_v36 = vld [vmem:[#allocation31_spill] sm:$0xff] }
 0x8f3   : > { %v4070_v54 = vpop.f32.mrb[108].mxu0 }
 0x8f4   : > { %v12245_v62 = vsel %vm13703_vm8, %v4070_v54, -1e+30  ;;  %v4072_v60 = vpop.f32.mrb[109].mxu0  ;;  %v13708_v54 = vld [vmem:[#allocation33_spill] sm:$0xff]  ;;  %vm13712_vm8 = vcmask 261120  }
 0x8f5   : > { %v12250_v0 = vsel %vm13704_vm10, %v4072_v60, -1e+30  ;;  %v4074_v35 = vpop.f32.mrb[110].mxu0  ;;  %v13709_v60 = vld [vmem:[#allocation34_spill] sm:$0xff]  ;;  %vm13713_vm10 = vmmov %vm13712_vm8 }
 0x8f6   : > { %v4153_v49 = vmax.f32 %v12245_v62, %v12250_v0  ;;  %v4076_v10 = vpop.f32.mrb[111].mxu0  ;;  %v12257_v45 = vsel %vm13705_vm12, %v4074_v35, -1e+30  ;;  %v8956_v35 = vld [vmem:[#allocation12] sm:$0xff]   ;;  %vm13714_vm12 = vcmp.ge.s32.totalorder %v13663_v26, %v10780_v43 }
 0x8f7   : > { %v12262_v59 = vsel %vm13706_vm15, %v4076_v10, -1e+30  ;;  %vm13715_vm15 = vcmp.ge.s32.totalorder %v13663_v26, %v10790_v50 }
 0x8f8   : > { %4154 = vmax.xlane.f32.xlu1 %v4153_v49  ;;  %v4156_v39 = vmax.f32 %v12257_v45, %v12262_v59 }
 0x8fc   : > { %4157 = vmax.xlane.f32.xlu1 %v4156_v39 }
 0x906   : > { %4691 = vrot.lane.b32.xlu0 %v13707_v36, %s9346_s27 }
 0x90a   : > { %4695 = vrot.lane.b32.xlu0 %v13708_v54, %s9346_s27 }
 0x90d   : > { %4693 = vrot.lane.b32.xlu1 %v13709_v60, %s9346_s27 }
 0x90e   : > { %4504 = vrot.lane.b32.xlu0 %v8956_v35, %s9345_s0 }
 0x911   : > { %4510 = vrot.lane.b32.xlu1 %v11967_v20, %s9345_s0 }
 0x912   : > { %4506 = vrot.lane.b32.xlu0 %v11933_v21, %s9345_s0 }
 0x915   : > { %4514 = vrot.lane.b32.xlu1 %v11993_v16, %s9345_s0 }
 0x916   : > { %4508 = vrot.lane.b32.xlu0 %v11953_v13, %s9345_s0 }
 0x919   : > { %4516 = vrot.lane.b32.xlu1 %v12003_v53, %s9345_s0 }
 0x91a   : > { %4512 = vrot.lane.b32.xlu0 %v11981_v48, %s9345_s0 }
 0x94d   : > { %v4113_v49 = vpop.xlane.xlu0 %4112 }
 0x94e   : > { %v4159_v10 = vsub.f32 %v12029_v44, %v4113_v49  ;;  %v4160_v20 = vsub.f32 %v12034_v30, %v4113_v49 }
 0x94f   : > { %v4116_v39 = vpop.xlane.xlu1 %4115 }
 0x950   : > { %v4191_v36 = vmul.f32 1.442695, %v4159_v10  ;;  %v4193_v21 = vmul.f32 1.442695, %v4160_v20  ;;  %v4161_v54 = vsub.f32 %v12042_v52, %v4116_v39  ;;  %v4162_v16 = vsub.f32 %v12051_v41, %v4116_v39 }
 0x952   : > { %8692 = vpow2.f32 %v4191_v36  ;;  %v4195_v13 = vmul.f32 1.442695, %v4161_v54  ;;  %v4197_v60 = vmul.f32 1.442695, %v4162_v16 }
 0x953   : > { %8694 = vpow2.f32 %v4193_v21 }
 0x954   : > { %8696 = vpow2.f32 %v4195_v13 }
 0x955   : > { %8698 = vpow2.f32 %v4197_v60  ;;  %v4119_v53 = vpop.xlane.xlu0 %4118 }
 0x956   : > { %v4163_v48 = vsub.f32 %v12058_v42, %v4119_v53  ;;  %v4164_v44 = vsub.f32 %v12063_v34, %v4119_v53 }
 0x957   : > { %v4122_v35 = vpop.xlane.xlu1 %4121 }
 0x958   : > { %v4199_v30 = vmul.f32 1.442695, %v4163_v48  ;;  %v4201_v49 = vmul.f32 1.442695, %v4164_v44  ;;  %v4165_v10 = vsub.f32 %v12074_v24, %v4122_v35  ;;  %v4166_v52 = vsub.f32 %v12084_v4, %v4122_v35 }
 0x95a   : > { %8700 = vpow2.f32 %v4199_v30  ;;  %v4203_v41 = vmul.f32 1.442695, %v4165_v10  ;;  %v4205_v20 = vmul.f32 1.442695, %v4166_v52 }
 0x95b   : > { %8702 = vpow2.f32 %v4201_v49 }
 0x95c   : > { %v8693_v39 = vpop.eup %8692  ;;  %8704 = vpow2.f32 %v4203_v41 }
 0x95d   : > { %v8695_v36 = vpop.eup %8694  ;;  %8706 = vpow2.f32 %v4205_v20  ;;  %v4125_v21 = vpop.xlane.xlu1 %4124 }
 0x95e   : > { %v8697_v54 = vpop.eup %8696  ;;  %v4167_v42 = vsub.f32 %v12094_v51, %v4125_v21  ;;  %v4168_v34 = vsub.f32 %v12099_v9, %v4125_v21  ;;  %v4255_v16 = vadd.f32 %v8695_v36, %v8693_v39 }
 0x95f   : > { %v8699_v13 = vpop.eup %8698  ;;  %v4128_v60 = vpop.xlane.xlu0 %4127  ;;  %v4303_v24 = vpack.c.bf16 %v8697_v54, %v8693_v39 }
 0x960   : > { %v4207_v53 = vmul.f32 1.442695, %v4167_v42  ;;  %v4209_v4 = vmul.f32 1.442695, %v4168_v34  ;;  %4256 = vadd.xlane.f32.xlu1 %v4255_v16  ;;  %v4169_v48 = vsub.f32 %v12110_v40, %v4128_v60  ;;  %v4170_v44 = vsub.f32 %v12120_v2, %v4128_v60 }
 0x961   : > { %v4258_v35 = vadd.f32 %v8699_v13, %v8697_v54  ;;  %v4304_v30 = vpack.c.bf16 %v8699_v13, %v8695_v36 }
 0x962   : > { %8708 = vpow2.f32 %v4207_v53  ;;  %v4211_v49 = vmul.f32 1.442695, %v4169_v48  ;;  %v4213_v10 = vmul.f32 1.442695, %v4170_v44 }
 0x963   : > { %8710 = vpow2.f32 %v4209_v4  ;;  %4259 = vadd.xlane.f32.xlu0 %v4258_v35  ;;  %4399 = vmatprep.mubr.bf16.mxu1 %v4304_v30 }
 0x964   : > { %v8701_v51 = vpop.eup %8700  ;;  %8712 = vpow2.f32 %v4211_v49  ;;  %4400 = vmatmul.mubr.bf16.vlgmr.msra.gmra.mrb[80].mxu1 %v4303_v24 }
 0x965   : > { %v8703_v9 = vpop.eup %8702  ;;  %8714 = vpow2.f32 %v4213_v10  ;;  %v4131_v52 = vpop.xlane.xlu0 %4130 }
 0x966   : > { %v8705_v41 = vpop.eup %8704  ;;  %v4171_v20 = vsub.f32 %v12130_v5, %v4131_v52  ;;  %v4172_v40 = vsub.f32 %v12135_v1, %v4131_v52  ;;  %v4261_v2 = vadd.f32 %v8703_v9, %v8701_v51 }
 0x967   : > { %v8707_v39 = vpop.eup %8706  ;;  %v4134_v36 = vpop.xlane.xlu1 %4133  ;;  %v4305_v21 = vpack.c.bf16 %v8705_v41, %v8701_v51 }
 0x968   : > { %v4215_v54 = vmul.f32 1.442695, %v4171_v20  ;;  %v4217_v42 = vmul.f32 1.442695, %v4172_v40  ;;  %v4173_v34 = vsub.f32 %v12146_v18, %v4134_v36  ;;  %v4174_v16 = vsub.f32 %v12156_v56, %v4134_v36  ;;  %4262 = vadd.xlane.f32.xlu0 %v4261_v2  ;;  %v12301_v13 = vpop.f32.mrb[112].mxu0 }
 0x969   : > { %v4306_v60 = vpack.c.bf16 %v8707_v39, %v8703_v9  ;;  %v12303_v24 = vpop.f32.mrb[113].mxu0  ;;  %v4264_v1 = vadd.f32 %v8707_v39, %v8705_v41 }
 0x96a   : > { %8716 = vpow2.f32 %v4215_v54  ;;  %v4219_v5 = vmul.f32 1.442695, %v4173_v34  ;;  %v4221_v53 = vmul.f32 1.442695, %v4174_v16  ;;  %v12305_v4 = vpop.f32.mrb[114].mxu0 }
 0x96b   : > { %8718 = vpow2.f32 %v4217_v42  ;;  %4407 = vmatprep.mubr.bf16.mxu1 %v4306_v60  ;;  %v12307_v18 = vpop.f32.mrb[115].mxu0 }
 0x96c   : > { %v8709_v48 = vpop.eup %8708  ;;  %8720 = vpow2.f32 %v4219_v5  ;;  %4408 = vmatmul.mubr.bf16.gmra.mrb[84].mxu1 %v4305_v21  ;;  %4265 = vadd.xlane.f32.xlu0 %v4264_v1 }
 0x96d   : > { %v8711_v56 = vpop.eup %8710  ;;  %8722 = vpow2.f32 %v4221_v53  ;;  %v4137_v44 = vpop.xlane.xlu1 %4136 }
 0x96e   : > { %v8713_v35 = vpop.eup %8712  ;;  %v4175_v30 = vsub.f32 %v12166_v6, %v4137_v44  ;;  %v4176_v49 = vsub.f32 %v12171_v19, %v4137_v44  ;;  %v4267_v10 = vadd.f32 %v8711_v56, %v8709_v48 }
 0x96f   : > { %v8715_v51 = vpop.eup %8714  ;;  %v4140_v9 = vpop.xlane.xlu0 %4139  ;;  %v4307_v52 = vpack.c.bf16 %v8713_v35, %v8709_v48 }
 0x970   : > { %v4223_v41 = vmul.f32 1.442695, %v4175_v30  ;;  %v4225_v20 = vmul.f32 1.442695, %v4176_v49  ;;  %4268 = vadd.xlane.f32.xlu0 %v4267_v10  ;;  %v4177_v40 = vsub.f32 %v12182_v25, %v4140_v9  ;;  %v4178_v2 = vsub.f32 %v12188_v47, %v4140_v9  ;;  %v12313_v39 = vpop.f32.mrb[116].mxu0 }
 0x971   : > { %v4308_v36 = vpack.c.bf16 %v8715_v51, %v8711_v56  ;;  %v12315_v21 = vpop.f32.mrb[117].mxu0  ;;  %v4270_v19 = vadd.f32 %v8715_v51, %v8713_v35 }
 0x972   : > { %8724 = vpow2.f32 %v4223_v41  ;;  %v4227_v6 = vmul.f32 1.442695, %v4177_v40  ;;  %v4229_v54 = vmul.f32 1.442695, %v4178_v2  ;;  %v12317_v42 = vpop.f32.mrb[118].mxu0 }
 0x973   : > { %8726 = vpow2.f32 %v4225_v20  ;;  %4415 = vmatprep.mubr.bf16.mxu1 %v4308_v36  ;;  %v12319_v16 = vpop.f32.mrb[119].mxu0 }
 0x974   : > { %v8717_v34 = vpop.eup %8716  ;;  %8728 = vpow2.f32 %v4227_v6  ;;  %4416 = vmatmul.mubr.bf16.gmra.mrb[88].mxu1 %v4307_v52  ;;  %4271 = vadd.xlane.f32.xlu0 %v4270_v19 }
 0x975   : > { %v8719_v25 = vpop.eup %8718  ;;  %8730 = vpow2.f32 %v4229_v54  ;;  %v4143_v47 = vpop.xlane.xlu1 %4142 }
 0x976   : > { %v8721_v60 = vpop.eup %8720  ;;  %v4179_v5 = vsub.f32 %v12197_v61, %v4143_v47  ;;  %v4180_v53 = vsub.f32 %v12202_v55, %v4143_v47  ;;  %v4273_v1 = vadd.f32 %v8719_v25, %v8717_v34 }
 0x977   : > { %v8723_v48 = vpop.eup %8722  ;;  %v4309_v35 = vpack.c.bf16 %v8721_v60, %v8717_v34 }
 0x978   : > { %v4231_v56 = vmul.f32 1.442695, %v4179_v5  ;;  %4274 = vadd.xlane.f32.xlu0 %v4273_v1  ;;  %v4310_v44 = vpack.c.bf16 %v8723_v48, %v8719_v25  ;;  %v4233_v30 = vmul.f32 1.442695, %v4180_v53  ;;  %v4276_v9 = vadd.f32 %v8723_v48, %v8721_v60 }
 0x979   : > { %v4146_v49 = vpop.xlane.xlu1 %4145 }
 0x97a   : > { %v4181_v10 = vsub.f32 %v12209_v63, %v4146_v49  ;;  %v4182_v51 = vsub.f32 %v12214_v15, %v4146_v49  ;;  %4423 = vmatprep.mubr.bf16.mxu1 %v4310_v44  ;;  %8732 = vpow2.f32 %v4231_v56  ;;  %v12363_v49 = vsel %vm13714_vm12, %v12305_v4, -1e+30 }
 0x97b   : > { %8734 = vpow2.f32 %v4233_v30 }
 0x97c   : > { %v8725_v52 = vpop.eup %8724  ;;  %v4235_v41 = vmul.f32 1.442695, %v4181_v10  ;;  %v4237_v61 = vmul.f32 1.442695, %v4182_v51  ;;  %4424 = vmatmul.mubr.bf16.gmra.mrb[92].mxu1 %v4309_v35  ;;  %4277 = vadd.xlane.f32.xlu0 %v4276_v9  ;;  %v12325_v55 = vpop.f32.mrb[120].mxu0 }
 0x97d   : > { %v8727_v20 = vpop.eup %8726  ;;  %v12327_v40 = vpop.f32.mrb[121].mxu0  ;;  %v12369_v10 = vsel %vm13715_vm15, %v12307_v18, -1e+30 }
 0x97e   : > { %v4149_v2 = vpop.xlane.xlu0 %4148  ;;  %v8729_v36 = vpop.eup %8728  ;;  %8736 = vpow2.f32 %v4235_v41  ;;  %v4279_v34 = vadd.f32 %v8727_v20, %v8725_v52 }
 0x97f   : > { %v4184_v63 = vsub.f32 %v12226_v57, %v4149_v2  ;;  %v12330_v15 = vpop.f32.mrb[122].mxu0  ;;  %v8731_v6 = vpop.eup %8730  ;;  %8738 = vpow2.f32 %v4237_v61  ;;  %v4183_v25 = vsub.f32 %v12221_v11, %v4149_v2  ;;  %v12341_v57 = vsel %vm13710_vm11, %v12301_v13, -1e+30  ;;  %vm13716_vm11 = vmmov %vm13712_vm8 }
 0x980   : > { %v4152_v54 = vpop.xlane.xlu1 %4151  ;;  %v12332_v19 = vpop.f32.mrb[123].mxu0  ;;  %4280 = vadd.xlane.f32.xlu0 %v4279_v34  ;;  %v4312_v53 = vpack.c.bf16 %v8731_v6, %v8727_v20  ;;  %v4282_v1 = vadd.f32 %v8731_v6, %v8729_v36  ;;  %v4311_v56 = vpack.c.bf16 %v8729_v36, %v8725_v52  ;;  %v12347_v11 = vsel %vm13711_vm7, %v12303_v24, -1e+30  ;;  %vm13717_vm7 = vmmov %vm13712_vm8 }
 0x981   : > { %v4241_v47 = vmul.f32 1.442695, %v4184_v63  ;;  %v4185_v60 = vsub.f32 %v12233_v14, %v4152_v54  ;;  %v4186_v5 = vsub.f32 %v12238_v38, %v4152_v54  ;;  %v4239_v38 = vmul.f32 1.442695, %v4183_v25  ;;  %vm13720_vm12 = vmmov %vm13717_vm7 }
 0x982   : > { %v4692_v48 = vpop.permute.xlu0 %4691  ;;  %4431 = vmatprep.mubr.bf16.mxu1 %v4312_v53  ;;  %4283 = vadd.xlane.f32.xlu1 %v4282_v1  ;;  %v4946_v35 = vmax.f32 %v12341_v57, %v12347_v11  ;;  %vm13721_vm15 = vmmov %vm13717_vm7 }
 0x983   : > { %v4243_v14 = vmul.f32 1.442695, %v4185_v60  ;;  %v4245_v44 = vmul.f32 1.442695, %v4186_v5  ;;  %7600 = vmatprep.mubr.msk.bf16.mxu0 %vm13712_vm8, %v4692_v48  ;;  %8740 = vpow2.f32 %v4241_v47  ;;  %vm13718_vm8 = vmmov %vm13717_vm7 }
 0x984   : > { %4432 = vmatmul.mubr.bf16.gmra.mrb[96].mxu1 %v4311_v56  ;;  %7601 = vmatmul.mubr.msk.bf16.gmra.mrb[132].mxu0 %vm13713_vm10, %v4692_v48  ;;  %v12351_v13 = vpop.f32.mrb[124].mxu0  ;;  %v12357_v30 = vpop.eup %8732  ;;  %vm13719_vm10 = vmmov %vm13717_vm7 }
 0x985   : > { %8742 = vpow2.f32 %v4243_v14  ;;  %v4155_v29 = vpop.xlane.xlu1 %4154  ;;  %v12355_v24 = vpop.f32.mrb[125].mxu0 }
 0x986   : > { %8744 = vpow2.f32 %v4245_v44  ;;  %v4187_v51 = vsub.f32 %v12245_v62, %v4155_v29  ;;  %v4188_v9 = vsub.f32 %v12250_v0, %v4155_v29  ;;  %v4696_v52 = vpop.permute.xlu0 %4695  ;;  %v12373_v41 = vpop.f32.mrb[126].mxu0  ;;  %4947 = vmax.xlane.f32.xlu1 %v4946_v35  ;;  %v4949_v62 = vmax.f32 %v12363_v49, %v12369_v10 }
 0x987   : > { %v12375_v61 = vpop.eup %8734  ;;  %v12377_v20 = vpop.f32.mrb[127].mxu0  ;;  %8746 = vpow2.f32 %v4239_v38 }
 0x988   : > { %v12379_v4 = vpop.eup %8736  ;;  %v4247_v2 = vmul.f32 1.442695, %v4187_v51  ;;  %v4249_v36 = vmul.f32 1.442695, %v4188_v9 }
 0x989   : > { %v12381_v26 = vpop.eup %8738  ;;  %v4158_v18 = vpop.xlane.xlu1 %4157  ;;  %v4313_v0 = vpack.c.bf16 %v12379_v4, %v12357_v30 }
 0x98a   : > { %8748 = vpow2.f32 %v4247_v2  ;;  %v4189_v63 = vsub.f32 %v12257_v45, %v4158_v18  ;;  %v4190_v6 = vsub.f32 %v12262_v59, %v4158_v18  ;;  %v4314_v54 = vpack.c.bf16 %v12381_v26, %v12375_v61  ;;  %v4505_v34 = vpop.permute.xlu0 %4504  ;;  %4950 = vmax.xlane.f32.xlu1 %v4949_v62 }
 0x98b   : > { %8750 = vpow2.f32 %v4249_v36  ;;  %8094 = vmatprep.subr.msk.bf16.mxu1 %vm13716_vm11, %v4505_v34  ;;  %v4545_v25 = vsel %vm13717_vm7, %v4505_v34, 0  ;;  %vm13722_vm11 = vmmov %vm13717_vm7 }
 0x98c   : > { %v4251_v47 = vmul.f32 1.442695, %v4189_v63  ;;  %v4253_v60 = vmul.f32 1.442695, %v4190_v6  ;;  %4439 = vmatprep.mubr.bf16.mxu1 %v4314_v54  ;;  %v12393_v5 = vpop.f32.mrb[128].mxu0  ;;  %7943 = vmatpush3.bf16.xpose.msra.mxu1 %v4545_v25 }
 0x98d   : > { %v12395_v53 = vpop.eup %8740  ;;  %4440 = vmatmul.mubr.bf16.gmra.mrb[100].mxu1 %v4313_v0  ;;  %v4694_v45 = vpop.permute.xlu1 %4693 }
 0x98e   : > { %v12397_v59 = vpop.f32.mrb[129].mxu0  ;;  %8752 = vpow2.f32 %v4251_v47  ;;  %7602 = vmatprep.mubr.msk.bf16.mxu0 %vm13718_vm8, %v4694_v45  ;;  %v4507_v56 = vpop.permute.xlu0 %4506  ;;  %vm13723_vm8 = vmmov %vm13717_vm7 }
 0x98f   : > { %v8743_v1 = vpop.eup %8742  ;;  %v12399_v48 = vpop.f32.mrb[130].mxu0  ;;  %8754 = vpow2.f32 %v4253_v60  ;;  %7603 = vmatmul.mubr.msk.bf16.gmra.mrb[136].mxu0 %vm13719_vm10, %v4694_v45  ;;  %8095 = vmatprep.subr.msk.bf16.mxu1 %vm13720_vm12, %v4507_v56  ;;  %v4548_v29 = vsel %vm13722_vm11, %v4507_v56, 0  ;;  %vm13724_vm10 = vmmov %vm13717_vm7  ;;  %v8958_v56 = vld [vmem:[#allocation3 + $0x48] sm:$0xff] }
 0x990   : > { %v8745_v14 = vpop.eup %8744  ;;  %v12402_v44 = vpop.f32.mrb[131].mxu0  ;;  %7604 = vmatprep.mubr.msk.bf16.mxu0 %vm13721_vm15, %v4696_v52  ;;  %vm13725_vm12 = vmmov %vm13717_vm7 }
 0x991   : > { %v4294_v38 = vadd.f32 %v8745_v14, %v8743_v1  ;;  %v4316_v35 = vpack.c.bf16 %v8745_v14, %v12395_v53  ;;  %v8747_v51 = vpop.eup %8746  ;;  %v4511_v47 = vpop.permute.xlu1 %4510  ;;  %vm13726_vm15 = vmmov %vm13717_vm7 }
 0x992   : > { %v4509_v9 = vpop.permute.xlu0 %4508  ;;  %v4315_v2 = vpack.c.bf16 %v8743_v1, %v8747_v51  ;;  %v4554_v60 = vsel %vm13726_vm15, %v4511_v47, 0  ;;  %vm13727_vm11 = vmmov %vm13717_vm7  ;;  %v8957_v1 = vld [vmem:[#allocation3 + $0x40] sm:$0xff] }
 0x993   : > { %4295 = vadd.xlane.f32.xlu1 %v4294_v38  ;;  %4447 = vmatprep.mubr.bf16.mxu1 %v4316_v35  ;;  %v4551_v25 = vsel %vm13724_vm10, %v4509_v9, 0  ;;  %vm13729_vm10 = vmmov %vm13717_vm7  ;;  %v4285_v38 = vadd.f32 %v12375_v61, %v12357_v30  ;;  %v12434_v30 = vsel %vm2163_vm9, %v12313_v39, -1e+30  ;;  %vm13733_vm9 = vcmp.ge.s32.totalorder %v13670_v32, %v10780_v43 }
 0x994   : > { %v8749_v36 = vpop.eup %8748  ;;  %7945 = vmatpush3.bf16.xpose.msra.mxu1 %v4548_v29  ;;  %v8959_v29 = vld [vmem:[#allocation3 + $0x8] sm:$0xff]  ;;  %vm13731_vm15 = vmmov %vm13717_vm7  ;;  %v12450_v39 = vsel %vm13733_vm9, %v12317_v42, -1e+30  ;;  %vm13743_vm9 = vcmp.ge.s32.totalorder %v13681_v46, %v10790_v50 }
 0x995   : > { %v8751_v62 = vpop.eup %8750  ;;  %4448 = vmatmul.mubr.bf16.gmra.mrb[104].mxu1 %v4315_v2  ;;  %8096 = vmatprep.subr.msk.bf16.mxu1 %vm13717_vm7, %v4509_v9  ;;  %v4515_v45 = vpop.permute.xlu1 %4514  ;;  %v4288_v9 = vadd.f32 %v12381_v26, %v12379_v4  ;;  %v8960_v4 = vld [vmem:[#allocation3] sm:$0xff] }
 0x996   : > { %v4297_v18 = vadd.f32 %v8751_v62, %v8749_v36  ;;  %4518 = vrot.lane.b32.xlu0 %v12016_v17, %s9345_s0  ;;  %v4513_v17 = vpop.permute.xlu0 %4512  ;;  %v4560_v14 = vsel %vm13729_vm10, %v4515_v45, 0 }
 0x997   : > { %7605 = vmatmul.mubr.msk.bf16.gmra.mrb[140].mxu0 %vm13723_vm8, %v4696_v52  ;;  %v4557_v52 = vsel %vm13717_vm7, %v4513_v17, 0  ;;  %vm13728_vm8 = vmmov %vm13717_vm7 }
 0x998   : > { %v8753_v0 = vpop.eup %8752  ;;  %4298 = vadd.xlane.f32.xlu1 %v4297_v18  ;;  %v8963_v18 = vld [vmem:[#allocation3 + $0x18] sm:$0xff]  ;;  %vm13735_vm10 = vmmov %vm13728_vm8 }
 0x999   : > { %v8755_v63 = vpop.eup %8754  ;;  %v4317_v6 = vpack.c.bf16 %v8753_v0, %v8749_v36  ;;  %v4517_v35 = vpop.permute.xlu1 %4516  ;;  %v4291_v36 = vadd.f32 %v8747_v51, %v12395_v53  ;;  %v8961_v53 = vld [vmem:[#allocation3 + $0x10] sm:$0xff] }
 0x99a   : > { %v4300_v54 = vadd.f32 %v8755_v63, %v8753_v0  ;;  %v4318_v34 = vpack.c.bf16 %v8755_v63, %v8751_v62  ;;  %v4563_v2 = vsel %vm13731_vm15, %v4517_v35, 0  ;;  %vm13739_vm15 = vmmov %vm13728_vm8 }
 0x99c   : > { %4301 = vadd.xlane.f32.xlu1 %v4300_v54  ;;  %4455 = vmatprep.mubr.bf16.mxu1 %v4318_v34 }
 0x99d   : > { %4456 = vmatmul.mubr.bf16.gmra.mrb[108].mxu1 %v4317_v6 }
 0x99e   : > { %7947 = vmatpush3.bf16.xpose.msra.mxu1 %v4551_v25 }
 0x99f   : > { %8097 = vmatprep.subr.msk.bf16.mxu1 %vm13725_vm12, %v4511_v47  ;;  %vm13730_vm12 = vmmov %vm13717_vm7  ;;  %vm13734_vm7 = vcmp.ge.s32.totalorder %v13670_v32, %v10790_v50 }
 0x9a6   : > { %7949 = vmatpush3.bf16.xpose.msra.mxu1 %v4554_v60  ;;  %v12479_v60 = vsel %vm2169_vm0, %v12330_v15, -1e+30  ;;  %vm13736_vm0 = vcmp.ge.s32.totalorder %v13674_v58, %v10780_v43 }
 0x9a7   : > { %8098 = vmatprep.subr.msk.bf16.mxu1 %vm13727_vm11, %v4513_v17  ;;  %vm13732_vm11 = vcmp.ge.s32.totalorder %v13667_v28, %v10790_v50  ;;  %v12456_v28 = vsel %vm13734_vm7, %v12319_v16, -1e+30  ;;  %v8964_v16 = vld [vmem:[#allocation3 + $0x50] sm:$0xff]  ;;  %v12485_v17 = vsel %vm2170_vm13, %v12332_v19, -1e+30  ;;  %vm13737_vm13 = vcmp.ge.s32.totalorder %v13674_v58, %v10790_v50 }
 0x9a8   : > { %v12440_v61 = vsel %vm13732_vm11, %v12315_v21, -1e+30  ;;  %v8962_v21 = vld [vmem:[#allocation3 + $0x58] sm:$0xff]  ;;  %v4955_v51 = vmax.f32 %v12450_v39, %v12456_v28  ;;  %vm13742_vm11 = vcmp.ge.s32.totalorder %v13681_v46, %v10780_v43 }
 0x9a9   : > { %v4952_v26 = vmax.f32 %v12434_v30, %v12440_v61 }
 0x9ad   : > { %5170 = vrot.lane.b32.xlu1 %v8957_v1, %s9346_s27  ;;  %v4961_v1 = vmax.f32 %v12479_v60, %v12485_v17 }
 0x9ae   : > { %7951 = vmatpush3.bf16.xpose.msra.mxu1 %v4557_v52 }
 0x9af   : > { %8099 = vmatprep.subr.msk.bf16.mxu1 %vm13728_vm8, %v4515_v45 }
 0x9b1   : > { %5172 = vrot.lane.b32.xlu1 %v8958_v56, %s9346_s27 }
 0x9b5   : > { %5156 = vrot.lane.b32.xlu1 %v8959_v29, %s9346_s27  ;;  %4286 = vadd.xlane.f32.xlu0 %v4285_v38 }
 0x9b6   : > { %7953 = vmatpush3.bf16.xpose.msra.mxu1 %v4560_v14 }
 0x9b7   : > { %8100 = vmatprep.subr.msk.bf16.mxu1 %vm13730_vm12, %v4517_v35  ;;  %vm13738_vm12 = vmmov %vm13728_vm8 }
 0x9b9   : > { %4289 = vadd.xlane.f32.xlu0 %v4288_v9 }
 0x9bd   : > { %4292 = vadd.xlane.f32.xlu0 %v4291_v36 }
 0x9be   : > { %7955 = vmatpush3.bf16.xpose.msra.mxu1 %v4563_v2 }
 0x9d3   : > { %5154 = vrot.lane.b32.xlu0 %v8960_v4, %s9346_s27 }
 0x9d9   : > { %4953 = vmax.xlane.f32.xlu1 %v4952_v26 }
 0x9ea   : > { %5158 = vrot.lane.b32.xlu1 %v8961_v53, %s9346_s27 }
 0x9ed   : > { %v4257_v34 = vpop.xlane.xlu1 %4256 }
 0x9ee   : > { %5176 = vrot.lane.b32.xlu1 %v8962_v21, %s9346_s27 }
 0x9f0   : > { %v4260_v62 = vpop.xlane.xlu0 %4259 }
 0x9f2   : > { %5160 = vrot.lane.b32.xlu1 %v8963_v18, %s9346_s27  ;;  %4956 = vmax.xlane.f32.xlu0 %v4955_v51  ;;  %v8971_v18 = vld [vmem:[#allocation3 + $0x70] sm:$0xff] }
 0x9f5   : > { %v4263_v0 = vpop.xlane.xlu0 %4262 }
 0x9f9   : > { %v4266_v42 = vpop.xlane.xlu0 %4265 }
 0x9fd   : > { %v12462_v63 = vpop.xlane.xlu0 %4268 }
 0xa01   : > { %v12464_v6 = vpop.xlane.xlu0 %4271 }
 0xa05   : > { %v12466_v32 = vpop.xlane.xlu0 %4274 }
 0xa08   : > { %5174 = vrot.lane.b32.xlu0 %v8964_v16, %s9346_s27 }
 0xa09   : > { %v12469_v54 = vpop.xlane.xlu0 %4277 }
 0xa0d   : > { %v12471_v25 = vpop.xlane.xlu0 %4280 }
 0xa0f   : > { %v12473_v47 = vpop.xlane.xlu1 %4283 }
 0xa11   : > { %v4519_v52 = vpop.permute.xlu0 %4518 }
 0xa12   : > { %8101 = vmatprep.subr.msk.bf16.mxu1 %vm13728_vm8, %v4519_v52  ;;  %v4566_v45 = vsel %vm13735_vm10, %v4519_v52, 0  ;;  %v8966_v52 = vld [vmem:[#allocation3 + $0x28] sm:$0xff] }
 0xa13   : > { %v4948_v56 = vpop.xlane.xlu1 %4947  ;;  %7957 = vmatpush3.bf16.xpose.msra.mxu1 %v4566_v45 }
 0xa14   : > { %v4994_v14 = vsub.f32 %v12341_v57, %v4948_v56  ;;  %v4995_v15 = vsub.f32 %v12347_v11, %v4948_v56  ;;  %v12503_v57 = vsel %vm13736_vm0, %v12325_v55, -1e+30  ;;  %v12509_v11 = vsel %vm13737_vm13, %v12327_v40, -1e+30  ;;  %v8965_v55 = vld [vmem:[#allocation3 + $0x20] sm:$0xff] }
 0xa15   : > { %v4958_v53 = vmax.f32 %v12503_v57, %v12509_v11  ;;  %vm13751_vm13 = vcmp.ge.s32.totalorder %v10861_v33, %v10780_v43 }
 0xa16   : > { %4962 = vmax.xlane.f32.xlu1 %v4961_v1  ;;  %v5026_v38 = vmul.f32 1.442695, %v4994_v14  ;;  %v5028_v35 = vmul.f32 1.442695, %v4995_v15 }
 0xa17   : > { %v4951_v31 = vpop.xlane.xlu1 %4950 }
 0xa18   : > { %8756 = vpow2.f32 %v5026_v38  ;;  %v4996_v19 = vsub.f32 %v12363_v49, %v4951_v31  ;;  %v4997_v29 = vsub.f32 %v12369_v10, %v4951_v31 }
 0xa19   : > { %8758 = vpow2.f32 %v5028_v35 }
 0xa1a   : > { %v5030_v9 = vmul.f32 1.442695, %v4996_v19  ;;  %v5032_v2 = vmul.f32 1.442695, %v4997_v29 }
 0xa1c   : > { %8760 = vpow2.f32 %v5030_v9 }
 0xa1d   : > { %8762 = vpow2.f32 %v5032_v2  ;;  %v8967_v2 = vld [vmem:[#allocation3 + $0x60] sm:$0xff] }
 0xa1e   : > { %8764 = vrcp.f32 %v4257_v34 }
 0xa1f   : > { %8766 = vrcp.f32 %v4260_v62 }
 0xa20   : > { %v12495_v36 = vpop.xlane.xlu1 %4295  ;;  %8768 = vrcp.f32 %v4263_v0 }
 0xa21   : > { %8770 = vrcp.f32 %v4266_v42  ;;  %v8968_v42 = vld [vmem:[#allocation3 + $0x68] sm:$0xff] }
 0xa22   : > { %v12497_v4 = vpop.eup %8756  ;;  %8772 = vrcp.f32 %v12462_v63 }
 0xa23   : > { %v12511_v49 = vpop.eup %8758  ;;  %8774 = vrcp.f32 %v12464_v6  ;;  %v12548_v6 = vsel %vm2173_vm6, %v12373_v41, -1e+30  ;;  %vm13740_vm6 = vmmov %vm13728_vm8 }
 0xa24   : > { %v12517_v26 = vadd.f32 %v12511_v49, %v12497_v4  ;;  %8776 = vrcp.f32 %v12466_v32  ;;  %vm13744_vm7 = vmmov %vm13740_vm6 }
 0xa25   : > { %v12513_v10 = vpop.xlane.xlu1 %4298  ;;  %8778 = vrcp.f32 %v12469_v54  ;;  %vm13745_vm8 = vmmov %vm13740_vm6 }
 0xa26   : > { %v12521_v21 = vpop.eup %8760  ;;  %8780 = vrcp.f32 %v12471_v25  ;;  %vm13746_vm10 = vmmov %vm13740_vm6 }
 0xa27   : > { %5162 = vrot.lane.b32.xlu1 %v8965_v55, %s9346_s27  ;;  %v12524_v51 = vpop.eup %8762  ;;  %4959 = vmax.xlane.f32.xlu0 %v4958_v53  ;;  %8782 = vrcp.f32 %v12473_v47  ;;  %vm13747_vm0 = vmmov %vm13740_vm6 }
 0xa28   : > { %v12534_v16 = vadd.f32 %v12524_v51, %v12521_v21  ;;  %v8765_v35 = vpop.eup %8764 }
 0xa29   : > { %v12528_v40 = vpop.xlane.xlu1 %4301  ;;  %v8767_v19 = vpop.eup %8766 }
 0xa2b   : > { %5164 = vrot.lane.b32.xlu1 %v8966_v52, %s9346_s27 }
 0xa2d   : > { %v5171_v45 = vpop.permute.xlu1 %5170 }
 0xa2e   : > { %7606 = vmatprep.subr.bf16.mxu1 %v5171_v45  ;;  %v8769_v45 = vpop.eup %8768 }
 0xa37   : > { %v7510_v1 = vpop.f32.mrb[80].mxu1 }
 0xa38   : > { %v7511_v56 = vpop.f32.mrb[81].mxu1 }
 0xa39   : > { %v7512_v14 = vadd.f32 %v7511_v56, %v7510_v1  ;;  %v7513_v15 = vpop.f32.mrb[82].mxu1 }
 0xa3a   : > { %v7514_v38 = vpop.f32.mrb[83].mxu1 }
 0xa3b   : > { %v7515_v31 = vadd.f32 %v7514_v38, %v7513_v15  ;;  %v4480_v29 = vmul.f32 %v8765_v35, %v7512_v14  ;;  %v8771_v14 = vpop.eup %8770 }
 0xa3c   : > { %v8773_v32 = vpop.eup %8772 }
 0xa3d   : > { %v4481_v9 = vmul.f32 %v8767_v19, %v7515_v31  ;;  %5178 = vrot.lane.b32.xlu0 %v8967_v2, %s9346_s27  ;;  %v12554_v2 = vsel %vm2174_vm14, %v12377_v20, -1e+30  ;;  %vm13741_vm14 = vmmov %vm13740_vm6 }
 0xa3f   : > { %v4496_v53 = vpack.c.bf16 %v4481_v9, %v4480_v29  ;;  %v7516_v55 = vpop.f32.mrb[84].mxu1 }
 0xa40   : > { %v7517_v52 = vpop.f32.mrb[85].mxu1 }
 0xa41   : > { %v7518_v62 = vadd.f32 %v7517_v52, %v7516_v55  ;;  %v7519_v34 = vpop.f32.mrb[86].mxu1  ;;  %7958 = vmatprep.mubr.msk.bf16.mxu1 %vm13738_vm12, %v4496_v53  ;;  %5180 = vrot.lane.b32.xlu0 %v8968_v42, %s9346_s27  ;;  %vm13752_vm12 = vcmp.ge.s32.totalorder %v10861_v33, %v10790_v50 }
 0xa42   : > { %v7520_v0 = vpop.f32.mrb[87].mxu1  ;;  %v4287_v56 = vpop.xlane.xlu0 %4286 }
 0xa43   : > { %v7521_v1 = vadd.f32 %v7520_v0, %v7519_v34  ;;  %v4482_v15 = vmul.f32 %v8769_v45, %v7518_v62  ;;  %v8775_v62 = vpop.eup %8774  ;;  %v4967_v34 = vmax.f32 %v12548_v6, %v12554_v2  ;;  %v5173_v0 = vpop.permute.xlu1 %5172  ;;  %8784 = vrcp.f32 %v4287_v56 }
 0xa45   : > { %v4483_v38 = vmul.f32 %v8771_v14, %v7521_v1 }
 0xa46   : > { %v4290_v19 = vpop.xlane.xlu0 %4289 }
 0xa47   : > { %v4497_v35 = vpack.c.bf16 %v4483_v38, %v4482_v15  ;;  %v7522_v31 = vpop.f32.mrb[88].mxu1  ;;  %v8777_v38 = vpop.eup %8776  ;;  %8786 = vrcp.f32 %v4290_v19 }
 0xa48   : > { %v7523_v63 = vpop.f32.mrb[89].mxu1  ;;  %8788 = vrcp.f32 %v12495_v36 }
 0xa49   : > { %v7524_v29 = vadd.f32 %v7523_v63, %v7522_v31  ;;  %v7525_v9 = vpop.f32.mrb[90].mxu1  ;;  %7959 = vmatmul.mubr.msk.bf16.vlgmr.msra.gmra.mrb[64].mxu1 %vm13739_vm15, %v4497_v35  ;;  %v5157_v35 = vpop.permute.xlu1 %5156  ;;  %vm13756_vm15 = vcmp.ge.s32.totalorder %v10831_v7, %v10780_v43 }
 0xa4a   : > { %v7526_v53 = vpop.f32.mrb[91].mxu1  ;;  %v4293_v52 = vpop.xlane.xlu0 %4292 }
 0xa4b   : > { %v7527_v55 = vadd.f32 %v7526_v53, %v7525_v9  ;;  %v4484_v42 = vmul.f32 %v8773_v32, %v7524_v29  ;;  %v8779_v63 = vpop.eup %8778  ;;  %8790 = vrcp.f32 %v4293_v52 }
 0xa4c   : > { %8792 = vrcp.f32 %v12513_v10 }
 0xa4d   : > { %v4485_v41 = vmul.f32 %v8775_v62, %v7527_v55  ;;  %8794 = vrcp.f32 %v12528_v40 }
 0xa4e   : > { %v5155_v14 = vpop.permute.xlu0 %5154 }
 0xa4f   : > { %v4498_v45 = vpack.c.bf16 %v4485_v41, %v4484_v42  ;;  %v7528_v1 = vpop.f32.mrb[92].mxu1  ;;  %4968 = vmax.xlane.f32.xlu1 %v4967_v34  ;;  %7607 = vmatpush3.bf16.msra.mxu1 %v5155_v14 }
 0xa50   : > { %v7529_v23 = vpop.f32.mrb[93].mxu1  ;;  %7608 = vmatprep.subr.bf16.mxu1 %v5173_v0 }
 0xa51   : > { %v7530_v20 = vadd.f32 %v7529_v23, %v7528_v1  ;;  %v7531_v54 = vpop.f32.mrb[94].mxu1  ;;  %7962 = vmatprep.mubr.msk.bf16.mxu1 %vm13740_vm6, %v4498_v45  ;;  %v8781_v45 = vpop.eup %8780  ;;  %v12575_v23 = vsel %vm13742_vm11, %v12351_v13, -1e+30  ;;  %vm13757_vm6 = vcmp.ge.s32.totalorder %v10831_v7, %v10790_v50  ;;  %vm13759_vm11 = vcmp.ge.s32.totalorder %v13702_v37, %v10790_v50 }
 0xa52   : > { %v7532_v15 = vpop.f32.mrb[95].mxu1  ;;  %v8783_v14 = vpop.eup %8782 }
 0xa53   : > { %v7533_v31 = vadd.f32 %v7532_v15, %v7531_v54  ;;  %7609 = vmatpush3.bf16.msra.mxu1 %v5157_v35  ;;  %v4486_v29 = vmul.f32 %v8777_v38, %v7530_v20  ;;  %v12581_v20 = vsel %vm13743_vm9, %v12355_v24, -1e+30  ;;  %v8969_v35 = vld [vmem:[#allocation3 + $0x30] sm:$0xff]  ;;  %vm13761_vm9 = vmmov %vm13747_vm0 }
 0xa54   : > { %v4964_v15 = vmax.f32 %v12575_v23, %v12581_v20 }
 0xa55   : > { %v4487_v9 = vmul.f32 %v8779_v63, %v7533_v31 }
 0xa57   : > { %v4499_v53 = vpack.c.bf16 %v4487_v9, %v4486_v29  ;;  %v7534_v32 = vpop.f32.mrb[96].mxu1  ;;  %v12562_v55 = vpop.f32.mrb[132].mxu0 }
 0xa58   : > { %v7535_v25 = vpop.f32.mrb[97].mxu1  ;;  %v12564_v62 = vpop.f32.mrb[133].mxu0 }
 0xa59   : > { %v7536_v34 = vadd.f32 %v7535_v25, %v7534_v32  ;;  %v7537_v42 = vpop.f32.mrb[98].mxu1  ;;  %7963 = vmatmul.mubr.msk.bf16.gmra.mrb[68].mxu1 %vm13741_vm14, %v4499_v53  ;;  %v12567_v47 = vpop.f32.mrb[134].mxu0  ;;  %v8970_v32 = vld [vmem:[#allocation3 + $0x38] sm:$0xff]  ;;  %vm13758_vm14 = vcmp.ge.s32.totalorder %v13702_v37, %v10780_v43 }
 0xa5a   : > { %v7538_v0 = vpop.f32.mrb[99].mxu1  ;;  %v12569_v41 = vpop.f32.mrb[135].mxu0 }
 0xa5b   : > { %v7539_v1 = vadd.f32 %v7538_v0, %v7537_v42  ;;  %v4488_v56 = vmul.f32 %v8781_v45, %v7536_v34  ;;  %v8785_v9 = vpop.eup %8784 }
 0xa5c   : > { %v8787_v34 = vpop.eup %8786 }
 0xa5d   : > { %v4489_v54 = vmul.f32 %v8783_v14, %v7539_v1 }
 0xa5f   : > { %v4500_v19 = vpack.c.bf16 %v4489_v54, %v4488_v56 }
 0xa60   : > { %v7540_v38 = vpop.f32.mrb[100].mxu1  ;;  %5166 = vrot.lane.b32.xlu1 %v8969_v35, %s9346_s27  ;;  %4965 = vmax.xlane.f32.xlu0 %v4964_v15 }
 0xa61   : > { %7966 = vmatprep.mubr.msk.bf16.mxu1 %vm13744_vm7, %v4500_v19  ;;  %v7541_v13 = vpop.f32.mrb[101].mxu1  ;;  %vm13762_vm7 = vmmov %vm13747_vm0 }
 0xa62   : > { %v7542_v31 = vadd.f32 %v7541_v13, %v7540_v38  ;;  %v7543_v46 = vpop.f32.mrb[102].mxu1  ;;  %v12588_v24 = vpop.f32.mrb[136].mxu0 }
 0xa63   : > { %v7544_v63 = vpop.f32.mrb[103].mxu1  ;;  %v12590_v29 = vpop.f32.mrb[137].mxu0 }
 0xa64   : > { %v7545_v53 = vadd.f32 %v7544_v63, %v7543_v46  ;;  %5168 = vrot.lane.b32.xlu1 %v8970_v32, %s9346_s27  ;;  %v12593_v25 = vpop.f32.mrb[138].mxu0  ;;  %v4490_v0 = vmul.f32 %v8785_v9, %v7542_v31  ;;  %v8789_v38 = vpop.eup %8788 }
 0xa65   : > { %v12595_v42 = vpop.f32.mrb[139].mxu0  ;;  %v8791_v31 = vpop.eup %8790 }
 0xa66   : > { %v4491_v36 = vmul.f32 %v8787_v34, %v7545_v53 }
 0xa68   : > { %v4501_v45 = vpack.c.bf16 %v4491_v36, %v4490_v0  ;;  %v7546_v1 = vpop.f32.mrb[104].mxu1  ;;  %v8793_v36 = vpop.eup %8792 }
 0xa69   : > { %v7547_v52 = vpop.f32.mrb[105].mxu1 }
 0xa6a   : > { %v7548_v14 = vadd.f32 %v7547_v52, %v7546_v1  ;;  %v7549_v56 = vpop.f32.mrb[106].mxu1  ;;  %7967 = vmatmul.mubr.msk.bf16.gmra.mrb[72].mxu1 %vm13745_vm8, %v4501_v45  ;;  %v12599_v54 = vpop.f32.mrb[140].mxu0  ;;  %vm13763_vm8 = vmmov %vm13747_vm0 }
 0xa6b   : > { %v7550_v15 = vpop.f32.mrb[107].mxu1  ;;  %v12602_v19 = vpop.f32.mrb[141].mxu0 }
 0xa6c   : > { %v7551_v35 = vadd.f32 %v7550_v15, %v7549_v56  ;;  %v4909_v13 = vpop.f32.mrb[142].mxu0  ;;  %v4492_v63 = vmul.f32 %v8791_v31, %v7548_v14  ;;  %v8795_v52 = vpop.eup %8794  ;;  %v12734_v7 = vsel %vm13759_vm11, %v12602_v19, -1e+30  ;;  %v8976_v19 = vld [vmem:[#allocation12] sm:$0xff]   ;;  %vm13775_vm11 = vmmov %vm13747_vm0 }
 0xa6d   : > { %v4911_v46 = vpop.f32.mrb[143].mxu0  ;;  %v4954_v56 = vpop.xlane.xlu1 %4953 }
 0xa6e   : > { %v4493_v9 = vmul.f32 %v8789_v38, %v7551_v35  ;;  %v4998_v14 = vsub.f32 %v12434_v30, %v4954_v56  ;;  %v8972_v38 = vld [vmem:[#allocation3 + $0x78] sm:$0xff]  ;;  %v13748_v35 = vpack.c.bf16 %v12524_v51, %v12511_v49  ;;  %v4999_v31 = vsub.f32 %v12440_v61, %v4954_v56 }
 0xa6f   : > { %v12619_v30 = vsel %vm2177_vm3, %v12399_v48, -1e+30  ;;  %v12625_v49 = vsel %vm2178_vm4, %v12402_v44, -1e+30  ;;  %vm13749_vm3 = vcmp.ge.s32.totalorder %v10841_v27, %v10780_v43  ;;  %vm13750_vm4 = vcmp.ge.s32.totalorder %v10841_v27, %v10790_v50 }
 0xa70   : > { %v4502_v10 = vpack.c.bf16 %v4493_v9, %v4492_v63  ;;  %v7552_v53 = vpop.f32.mrb[108].mxu1  ;;  %v5034_v9 = vmul.f32 1.442695, %v4998_v14  ;;  %v12633_v12 = vsel %vm13749_vm3, %v12593_v25, -1e+30  ;;  %v8975_v14 = vld [vmem:[#allocation12 + $0x18] sm:$0xff]   ;;  %vm13765_vm3 = vmmov %vm13747_vm0 }
 0xa71   : > { %v7553_v32 = vpop.f32.mrb[109].mxu1  ;;  %v5159_v63 = vpop.permute.xlu1 %5158  ;;  %v12639_v48 = vsel %vm13750_vm4, %v12595_v42, -1e+30  ;;  %v12651_v25 = vsel %vm13752_vm12, %v4911_v46, -1e+30  ;;  %vm13766_vm4 = vmmov %vm13747_vm0 }
 0xa72   : > { %v7554_v34 = vadd.f32 %v7553_v32, %v7552_v53  ;;  %v7555_v0 = vpop.f32.mrb[110].mxu1  ;;  %7970 = vmatprep.mubr.msk.bf16.mxu1 %vm13746_vm10, %v4502_v10  ;;  %v5036_v10 = vmul.f32 1.442695, %v4999_v31  ;;  %8796 = vpow2.f32 %v5034_v9  ;;  %v12671_v46 = vsel %vm2175_vm1, %v12393_v5, -1e+30  ;;  %v8977_v31 = vld [vmem:[#allocation12 + $0x20] sm:$0xff]   ;;  %vm13764_vm10 = vmmov %vm13747_vm0 }
 0xa73   : > { %v7556_v45 = vpop.f32.mrb[111].mxu1  ;;  %v12685_v56 = vsel %vm2179_vm5, %v12562_v55, -1e+30  ;;  %vm13753_vm1 = vcmp.ge.s32.totalorder %v13693_v22, %v10790_v50  ;;  %vm13755_vm5 = vcmp.ge.s32.totalorder %v13695_v3, %v10790_v50  ;;  %vm13768_vm12 = vmmov %vm13747_vm0 }
 0xa74   : > { %v4494_v40 = vmul.f32 %v8793_v36, %v7554_v34  ;;  %v7557_v1 = vadd.f32 %v7556_v45, %v7555_v0  ;;  %8798 = vpow2.f32 %v5036_v10  ;;  %v4985_v34 = vmax.f32 %v12633_v12, %v12639_v48 }
 0xa75   : > { %v5177_v61 = vpop.permute.xlu1 %5176  ;;  %v12646_v0 = vsel %vm13751_vm13, %v4909_v13, -1e+30  ;;  %v12691_v5 = vsel %vm13753_vm1, %v12564_v62, -1e+30  ;;  %v12705_v55 = vsel %vm13755_vm5, %v12569_v41, -1e+30  ;;  %vm13767_vm13 = vmmov %vm13747_vm0 }
 0xa76   : > { %v4495_v58 = vmul.f32 %v8795_v52, %v7557_v1  ;;  %5182 = vrot.lane.b32.xlu0 %v8971_v18, %s9346_s27  ;;  %v4991_v36 = vmax.f32 %v12646_v0, %v12651_v25  ;;  %v12677_v1 = vsel %vm2176_vm2, %v12397_v59, -1e+30  ;;  %v4976_v8 = vmax.f32 %v12685_v56, %v12691_v5  ;;  %vm13769_vm1 = vmmov %vm13747_vm0 }
 0xa77   : > { %v4970_v52 = vmax.f32 %v12671_v46, %v12677_v1  ;;  %vm13754_vm2 = vcmp.ge.s32.totalorder %v13695_v3, %v10780_v43  ;;  %v12713_v62 = vsel %vm13756_vm15, %v12588_v24, -1e+30  ;;  %v12728_v41 = vsel %vm13758_vm14, %v12599_v54, -1e+30  ;;  %v8974_v24 = vld [vmem:[#allocation12 + $0x10] sm:$0xff]   ;;  %vm13771_vm5 = vmmov %vm13747_vm0 }
 0xa78   : > { %v4503_v15 = vpack.c.bf16 %v4495_v58, %v4494_v40  ;;  %v12699_v59 = vsel %vm13754_vm2, %v12567_v47, -1e+30  ;;  %v12719_v47 = vsel %vm13757_vm6, %v12590_v29, -1e+30  ;;  %v4988_v29 = vmax.f32 %v12728_v41, %v12734_v7  ;;  %vm13770_vm2 = vmmov %vm13747_vm0 }
 0xa79   : > { %v5161_v44 = vpop.permute.xlu1 %5160  ;;  %v4979_v22 = vmax.f32 %v12699_v59, %v12705_v55  ;;  %v4982_v3 = vmax.f32 %v12713_v62, %v12719_v47  ;;  %vm13772_vm15 = vmmov %vm13747_vm0 }
 0xa7a   : > { %7971 = vmatmul.mubr.msk.bf16.gmra.mrb[76].mxu1 %vm13747_vm0, %v4503_v15  ;;  %5184 = vrot.lane.b32.xlu0 %v8972_v38, %s9346_s27  ;;  %v8973_v15 = vld [vmem:[#allocation12 + $0x8] sm:$0xff]   ;;  %vm13773_vm6 = vmmov %vm13747_vm0 }
 0xa7b   : > { %5234 = vmatprep.mubr.bf16.mxu1 %v13748_v35  ;;  %vm13774_vm14 = vmmov %vm13747_vm0 }
 0xa7c   : > { %v12653_v27 = vpop.eup %8796 }
 0xa7e   : > { %v12655_v42 = vpop.eup %8798 }
 0xa7f   : > { %v4957_v53 = vpop.xlane.xlu0 %4956  ;;  %v5096_v9 = vadd.f32 %v12655_v42, %v12653_v27 }
 0xa80   : > { %v5000_v18 = vsub.f32 %v12450_v39, %v4957_v53  ;;  %v5001_v58 = vsub.f32 %v12456_v28, %v4957_v53  ;;  %v4973_v28 = vmax.f32 %v12619_v30, %v12625_v49 }
 0xa82   : > { %v5038_v51 = vmul.f32 1.442695, %v5000_v18  ;;  %v5040_v32 = vmul.f32 1.442695, %v5001_v58 }
 0xa83   : > { %v5175_v39 = vpop.permute.xlu0 %5174 }
 0xa84   : > { %8800 = vpow2.f32 %v5038_v51  ;;  %7610 = vmatprep.subr.bf16.mxu1 %v5175_v39 }
 0xa85   : > { %8802 = vpow2.f32 %v5040_v32  ;;  %7611 = vmatpush3.bf16.msra.mxu1 %v5159_v63  ;;  %v8978_v63 = vld [vmem:[#allocation12 + $0x28] sm:$0xff]  }
 0xa86   : > { %7612 = vmatprep.subr.bf16.mxu1 %v5177_v61 }
 0xa88   : > { %4974 = vmax.xlane.f32.xlu1 %v4973_v28 }
 0xa89   : > { %7613 = vmatpush3.bf16.msra.mxu1 %v5161_v44 }
 0xa8c   : > { %4986 = vmax.xlane.f32.xlu1 %v4985_v34 }
 0xa8e   : > { %v12659_v45 = vpop.eup %8800 }
 0xa8f   : > { %v12661_v40 = vpop.eup %8802  ;;  %v5140_v13 = vpack.c.bf16 %v12659_v45, %v12653_v27 }
 0xa90   : > { %4992 = vmax.xlane.f32.xlu1 %v4991_v36  ;;  %v5141_v33 = vpack.c.bf16 %v12661_v40, %v12655_v42  ;;  %v5099_v10 = vadd.f32 %v12661_v40, %v12659_v45 }
 0xa99   : > { %4971 = vmax.xlane.f32.xlu0 %v4970_v52 }
 0xa9d   : > { %4977 = vmax.xlane.f32.xlu0 %v4976_v8 }
 0xaa1   : > { %5341 = vrot.lane.b32.xlu1 %v8973_v15, %s9346_s27  ;;  %4980 = vmax.xlane.f32.xlu0 %v4979_v22  ;;  %v13760_v22 = vpack.c.bf16 %v12521_v21, %v12497_v4 }
 0xaa3   : > { %v4963_v43 = vpop.xlane.xlu1 %4962 }
 0xaa4   : > { %v5005_v58 = vsub.f32 %v12485_v17, %v4963_v43  ;;  %v5004_v17 = vsub.f32 %v12479_v60, %v4963_v43  ;;  %v8979_v43 = vld [vmem:[#allocation12 + $0x30] sm:$0xff]  }
 0xaa5   : > { %5343 = vrot.lane.b32.xlu1 %v8974_v24, %s9346_s27  ;;  %4983 = vmax.xlane.f32.xlu0 %v4982_v3 }
 0xaa6   : > { %v5048_v28 = vmul.f32 1.442695, %v5005_v58 }
 0xaa7   : > { %v5163_v38 = vpop.permute.xlu1 %5162 }
 0xaa9   : > { %5345 = vrot.lane.b32.xlu1 %v8975_v14, %s9346_s27  ;;  %4989 = vmax.xlane.f32.xlu0 %v4988_v29 }
 0xaab   : > { %v5165_v37 = vpop.permute.xlu1 %5164 }
 0xab4   : > { %v4960_v54 = vpop.xlane.xlu0 %4959 }
 0xab5   : > { %v5002_v53 = vsub.f32 %v12503_v57, %v4960_v54  ;;  %v5003_v18 = vsub.f32 %v12509_v11, %v4960_v54 }
 0xab7   : > { %v5042_v61 = vmul.f32 1.442695, %v5002_v53  ;;  %v5044_v32 = vmul.f32 1.442695, %v5003_v18 }
 0xab8   : > { %v5179_v35 = vpop.permute.xlu0 %5178 }
 0xab9   : > { %7614 = vmatprep.subr.bf16.mxu1 %v5179_v35  ;;  %8804 = vpow2.f32 %v5042_v61 }
 0xaba   : > { %7615 = vmatpush3.bf16.msra.mxu1 %v5163_v38  ;;  %8806 = vpow2.f32 %v5044_v32 }
 0xabb   : > { %8808 = vpow2.f32 %v5048_v28 }
 0xabc   : > { %v5181_v50 = vpop.permute.xlu0 %5180 }
 0xabd   : > { %7616 = vmatprep.subr.bf16.mxu1 %v5181_v50  ;;  %v8980_v50 = vld [vmem:[#allocation12 + $0x38] sm:$0xff]  }
 0xabe   : > { %7617 = vmatpush3.bf16.msra.mxu1 %v5165_v37 }
 0xabf   : > { %5339 = vrot.lane.b32.xlu0 %v8976_v19, %s9346_s27 }
 0xac3   : > { %5347 = vrot.lane.b32.xlu0 %v8977_v31, %s9346_s27  ;;  %v8805_v15 = vpop.eup %8804 }
 0xac4   : > { %v8807_v60 = vpop.eup %8806 }
 0xac5   : > { %v5102_v29 = vadd.f32 %v8807_v60, %v8805_v15 }
 0xacd   : > { %5091 = vadd.xlane.f32.xlu1 %v12517_v26 }
 0xadc   : > { %v4969_v26 = vpop.xlane.xlu1 %4968 }
 0xadd   : > { %v5009_v52 = vsub.f32 %v12554_v2, %v4969_v26  ;;  %v5008_v3 = vsub.f32 %v12548_v6, %v4969_v26  ;;  %v8809_v2 = vpop.eup %8808 }
 0xade   : > { %5349 = vrot.lane.b32.xlu1 %v8978_v63, %s9346_s27  ;;  %v5143_v4 = vpack.c.bf16 %v8809_v2, %v8807_v60 }
 0xadf   : > { %v5054_v54 = vmul.f32 1.442695, %v5008_v3 }
 0xae0   : > { %v5167_v44 = vpop.permute.xlu1 %5166 }
 0xae2   : > { %5094 = vadd.xlane.f32.xlu0 %v12534_v16 }
 0xae4   : > { %v5169_v8 = vpop.permute.xlu1 %5168 }
 0xae6   : > { %5097 = vadd.xlane.f32.xlu0 %v5096_v9 }
 0xaea   : > { %5100 = vadd.xlane.f32.xlu0 %v5099_v10 }
 0xaed   : > { %v4966_v51 = vpop.xlane.xlu0 %4965 }
 0xaee   : > { %v5006_v16 = vsub.f32 %v12575_v23, %v4966_v51  ;;  %v5007_v39 = vsub.f32 %v12581_v20, %v4966_v51  ;;  %v5046_v23 = vmul.f32 1.442695, %v5004_v17  ;;  %v5056_v20 = vmul.f32 1.442695, %v5009_v52 }
 0xaf0   : > { %v5050_v34 = vmul.f32 1.442695, %v5006_v16  ;;  %v5052_v57 = vmul.f32 1.442695, %v5007_v39 }
 0xaf1   : > { %v5183_v36 = vpop.permute.xlu0 %5182 }
 0xaf2   : > { %7618 = vmatprep.subr.bf16.mxu1 %v5183_v36  ;;  %8810 = vpow2.f32 %v5050_v34 }
 0xaf3   : > { %7619 = vmatpush3.bf16.msra.mxu1 %v5167_v44  ;;  %8812 = vpow2.f32 %v5052_v57 }
 0xaf4   : > { %8814 = vpow2.f32 %v5046_v23 }
 0xaf5   : > { %v5185_v11 = vpop.permute.xlu0 %5184  ;;  %8816 = vpow2.f32 %v5056_v20 }
 0xaf6   : > { %7620 = vmatprep.subr.bf16.mxu1 %v5185_v11  ;;  %8818 = vpow2.f32 %v5054_v54 }
 0xaf7   : > { %7621 = vmatpush3.bf16.msra.mxu1 %v5169_v8 }
 0xafa   : > { %5235 = vmatmul.mubr.bf16.vlgmr.msra.gmra.mrb[112].mxu1 %v13760_v22 }
 0xafb   : > { %5242 = vmatprep.mubr.bf16.mxu1 %v5141_v33 }
 0xafc   : > { %v8811_v24 = vpop.eup %8810 }
 0xafd   : > { %v8813_v14 = vpop.eup %8812 }
 0xafe   : > { %v5108_v21 = vadd.f32 %v8813_v14, %v8811_v24  ;;  %v8815_v6 = vpop.eup %8814 }
 0xaff   : > { %v8817_v42 = vpop.eup %8816  ;;  %v5142_v40 = vpack.c.bf16 %v8815_v6, %v8805_v15  ;;  %v5105_v37 = vadd.f32 %v8815_v6, %v8809_v2 }
 0xb00   : > { %5351 = vrot.lane.b32.xlu0 %v8979_v43, %s9346_s27  ;;  %v5145_v33 = vpack.c.bf16 %v8817_v42, %v8813_v14  ;;  %v8819_v38 = vpop.eup %8818 }
 0xb01   : > { %v5144_v35 = vpack.c.bf16 %v8819_v38, %v8811_v24  ;;  %v5111_v45 = vadd.f32 %v8819_v38, %v8817_v42 }
 0xb02   : > { %5103 = vadd.xlane.f32.xlu1 %v5102_v29  ;;  %5243 = vmatmul.mubr.bf16.gmra.mrb[116].mxu1 %v5140_v13 }
 0xb03   : > { %5250 = vmatprep.mubr.bf16.mxu1 %v5143_v4 }
 0xb06   : > { %5109 = vadd.xlane.f32.xlu1 %v5108_v21 }
 0xb0a   : > { %5251 = vmatmul.mubr.bf16.gmra.mrb[120].mxu1 %v5142_v40 }
 0xb0b   : > { %5258 = vmatprep.mubr.bf16.mxu1 %v5145_v33 }
 0xb12   : > { %5259 = vmatmul.mubr.bf16.gmra.mrb[124].mxu1 %v5144_v35 }
 0xb15   : > { %v4975_v19 = vpop.xlane.xlu1 %4974 }
 0xb16   : > { %v5012_v27 = vsub.f32 %v12619_v30, %v4975_v19  ;;  %v5013_v13 = vsub.f32 %v12625_v49, %v4975_v19 }
 0xb17   : > { %5353 = vrot.lane.b32.xlu1 %v8980_v50, %s9346_s27 }
 0xb18   : > { %v5062_v31 = vmul.f32 1.442695, %v5012_v27  ;;  %v5064_v63 = vmul.f32 1.442695, %v5013_v13 }
 0xb19   : > { %v4987_v61 = vpop.xlane.xlu1 %4986 }
 0xb1a   : > { %8820 = vpow2.f32 %v5062_v31  ;;  %v5021_v32 = vsub.f32 %v12639_v48, %v4987_v61  ;;  %v5020_v34 = vsub.f32 %v12633_v12, %v4987_v61 }
 0xb1b   : > { %8822 = vpow2.f32 %v5064_v63 }
 0xb1c   : > { %v5080_v36 = vmul.f32 1.442695, %v5021_v32  ;;  %v5078_v23 = vmul.f32 1.442695, %v5020_v34 }
 0xb1f   : > { %5106 = vadd.xlane.f32.xlu0 %v5105_v37 }
 0xb23   : > { %5112 = vadd.xlane.f32.xlu0 %v5111_v45 }
 0xb24   : > { %v8821_v57 = vpop.eup %8820 }
 0xb25   : > { %v8823_v11 = vpop.eup %8822 }
 0xb26   : > { %v4972_v9 = vpop.xlane.xlu0 %4971 }
 0xb27   : > { %v5010_v10 = vsub.f32 %v12671_v46, %v4972_v9  ;;  %v5011_v53 = vsub.f32 %v12677_v1, %v4972_v9 }
 0xb29   : > { %v5058_v18 = vmul.f32 1.442695, %v5010_v10  ;;  %v5060_v58 = vmul.f32 1.442695, %v5011_v53 }
 0xb2a   : > { %v4978_v26 = vpop.xlane.xlu0 %4977 }
 0xb2b   : > { %8824 = vpow2.f32 %v5058_v18  ;;  %v5014_v30 = vsub.f32 %v12685_v56, %v4978_v26  ;;  %v5015_v51 = vsub.f32 %v12691_v5, %v4978_v26  ;;  %v4993_v5 = vpop.xlane.xlu1 %4992 }
 0xb2c   : > { %8826 = vpow2.f32 %v5060_v58  ;;  %v5025_v12 = vsub.f32 %v12651_v25, %v4993_v5  ;;  %v5024_v25 = vsub.f32 %v12646_v0, %v4993_v5 }
 0xb2d   : > { %v5066_v49 = vmul.f32 1.442695, %v5014_v30  ;;  %v5068_v16 = vmul.f32 1.442695, %v5015_v51 }
 0xb2e   : > { %v4981_v39 = vpop.xlane.xlu0 %4980  ;;  %v5088_v2 = vmul.f32 1.442695, %v5025_v12  ;;  %v5086_v42 = vmul.f32 1.442695, %v5024_v25 }
 0xb2f   : > { %v5016_v46 = vsub.f32 %v12699_v59, %v4981_v39  ;;  %v5017_v1 = vsub.f32 %v12705_v55, %v4981_v39  ;;  %8828 = vpow2.f32 %v5066_v49  ;;  %v5342_v54 = vpop.permute.xlu1 %5341 }
 0xb30   : > { %8830 = vpow2.f32 %v5068_v16  ;;  %v5383_v35 = vsel %vm13764_vm10, %v5342_v54, 0  ;;  %vm13779_vm10 = vmmov %vm13747_vm0 }
 0xb31   : > { %v5070_v28 = vmul.f32 1.442695, %v5016_v46  ;;  %v5072_v44 = vmul.f32 1.442695, %v5017_v1 }
 0xb32   : > { %v4984_v56 = vpop.xlane.xlu0 %4983 }
 0xb33   : > { %8832 = vpow2.f32 %v5070_v28  ;;  %v5018_v17 = vsub.f32 %v12713_v62, %v4984_v56  ;;  %v5019_v48 = vsub.f32 %v12719_v47, %v4984_v56  ;;  %v5344_v13 = vpop.permute.xlu1 %5343 }
 0xb34   : > { %8834 = vpow2.f32 %v5072_v44  ;;  %v5386_v58 = vsel %vm13765_vm3, %v5344_v13, 0  ;;  %vm13780_vm3 = vmmov %vm13747_vm0 }
 0xb35   : > { %v8825_v59 = vpop.eup %8824  ;;  %v5074_v52 = vmul.f32 1.442695, %v5018_v17  ;;  %v5076_v55 = vmul.f32 1.442695, %v5019_v48  ;;  %8836 = vpow2.f32 %v5080_v36 }
 0xb36   : > { %v8827_v8 = vpop.eup %8826  ;;  %v4990_v20 = vpop.xlane.xlu0 %4989  ;;  %v5146_v22 = vpack.c.bf16 %v8821_v57, %v8825_v59 }
 0xb37   : > { %8838 = vpow2.f32 %v5074_v52  ;;  %v5022_v15 = vsub.f32 %v12728_v41, %v4990_v20  ;;  %v5023_v60 = vsub.f32 %v12734_v7, %v4990_v20  ;;  %v5147_v62 = vpack.c.bf16 %v8823_v11, %v8827_v8  ;;  %v5346_v61 = vpop.permute.xlu1 %5345 }
 0xb38   : > { %8840 = vpow2.f32 %v5076_v55  ;;  %v5114_v47 = vadd.f32 %v8827_v8, %v8825_v59  ;;  %v5117_v7 = vadd.f32 %v8823_v11, %v8821_v57  ;;  %v5389_v32 = vsel %vm13767_vm13, %v5346_v61, 0  ;;  %vm13782_vm13 = vmmov %vm13747_vm0 }
 0xb39   : > { %v5084_v3 = vmul.f32 1.442695, %v5023_v60  ;;  %5266 = vmatprep.mubr.bf16.mxu1 %v5147_v62  ;;  %v8829_v29 = vpop.eup %8828  ;;  %8842 = vpow2.f32 %v5078_v23  ;;  %v5082_v14 = vmul.f32 1.442695, %v5022_v15 }
 0xb3a   : > { %5115 = vadd.xlane.f32.xlu0 %v5114_v47  ;;  %5267 = vmatmul.mubr.bf16.gmra.mrb[128].mxu1 %v5146_v22  ;;  %v5340_v24 = vpop.permute.xlu0 %5339  ;;  %v8831_v41 = vpop.eup %8830 }
 0xb3b   : > { %v5380_v43 = vsel %vm13761_vm9, %v5340_v24, 0  ;;  %8110 = vmatprep.subr.msk.bf16.mxu1 %vm13762_vm7, %v5340_v24  ;;  %8844 = vpow2.f32 %v5084_v3  ;;  %v5120_v33 = vadd.f32 %v8831_v41, %v8829_v29  ;;  %vm13776_vm9 = vmmov %vm13747_vm0 }
 0xb3c   : > { %7975 = vmatpush3.bf16.xpose.msra.mxu1 %v5380_v43  ;;  %8846 = vpow2.f32 %v5088_v2  ;;  %vm13777_vm7 = vmmov %vm13747_vm0 }
 0xb3d   : > { %v8833_v4 = vpop.eup %8832  ;;  %8111 = vmatprep.subr.msk.bf16.mxu1 %vm13763_vm8, %v5342_v54  ;;  %8848 = vpow2.f32 %v5082_v14  ;;  %vm13778_vm8 = vmmov %vm13747_vm0 }
 0xb3e   : > { %v8835_v21 = vpop.eup %8834  ;;  %5118 = vadd.xlane.f32.xlu0 %v5117_v7  ;;  %v5148_v6 = vpack.c.bf16 %v8833_v4, %v8829_v29  ;;  %8850 = vpow2.f32 %v5086_v42  ;;  %v5348_v16 = vpop.permute.xlu0 %5347 }
 0xb3f   : > { %v5149_v0 = vpack.c.bf16 %v8835_v21, %v8831_v41  ;;  %v8837_v40 = vpop.eup %8836  ;;  %v5123_v27 = vadd.f32 %v8835_v21, %v8833_v4  ;;  %v5392_v46 = vsel %vm13769_vm1, %v5348_v16, 0 }
 0xb41   : > { %v8839_v38 = vpop.eup %8838  ;;  %5274 = vmatprep.mubr.bf16.mxu1 %v5149_v0 }
 0xb42   : > { %v8841_v50 = vpop.eup %8840  ;;  %5121 = vadd.xlane.f32.xlu0 %v5120_v33  ;;  %5275 = vmatmul.mubr.bf16.gmra.mrb[132].mxu1 %v5148_v6 }
 0xb43   : > { %v5151_v37 = vpack.c.bf16 %v8837_v40, %v8841_v50  ;;  %v5126_v19 = vadd.f32 %v8841_v50, %v8839_v38  ;;  %v8843_v45 = vpop.eup %8842 }
 0xb44   : > { %7977 = vmatpush3.bf16.xpose.msra.mxu1 %v5383_v35  ;;  %v5129_v9 = vadd.f32 %v8843_v45, %v8837_v40  ;;  %v5150_v10 = vpack.c.bf16 %v8843_v45, %v8839_v38 }
 0xb45   : > { %5282 = vmatprep.mubr.bf16.mxu1 %v5151_v37  ;;  %5127 = vadd.xlane.f32.xlu1 %v5126_v19  ;;  %v8845_v31 = vpop.eup %8844 }
 0xb46   : > { %5124 = vadd.xlane.f32.xlu0 %v5123_v27  ;;  %8112 = vmatprep.subr.msk.bf16.mxu1 %vm13747_vm0, %v5344_v13  ;;  %v8847_v63 = vpop.eup %8846 }
 0xb47   : > { %v8849_v53 = vpop.eup %8848  ;;  %v5153_v18 = vpack.c.bf16 %v8847_v63, %v8845_v31 }
 0xb48   : > { %v5132_v26 = vadd.f32 %v8849_v53, %v8845_v31  ;;  %v8851_v30 = vpop.eup %8850 }
 0xb49   : > { %v5135_v51 = vadd.f32 %v8851_v30, %v8847_v63  ;;  %v5152_v49 = vpack.c.bf16 %v8851_v30, %v8849_v53 }
 0xb4a   : > { %5130 = vadd.xlane.f32.xlu0 %v5129_v9  ;;  %5283 = vmatmul.mubr.bf16.gmra.mrb[136].mxu1 %v5150_v10 }
 0xb4b   : > { %5290 = vmatprep.mubr.bf16.mxu1 %v5153_v18 }
 0xb4c   : > { %7979 = vmatpush3.bf16.xpose.msra.mxu1 %v5386_v58 }
 0xb4d   : > { %8113 = vmatprep.subr.msk.bf16.mxu1 %vm13766_vm4, %v5346_v61  ;;  %vm13781_vm4 = vmmov %vm13747_vm0 }
 0xb4e   : > { %5133 = vadd.xlane.f32.xlu0 %v5132_v26 }
 0xb52   : > { %5136 = vadd.xlane.f32.xlu0 %v5135_v51  ;;  %5291 = vmatmul.mubr.bf16.gmra.mrb[140].mxu1 %v5152_v49 }
 0xb54   : > { %7981 = vmatpush3.bf16.xpose.msra.mxu1 %v5389_v32 }
 0xb55   : > { %8114 = vmatprep.subr.msk.bf16.mxu1 %vm13768_vm12, %v5348_v16 }
 0xb5a   : > { %v5092_v39 = vpop.xlane.xlu1 %5091 }
 0xb5b   : > { %8852 = vrcp.f32 %v5092_v39 }
 0xb5c   : > { %7983 = vmatpush3.bf16.xpose.msra.mxu1 %v5392_v46 }
 0xb5e   : > { %v5350_v1 = vpop.permute.xlu1 %5349 }
 0xb5f   : > { %8115 = vmatprep.subr.msk.bf16.mxu1 %vm13770_vm2, %v5350_v1  ;;  %v5395_v28 = vsel %vm13771_vm5, %v5350_v1, 0 }
 0xb64   : > { %7985 = vmatpush3.bf16.xpose.msra.mxu1 %v5395_v28 }
 0xb65   : > { %v8853_v23 = vpop.eup %8852 }
 0xb6f   : > { %v5095_v44 = vpop.xlane.xlu0 %5094 }
 0xb70   : > { %8854 = vrcp.f32 %v5095_v44 }
 0xb73   : > { %v5098_v34 = vpop.xlane.xlu0 %5097 }
 0xb74   : > { %8856 = vrcp.f32 %v5098_v34 }
 0xb77   : > { %v5101_v36 = vpop.xlane.xlu0 %5100 }
 0xb78   : > { %8858 = vrcp.f32 %v5101_v36 }
 0xb7a   : > { %v8855_v15 = vpop.eup %8854 }
 0xb7b   : > { %v5352_v56 = vpop.permute.xlu0 %5351 }
 0xb7c   : > { %v5398_v57 = vsel %vm13772_vm15, %v5352_v56, 0  ;;  %8116 = vmatprep.subr.msk.bf16.mxu1 %vm13773_vm6, %v5352_v56 }
 0xb7d   : > { %7987 = vmatpush3.bf16.xpose.msra.mxu1 %v5398_v57 }
 0xb7e   : > { %v8857_v25 = vpop.eup %8856 }
 0xb82   : > { %v8859_v7 = vpop.eup %8858 }
 0xb8f   : > { %v5104_v5 = vpop.xlane.xlu1 %5103 }
 0xb90   : > { %8860 = vrcp.f32 %v5104_v5 }
 0xb93   : > { %v5110_v17 = vpop.xlane.xlu1 %5109 }
 0xb97   : > { %v5354_v48 = vpop.permute.xlu1 %5353 }
 0xb98   : > { %v5401_v11 = vsel %vm13774_vm14, %v5354_v48, 0  ;;  %8117 = vmatprep.subr.msk.bf16.mxu1 %vm13775_vm11, %v5354_v48 }
 0xb99   : > { %7989 = vmatpush3.bf16.xpose.msra.mxu1 %v5401_v11 }
 0xb9a   : > { %v8861_v33 = vpop.eup %8860 }
 0xbac   : > { %v5107_v62 = vpop.xlane.xlu0 %5106 }
 0xbad   : > { %8862 = vrcp.f32 %v5107_v62 }
 0xbae   : > { %8864 = vrcp.f32 %v5110_v17 }
 0xbb0   : > { %v5113_v4 = vpop.xlane.xlu0 %5112 }
 0xbb1   : > { %8866 = vrcp.f32 %v5113_v4 }
 0xbb7   : > { %v8863_v37 = vpop.eup %8862 }
 0xbb8   : > { %v8865_v9 = vpop.eup %8864 }
 0xbbb   : > { %v8867_v58 = vpop.eup %8866 }
 0xbc7   : > { %v5116_v30 = vpop.xlane.xlu0 %5115 }
 0xbc8   : > { %8868 = vrcp.f32 %v5116_v30 }
 0xbcb   : > { %v5119_v51 = vpop.xlane.xlu0 %5118 }
 0xbcc   : > { %8870 = vrcp.f32 %v5119_v51 }
 0xbcd   : > { %v7622_v59 = vpop.f32.mrb[112].mxu1 }
 0xbce   : > { %v7623_v52 = vpop.f32.mrb[113].mxu1 }
 0xbcf   : > { %v7624_v55 = vadd.f32 %v7623_v52, %v7622_v59  ;;  %v7625_v8 = vpop.f32.mrb[114].mxu1  ;;  %v5122_v49 = vpop.xlane.xlu0 %5121 }
 0xbd0   : > { %v7626_v12 = vpop.f32.mrb[115].mxu1  ;;  %8872 = vrcp.f32 %v5122_v49  ;;  %v8984_v49 = vld [vmem:[%s10267_s14 + $0x18] sm:$0xff] }
 0xbd1   : > { %v5315_v20 = vmul.f32 %v8853_v23, %v7624_v55  ;;  %v7627_v22 = vadd.f32 %v7626_v12, %v7625_v8 }
 0xbd2   : > { %v8869_v44 = vpop.eup %8868  ;;  %v5128_v17 = vpop.xlane.xlu1 %5127 }
 0xbd3   : > { %v5316_v60 = vmul.f32 %v8855_v15, %v7627_v22  ;;  %v5125_v32 = vpop.xlane.xlu0 %5124 }
 0xbd4   : > { %8874 = vrcp.f32 %v5125_v32 }
 0xbd5   : > { %v5331_v47 = vpack.c.bf16 %v5316_v60, %v5315_v20  ;;  %v7628_v3 = vpop.f32.mrb[116].mxu1  ;;  %8876 = vrcp.f32 %v5128_v17  ;;  %v8987_v17 = vld [vmem:[%s10267_s14 + $0x28] sm:$0xff] }
 0xbd6   : > { %v7629_v2 = vpop.f32.mrb[117].mxu1  ;;  %v8871_v56 = vpop.eup %8870 }
 0xbd7   : > { %v7630_v24 = vadd.f32 %v7629_v2, %v7628_v3  ;;  %v7631_v29 = vpop.f32.mrb[118].mxu1  ;;  %7990 = vmatprep.mubr.msk.bf16.mxu1 %vm13776_vm9, %v5331_v47  ;;  %v5131_v34 = vpop.xlane.xlu0 %5130 }
 0xbd8   : > { %v7632_v14 = vpop.f32.mrb[119].mxu1  ;;  %8878 = vrcp.f32 %v5131_v34 }
 0xbd9   : > { %v5317_v43 = vmul.f32 %v8857_v25, %v7630_v24  ;;  %v7633_v41 = vadd.f32 %v7632_v14, %v7631_v29 }
 0xbda   : > { %v8873_v12 = vpop.eup %8872 }
 0xbdb   : > { %v5318_v54 = vmul.f32 %v8859_v7, %v7633_v41  ;;  %v5134_v52 = vpop.xlane.xlu0 %5133 }
 0xbdc   : > { %8880 = vrcp.f32 %v5134_v52 }
 0xbdd   : > { %v5332_v21 = vpack.c.bf16 %v5318_v54, %v5317_v43  ;;  %v7634_v6 = vpop.f32.mrb[120].mxu1 }
 0xbde   : > { %v7635_v42 = vpop.f32.mrb[121].mxu1  ;;  %v8875_v22 = vpop.eup %8874 }
 0xbdf   : > { %v7636_v0 = vadd.f32 %v7635_v42, %v7634_v6  ;;  %v7637_v40 = vpop.f32.mrb[122].mxu1  ;;  %7991 = vmatmul.mubr.msk.bf16.vlgmr.msra.gmra.mrb[64].mxu1 %vm13777_vm7, %v5332_v21  ;;  %v5137_v62 = vpop.xlane.xlu0 %5136 }
 0xbe0   : > { %v7638_v38 = vpop.f32.mrb[123].mxu1  ;;  %8882 = vrcp.f32 %v5137_v62  ;;  %v8877_v14 = vpop.eup %8876 }
 0xbe1   : > { %v5319_v35 = vmul.f32 %v8861_v33, %v7636_v0  ;;  %v7639_v50 = vadd.f32 %v7638_v38, %v7637_v40 }
 0xbe2   : > { %v8879_v41 = vpop.eup %8878 }
 0xbe3   : > { %v5320_v19 = vmul.f32 %v8863_v37, %v7639_v50 }
 0xbe5   : > { %v5333_v27 = vpack.c.bf16 %v5320_v19, %v5319_v35  ;;  %v7640_v45 = vpop.f32.mrb[124].mxu1 }
 0xbe6   : > { %v7641_v13 = vpop.f32.mrb[125].mxu1  ;;  %v8881_v33 = vpop.eup %8880 }
 0xbe7   : > { %v7642_v31 = vadd.f32 %v7641_v13, %v7640_v45  ;;  %v7643_v63 = vpop.f32.mrb[126].mxu1  ;;  %7994 = vmatprep.mubr.msk.bf16.mxu1 %vm13778_vm8, %v5333_v27  ;;  %v12811_v45 = vld [vmem:[%s13783_s12] ss:$0 sm:$0xff] }
 0xbe8   : > { %v7644_v10 = vpop.f32.mrb[127].mxu1 }
 0xbe9   : > { %v5321_v53 = vmul.f32 %v8865_v9, %v7642_v31  ;;  %v7645_v18 = vadd.f32 %v7644_v10, %v7643_v63  ;;  %v8981_v31 = vld [vmem:[%s10267_s14] sm:$0xff] }
 0xbea   : > { %v8883_v35 = vpop.eup %8882 }
 0xbeb   : > { %v5322_v26 = vmul.f32 %v8867_v58, %v7645_v18  ;;  %v8982_v18 = vld [vmem:[%s10267_s14 + $0x8] sm:$0xff] }
 0xbed   : > { %v5334_v61 = vpack.c.bf16 %v5322_v26, %v5321_v53  ;;  %v8983_v26 = vld [vmem:[%s10267_s14 + $0x10] sm:$0xff] }
 0xbef   : > { %7995 = vmatmul.mubr.msk.bf16.gmra.mrb[68].mxu1 %vm13779_vm10, %v5334_v61 }
 0xc0d   : > { %v7646_v16 = vpop.f32.mrb[128].mxu1 }
 0xc0e   : > { %v7647_v39 = vpop.f32.mrb[129].mxu1 }
 0xc0f   : > { %v7648_v46 = vadd.f32 %v7647_v39, %v7646_v16  ;;  %v7649_v1 = vpop.f32.mrb[130].mxu1 }
 0xc10   : > { %v7650_v28 = vpop.f32.mrb[131].mxu1 }
 0xc11   : > { %v7651_v36 = vadd.f32 %v7650_v28, %v7649_v1  ;;  %v5323_v57 = vmul.f32 %v8869_v44, %v7648_v46  ;;  %v8985_v46 = vld [vmem:[%s10267_s14 + $0x30] sm:$0xff]  ;;  %v8986_v44 = vld [vmem:[%s10267_s14 + $0x20] sm:$0xff] }
 0xc13   : > { %v5324_v5 = vmul.f32 %v8871_v56, %v7651_v36 }
 0xc15   : > { %v5335_v48 = vpack.c.bf16 %v5324_v5, %v5323_v57  ;;  %v7652_v11 = vpop.f32.mrb[132].mxu1 }
 0xc16   : > { %v7653_v59 = vpop.f32.mrb[133].mxu1 }
 0xc17   : > { %v7654_v55 = vadd.f32 %v7653_v59, %v7652_v11  ;;  %v7655_v8 = vpop.f32.mrb[134].mxu1  ;;  %7998 = vmatprep.mubr.msk.bf16.mxu1 %vm13747_vm0, %v5335_v48  ;;  %v8988_v11 = vld [vmem:[%s10267_s14 + $0x38] sm:$0xff] }
 0xc18   : > { %v7656_v23 = vpop.f32.mrb[135].mxu1 }
 0xc19   : > { %v7657_v20 = vadd.f32 %v7656_v23, %v7655_v8  ;;  %v5325_v15 = vmul.f32 %v8873_v12, %v7654_v55  ;;  %v8989_v12 = vld [vmem:[%s10267_s14 + $0x40] sm:$0xff] }
 0xc1b   : > { %v5326_v60 = vmul.f32 %v8875_v22, %v7657_v20 }
 0xc1d   : > { %v5336_v47 = vpack.c.bf16 %v5326_v60, %v5325_v15  ;;  %v7658_v3 = vpop.f32.mrb[136].mxu1  ;;  %v8990_v60 = vld [vmem:[%s10267_s14 + $0x50] sm:$0xff] }
 0xc1e   : > { %v7659_v2 = vpop.f32.mrb[137].mxu1 }
 0xc1f   : > { %v7660_v24 = vadd.f32 %v7659_v2, %v7658_v3  ;;  %v7661_v29 = vpop.f32.mrb[138].mxu1  ;;  %7999 = vmatmul.mubr.msk.bf16.gmra.mrb[72].mxu1 %vm13780_vm3, %v5336_v47  ;;  %v8991_v3 = vld [vmem:[%s10267_s14 + $0x48] sm:$0xff] }
 0xc20   : > { %v7662_v25 = vpop.f32.mrb[139].mxu1 }
 0xc21   : > { %v7663_v43 = vadd.f32 %v7662_v25, %v7661_v29  ;;  %v5327_v7 = vmul.f32 %v8877_v14, %v7660_v24  ;;  %v8992_v24 = vld [vmem:[%s10267_s14 + $0x58] sm:$0xff] }
 0xc23   : > { %v5328_v54 = vmul.f32 %v8879_v41, %v7663_v43 }
 0xc25   : > { %v5337_v4 = vpack.c.bf16 %v5328_v54, %v5327_v7  ;;  %v7664_v21 = vpop.f32.mrb[140].mxu1  ;;  %v8993_v54 = vld [vmem:[%s10267_s14 + $0x60] sm:$0xff] }
 0xc26   : > { %v7665_v6 = vpop.f32.mrb[141].mxu1 }
 0xc27   : > { %v7666_v42 = vadd.f32 %v7665_v6, %v7664_v21  ;;  %v7667_v0 = vpop.f32.mrb[142].mxu1  ;;  %8002 = vmatprep.mubr.msk.bf16.mxu1 %vm13781_vm4, %v5337_v4 }
 0xc28   : > { %v7668_v40 = vpop.f32.mrb[143].mxu1 }
 0xc29   : > { %v7669_v38 = vadd.f32 %v7668_v40, %v7667_v0  ;;  %v5329_v50 = vmul.f32 %v8881_v33, %v7666_v42  ;;  %v8994_v42 = vld [vmem:[%s10267_s14 + $0x70] sm:$0xff]  ;;  %v8995_v33 = vld [vmem:[%s10267_s14 + $0x68] sm:$0xff] }
 0xc2b   : > { %v5330_v37 = vmul.f32 %v8883_v35, %v7669_v38  ;;  %v8996_v35 = vld [vmem:[%s10267_s14 + $0x78] sm:$0xff]  ;;  %s13788_s14 = sld [smem:[#allocation108_spill]] }
 0xc2d   : > { %v5338_v19 = vpack.c.bf16 %v5330_v37, %v5329_v50 }
 0xc2f   : > { %8003 = vmatmul.mubr.msk.bf16.gmra.mrb[76].mxu1 %vm13782_vm13, %v5338_v19 }
 0xcb2   : > { %v7992_v27 = vpop.f32.mrb[64].mxu1 }
 0xcb3   : > { %v5437_v13 = vpop.f32.mrb[65].mxu1  ;;  %v5518_v61 = vadd.f32 %v8983_v26, %v7992_v27  ;;  %v8396_v26 = vld [vmem:[#allocation13 + $0x60] sm:$0xff]  }
 0xcb4   : > { %v5516_v63 = vadd.f32 %v8981_v31, %v5437_v13  ;;  %v7993_v9 = vpop.f32.mrb[66].mxu1  ;;  %v8388_v13 = vld [vmem:[#allocation13 + $0x40] sm:$0xff]  }
 0xcb5   : > { %v5440_v10 = vpop.f32.mrb[67].mxu1  ;;  %v12825_v51 = vadd.f32 %v12811_v45, %v5518_v61  ;;  %v5519_v32 = vadd.f32 %v8984_v49, %v7993_v9  ;;  %v8389_v31 = vld [vmem:[#allocation13] sm:$0xff]   ;;  %7686 = vmatprep.subr.bf16.mxu0 %v8388_v13  ;;  %v8391_v9 = vld [vmem:[#allocation13 + $0x8] sm:$0xff]  }
 0xcb6   : > { %v12815_v53 = vadd.f32 %v12811_v45, %v5516_v63  ;;  %v5517_v58 = vadd.f32 %v8982_v18, %v5440_v10  ;;  %v8390_v63 = vld [vmem:[#allocation13 + $0x48] sm:$0xff]   ;;  %7687 = vmatpush3.bf16.xpose.msra.mxu0 %v8389_v31  ;;  %v8392_v10 = vld [vmem:[#allocation13 + $0x50] sm:$0xff]   ;;  %v8397_v61 = vld [vmem:[#allocation13 + $0x20] sm:$0xff]  }
 0xcb7   : > { %v12830_v16 = vadd.f32 %v12811_v45, %v5519_v32  ;;  %7688 = vmatprep.subr.bf16.mxu0 %v8390_v63  ;;  %v8393_v18 = vld [vmem:[#allocation13 + $0x10] sm:$0xff]  }
 0xcb8   : > { %5557 = vadd.xlane.f32.xlu0 %v12815_v53  ;;  %v12821_v30 = vadd.f32 %v12811_v45, %v5517_v58  ;;  %v8394_v58 = vld [vmem:[#allocation13 + $0x58] sm:$0xff]  }
 0xcbc   : > { %5559 = vadd.xlane.f32.xlu0 %v12821_v30 }
 0xcbe   : > { %7689 = vmatpush3.bf16.xpose.msra.mxu0 %v8391_v9 }
 0xcbf   : > { %7690 = vmatprep.subr.bf16.mxu0 %v8392_v10 }
 0xcc0   : > { %5561 = vadd.xlane.f32.xlu0 %v12825_v51 }
 0xcc2   : > { %v7996_v39 = vpop.f32.mrb[68].mxu1 }
 0xcc3   : > { %v5522_v1 = vadd.f32 %v8985_v46, %v7996_v39  ;;  %v5453_v28 = vpop.f32.mrb[69].mxu1 }
 0xcc4   : > { %v5520_v34 = vadd.f32 %v8986_v44, %v5453_v28  ;;  %5563 = vadd.xlane.f32.xlu0 %v12830_v16  ;;  %v7997_v36 = vpop.f32.mrb[70].mxu1 }
 0xcc5   : > { %v12836_v56 = vadd.f32 %v12811_v45, %v5522_v1  ;;  %v5456_v57 = vpop.f32.mrb[71].mxu1  ;;  %v5523_v59 = vadd.f32 %v8988_v11, %v7997_v36 }
 0xcc6   : > { %v12839_v5 = vadd.f32 %v12811_v45, %v5520_v34  ;;  %v5521_v48 = vadd.f32 %v8987_v17, %v5456_v57  ;;  %7691 = vmatpush3.bf16.xpose.msra.mxu0 %v8393_v18 }
 0xcc7   : > { %5569 = vadd.xlane.f32.xlu1 %v12836_v56  ;;  %v12850_v55 = vadd.f32 %v12811_v45, %v5523_v59  ;;  %7692 = vmatprep.subr.bf16.mxu0 %v8394_v58 }
 0xcc8   : > { %5565 = vadd.xlane.f32.xlu0 %v12839_v5  ;;  %v12846_v52 = vadd.f32 %v12811_v45, %v5521_v48 }
 0xccc   : > { %5567 = vadd.xlane.f32.xlu0 %v12846_v52 }
 0xcd0   : > { %5571 = vadd.xlane.f32.xlu0 %v12850_v55 }
 0xcf2   : > { %v8000_v8 = vpop.f32.mrb[72].mxu1 }
 0xcf3   : > { %v5469_v23 = vpop.f32.mrb[73].mxu1  ;;  %v5526_v62 = vadd.f32 %v8990_v60, %v8000_v8 }
 0xcf4   : > { %v5524_v20 = vadd.f32 %v8989_v12, %v5469_v23  ;;  %v8001_v22 = vpop.f32.mrb[74].mxu1 }
 0xcf5   : > { %v5472_v15 = vpop.f32.mrb[75].mxu1  ;;  %v5527_v29 = vadd.f32 %v8992_v24, %v8001_v22  ;;  %v12865_v14 = vadd.f32 %v12811_v45, %v5526_v62 }
 0xcf6   : > { %v12856_v47 = vadd.f32 %v12811_v45, %v5524_v20  ;;  %v5525_v2 = vadd.f32 %v8991_v3, %v5472_v15 }
 0xcf7   : > { %v12869_v43 = vadd.f32 %v12811_v45, %v5527_v29 }
 0xcf8   : > { %v12861_v25 = vadd.f32 %v12811_v45, %v5525_v2  ;;  %5573 = vadd.xlane.f32.xlu1 %v12856_v47 }
 0xcfa   : > { %5575 = vadd.xlane.f32.xlu0 %v12861_v25 }
 0xcfc   : > { %5577 = vadd.xlane.f32.xlu1 %v12865_v14 }
 0xcfe   : > { %5579 = vadd.xlane.f32.xlu0 %v12869_v43 }
 0xd02   : > { %v8004_v41 = vpop.f32.mrb[76].mxu1 }
 0xd03   : > { %v5485_v7 = vpop.f32.mrb[77].mxu1  ;;  %v5530_v0 = vadd.f32 %v8994_v42, %v8004_v41 }
 0xd04   : > { %v5528_v4 = vadd.f32 %v8993_v54, %v5485_v7  ;;  %v8005_v21 = vpop.f32.mrb[78].mxu1 }
 0xd05   : > { %v5488_v6 = vpop.f32.mrb[79].mxu1  ;;  %v5531_v50 = vadd.f32 %v8996_v35, %v8005_v21  ;;  %v12885_v19 = vadd.f32 %v12811_v45, %v5530_v0  ;;  %v8398_v21 = vld [vmem:[#allocation13 + $0x68] sm:$0xff]   ;;  %v8402_v35 = vld [vmem:[#allocation13 + $0x78] sm:$0xff]  }
 0xd06   : > { %v12876_v40 = vadd.f32 %v12811_v45, %v5528_v4  ;;  %v5529_v38 = vadd.f32 %v8995_v33, %v5488_v6  ;;  %v8399_v6 = vld [vmem:[#allocation13 + $0x28] sm:$0xff]   ;;  %v8400_v33 = vld [vmem:[#allocation13 + $0x70] sm:$0xff]  }
 0xd07   : > { %v12889_v27 = vadd.f32 %v12811_v45, %v5531_v50  ;;  %v8403_v50 = vld [vmem:[#allocation13 + $0x38] sm:$0xff]  }
 0xd08   : > { %v12881_v37 = vadd.f32 %v12811_v45, %v5529_v38  ;;  %5581 = vadd.xlane.f32.xlu1 %v12876_v40  ;;  %v8395_v45 = vld [vmem:[#allocation13 + $0x18] sm:$0xff]   ;;  %v8401_v38 = vld [vmem:[#allocation13 + $0x30] sm:$0xff]  }
 0xd09   : > { %7693 = vmatpush3.bf16.xpose.msra.mxu0 %v8395_v45 }
 0xd0a   : > { %5583 = vadd.xlane.f32.xlu0 %v12881_v37  ;;  %7694 = vmatprep.subr.bf16.mxu0 %v8396_v26 }
 0xd0c   : > { %5585 = vadd.xlane.f32.xlu1 %v12885_v19 }
 0xd0e   : > { %5587 = vadd.xlane.f32.xlu0 %v12889_v27 }
 0xd11   : > { %7695 = vmatpush3.bf16.xpose.msra.mxu0 %v8397_v61 }
 0xd12   : > { %7696 = vmatprep.subr.bf16.mxu0 %v8398_v21 }
 0xd19   : > { %7697 = vmatpush3.bf16.xpose.msra.mxu0 %v8399_v6 }
 0xd1a   : > { %7698 = vmatprep.subr.bf16.mxu0 %v8400_v33 }
 0xd21   : > { %7699 = vmatpush3.bf16.xpose.msra.mxu0 %v8401_v38 }
 0xd22   : > { %7700 = vmatprep.subr.bf16.mxu0 %v8402_v35 }
 0xd29   : > { %7701 = vmatpush3.bf16.xpose.msra.mxu0 %v8403_v50 }
 0xd45   : > { %v5558_v49 = vpop.xlane.xlu0 %5557 }
 0xd46   : > { %v5589_v32 = vmul.f32 0.0078125, %v5558_v49 }
 0xd48   : > { %v12894_v39 = vsub.f32 %v12815_v53, %v5589_v32 }
 0xd49   : > { %v5560_v46 = vpop.xlane.xlu0 %5559 }
 0xd4a   : > { %v5590_v1 = vmul.f32 0.0078125, %v5560_v46  ;;  %v5621_v28 = vmul.f32 %v12894_v39, %v12894_v39 }
 0xd4c   : > { %v12899_v44 = vsub.f32 %v12821_v30, %v5590_v1  ;;  %5637 = vadd.xlane.f32.xlu1 %v5621_v28 }
 0xd4d   : > { %v5562_v34 = vpop.xlane.xlu0 %5561 }
 0xd4e   : > { %v5591_v36 = vmul.f32 0.0078125, %v5562_v34  ;;  %v5622_v57 = vmul.f32 %v12899_v44, %v12899_v44  ;;  %v8404_v34 = vld [vmem:[#allocation13 + $0xc0] sm:$0xff]  }
 0xd4f   : > { %7718 = vmatprep.subr.bf16.mxu0 %v8404_v34 }
 0xd50   : > { %v12904_v17 = vsub.f32 %v12825_v51, %v5591_v36  ;;  %5639 = vadd.xlane.f32.xlu0 %v5622_v57 }
 0xd51   : > { %v5564_v48 = vpop.xlane.xlu0 %5563 }
 0xd52   : > { %v5592_v11 = vmul.f32 0.0078125, %v5564_v48  ;;  %v5623_v59 = vmul.f32 %v12904_v17, %v12904_v17 }
 0xd54   : > { %v12909_v8 = vsub.f32 %v12830_v16, %v5592_v11  ;;  %v5570_v23 = vpop.xlane.xlu1 %5569  ;;  %5641 = vadd.xlane.f32.xlu1 %v5623_v59 }
 0xd55   : > { %v5566_v12 = vpop.xlane.xlu0 %5565  ;;  %v5595_v20 = vmul.f32 0.0078125, %v5570_v23 }
 0xd56   : > { %v5593_v22 = vmul.f32 0.0078125, %v5566_v12  ;;  %v5624_v15 = vmul.f32 %v12909_v8, %v12909_v8 }
 0xd57   : > { %v12917_v3 = vsub.f32 %v12836_v56, %v5595_v20 }
 0xd58   : > { %v12914_v60 = vsub.f32 %v12839_v5, %v5593_v22  ;;  %5643 = vadd.xlane.f32.xlu0 %v5624_v15 }
 0xd59   : > { %v5568_v62 = vpop.xlane.xlu0 %5567  ;;  %v5627_v54 = vmul.f32 %v12917_v3, %v12917_v3 }
 0xd5a   : > { %v5594_v2 = vmul.f32 0.0078125, %v5568_v62  ;;  %v5625_v24 = vmul.f32 %v12914_v60, %v12914_v60 }
 0xd5c   : > { %v12922_v29 = vsub.f32 %v12846_v52, %v5594_v2  ;;  %5645 = vadd.xlane.f32.xlu1 %v5625_v24 }
 0xd5d   : > { %v5572_v41 = vpop.xlane.xlu0 %5571 }
 0xd5e   : > { %v5596_v7 = vmul.f32 0.0078125, %v5572_v41  ;;  %v5626_v4 = vmul.f32 %v12922_v29, %v12922_v29 }
 0xd60   : > { %v12929_v42 = vsub.f32 %v12850_v55, %v5596_v7  ;;  %5649 = vadd.xlane.f32.xlu1 %v5627_v54  ;;  %5647 = vadd.xlane.f32.xlu0 %v5626_v4 }
 0xd62   : > { %v5628_v0 = vmul.f32 %v12929_v42, %v12929_v42 }
 0xd64   : > { %5651 = vadd.xlane.f32.xlu0 %v5628_v0 }
 0xd85   : > { %v5574_v13 = vpop.xlane.xlu1 %5573 }
 0xd86   : > { %v5597_v31 = vmul.f32 0.0078125, %v5574_v13 }
 0xd87   : > { %v5576_v63 = vpop.xlane.xlu0 %5575 }
 0xd88   : > { %v12934_v9 = vsub.f32 %v12856_v47, %v5597_v31  ;;  %v5598_v10 = vmul.f32 0.0078125, %v5576_v63 }
 0xd89   : > { %v5578_v18 = vpop.xlane.xlu1 %5577 }
 0xd8a   : > { %v12937_v58 = vsub.f32 %v12861_v25, %v5598_v10  ;;  %v5599_v45 = vmul.f32 0.0078125, %v5578_v18  ;;  %v5629_v26 = vmul.f32 %v12934_v9, %v12934_v9 }
 0xd8b   : > { %v5580_v61 = vpop.xlane.xlu0 %5579 }
 0xd8c   : > { %v12942_v49 = vsub.f32 %v12865_v14, %v5599_v45  ;;  %v5600_v32 = vmul.f32 0.0078125, %v5580_v61  ;;  %5653 = vadd.xlane.f32.xlu1 %v5629_v26  ;;  %v5630_v46 = vmul.f32 %v12937_v58, %v12937_v58 }
 0xd8e   : > { %v12947_v1 = vsub.f32 %v12869_v43, %v5600_v32  ;;  %5655 = vadd.xlane.f32.xlu0 %v5630_v46  ;;  %v5631_v28 = vmul.f32 %v12942_v49, %v12942_v49  ;;  %v12977_v46 = vld [vmem:[%s13784_s7] ss:$0 sm:$0xff]  ;;  %s7168_s7 = sshll.u32 %s13442_s11, 4 }
 0xd8f   : > { %s6823_s21 = sadd.s32 %s7169_s16, %s7168_s7  ;;  %s9347_s7 = smov [#allocation16]  }
 0xd90   : > { %5657 = vadd.xlane.f32.xlu1 %v5631_v28  ;;  %v5632_v36 = vmul.f32 %v12947_v1, %v12947_v1  ;;  %s7170_s11 = sshll.u32 %s6823_s21, 7  ;;  %s9199_s16 = sshll.u32 %s9347_s7, 4  ;;  %s9200_s16 = int_to_ptr.vmem [resolvable:$false] %s9199_s16 }
 0xd91   : > { %s9201_s21 = scalar_lea.vmem %s9200_s16, 4096 }
 0xd92   : > { %5659 = vadd.xlane.f32.xlu0 %v5632_v36 }
 0xd95   : > { %v5582_v57 = vpop.xlane.xlu1 %5581 }
 0xd96   : > { %v5601_v48 = vmul.f32 0.0078125, %v5582_v57 }
 0xd97   : > { %v5584_v11 = vpop.xlane.xlu0 %5583 }
 0xd98   : > { %v12954_v59 = vsub.f32 %v12876_v40, %v5601_v48  ;;  %v5602_v23 = vmul.f32 0.0078125, %v5584_v11 }
 0xd99   : > { %v5586_v12 = vpop.xlane.xlu1 %5585 }
 0xd9a   : > { %v12957_v20 = vsub.f32 %v12881_v37, %v5602_v23  ;;  %v5603_v22 = vmul.f32 0.0078125, %v5586_v12  ;;  %v5633_v15 = vmul.f32 %v12954_v59, %v12954_v59 }
 0xd9b   : > { %v5588_v62 = vpop.xlane.xlu0 %5587 }
 0xd9c   : > { %v12962_v2 = vsub.f32 %v12885_v19, %v5603_v22  ;;  %v5604_v24 = vmul.f32 0.0078125, %v5588_v62  ;;  %5661 = vadd.xlane.f32.xlu1 %v5633_v15  ;;  %v5634_v41 = vmul.f32 %v12957_v20, %v12957_v20 }
 0xd9e   : > { %v12967_v7 = vsub.f32 %v12889_v27, %v5604_v24  ;;  %5663 = vadd.xlane.f32.xlu0 %v5634_v41  ;;  %v5635_v54 = vmul.f32 %v12962_v2, %v12962_v2 }
 0xda0   : > { %5665 = vadd.xlane.f32.xlu1 %v5635_v54  ;;  %v5636_v4 = vmul.f32 %v12967_v7, %v12967_v7 }
 0xda2   : > { %5667 = vadd.xlane.f32.xlu0 %v5636_v4 }
 0xdd9   : > { %v5638_v21 = vpop.xlane.xlu1 %5637 }
 0xdda   : > { %v5669_v6 = vmul.f32 0.0078125, %v5638_v21 }
 0xddc   : > { %v5685_v0 = vadd.f32 1e-05, %v5669_v6 }
 0xddd   : > { %v5640_v33 = vpop.xlane.xlu0 %5639 }
 0xdde   : > { %8884 = vrsqrt.f32 %v5685_v0  ;;  %v5670_v38 = vmul.f32 0.0078125, %v5640_v33  ;;  %v8405_v0 = vld [vmem:[#allocation13 + $0x80] sm:$0xff]  }
 0xde0   : > { %v5686_v35 = vadd.f32 1e-05, %v5670_v38 }
 0xde1   : > { %v5642_v50 = vpop.xlane.xlu1 %5641 }
 0xde2   : > { %8886 = vrsqrt.f32 %v5686_v35  ;;  %v5671_v13 = vmul.f32 0.0078125, %v5642_v50  ;;  %v8406_v35 = vld [vmem:[#allocation13 + $0xc8] sm:$0xff]  }
 0xde4   : > { %v5687_v31 = vadd.f32 1e-05, %v5671_v13 }
 0xde5   : > { %v5644_v63 = vpop.xlane.xlu0 %5643 }
 0xde6   : > { %8888 = vrsqrt.f32 %v5687_v31  ;;  %v5672_v10 = vmul.f32 0.0078125, %v5644_v63 }
 0xde8   : > { %v8885_v18 = vpop.eup %8884  ;;  %v5688_v45 = vadd.f32 1e-05, %v5672_v10 }
 0xde9   : > { %v5717_v26 = vmul.f32 %v8885_v18, %v12894_v39  ;;  %v5646_v61 = vpop.xlane.xlu1 %5645  ;;  %v12984_v39 = vld [vmem:[%s13785_s3] ss:$0 sm:$0xff]  ;;  %s6826_s3 = sshll.u32 %s9792_s30, 4  ;;  %s13222_s3 = int_to_ptr.vmem [resolvable:$true] %s6826_s3 }
 0xdea   : > { %8890 = vrsqrt.f32 %v5688_v45  ;;  %v5673_v32 = vmul.f32 0.0078125, %v5646_v61  ;;  %v8408_v61 = vld [vmem:[#allocation13 + $0xd0] sm:$0xff]   ;;  %s9195_s17 = scalar_lea.vmem %s13222_s3, 2048  ;;  %p9202_p12 = scmp.lt.s32.totalorder %s13222_s3, %s9200_s16 }
 0xdeb   : > { %v5739_v11 = vmul.f32 %v12977_v46, %v5717_v26  ;;  %p9196_p13 = scmp.ne.s32.totalorder %s13222_s3, %s9195_s17  ;;  %p9203_p1 = scmp.lt.s32.totalorder %s9201_s21, %s9195_s17 }
 0xdec   : > { %v8887_v28 = vpop.eup %8886  ;;  %v5689_v34 = vadd.f32 1e-05, %v5673_v32 }
 0xded   : > { %v5718_v36 = vmul.f32 %v8887_v28, %v12899_v44  ;;  %v5650_v57 = vpop.xlane.xlu1 %5649  ;;  %v5648_v48 = vpop.xlane.xlu0 %5647  ;;  %v5761_v54 = vadd.f32 %v12984_v39, %v5739_v11  ;;  %p9197_p9 = pnand %p9196_p13, %p13792_p6  ;;  %p9204_p0 = por %p9203_p1, %p9202_p12 }
 0xdee   : > { %8892 = vrsqrt.f32 %v5689_v34  ;;  %v5675_v23 = vmul.f32 0.0078125, %v5650_v57  ;;  %v5674_v12 = vmul.f32 0.0078125, %v5648_v48 }
 0xdef   : > { %v5740_v22 = vmul.f32 %v12977_v46, %v5718_v36  ;;  %p9198_p11 = pneg %p9197_p9 }
 0xdf0   : > { %v8889_v15 = vpop.eup %8888  ;;  %v5691_v62 = vadd.f32 1e-05, %v5675_v23  ;;  %v5690_v24 = vadd.f32 1e-05, %v5674_v12 }
 0xdf1   : > { %v5719_v41 = vmul.f32 %v8889_v15, %v12904_v17  ;;  %v5652_v44 = vpop.xlane.xlu0 %5651  ;;  %v5762_v4 = vadd.f32 %v12984_v39, %v5740_v22  ;;  %v8409_v22 = vld [vmem:[#allocation13 + $0x90] sm:$0xff]   ;;  %p9205_p7 = pnand %p9204_p0, %p9198_p11 }
 0xdf2   : > { %8894 = vrsqrt.f32 %v5691_v62  ;;  %v5676_v21 = vmul.f32 0.0078125, %v5652_v44  ;;  %v8420_v44 = vld [vmem:[#allocation15] ss:$16 sps:$4 sm:$0xff]  }
 0xdf3   : > { %8896 = vrsqrt.f32 %v5690_v24  ;;  %v12990_v6 = vpack.c.bf16 %v5762_v4, %v5761_v54  ;;  %v5741_v17 = vmul.f32 %v12977_v46, %v5719_v41  ;;  %v8410_v24 = vld [vmem:[#allocation13 + $0xd8] sm:$0xff]   ;;  %v8422_v54 = vld [vmem:[#allocation15 + $0x4] ss:$16 sps:$4 sm:$0xff]  }
 0xdf4   : > { %v8891_v33 = vpop.eup %8890  ;;  %v5692_v38 = vadd.f32 1e-05, %v5676_v21  ;;  %v8411_v41 = vld [vmem:[#allocation13 + $0x98] sm:$0xff]   ;;  %v8412_v4 = vld [vmem:[#allocation13 + $0xe0] sm:$0xff]   ;;  %6584 = vmatprep.subr.bf16.mxu1 %v8422_v54 }
 0xdf5   : > { %v5720_v50 = vmul.f32 %v8891_v33, %v12909_v8  ;;  %7702 = vmatprep.mubr.bf16.mxu0 %v12990_v6  ;;  %v5763_v63 = vadd.f32 %v12984_v39, %v5741_v17  ;;  %v8407_v8 = vld [vmem:[#allocation13 + $0x88] sm:$0xff]   ;;  %v8425_v21 = vld [vmem:[#allocation15 + $0x24] ss:$16 sps:$4 sm:$0xff]   ;;  %6585 = vmatpush1.bf16.xpose.msra.mxu1 %v8420_v44 }
 0xdf6   : > { %8898 = vrsqrt.f32 %v5692_v38  ;;  %7703 = vmatmul.mubr.bf16.vlgmr.msra.gmra.mrb[144].mxu0 %v12990_v6  ;;  %6586 = vmatprep.subr.bf16.mxu1 %v8425_v21  ;;  %v8413_v33 = vld [vmem:[#allocation13 + $0xa0] sm:$0xff]  }
 0xdf7   : > { %v5742_v13 = vmul.f32 %v12977_v46, %v5720_v50  ;;  %7719 = vmatpush3.bf16.xpose.msra.mxu0 %v8405_v0  ;;  %v8423_v0 = vld [vmem:[#allocation15 + $0x20] ss:$16 sps:$4 sm:$0xff]   ;;  %v8428_v38 = vld [vmem:[#allocation15 + $0x44] ss:$16 sps:$4 sm:$0xff]  }
 0xdf8   : > { %v8893_v31 = vpop.eup %8892  ;;  %7720 = vmatprep.subr.bf16.mxu0 %v8406_v35  ;;  %v8414_v35 = vld [vmem:[#allocation13 + $0xe8] sm:$0xff]  }
 0xdf9   : > { %v5764_v10 = vadd.f32 %v12984_v39, %v5742_v13  ;;  %v5721_v18 = vmul.f32 %v8893_v31, %v12914_v60  ;;  %v8426_v31 = vld [vmem:[#allocation15 + $0x40] ss:$16 sps:$4 sm:$0xff]  }
 0xdfb   : > { %v13000_v45 = vpack.c.bf16 %v5764_v10, %v5763_v63  ;;  %v5743_v36 = vmul.f32 %v12977_v46, %v5721_v18  ;;  %v8415_v18 = vld [vmem:[#allocation13 + $0xa8] sm:$0xff]  }
 0xdfc   : > { %v8895_v26 = vpop.eup %8894 }
 0xdfd   : > { %v8897_v32 = vpop.eup %8896  ;;  %v5723_v28 = vmul.f32 %v8895_v26, %v12917_v3  ;;  %7704 = vmatprep.mubr.bf16.mxu0 %v13000_v45  ;;  %v5765_v23 = vadd.f32 %v12984_v39, %v5743_v36  ;;  %6587 = vmatpush1.bf16.xpose.msra.mxu1 %v8423_v0 }
 0xdfe   : > { %v5722_v34 = vmul.f32 %v8897_v32, %v12922_v29  ;;  %7705 = vmatmul.mubr.bf16.gmra.mrb[148].mxu0 %v13000_v45  ;;  %6588 = vmatprep.subr.bf16.mxu1 %v8428_v38  ;;  %v8419_v38 = vld [vmem:[#allocation13 + $0xb8] sm:$0xff]  }
 0xdff   : > { %7721 = vmatpush3.bf16.xpose.msra.mxu0 %v8407_v8  ;;  %v5745_v11 = vmul.f32 %v12977_v46, %v5723_v28  ;;  %v8431_v8 = vld [vmem:[#allocation15 + $0x64] ss:$16 sps:$4 sm:$0xff]  }
 0xe00   : > { %v8899_v57 = vpop.eup %8898  ;;  %v5744_v60 = vmul.f32 %v12977_v46, %v5722_v34  ;;  %7722 = vmatprep.subr.bf16.mxu0 %v8408_v61  ;;  %v8416_v61 = vld [vmem:[#allocation13 + $0xf0] sm:$0xff]  }
 0xe01   : > { %v5724_v48 = vmul.f32 %v8899_v57, %v12929_v42  ;;  %v5767_v15 = vadd.f32 %v12984_v39, %v5745_v11  ;;  %v8417_v11 = vld [vmem:[#allocation13 + $0xb0] sm:$0xff]  }
 0xe02   : > { %v5766_v3 = vadd.f32 %v12984_v39, %v5744_v60 }
 0xe03   : > { %v5746_v12 = vmul.f32 %v12977_v46, %v5724_v48  ;;  %v8429_v48 = vld [vmem:[#allocation15 + $0x60] ss:$16 sps:$4 sm:$0xff]  }
 0xe04   : > { %v13013_v29 = vpack.c.bf16 %v5766_v3, %v5765_v23  ;;  %v8434_v23 = vld [vmem:[#allocation15 + $0x84] ss:$16 sps:$4 sm:$0xff]   ;;  %v8418_v3 = vld [vmem:[#allocation13 + $0xf8] sm:$0xff]  }
 0xe05   : > { %v5768_v62 = vadd.f32 %v12984_v39, %v5746_v12  ;;  %6589 = vmatpush1.bf16.xpose.msra.mxu1 %v8426_v31 }
 0xe06   : > { %7706 = vmatprep.mubr.bf16.mxu0 %v13013_v29  ;;  %6590 = vmatprep.subr.bf16.mxu1 %v8431_v8 }
 0xe07   : > { %7707 = vmatmul.mubr.bf16.gmra.mrb[152].mxu0 %v13013_v29  ;;  %v13019_v42 = vpack.c.bf16 %v5768_v62, %v5767_v15 }
 0xe08   : > { %7723 = vmatpush3.bf16.xpose.msra.mxu0 %v8409_v22 }
 0xe09   : > { %7708 = vmatprep.mubr.bf16.mxu0 %v13019_v42  ;;  %7724 = vmatprep.subr.bf16.mxu0 %v8410_v24 }
 0xe0d   : > { %6591 = vmatpush1.bf16.xpose.msra.mxu1 %v8429_v48 }
 0xe0e   : > { %6592 = vmatprep.subr.bf16.mxu1 %v8434_v23 }
 0xe0f   : > { %7709 = vmatmul.mubr.bf16.gmra.mrb[156].mxu0 %v13019_v42 }
 0xe10   : > { %7725 = vmatpush3.bf16.xpose.msra.mxu0 %v8411_v41 }
 0xe11   : > { %7726 = vmatprep.subr.bf16.mxu0 %v8412_v4  ;;  %v8432_v4 = vld [vmem:[#allocation15 + $0x80] ss:$16 sps:$4 sm:$0xff]  }
 0xe15   : > { %6593 = vmatpush1.bf16.xpose.msra.mxu1 %v8432_v4 }
 0xe18   : > { %7727 = vmatpush3.bf16.xpose.msra.mxu0 %v8413_v33 }
 0xe19   : > { %v5654_v50 = vpop.xlane.xlu1 %5653  ;;  %7728 = vmatprep.subr.bf16.mxu0 %v8414_v35  ;;  %v8437_v35 = vld [vmem:[#allocation15 + $0xa4] ss:$16 sps:$4 sm:$0xff]  }
 0xe1a   : > { %v5677_v17 = vmul.f32 0.0078125, %v5654_v50  ;;  %6594 = vmatprep.subr.bf16.mxu1 %v8437_v35  ;;  %v8441_v35 = vld [vmem:[#allocation15 + $0xe0] ss:$16 sps:$4 sm:$0xff]  }
 0xe1b   : > { %v5656_v13 = vpop.xlane.xlu0 %5655 }
 0xe1c   : > { %v5693_v63 = vadd.f32 1e-05, %v5677_v17  ;;  %v5678_v10 = vmul.f32 0.0078125, %v5656_v13 }
 0xe1d   : > { %v5658_v26 = vpop.xlane.xlu1 %5657 }
 0xe1e   : > { %8900 = vrsqrt.f32 %v5693_v63  ;;  %v5694_v32 = vadd.f32 1e-05, %v5678_v10  ;;  %v5679_v28 = vmul.f32 0.0078125, %v5658_v26 }
 0xe1f   : > { %v5660_v34 = vpop.xlane.xlu0 %5659 }
 0xe20   : > { %8902 = vrsqrt.f32 %v5694_v32  ;;  %v5695_v36 = vadd.f32 1e-05, %v5679_v28  ;;  %v5680_v57 = vmul.f32 0.0078125, %v5660_v34  ;;  %7729 = vmatpush3.bf16.xpose.msra.mxu0 %v8415_v18 }
 0xe21   : > { %7730 = vmatprep.subr.bf16.mxu0 %v8416_v61 }
 0xe22   : > { %8904 = vrsqrt.f32 %v5695_v36  ;;  %v5696_v60 = vadd.f32 1e-05, %v5680_v57  ;;  %v8435_v57 = vld [vmem:[#allocation15 + $0xa0] ss:$16 sps:$4 sm:$0xff]  }
 0xe23   : > { %6595 = vmatpush1.bf16.xpose.msra.mxu1 %v8435_v57 }
 0xe24   : > { %8906 = vrsqrt.f32 %v5696_v60  ;;  %v8440_v60 = vld [vmem:[#allocation15 + $0xc4] ss:$16 sps:$4 sm:$0xff]  }
 0xe25   : > { %6596 = vmatprep.subr.bf16.mxu1 %v8440_v60 }
 0xe28   : > { %v8901_v12 = vpop.eup %8900  ;;  %7731 = vmatpush3.bf16.xpose.msra.mxu0 %v8417_v11 }
 0xe29   : > { %v5725_v22 = vmul.f32 %v8901_v12, %v12934_v9  ;;  %v5662_v15 = vpop.xlane.xlu1 %5661  ;;  %7732 = vmatprep.subr.bf16.mxu0 %v8418_v3 }
 0xe2a   : > { %v8903_v62 = vpop.eup %8902  ;;  %v5681_v24 = vmul.f32 0.0078125, %v5662_v15  ;;  %v8438_v15 = vld [vmem:[#allocation15 + $0xc0] ss:$16 sps:$4 sm:$0xff]  }
 0xe2b   : > { %v5726_v41 = vmul.f32 %v8903_v62, %v12937_v58  ;;  %v5664_v44 = vpop.xlane.xlu0 %5663  ;;  %v5747_v54 = vmul.f32 %v12977_v46, %v5725_v22  ;;  %6597 = vmatpush1.bf16.xpose.msra.mxu1 %v8438_v15 }
 0xe2c   : > { %v8905_v21 = vpop.eup %8904  ;;  %v5697_v0 = vadd.f32 1e-05, %v5681_v24  ;;  %v5682_v33 = vmul.f32 0.0078125, %v5664_v44 }
 0xe2d   : > { %v5727_v50 = vmul.f32 %v8905_v21, %v12942_v49  ;;  %v5666_v17 = vpop.xlane.xlu1 %5665  ;;  %v5748_v9 = vmul.f32 %v12977_v46, %v5726_v41  ;;  %v5769_v18 = vadd.f32 %v12984_v39, %v5747_v54 }
 0xe2e   : > { %v8907_v13 = vpop.eup %8906  ;;  %8908 = vrsqrt.f32 %v5697_v0  ;;  %v5698_v31 = vadd.f32 1e-05, %v5682_v33  ;;  %v5683_v63 = vmul.f32 0.0078125, %v5666_v17  ;;  %v8452_v17 = vld [vmem:[#allocation15 + $0x4c] ss:$16 sps:$4 sm:$0xff]  }
 0xe2f   : > { %v5728_v58 = vmul.f32 %v8907_v13, %v12947_v1  ;;  %v5668_v10 = vpop.xlane.xlu0 %5667  ;;  %v5770_v8 = vadd.f32 %v12984_v39, %v5748_v9  ;;  %v5749_v26 = vmul.f32 %v12977_v46, %v5727_v50  ;;  %v8449_v50 = vld [vmem:[#allocation15 + $0x2c] ss:$16 sps:$4 sm:$0xff]   ;;  %v8456_v13 = vld [vmem:[#allocation15 + $0x88] ss:$16 sps:$4 sm:$0xff]  }
 0xe30   : > { %8910 = vrsqrt.f32 %v5698_v31  ;;  %v5699_v61 = vadd.f32 1e-05, %v5683_v63  ;;  %v5684_v49 = vmul.f32 0.0078125, %v5668_v10  ;;  %7733 = vmatpush3.bf16.xpose.msra.mxu0 %v8419_v38  ;;  %v8458_v9 = vld [vmem:[#allocation15 + $0x8c] ss:$16 sps:$4 sm:$0xff]  }
 0xe31   : > { %v5845_v32 = vpack.c.bf16 %v5770_v8, %v5769_v18  ;;  %v5750_v28 = vmul.f32 %v12977_v46, %v5728_v58  ;;  %v5771_v1 = vadd.f32 %v12984_v39, %v5749_v26  ;;  %v8461_v31 = vld [vmem:[#allocation15 + $0xac] ss:$16 sps:$4 sm:$0xff]   ;;  %v8459_v63 = vld [vmem:[#allocation15 + $0xa8] ss:$16 sps:$4 sm:$0xff]   ;;  %v13786_v26 = vld [vmem:[#allocation35_spill] sm:$0xff] }
 0xe32   : > { %8912 = vrsqrt.f32 %v5699_v61  ;;  %v5700_v34 = vadd.f32 1e-05, %v5684_v49  ;;  %v8464_v58 = vld [vmem:[#allocation15 + $0xcc] ss:$16 sps:$4 sm:$0xff]   ;;  %v8462_v10 = vld [vmem:[#allocation15 + $0xc8] ss:$16 sps:$4 sm:$0xff]  }
 0xe33   : > { %7710 = vmatprep.mubr.bf16.mxu0 %v5845_v32  ;;  %v5772_v36 = vadd.f32 %v12984_v39, %v5750_v28  ;;  %v8467_v18 = vld [vmem:[#allocation15 + $0xec] ss:$16 sps:$4 sm:$0xff]   ;;  %v8465_v8 = vld [vmem:[#allocation15 + $0xe8] ss:$16 sps:$4 sm:$0xff]   ;;  %v5853_v61 = vsub.s32 0, %v13786_v26 }
 0xe34   : > { %8914 = vrsqrt.f32 %v5700_v34  ;;  %7711 = vmatmul.mubr.bf16.gmra.mrb[160].mxu0 %v5845_v32  ;;  %v13059_v49 = vld [vmem:[%s13787_s24] sm:$0xf]  ;;  %s13790_s24 = sld [smem:[#allocation109_spill]] }
 0xe35   : > { %v5846_v48 = vpack.c.bf16 %v5772_v36, %v5771_v1  ;;  %v13063_v28 = vrot.slane %v13059_v49, %v5853_v61 }
 0xe37   : > { %7712 = vmatprep.mubr.bf16.mxu0 %v5846_v48 }
 0xe38   : > { %v8909_v11 = vpop.eup %8908 }
 0xe39   : > { %v5729_v23 = vmul.f32 %v8909_v11, %v12954_v59 }
 0xe3a   : > { %v8911_v3 = vpop.eup %8910  ;;  %s13791_s6 = smov %s13790_s24  ;;  %s13220_s12 = scalar_lea.hbm %s13790_s24, %s7170_s11 }
 0xe3b   : > { %v5730_v12 = vmul.f32 %v8911_v3, %v12957_v20  ;;  %v5751_v22 = vmul.f32 %v12977_v46, %v5729_v23 }
 0xe3c   : > { %v8913_v62 = vpop.eup %8912  ;;  %7713 = vmatmul.mubr.bf16.gmra.mrb[164].mxu0 %v5846_v48 }
 0xe3d   : > { %v5731_v24 = vmul.f32 %v8913_v62, %v12962_v2  ;;  %v5752_v41 = vmul.f32 %v12977_v46, %v5730_v12  ;;  %v5773_v4 = vadd.f32 %v12984_v39, %v5751_v22 }
 0xe3e   : > { %v8915_v44 = vpop.eup %8914 }
 0xe3f   : > { %v5732_v54 = vmul.f32 %v8915_v44, %v12967_v7  ;;  %v5774_v21 = vadd.f32 %v12984_v39, %v5752_v41  ;;  %v5753_v59 = vmul.f32 %v12977_v46, %v5731_v24  ;;  %v8443_v7 = vld [vmem:[#allocation15 + $0xe4] ss:$16 sps:$4 sm:$0xff]  }
 0xe40   : > { %6598 = vmatprep.subr.bf16.mxu1 %v8443_v7 }
 0xe41   : > { %v5847_v20 = vpack.c.bf16 %v5774_v21, %v5773_v4  ;;  %v5754_v0 = vmul.f32 %v12977_v46, %v5732_v54  ;;  %v5775_v33 = vadd.f32 %v12984_v39, %v5753_v59  ;;  %6599 = vmatpush1.bf16.xpose.msra.mxu1 %v8441_v35  ;;  %v8444_v46 = vld [vmem:[#allocation15 + $0x8] ss:$16 sps:$4 sm:$0xff]  }
 0xe43   : > { %7714 = vmatprep.mubr.bf16.mxu0 %v5847_v20  ;;  %v5776_v2 = vadd.f32 %v12984_v39, %v5754_v0  ;;  %v8446_v39 = vld [vmem:[#allocation15 + $0xc] ss:$16 sps:$4 sm:$0xff]  }
 0xe44   : > { %7715 = vmatmul.mubr.bf16.gmra.mrb[168].mxu0 %v5847_v20  ;;  %6681 = vmatprep.subr.bf16.mxu0 %v8446_v39 }
 0xe45   : > { %v5848_v38 = vpack.c.bf16 %v5776_v2, %v5775_v33 }
 0xe47   : > { %7716 = vmatprep.mubr.bf16.mxu0 %v5848_v38 }
 0xe4c   : > { %7717 = vmatmul.mubr.bf16.gmra.mrb[172].mxu0 %v5848_v38 }
 0xe4d   : > { %7734 = vmatprep.mubr.bf16.mxu0 %v12990_v6 }
 0xe54   : > { %7735 = vmatmul.mubr.bf16.vlgmr.msra.gmra.mrb[176].mxu0 %v12990_v6  ;;  %v8447_v6 = vld [vmem:[#allocation15 + $0x28] ss:$16 sps:$4 sm:$0xff]  }
 0xe55   : > { %7736 = vmatprep.mubr.bf16.mxu0 %v13000_v45  ;;  %6682 = vmatpush1.bf16.xpose.msra.mxu0 %v8444_v46 }
 0xe56   : > { %6683 = vmatprep.subr.bf16.mxu0 %v8449_v50 }
 0xe5c   : > { %7737 = vmatmul.mubr.bf16.gmra.mrb[180].mxu0 %v13000_v45  ;;  %v8450_v45 = vld [vmem:[#allocation15 + $0x48] ss:$16 sps:$4 sm:$0xff]  }
 0xe5d   : > { %7738 = vmatprep.mubr.bf16.mxu0 %v13013_v29  ;;  %6684 = vmatpush1.bf16.xpose.msra.mxu0 %v8447_v6 }
 0xe5e   : > { %6685 = vmatprep.subr.bf16.mxu0 %v8452_v17 }
 0xe64   : > { %7739 = vmatmul.mubr.bf16.gmra.mrb[184].mxu0 %v13013_v29  ;;  %v8455_v29 = vld [vmem:[#allocation15 + $0x6c] ss:$16 sps:$4 sm:$0xff]  }
 0xe65   : > { %7740 = vmatprep.mubr.bf16.mxu0 %v13019_v42  ;;  %6686 = vmatpush1.bf16.xpose.msra.mxu0 %v8450_v45 }
 0xe66   : > { %6687 = vmatprep.subr.bf16.mxu0 %v8455_v29 }
 0xe6c   : > { %7741 = vmatmul.mubr.bf16.gmra.mrb[188].mxu0 %v13019_v42  ;;  %v8453_v42 = vld [vmem:[#allocation15 + $0x68] ss:$16 sps:$4 sm:$0xff]  }
 0xe6d   : > { %7742 = vmatprep.mubr.bf16.mxu0 %v5845_v32  ;;  %6688 = vmatpush1.bf16.xpose.msra.mxu0 %v8453_v42 }
 0xe6e   : > { %6689 = vmatprep.subr.bf16.mxu0 %v8458_v9 }
 0xe74   : > { %7743 = vmatmul.mubr.bf16.gmra.mrb[192].mxu0 %v5845_v32  ;;  %v5857_v32 = vsub.s32 1, %v13786_v26 }
 0xe75   : > { %7744 = vmatprep.mubr.bf16.mxu0 %v5846_v48  ;;  %6690 = vmatpush1.bf16.xpose.msra.mxu0 %v8456_v13 }
 0xe76   : > { %6691 = vmatprep.subr.bf16.mxu0 %v8461_v31  ;;  %v13066_v34 = vrot.slane %v13059_v49, %v5857_v32 }
 0xe7c   : > { %7745 = vmatmul.mubr.bf16.gmra.mrb[196].mxu0 %v5846_v48 }
 0xe7d   : > { %7746 = vmatprep.mubr.bf16.mxu0 %v5847_v20  ;;  %6692 = vmatpush1.bf16.xpose.msra.mxu0 %v8459_v63 }
 0xe7e   : > { %6693 = vmatprep.subr.bf16.mxu0 %v8464_v58 }
 0xe84   : > { %7747 = vmatmul.mubr.bf16.gmra.mrb[200].mxu0 %v5847_v20 }
 0xe85   : > { %7748 = vmatprep.mubr.bf16.mxu0 %v5848_v38  ;;  %6694 = vmatpush1.bf16.xpose.msra.mxu0 %v8462_v10 }
 0xe86   : > { %6695 = vmatprep.subr.bf16.mxu0 %v8467_v18 }
 0xe8c   : > { %7749 = vmatmul.mubr.bf16.gmra.mrb[204].mxu0 %v5848_v38 }
 0xe8d   : > { %6696 = vmatpush1.bf16.xpose.msra.mxu0 %v8465_v8 }
 0xec9   : > { %v6097_v1 = vpop.f32.mrb[144].mxu0 }
 0xeca   : > { %v6098_v36 = vadd.f32 %v6097_v1, %v13063_v28  ;;  %v6099_v57 = vpop.f32.mrb[145].mxu0 }
 0xecb   : > { %v6100_v60 = vadd.f32 %v6099_v57, %v13066_v34  ;;  %v6101_v48 = vpop.f32.mrb[146].mxu0 }
 0xecc   : > { %v6102_v11 = vadd.f32 %v6101_v48, %v13063_v28  ;;  %v6103_v23 = vpop.f32.mrb[147].mxu0  ;;  %v6289_v12 = vmax.f32 %v6098_v36, 0.0 }
 0xecd   : > { %v6104_v3 = vadd.f32 %v6103_v23, %v13066_v34  ;;  %v6290_v15 = vmax.f32 %v6100_v60, 0.0 }
 0xece   : > { %v6293_v22 = vmax.f32 %v6102_v11, 0.0 }
 0xecf   : > { %v6294_v62 = vmax.f32 %v6104_v3, 0.0 }
 0xed0   : > { %v6385_v24 = vpack.c.bf16 %v6293_v22, %v6289_v12 }
 0xed1   : > { %v6386_v41 = vpack.c.bf16 %v6294_v62, %v6290_v15  ;;  %v6107_v44 = vpop.f32.mrb[148].mxu0 }
 0xed2   : > { %v6108_v54 = vadd.f32 %v6107_v44, %v13063_v28  ;;  %v6109_v4 = vpop.f32.mrb[149].mxu0 }
 0xed3   : > { %v6110_v21 = vadd.f32 %v6109_v4, %v13066_v34  ;;  %v6111_v59 = vpop.f32.mrb[150].mxu0  ;;  %6616 = vmatprep.mubr.bf16.mxu1 %v6386_v41 }
 0xed4   : > { %v6112_v20 = vadd.f32 %v6111_v59, %v13063_v28  ;;  %v6113_v0 = vpop.f32.mrb[151].mxu0  ;;  %6617 = vmatmul.mubr.bf16.vlgmr.msra.gmra.mrb[144].mxu1 %v6385_v24  ;;  %v6297_v2 = vmax.f32 %v6108_v54, 0.0 }
 0xed5   : > { %v6114_v33 = vadd.f32 %v6113_v0, %v13066_v34  ;;  %v6298_v7 = vmax.f32 %v6110_v21, 0.0 }
 0xed6   : > { %v6301_v38 = vmax.f32 %v6112_v20, 0.0 }
 0xed7   : > { %v6302_v35 = vmax.f32 %v6114_v33, 0.0 }
 0xed8   : > { %v6389_v46 = vpack.c.bf16 %v6301_v38, %v6297_v2 }
 0xed9   : > { %v6390_v39 = vpack.c.bf16 %v6302_v35, %v6298_v7 }
 0xeda   : > { %v6117_v50 = vpop.f32.mrb[152].mxu0 }
 0xedb   : > { %v6118_v6 = vadd.f32 %v6117_v50, %v13063_v28  ;;  %v6119_v17 = vpop.f32.mrb[153].mxu0  ;;  %6624 = vmatprep.mubr.bf16.mxu1 %v6390_v39 }
 0xedc   : > { %v6120_v45 = vadd.f32 %v6119_v17, %v13066_v34  ;;  %v6121_v29 = vpop.f32.mrb[154].mxu0  ;;  %6625 = vmatmul.mubr.bf16.gmra.mrb[148].mxu1 %v6389_v46 }
 0xedd   : > { %v6122_v42 = vadd.f32 %v6121_v29, %v13063_v28  ;;  %v6123_v9 = vpop.f32.mrb[155].mxu0  ;;  %v6305_v31 = vmax.f32 %v6118_v6, 0.0 }
 0xede   : > { %v6124_v13 = vadd.f32 %v6123_v9, %v13066_v34  ;;  %v6306_v58 = vmax.f32 %v6120_v45, 0.0 }
 0xedf   : > { %v6309_v63 = vmax.f32 %v6122_v42, 0.0 }
 0xee0   : > { %v6310_v10 = vmax.f32 %v6124_v13, 0.0 }
 0xee1   : > { %v6393_v18 = vpack.c.bf16 %v6309_v63, %v6305_v31 }
 0xee2   : > { %v6394_v8 = vpack.c.bf16 %v6310_v10, %v6306_v58  ;;  %v6127_v61 = vpop.f32.mrb[156].mxu0 }
 0xee3   : > { %v6128_v32 = vadd.f32 %v6127_v61, %v13063_v28  ;;  %v6129_v1 = vpop.f32.mrb[157].mxu0 }
 0xee4   : > { %v6130_v36 = vadd.f32 %v6129_v1, %v13066_v34  ;;  %v6131_v57 = vpop.f32.mrb[158].mxu0  ;;  %6632 = vmatprep.mubr.bf16.mxu1 %v6394_v8 }
 0xee5   : > { %v6132_v60 = vadd.f32 %v6131_v57, %v13063_v28  ;;  %v6133_v48 = vpop.f32.mrb[159].mxu0  ;;  %6633 = vmatmul.mubr.bf16.gmra.mrb[152].mxu1 %v6393_v18  ;;  %v6313_v23 = vmax.f32 %v6128_v32, 0.0 }
 0xee6   : > { %v6134_v11 = vadd.f32 %v6133_v48, %v13066_v34  ;;  %v6314_v12 = vmax.f32 %v6130_v36, 0.0 }
 0xee7   : > { %v6317_v3 = vmax.f32 %v6132_v60, 0.0 }
 0xee8   : > { %v6318_v22 = vmax.f32 %v6134_v11, 0.0 }
 0xee9   : > { %v6397_v15 = vpack.c.bf16 %v6317_v3, %v6313_v23 }
 0xeea   : > { %v6398_v62 = vpack.c.bf16 %v6318_v22, %v6314_v12 }
 0xeec   : > { %6640 = vmatprep.mubr.bf16.mxu1 %v6398_v62 }
 0xeed   : > { %6641 = vmatmul.mubr.bf16.gmra.mrb[156].mxu1 %v6397_v15 }
 0xf07   : > { %v6137_v24 = vpop.f32.mrb[160].mxu0 }
 0xf08   : > { %v6138_v41 = vadd.f32 %v6137_v24, %v13063_v28  ;;  %v6139_v44 = vpop.f32.mrb[161].mxu0 }
 0xf09   : > { %v6140_v54 = vadd.f32 %v6139_v44, %v13066_v34  ;;  %v6141_v4 = vpop.f32.mrb[162].mxu0 }
 0xf0a   : > { %v6142_v21 = vadd.f32 %v6141_v4, %v13063_v28  ;;  %v6143_v59 = vpop.f32.mrb[163].mxu0  ;;  %v6321_v0 = vmax.f32 %v6138_v41, 0.0  ;;  %v5861_v41 = vsub.s32 2, %v13786_v26  ;;  %v5865_v4 = vsub.s32 3, %v13786_v26 }
 0xf0b   : > { %v6144_v20 = vadd.f32 %v6143_v59, %v13066_v34  ;;  %v6322_v2 = vmax.f32 %v6140_v54, 0.0 }
 0xf0c   : > { %v6325_v33 = vmax.f32 %v6142_v21, 0.0 }
 0xf0d   : > { %v6326_v38 = vmax.f32 %v6144_v20, 0.0 }
 0xf0e   : > { %v6401_v7 = vpack.c.bf16 %v6325_v33, %v6321_v0 }
 0xf0f   : > { %v6402_v35 = vpack.c.bf16 %v6326_v38, %v6322_v2  ;;  %v6147_v46 = vpop.f32.mrb[164].mxu0  ;;  %v13103_v2 = vrot.slane %v13059_v49, %v5861_v41 }
 0xf10   : > { %v6148_v39 = vadd.f32 %v6147_v46, %v13063_v28  ;;  %v6149_v50 = vpop.f32.mrb[165].mxu0 }
 0xf11   : > { %v6150_v6 = vadd.f32 %v6149_v50, %v13066_v34  ;;  %v6151_v17 = vpop.f32.mrb[166].mxu0  ;;  %6648 = vmatprep.mubr.bf16.mxu1 %v6402_v35  ;;  %v13106_v35 = vrot.slane %v13059_v49, %v5865_v4 }
 0xf12   : > { %v6152_v45 = vadd.f32 %v6151_v17, %v13063_v28  ;;  %v6153_v29 = vpop.f32.mrb[167].mxu0  ;;  %6649 = vmatmul.mubr.bf16.gmra.mrb[160].mxu1 %v6401_v7  ;;  %v6329_v9 = vmax.f32 %v6148_v39, 0.0 }
 0xf13   : > { %v6154_v42 = vadd.f32 %v6153_v29, %v13066_v34  ;;  %v6330_v31 = vmax.f32 %v6150_v6, 0.0 }
 0xf14   : > { %v6333_v13 = vmax.f32 %v6152_v45, 0.0 }
 0xf15   : > { %v6334_v63 = vmax.f32 %v6154_v42, 0.0 }
 0xf16   : > { %v6405_v58 = vpack.c.bf16 %v6333_v13, %v6329_v9 }
 0xf17   : > { %v6406_v10 = vpack.c.bf16 %v6334_v63, %v6330_v31  ;;  %v6157_v18 = vpop.f32.mrb[168].mxu0 }
 0xf18   : > { %v6158_v8 = vadd.f32 %v6157_v18, %v13063_v28  ;;  %v6159_v61 = vpop.f32.mrb[169].mxu0 }
 0xf19   : > { %v6160_v32 = vadd.f32 %v6159_v61, %v13066_v34  ;;  %v6161_v1 = vpop.f32.mrb[170].mxu0  ;;  %6656 = vmatprep.mubr.bf16.mxu1 %v6406_v10 }
 0xf1a   : > { %v6162_v36 = vadd.f32 %v6161_v1, %v13063_v28  ;;  %v6163_v57 = vpop.f32.mrb[171].mxu0  ;;  %6657 = vmatmul.mubr.bf16.gmra.mrb[164].mxu1 %v6405_v58  ;;  %v6337_v48 = vmax.f32 %v6158_v8, 0.0 }
 0xf1b   : > { %v6164_v60 = vadd.f32 %v6163_v57, %v13066_v34  ;;  %v6338_v23 = vmax.f32 %v6160_v32, 0.0 }
 0xf1c   : > { %v6341_v11 = vmax.f32 %v6162_v36, 0.0 }
 0xf1d   : > { %v6342_v3 = vmax.f32 %v6164_v60, 0.0 }
 0xf1e   : > { %v6409_v12 = vpack.c.bf16 %v6341_v11, %v6337_v48 }
 0xf1f   : > { %v6410_v22 = vpack.c.bf16 %v6342_v3, %v6338_v23  ;;  %v6167_v15 = vpop.f32.mrb[172].mxu0 }
 0xf20   : > { %v6168_v62 = vadd.f32 %v6167_v15, %v13063_v28  ;;  %v6169_v24 = vpop.f32.mrb[173].mxu0 }
 0xf21   : > { %v6170_v44 = vadd.f32 %v6169_v24, %v13066_v34  ;;  %v6171_v54 = vpop.f32.mrb[174].mxu0  ;;  %6664 = vmatprep.mubr.bf16.mxu1 %v6410_v22 }
 0xf22   : > { %v6172_v21 = vadd.f32 %v6171_v54, %v13063_v28  ;;  %v6173_v59 = vpop.f32.mrb[175].mxu0  ;;  %6665 = vmatmul.mubr.bf16.gmra.mrb[168].mxu1 %v6409_v12  ;;  %v6345_v0 = vmax.f32 %v6168_v62, 0.0 }
 0xf23   : > { %v6174_v20 = vadd.f32 %v6173_v59, %v13066_v34  ;;  %v6346_v38 = vmax.f32 %v6170_v44, 0.0 }
 0xf24   : > { %v6349_v33 = vmax.f32 %v6172_v21, 0.0 }
 0xf25   : > { %v6350_v7 = vmax.f32 %v6174_v20, 0.0 }
 0xf26   : > { %v6413_v46 = vpack.c.bf16 %v6349_v33, %v6345_v0 }
 0xf27   : > { %v6414_v39 = vpack.c.bf16 %v6350_v7, %v6346_v38  ;;  %v6210_v50 = vpop.f32.mrb[176].mxu0 }
 0xf28   : > { %v6211_v26 = vadd.f32 %v6210_v50, %v13103_v2  ;;  %v6212_v28 = vpop.f32.mrb[177].mxu0 }
 0xf29   : > { %v6213_v6 = vadd.f32 %v6212_v28, %v13106_v35  ;;  %v6214_v17 = vpop.f32.mrb[178].mxu0  ;;  %6672 = vmatprep.mubr.bf16.mxu1 %v6414_v39 }
 0xf2a   : > { %v6215_v34 = vadd.f32 %v6214_v17, %v13103_v2  ;;  %v6216_v45 = vpop.f32.mrb[179].mxu0  ;;  %6673 = vmatmul.mubr.bf16.gmra.mrb[172].mxu1 %v6413_v46  ;;  %v6291_v42 = vmax.f32 %v6211_v26, 0.0 }
 0xf2b   : > { %v6217_v29 = vadd.f32 %v6216_v45, %v13106_v35  ;;  %v6292_v49 = vmax.f32 %v6213_v6, 0.0 }
 0xf2c   : > { %v6295_v9 = vmax.f32 %v6215_v34, 0.0 }
 0xf2d   : > { %v6296_v13 = vmax.f32 %v6217_v29, 0.0 }
 0xf2e   : > { %v6387_v31 = vpack.c.bf16 %v6295_v9, %v6291_v42 }
 0xf2f   : > { %v6388_v63 = vpack.c.bf16 %v6296_v13, %v6292_v49  ;;  %v6220_v58 = vpop.f32.mrb[180].mxu0 }
 0xf30   : > { %v6221_v10 = vadd.f32 %v6220_v58, %v13103_v2  ;;  %v6222_v18 = vpop.f32.mrb[181].mxu0 }
 0xf31   : > { %v6223_v8 = vadd.f32 %v6222_v18, %v13106_v35  ;;  %v6224_v61 = vpop.f32.mrb[182].mxu0  ;;  %6713 = vmatprep.mubr.bf16.mxu0 %v6388_v63 }
 0xf32   : > { %v6225_v32 = vadd.f32 %v6224_v61, %v13103_v2  ;;  %v6226_v1 = vpop.f32.mrb[183].mxu0  ;;  %6714 = vmatmul.mubr.bf16.vlgmr.msra.gmra.mrb[208].mxu0 %v6387_v31  ;;  %v6299_v57 = vmax.f32 %v6221_v10, 0.0 }
 0xf33   : > { %v6227_v36 = vadd.f32 %v6226_v1, %v13106_v35  ;;  %v6300_v48 = vmax.f32 %v6223_v8, 0.0 }
 0xf34   : > { %v6303_v60 = vmax.f32 %v6225_v32, 0.0 }
 0xf35   : > { %v6304_v11 = vmax.f32 %v6227_v36, 0.0 }
 0xf36   : > { %v6391_v23 = vpack.c.bf16 %v6303_v60, %v6299_v57 }
 0xf37   : > { %v6392_v3 = vpack.c.bf16 %v6304_v11, %v6300_v48  ;;  %v6230_v12 = vpop.f32.mrb[184].mxu0 }
 0xf38   : > { %v6231_v22 = vadd.f32 %v6230_v12, %v13103_v2  ;;  %v6232_v15 = vpop.f32.mrb[185].mxu0 }
 0xf39   : > { %v6233_v62 = vadd.f32 %v6232_v15, %v13106_v35  ;;  %v6234_v24 = vpop.f32.mrb[186].mxu0  ;;  %6721 = vmatprep.mubr.bf16.mxu0 %v6392_v3 }
 0xf3a   : > { %v6235_v41 = vadd.f32 %v6234_v24, %v13103_v2  ;;  %v6236_v44 = vpop.f32.mrb[187].mxu0  ;;  %6722 = vmatmul.mubr.bf16.gmra.mrb[212].mxu0 %v6391_v23  ;;  %v6307_v4 = vmax.f32 %v6231_v22, 0.0 }
 0xf3b   : > { %v6237_v54 = vadd.f32 %v6236_v44, %v13106_v35  ;;  %v6308_v59 = vmax.f32 %v6233_v62, 0.0 }
 0xf3c   : > { %v6311_v21 = vmax.f32 %v6235_v41, 0.0 }
 0xf3d   : > { %v6312_v20 = vmax.f32 %v6237_v54, 0.0 }
 0xf3e   : > { %v6395_v0 = vpack.c.bf16 %v6311_v21, %v6307_v4 }
 0xf3f   : > { %v6396_v33 = vpack.c.bf16 %v6312_v20, %v6308_v59  ;;  %v6240_v38 = vpop.f32.mrb[188].mxu0 }
 0xf40   : > { %v6241_v7 = vadd.f32 %v6240_v38, %v13103_v2  ;;  %v6242_v46 = vpop.f32.mrb[189].mxu0 }
 0xf41   : > { %v6243_v39 = vadd.f32 %v6242_v46, %v13106_v35  ;;  %v6244_v50 = vpop.f32.mrb[190].mxu0  ;;  %6729 = vmatprep.mubr.bf16.mxu0 %v6396_v33 }
 0xf42   : > { %v6245_v26 = vadd.f32 %v6244_v50, %v13103_v2  ;;  %v6246_v28 = vpop.f32.mrb[191].mxu0  ;;  %6730 = vmatmul.mubr.bf16.gmra.mrb[216].mxu0 %v6395_v0  ;;  %v6315_v17 = vmax.f32 %v6241_v7, 0.0 }
 0xf43   : > { %v6247_v6 = vadd.f32 %v6246_v28, %v13106_v35  ;;  %v6316_v45 = vmax.f32 %v6243_v39, 0.0 }
 0xf44   : > { %v6319_v34 = vmax.f32 %v6245_v26, 0.0 }
 0xf45   : > { %v6320_v29 = vmax.f32 %v6247_v6, 0.0 }
 0xf46   : > { %v6399_v42 = vpack.c.bf16 %v6319_v34, %v6315_v17 }
 0xf47   : > { %v6400_v9 = vpack.c.bf16 %v6320_v29, %v6316_v45  ;;  %v6250_v49 = vpop.f32.mrb[192].mxu0 }
 0xf48   : > { %v6251_v13 = vadd.f32 %v6250_v49, %v13103_v2  ;;  %v6252_v31 = vpop.f32.mrb[193].mxu0 }
 0xf49   : > { %v6253_v63 = vadd.f32 %v6252_v31, %v13106_v35  ;;  %v6254_v58 = vpop.f32.mrb[194].mxu0  ;;  %6737 = vmatprep.mubr.bf16.mxu0 %v6400_v9 }
 0xf4a   : > { %v6255_v10 = vadd.f32 %v6254_v58, %v13103_v2  ;;  %v6256_v18 = vpop.f32.mrb[195].mxu0  ;;  %6738 = vmatmul.mubr.bf16.gmra.mrb[220].mxu0 %v6399_v42  ;;  %v6323_v61 = vmax.f32 %v6251_v13, 0.0 }
 0xf4b   : > { %v6257_v8 = vadd.f32 %v6256_v18, %v13106_v35  ;;  %v6324_v1 = vmax.f32 %v6253_v63, 0.0 }
 0xf4c   : > { %v6327_v32 = vmax.f32 %v6255_v10, 0.0 }
 0xf4d   : > { %v6328_v36 = vmax.f32 %v6257_v8, 0.0 }
 0xf4e   : > { %v6403_v57 = vpack.c.bf16 %v6327_v32, %v6323_v61 }
 0xf4f   : > { %v6404_v60 = vpack.c.bf16 %v6328_v36, %v6324_v1  ;;  %v6260_v48 = vpop.f32.mrb[196].mxu0 }
 0xf50   : > { %v6261_v11 = vadd.f32 %v6260_v48, %v13103_v2  ;;  %v6262_v23 = vpop.f32.mrb[197].mxu0 }
 0xf51   : > { %v6263_v3 = vadd.f32 %v6262_v23, %v13106_v35  ;;  %v6264_v12 = vpop.f32.mrb[198].mxu0  ;;  %6745 = vmatprep.mubr.bf16.mxu0 %v6404_v60 }
 0xf52   : > { %v6265_v22 = vadd.f32 %v6264_v12, %v13103_v2  ;;  %v6266_v15 = vpop.f32.mrb[199].mxu0  ;;  %6746 = vmatmul.mubr.bf16.gmra.mrb[224].mxu0 %v6403_v57  ;;  %v6331_v24 = vmax.f32 %v6261_v11, 0.0 }
 0xf53   : > { %v6267_v62 = vadd.f32 %v6266_v15, %v13106_v35  ;;  %v6332_v44 = vmax.f32 %v6263_v3, 0.0 }
 0xf54   : > { %v6335_v41 = vmax.f32 %v6265_v22, 0.0 }
 0xf55   : > { %v6336_v54 = vmax.f32 %v6267_v62, 0.0 }
 0xf56   : > { %v6407_v4 = vpack.c.bf16 %v6335_v41, %v6331_v24 }
 0xf57   : > { %v6408_v21 = vpack.c.bf16 %v6336_v54, %v6332_v44  ;;  %v6270_v59 = vpop.f32.mrb[200].mxu0 }
 0xf58   : > { %v6271_v20 = vadd.f32 %v6270_v59, %v13103_v2  ;;  %v6272_v0 = vpop.f32.mrb[201].mxu0 }
 0xf59   : > { %v6273_v33 = vadd.f32 %v6272_v0, %v13106_v35  ;;  %v6274_v38 = vpop.f32.mrb[202].mxu0  ;;  %6753 = vmatprep.mubr.bf16.mxu0 %v6408_v21 }
 0xf5a   : > { %v6275_v7 = vadd.f32 %v6274_v38, %v13103_v2  ;;  %v6276_v46 = vpop.f32.mrb[203].mxu0  ;;  %6754 = vmatmul.mubr.bf16.gmra.mrb[228].mxu0 %v6407_v4  ;;  %v6339_v50 = vmax.f32 %v6271_v20, 0.0 }
 0xf5b   : > { %v6277_v39 = vadd.f32 %v6276_v46, %v13106_v35  ;;  %v6340_v28 = vmax.f32 %v6273_v33, 0.0 }
 0xf5c   : > { %v6343_v26 = vmax.f32 %v6275_v7, 0.0 }
 0xf5d   : > { %v6344_v6 = vmax.f32 %v6277_v39, 0.0 }
 0xf5e   : > { %v6411_v17 = vpack.c.bf16 %v6343_v26, %v6339_v50 }
 0xf5f   : > { %v6412_v34 = vpack.c.bf16 %v6344_v6, %v6340_v28  ;;  %v6280_v45 = vpop.f32.mrb[204].mxu0 }
 0xf60   : > { %v6281_v29 = vadd.f32 %v6280_v45, %v13103_v2  ;;  %v6282_v42 = vpop.f32.mrb[205].mxu0 }
 0xf61   : > { %v6283_v9 = vadd.f32 %v6282_v42, %v13106_v35  ;;  %v6284_v49 = vpop.f32.mrb[206].mxu0  ;;  %6761 = vmatprep.mubr.bf16.mxu0 %v6412_v34 }
 0xf62   : > { %v6285_v13 = vadd.f32 %v6284_v49, %v13103_v2  ;;  %v6286_v31 = vpop.f32.mrb[207].mxu0  ;;  %6762 = vmatmul.mubr.bf16.gmra.mrb[232].mxu0 %v6411_v17  ;;  %v6347_v58 = vmax.f32 %v6281_v29, 0.0  ;;  %v13159_v17 = vld [vmem:[%s13788_s14] ss:$0 sm:$0xff]  ;;  %s13229_s14 = scalar_lea.sflag [#allocation6], %s665_s5 }
 0xf63   : > { %v6287_v63 = vadd.f32 %v6286_v31, %v13106_v35  ;;  %v6348_v18 = vmax.f32 %v6283_v9, 0.0 }
 0xf64   : > { %v6351_v10 = vmax.f32 %v6285_v13, 0.0 }
 0xf65   : > { %v6352_v8 = vmax.f32 %v6287_v63, 0.0 }
 0xf66   : > { %v6415_v61 = vpack.c.bf16 %v6351_v10, %v6347_v58 }
 0xf67   : > { %v6416_v32 = vpack.c.bf16 %v6352_v8, %v6348_v18 }
 0xf69   : > { %6769 = vmatprep.mubr.bf16.mxu0 %v6416_v32 }
 0xf6a   : > { %6770 = vmatmul.mubr.bf16.gmra.mrb[236].mxu0 %v6415_v61 }
 0xfa7   : > { %v6618_v1 = vpop.f32.mrb[144].mxu1 }
 0xfa8   : > { %v6620_v36 = vpop.f32.mrb[145].mxu1  ;;  %v6619_v34 = vadd.f32 %v13159_v17, %v6618_v1 }
 0xfa9   : > { %v6621_v57 = vpop.f32.mrb[146].mxu1 }
 0xfaa   : > { %v6623_v60 = vpop.f32.mrb[147].mxu1  ;;  %v6622_v29 = vadd.f32 %v13159_v17, %v6621_v57 }
 0xfaf   : > { %v6626_v48 = vpop.f32.mrb[148].mxu1 }
 0xfb0   : > { %v6628_v11 = vpop.f32.mrb[149].mxu1  ;;  %v6627_v10 = vadd.f32 %v13159_v17, %v6626_v48 }
 0xfb1   : > { %v6629_v23 = vpop.f32.mrb[150].mxu1 }
 0xfb2   : > { %v6631_v2 = vpop.f32.mrb[151].mxu1  ;;  %v6630_v8 = vadd.f32 %v13159_v17, %v6629_v23 }
 0xfb8   : > { %v6634_v3 = vpop.f32.mrb[152].mxu1 }
 0xfb9   : > { %v6636_v12 = vpop.f32.mrb[153].mxu1 }
 0xfba   : > { %v6637_v22 = vpop.f32.mrb[154].mxu1 }
 0xfbb   : > { %v6639_v35 = vpop.f32.mrb[155].mxu1  ;;  %v6638_v11 = vadd.f32 %v13159_v17, %v6637_v22 }
 0xfc0   : > { %v6642_v15 = vpop.f32.mrb[156].mxu1 }
 0xfc1   : > { %v6644_v62 = vpop.f32.mrb[157].mxu1 }
 0xfc2   : > { %v6645_v24 = vpop.f32.mrb[158].mxu1 }
 0xfc3   : > { %v6647_v41 = vpop.f32.mrb[159].mxu1 }
 0xfe5   : > { %v13140_v44 = vpop.f32.mrb[160].mxu1 }
 0xfe6   : > { %v6652_v54 = vpop.f32.mrb[161].mxu1 }
 0xfe7   : > { %v13142_v4 = vpop.f32.mrb[162].mxu1  ;;  %v6646_v54 = vadd.f32 %v13159_v17, %v6645_v24 }
 0xfe8   : > { %v6655_v21 = vpop.f32.mrb[163].mxu1  ;;  %v6654_v24 = vadd.f32 %v13159_v17, %v13142_v4 }
 0xfed   : > { %v13144_v59 = vpop.f32.mrb[164].mxu1 }
 0xfee   : > { %v6660_v20 = vpop.f32.mrb[165].mxu1 }
 0xfef   : > { %v13146_v0 = vpop.f32.mrb[166].mxu1 }
 0xff0   : > { %v6663_v33 = vpop.f32.mrb[167].mxu1  ;;  %v6662_v4 = vadd.f32 %v13159_v17, %v13146_v0 }
 0xff5   : > { %v13148_v38 = vpop.f32.mrb[168].mxu1 }
 0xff6   : > { %v6668_v7 = vpop.f32.mrb[169].mxu1 }
 0xff7   : > { %v13150_v46 = vpop.f32.mrb[170].mxu1 }
 0xff8   : > { %v6671_v39 = vpop.f32.mrb[171].mxu1  ;;  %v6670_v0 = vadd.f32 %v13159_v17, %v13150_v46 }
 0xffd   : > { %v13152_v50 = vpop.f32.mrb[172].mxu1 }
 0xffe   : > { %v6676_v26 = vpop.f32.mrb[173].mxu1 }
 0xfff   : > { %v13154_v28 = vpop.f32.mrb[174].mxu1 }
0x1000   : > { %v6679_v6 = vpop.f32.mrb[175].mxu1 }
0x1005   : > { %v6715_v45 = vpop.f32.mrb[208].mxu0 }
0x1006   : > { %v6716_v42 = vadd.f32 %v6715_v45, %v6619_v34  ;;  %v6717_v9 = vpop.f32.mrb[209].mxu0 }
0x1007   : > { %v6718_v49 = vpop.f32.mrb[210].mxu0 }
0x1008   : > { %v6778_v13 = vadd.f32 %v6716_v42, %v12815_v53  ;;  %v6719_v31 = vadd.f32 %v6718_v49, %v6622_v29  ;;  %v6720_v63 = vpop.f32.mrb[211].mxu0 }
0x100a   : > { %6794 = vst [vmem:[%s9792_s30] sm:$0xff] %v6778_v13  ;;  %v6779_v58 = vadd.f32 %v6719_v31, %v12821_v30  ;;  %v6635_v30 = vadd.f32 %v13159_v17, %v6634_v3 }
0x100c   : > { %6795 = vst [vmem:[%s9792_s30 + $0x8] sm:$0xff] %v6779_v58 }
0x100d   : > { %v6723_v18 = vpop.f32.mrb[212].mxu0 }
0x100e   : > { %v6724_v61 = vadd.f32 %v6723_v18, %v6627_v10  ;;  %v6725_v32 = vpop.f32.mrb[213].mxu0 }
0x100f   : > { %v6726_v1 = vpop.f32.mrb[214].mxu0 }
0x1010   : > { %v6780_v36 = vadd.f32 %v6724_v61, %v12825_v51  ;;  %v6727_v57 = vadd.f32 %v6726_v1, %v6630_v8  ;;  %v6728_v53 = vpop.f32.mrb[215].mxu0  ;;  %v6678_v1 = vadd.f32 %v13159_v17, %v13154_v28 }
0x1012   : > { %6796 = vst [vmem:[%s9792_s30 + $0x10] sm:$0xff] %v6780_v36  ;;  %v6781_v60 = vadd.f32 %v6727_v57, %v12830_v16  ;;  %v6643_v16 = vadd.f32 %v13159_v17, %v6642_v15 }
0x1014   : > { %6797 = vst [vmem:[%s9792_s30 + $0x18] sm:$0xff] %v6781_v60 }
0x1015   : > { %v6731_v48 = vpop.f32.mrb[216].mxu0 }
0x1016   : > { %v6732_v2 = vadd.f32 %v6731_v48, %v6635_v30  ;;  %v6733_v23 = vpop.f32.mrb[217].mxu0 }
0x1017   : > { %v6734_v12 = vpop.f32.mrb[218].mxu0 }
0x1018   : > { %v6782_v35 = vadd.f32 %v6732_v2, %v12839_v5  ;;  %v6735_v62 = vadd.f32 %v6734_v12, %v6638_v11  ;;  %v6736_v51 = vpop.f32.mrb[219].mxu0 }
0x101a   : > { %6798 = vst [vmem:[%s9792_s30 + $0x20] sm:$0xff] %v6782_v35  ;;  %v6783_v41 = vadd.f32 %v6735_v62, %v12846_v52  ;;  %v6651_v52 = vadd.f32 %v13159_v17, %v13140_v44  ;;  %v6659_v44 = vadd.f32 %v13159_v17, %v13144_v59  ;;  %v6667_v59 = vadd.f32 %v13159_v17, %v13148_v38 }
0x101b   : > { %v6675_v38 = vadd.f32 %v13159_v17, %v13152_v50 }
0x101c   : > { %6799 = vst [vmem:[%s9792_s30 + $0x28] sm:$0xff] %v6783_v41 }
0x101d   : > { %v6739_v3 = vpop.f32.mrb[220].mxu0 }
0x101e   : > { %v6740_v21 = vadd.f32 %v6739_v3, %v6643_v16  ;;  %v6741_v22 = vpop.f32.mrb[221].mxu0 }
0x101f   : > { %v6742_v20 = vpop.f32.mrb[222].mxu0 }
0x1020   : > { %v6784_v33 = vadd.f32 %v6740_v21, %v12836_v56  ;;  %v6743_v7 = vadd.f32 %v6742_v20, %v6646_v54  ;;  %v6744_v5 = vpop.f32.mrb[223].mxu0 }
0x1022   : > { %6800 = vst [vmem:[%s9792_s30 + $0x30] sm:$0xff] %v6784_v33  ;;  %v6785_v39 = vadd.f32 %v6743_v7, %v12850_v55 }
0x1024   : > { %6801 = vst [vmem:[%s9792_s30 + $0x38] sm:$0xff] %v6785_v39 }
0x1025   : > { %v6747_v15 = vpop.f32.mrb[224].mxu0 }
0x1026   : > { %v6748_v26 = vadd.f32 %v6747_v15, %v6651_v52  ;;  %v6749_v6 = vpop.f32.mrb[225].mxu0 }
0x1027   : > { %v6750_v34 = vpop.f32.mrb[226].mxu0 }
0x1028   : > { %v6786_v56 = vadd.f32 %v6748_v26, %v12856_v47  ;;  %v6751_v45 = vadd.f32 %v6750_v34, %v6654_v24  ;;  %v6752_v29 = vpop.f32.mrb[227].mxu0 }
0x102a   : > { %6802 = vst [vmem:[%s9792_s30 + $0x40] sm:$0xff] %v6786_v56  ;;  %v6787_v55 = vadd.f32 %v6751_v45, %v12861_v25 }
0x102c   : > { %6803 = vst [vmem:[%s9792_s30 + $0x48] sm:$0xff] %v6787_v55 }
0x102d   : > { %v6755_v42 = vpop.f32.mrb[228].mxu0 }
0x102e   : > { %v6756_v9 = vadd.f32 %v6755_v42, %v6659_v44  ;;  %v6757_v49 = vpop.f32.mrb[229].mxu0 }
0x102f   : > { %v6758_v13 = vpop.f32.mrb[230].mxu0 }
0x1030   : > { %v6788_v47 = vadd.f32 %v6756_v9, %v12865_v14  ;;  %v6759_v31 = vadd.f32 %v6758_v13, %v6662_v4  ;;  %v6760_v63 = vpop.f32.mrb[231].mxu0 }
0x1032   : > { %6804 = vst [vmem:[%s9792_s30 + $0x50] sm:$0xff] %v6788_v47  ;;  %v6789_v25 = vadd.f32 %v6759_v31, %v12869_v43 }
0x1034   : > { %6805 = vst [vmem:[%s9792_s30 + $0x58] sm:$0xff] %v6789_v25 }
0x1035   : > { %v6763_v58 = vpop.f32.mrb[232].mxu0 }
0x1036   : > { %v6764_v10 = vadd.f32 %v6763_v58, %v6667_v59  ;;  %v6765_v18 = vpop.f32.mrb[233].mxu0 }
0x1037   : > { %v6766_v8 = vpop.f32.mrb[234].mxu0 }
0x1038   : > { %v6790_v14 = vadd.f32 %v6764_v10, %v12876_v40  ;;  %v6767_v61 = vadd.f32 %v6766_v8, %v6670_v0  ;;  %v6768_v32 = vpop.f32.mrb[235].mxu0 }
0x103a   : > { %6806 = vst [vmem:[%s9792_s30 + $0x60] sm:$0xff] %v6790_v14  ;;  %v6791_v43 = vadd.f32 %v6767_v61, %v12881_v37 }
0x103c   : > { %6807 = vst [vmem:[%s9792_s30 + $0x68] sm:$0xff] %v6791_v43 }
0x103d   : > { %v6771_v46 = vpop.f32.mrb[236].mxu0 }
0x103e   : > { %v6772_v40 = vadd.f32 %v6771_v46, %v6675_v38  ;;  %v6773_v36 = vpop.f32.mrb[237].mxu0 }
0x103f   : > { %v6774_v57 = vpop.f32.mrb[238].mxu0 }
0x1040   : > { %v6792_v37 = vadd.f32 %v6772_v40, %v12885_v19  ;;  %v6775_v53 = vadd.f32 %v6774_v57, %v6678_v1  ;;  %v6776_v60 = vpop.f32.mrb[239].mxu0 }
0x1042   : > { %6808 = vst [vmem:[%s9792_s30 + $0x70] sm:$0xff] %v6792_v37  ;;  %v6793_v50 = vadd.f32 %v6775_v53, %v12889_v27 }
0x1044   : > { %6809 = vst [vmem:[%s9792_s30 + $0x78] sm:$0xff] %v6793_v50 }
0x1045   : > { %9208 = shalt.err (!%p9205_p7)
}
0x1046   : > { %s9209_s5 = scalar_lea.hbm %s13220_s12, 2048  ;;  %s9213_s0 = scalar_lea.hbm %s13791_s6, 8192 }
0x1047   : > { %p9210_p2 = scmp.ne.s32.totalorder %s13220_s12, %s9209_s5  ;;  %p9214_p3 = scmp.lt.u32.totalorder %s13220_s12, %s13791_s6 }
0x1048   : > { %p9215_p8 = scmp.lt.u32.totalorder %s9213_s0, %s9209_s5  ;;  %p9217_p13 = scmp.lt.u32.totalorder %s9209_s5, %s13220_s12 }
0x1049   : > { %p9211_p4 = pnand %p9210_p2, %p13792_p6 }
0x104a   : > { %p9216_p5 = por %p9215_p8, %p9214_p3 }
0x104b   : > { %p9212_p10 = pneg %p9211_p4 }
0x104c   : > { %p9218_p9 = por %p9217_p13, %p9216_p5 }
0x104e   : > { %p9219_p11 = pnand %p9218_p9, %p9212_p10 }
0x1050   : > { %9222 = shalt.err (!%p9219_p11)
}
0x1051   : > { %s9348_s17 = smov 128   ;;  %s9349_s7 = smov 8  }
0x1052   : > { %8144 = dma.vmem_to_hbm [thread:$0]  (%p13792_p6), %s13222_s3, 2048, %s13220_s12, %s13229_s14, %s9348_s17, %s9348_s17, %s9349_s7  }
0x1053 PF: > { %s13793_s16 = sld [smem:[#allocation22_spill]]  ;;  %p8186_p12 = scmp.ge.s32.totalorder %s9329_s1, 2 }
0x1054   : > { %p13794_p1 = scmp.ne.s32.totalorder %s13431_s10, 0 }
0x1056   : > { %p8170_p0 = pnand %p8186_p12, %p13794_p1 }
0x1059   : > { %s6841_s21 = sand.u32 1, %s13793_s16  }
0x105a   : > { %s6842_s5 = scalar_lea.sflag [#allocation6], %s6841_s21 }
0x105b   : > { %9284 = dma.done.wait (!%p8170_p0), %s6842_s5, 2048  }
0x105c   : > { %9286 = vsyncadd (!%p8170_p0), %s6842_s5, 4294965248  ;;  %s36_s1 = sadd.s32 1, %s9329_s1   ;;  %s13795_s24 = smov %s9293_s25 }
0x105d   : > { %p33_p7 = scmp.ge.s32.totalorder %s36_s1, 6   ;;  %s13796_s25 = smov %s9297_s26 }
0x105e   : > { %s13797_s26 = smov %s9718_s2  ;;  %s13798_s27 = smov %s9305_s28 }
0x105f   : > { %s13799_s28 = smov %s9309_s29  ;;  %s13800_s29 = smov %s9715_s4 }
0x1060   : > { %s13801_s0 = smov %s9321_s18  ;;  %s13802_s30 = smov %s9325_s19 }
0x1061   : > { %s13803_s18 = smov %s13806_s23  ;;  %s13804_s19 = smov %s13810_s20 }
0x1062   :  { %35 = sbr.rel (!%p33_p7) target bundleno = 28 (0x1c), region = 162 }
0x1069   :  { %6847 = vsyncpa [#allocation5], 1 }
0x106a   :  { %6849 = vsyncpa [#allocation5 + $0x1], 1 }
0x106b   :  { %6850 = vsyncpa [#allocation8], 1 }
0x106c   :  { %6851 = vsyncpa [#allocation11], 1 }
0x106d   :  { %6852 = vsyncpa [#allocation14], 1 }
0x106e   :  { %6853 = vsyncpa [#allocation6], 1 }
0x106f   :  { %6855 = vsyncpa [#allocation6 + $0x1], 1 }

</bundles_post_ra>
